<compile_context>
chip_gen: v7x
topology: tpu7x:2x2x1
jax: 0.10.0
libtpu: 0.0.40
codegen_flags: <defaults>
</compile_context>

<pallas_src>
import functools

import jax
import jax.numpy as jnp
from jax.experimental import pallas as pl
from jax.experimental.pallas import tpu as pltpu


_TAPS = tuple((dh, dw) for dh in (-1, 0, 1) for dw in (-1, 0, 1))


# ----------------------------------------------------------------------------
# parameter / layout glue
# ----------------------------------------------------------------------------
def fold_bn(w, b, bn, eps=1e-5):
    """Fold eval-mode BatchNorm into conv weight/bias. w: (Cout,Cin,kh,kw)."""
    gamma, beta, mean, var = bn
    scale = gamma / jnp.sqrt(var + eps)
    w_f = w * scale[:, None, None, None]
    b_f = (b - mean) * scale + beta
    return w_f.astype(jnp.float32), b_f.astype(jnp.float32)


def _h_swish(z):
    return z * jnp.clip(z + 3.0, 0.0, 6.0) * (1.0 / 6.0)


def _sigmoid(z):
    return 1.0 / (1.0 + jnp.exp(-z))


def _smem_spec():
    return pl.BlockSpec(memory_space=pltpu.MemorySpace.SMEM)


def _vmem_limit_bytes():
    # 128 MiB physical VMEM on v5e/v6e, 64 MiB on v7x; leave headroom either way.
    try:
        cap = int(pltpu.get_tpu_info().vmem_capacity_bytes)
        return int(min(96 * 1024 * 1024, (cap * 3) // 4))
    except Exception:
        return 64 * 1024 * 1024


def _compiler_params():
    return pltpu.CompilerParams(dimension_semantics=("parallel",),
                                vmem_limit_bytes=_vmem_limit_bytes())


def _pick_block_batch(n, cap=64):
    """Largest divisor of n that is a multiple of 8 (sublane tile), <= cap and,
    when possible, leaves >= 2 grid steps (v7x dual-TensorCore)."""
    cands = [d for d in range(1, n + 1)
             if n % d == 0 and d % 8 == 0 and d <= cap]
    two_step = [d for d in cands if d <= n // 2]
    if two_step:
        return max(two_step)
    if cands:
        return max(cands)
    return n          # tiny batches: whole batch in one grid step (correct)


def _make_tap_masks(H, W):
    """(9, 1, H*W) f32 validity masks per 3x3 tap (zero-padding boundaries)."""
    hh = jnp.arange(H)[:, None]
    ww = jnp.arange(W)[None, :]
    rows = []
    for dh, dw in _TAPS:
        ok = (hh + dh >= 0) & (hh + dh < H) & (ww + dw >= 0) & (ww + dw < W)
        rows.append(ok.reshape(1, H * W))
    return jnp.concatenate(rows, axis=0).astype(jnp.float32).reshape(9, 1, H * W)


def _make_pool_mats(H, W):
    """Constant matrices for CoordAtt pooling / re-expansion on the flat axis."""
    HW = H * W
    p = jnp.arange(HW)
    hh = p // W
    ww = p % W
    pool_h = (hh[:, None] == jnp.arange(H)[None, :]).astype(jnp.float32) * (1.0 / W)
    pool_w = (ww[:, None] == jnp.arange(W)[None, :]).astype(jnp.float32) * (1.0 / H)
    expand_w = (jnp.arange(W)[:, None] == ww[None, :]).astype(jnp.float32)
    return pool_h, pool_w, expand_w


# ----------------------------------------------------------------------------
# in-kernel building blocks (lane-dense, roll-based taps)
# ----------------------------------------------------------------------------
def _roll_flat(x, off, HW):
    if off == 0:
        return x
    return pltpu.roll(x, shift=(-off) % HW, axis=1)    # shifted[p] = x[p + off]


def _conv3x3_flat(x, w_ref, bias, tap_masks, W, HW):
    """3x3 conv (1->1 ch, zero pad 1) + bias + ReLU on a (nb, H*W) value."""
    acc = None
    for k, (dh, dw) in enumerate(_TAPS):
        t = w_ref[k] * (tap_masks[k] * _roll_flat(x, dh * W + dw, HW))
        acc = t if acc is None else acc + t
    return jnp.maximum(acc + bias, 0.0)


# ----------------------------------------------------------------------------
# Stage 1: pre_conv + residual conv block + CoordAtt + squeeze  (one kernel)
# ----------------------------------------------------------------------------
def _stage1_kernel(x_ref, mask_ref, ph_ref, pw_ref, ew_ref,
                   wpre_ref, bpre_ref, wa_ref, ba_ref, wb_ref, bb_ref,
                   w1_ref, b1_ref, wch_ref, bch_ref, wcw_ref, bcw_ref,
                   x2_ref, sq_ref, *, H, W):
    nb, Cin, HW = x_ref.shape
    tap_masks = [mask_ref[k] for k in range(9)]         # each (1, HW)

    # pre_conv: 1x1 (Cin -> 1) + folded BN + ReLU
    acc = wpre_ref[0] * x_ref[:, 0, :]
    for c in range(1, Cin):
        acc = acc + wpre_ref[c] * x_ref[:, c, :]
    x1 = jnp.maximum(acc + bpre_ref[0], 0.0)             # (nb, HW)

    # x2 = x1 + relu(conv_b(relu(conv_a(x1))))  (two 3x3 convs, folded BN)
    y = _conv3x3_flat(x1, wa_ref, ba_ref[0], tap_masks, W, HW)
    y = _conv3x3_flat(y, wb_ref, bb_ref[0], tap_masks, W, HW)
    x2 = x1 + y
    x2_ref[...] = x2

    # CoordAtt(1,1): W-/H-pooling via small constant matmuls (MXU), 8-ch 1x1
    # MLP (+h_swish), per-path 1x1 conv, sigmoid gates.
    ph = ph_ref[...]                                      # (HW, H)
    xh = jnp.dot(x2, ph, preferred_element_type=jnp.float32)            # (nb,H)
    xw = jnp.dot(x2, pw_ref[...], preferred_element_type=jnp.float32)   # (nb,W)
    ah = None
    aw = None
    for m in range(8):
        zh = _h_swish(w1_ref[m] * xh + b1_ref[m])
        zw = _h_swish(w1_ref[m] * xw + b1_ref[m])
        th = wch_ref[m] * zh
        tw = wcw_ref[m] * zw
        ah = th if ah is None else ah + th
        aw = tw if aw is None else aw + tw
    a_h = _sigmoid(ah + bch_ref[0])                       # (nb, H)
    a_w = _sigmoid(aw + bcw_ref[0])                       # (nb, W)

    # squeeze = global mean of (x2 * a_h * a_w)   (.detach() is a no-op fwd)
    a_w_full = jnp.dot(a_w, ew_ref[...], preferred_element_type=jnp.float32)   # (nb,HW)
    row = jnp.dot(x2 * a_w_full, ph, preferred_element_type=jnp.float32)       # (nb,H)
    sq_ref[...] = jnp.sum(row * a_h, axis=1, keepdims=True) * (1.0 / H)


def stage1_fused(xf, masks, pool_h, pool_w, expand_w,
                 wpre, bpre, wa, ba, wb, bb, w1, b1, wch, bch, wcw, bcw,
                 *, nb, H, W):
    N, Cin, HW = xf.shape
    grid = (N // nb,)
    kern = functools.partial(_stage1_kernel, H=H, W=W)
    cost = pl.CostEstimate(
        flops=int(N * HW * (2 * Cin + 56 + 2 * (H + W)) + N * (H + W) * 64),
        transcendentals=int(N * (H + W)),
        bytes_accessed=int(4 * (N * Cin * HW + N * HW + N
                                + 9 * HW + HW * (H + W) + W * HW)))
    return pl.pallas_call(
        kern,
        out_shape=(jax.ShapeDtypeStruct((N, HW), jnp.float32),
                   jax.ShapeDtypeStruct((N, 1), jnp.float32)),
        grid=grid,
        in_specs=[
            pl.BlockSpec((nb, Cin, HW), lambda n: (n, 0, 0)),
            pl.BlockSpec((9, 1, HW), lambda n: (0, 0, 0)),
            pl.BlockSpec((HW, H), lambda n: (0, 0)),
            pl.BlockSpec((HW, W), lambda n: (0, 0)),
            pl.BlockSpec((W, HW), lambda n: (0, 0)),
        ] + [_smem_spec()] * 12,
        out_specs=(pl.BlockSpec((nb, HW), lambda n: (n, 0)),
                   pl.BlockSpec((nb, 1), lambda n: (n, 0))),
        compiler_params=_compiler_params(),
        cost_estimate=cost,
    )(xf, masks, pool_h, pool_w, expand_w,
      wpre, bpre, wa, ba, wb, bb, w1, b1, wch, bch, wcw, bcw)


# ----------------------------------------------------------------------------
# Stage 2: clamp + both post 3x3 convs   (one fused kernel)
# ----------------------------------------------------------------------------
def _stage2_kernel(x2_ref, mask_ref, hi_ref, wp1_ref, bp1_ref, wp2_ref, bp2_ref,
                   out_ref, *, W):
    nb, HW = x2_ref.shape
    Cout = out_ref.shape[1]
    tap_masks = [mask_ref[k] for k in range(9)]           # each (1, HW)

    # clamp(x2, 1e-6, hi); hi is the batch-wide threshold scalar (SMEM)
    xc = jnp.minimum(jnp.maximum(x2_ref[...], 1e-6), hi_ref[0])

    # masked shifted copies of xc, shared across all Cout outputs of conv 1
    x_taps = [tap_masks[k] * _roll_flat(xc, dh * W + dw, HW)
              for k, (dh, dw) in enumerate(_TAPS)]

    # post conv 1: 3x3 (1 -> Cout) + folded BN + ReLU
    mids = []
    for o in range(Cout):
        acc = None
        for k in range(9):
            t = wp1_ref[o * 9 + k] * x_taps[k]
            acc = t if acc is None else acc + t
        mids.append(jnp.maximum(acc + bp1_ref[o], 0.0))

    # post conv 2: 3x3 (Cout -> Cout) + folded BN + ReLU.  Input-channel taps
    # are built once per channel and shared across all output channels.
    accs = [None] * Cout
    for c in range(Cout):
        ch_taps = [tap_masks[k] * _roll_flat(mids[c], dh * W + dw, HW)
                   for k, (dh, dw) in enumerate(_TAPS)]
        for o in range(Cout):
            base = (o * Cout + c) * 9
            part = None
            for k in range(9):
                t = wp2_ref[base + k] * ch_taps[k]
                part = t if part is None else part + t
            accs[o] = part if accs[o] is None else accs[o] + part
    for o in range(Cout):
        out_ref[:, o, :] = jnp.maximum(accs[o] + bp2_ref[o], 0.0)


def stage2_fused(x2, masks, hi, wp1, bp1, wp2, bp2, *, nb, out_ch, W):
    N, HW = x2.shape
    grid = (N // nb,)
    kern = functools.partial(_stage2_kernel, W=W)
    cost = pl.CostEstimate(
        flops=int(N * HW * (2 + 27 * out_ch + 27 * out_ch * out_ch)),
        transcendentals=0,
        bytes_accessed=int(4 * (N * HW + N * out_ch * HW + 9 * HW)))
    return pl.pallas_call(
        kern,
        out_shape=jax.ShapeDtypeStruct((N, out_ch, HW), jnp.float32),
        grid=grid,
        in_specs=[
            pl.BlockSpec((nb, HW), lambda n: (n, 0)),
            pl.BlockSpec((9, 1, HW), lambda n: (0, 0, 0)),
        ] + [_smem_spec()] * 5,
        out_specs=pl.BlockSpec((nb, out_ch, HW), lambda n: (n, 0, 0)),
        compiler_params=_compiler_params(),
        cost_estimate=cost,
    )(x2, masks, hi, wp1, bp1, wp2, bp2)


# ----------------------------------------------------------------------------
# WindowTrunction forward (two fused Pallas kernels + scalar JAX glue)
# ----------------------------------------------------------------------------
def window_trunction_forward(x, p):
    N, Cin, H, W = x.shape
    HW = H * W
    nb = _pick_block_batch(N)
    assert N % nb == 0, "batch block must evenly divide N (no dropped tail)"

    xf = x.reshape(N, Cin, HW)              # lane-dense layout; free HBM reshape
    masks = _make_tap_masks(H, W)
    pool_h, pool_w, expand_w = _make_pool_mats(H, W)

    wpre, bpre = fold_bn(p['pre_w'], p['pre_b'], p['pre_bn'])
    wa, ba = fold_bn(p['ca_w'], p['ca_b'], p['ca_bn'])
    wb, bb = fold_bn(p['cb_w'], p['cb_b'], p['cb_bn'])
    w1, b1 = fold_bn(p['att_c1_w'], p['att_c1_b'], p['att_bn'])

    x2, squeeze = stage1_fused(
        xf, masks, pool_h, pool_w, expand_w,
        wpre.reshape(-1), bpre.reshape(-1),
        wa.reshape(-1), ba.reshape(-1),
        wb.reshape(-1), bb.reshape(-1),
        w1[:, 0, 0, 0], b1.reshape(-1),
        p['att_ch_w'][0, :, 0, 0].astype(jnp.float32),
        p['att_ch_b'].reshape(-1).astype(jnp.float32),
        p['att_cw_w'][0, :, 0, 0].astype(jnp.float32),
        p['att_cw_b'].reshape(-1).astype(jnp.float32),
        nb=nb, H=H, W=W)

    # threshold: Linear(1,1)->ReLU->Linear(1,1)->Sigmoid, then batch mean -> hi
    # (scalar-sized and inherently batch-wide -> tiny JAX glue between kernels)
    sq = squeeze[:, 0]
    t = jnp.maximum(sq * p['th1_w'][0, 0] + p['th1_b'][0], 0.0)
    t = jax.nn.sigmoid(t * p['th2_w'][0, 0] + p['th2_b'][0])
    hi = jnp.mean(t).reshape(1).astype(jnp.float32)

    wp1, bp1 = fold_bn(p['post1_w'], p['post1_b'], p['post1_bn'])
    wp2, bp2 = fold_bn(p['post2_w'], p['post2_b'], p['post2_bn'])
    out_ch = int(p['post1_w'].shape[0])

    out = stage2_fused(x2, masks, hi,
                       wp1.reshape(-1), bp1.reshape(-1),
                       wp2.reshape(-1), bp2.reshape(-1),
                       nb=nb, out_ch=out_ch, W=W)
    return out.reshape(N, out_ch, H, W)


# ----------------------------------------------------------------------------
# pure-JAX reference (correctness check of the kernel path)
# ----------------------------------------------------------------------------
def _conv2d(x, w, b, pad):
    y = jax.lax.conv_general_dilated(
        x, w, (1, 1), ((pad, pad), (pad, pad)),
        dimension_numbers=('NCHW', 'OIHW', 'NCHW'))
    return y + b[None, :, None, None]


def reference_forward(x, p):
    w, b = fold_bn(p['pre_w'], p['pre_b'], p['pre_bn'])
    x1 = jnp.maximum(_conv2d(x, w, b, 0), 0.0)
    wa, ba = fold_bn(p['ca_w'], p['ca_b'], p['ca_bn'])
    wb, bb = fold_bn(p['cb_w'], p['cb_b'], p['cb_bn'])
    y = jnp.maximum(_conv2d(x1, wa, ba, 1), 0.0)
    y = jnp.maximum(_conv2d(y, wb, bb, 1), 0.0)
    x2 = x1 + y
    N, _, H, W = x2.shape
    xh = jnp.mean(x2, axis=3, keepdims=True)
    xw = jnp.mean(x2, axis=2, keepdims=True)
    yc = jnp.concatenate([xh, jnp.transpose(xw, (0, 1, 3, 2))], axis=2)
    w1, b1 = fold_bn(p['att_c1_w'], p['att_c1_b'], p['att_bn'])
    yc = _h_swish(_conv2d(yc, w1, b1, 0))
    zh, zw = yc[:, :, :H, :], jnp.transpose(yc[:, :, H:, :], (0, 1, 3, 2))
    a_h = jax.nn.sigmoid(_conv2d(zh, p['att_ch_w'], p['att_ch_b'], 0))
    a_w = jax.nn.sigmoid(_conv2d(zw, p['att_cw_w'], p['att_cw_b'], 0))
    att = x2 * a_w * a_h
    squeeze = jnp.mean(att, axis=(2, 3), keepdims=True)
    t = jnp.maximum(squeeze * p['th1_w'][0, 0] + p['th1_b'][0], 0.0)
    t = jax.nn.sigmoid(t * p['th2_w'][0, 0] + p['th2_b'][0])
    hi = jnp.mean(t)
    xc = jnp.clip(x2, jnp.float32(1e-6), hi)
    wp1, bp1 = fold_bn(p['post1_w'], p['post1_b'], p['post1_bn'])
    wp2, bp2 = fold_bn(p['post2_w'], p['post2_b'], p['post2_bn'])
    z = jnp.maximum(_conv2d(xc, wp1, bp1, 1), 0.0)
    z = jnp.maximum(_conv2d(z, wp2, bp2, 1), 0.0)
    return z


# ----------------------------------------------------------------------------
# deterministic parameter init (shapes from WindowTrunction.__init__)
# ----------------------------------------------------------------------------
def init_params(key, in_ch, out_ch):
    it = iter(jax.random.split(key, 64))

    def nrm(shape, scale=0.3):
        return scale * jax.random.normal(next(it), shape, dtype=jnp.float32)

    def bn_params(c):
        gamma = 1.0 + 0.1 * jax.random.normal(next(it), (c,), dtype=jnp.float32)
        beta = 0.1 * jax.random.normal(next(it), (c,), dtype=jnp.float32)
        mean = 0.1 * jax.random.normal(next(it), (c,), dtype=jnp.float32)
        var = 0.5 + jax.random.uniform(next(it), (c,), dtype=jnp.float32)
        return (gamma, beta, mean, var)

    p = {}
    p['pre_w'], p['pre_b'], p['pre_bn'] = nrm((1, in_ch, 1, 1)), nrm((1,)), bn_params(1)
    p['ca_w'], p['ca_b'], p['ca_bn'] = nrm((1, 1, 3, 3)), nrm((1,)), bn_params(1)
    p['cb_w'], p['cb_b'], p['cb_bn'] = nrm((1, 1, 3, 3)), nrm((1,)), bn_params(1)
    # CoordAtt(1, 1): mip = max(8, 1 // 1) = 8
    p['att_c1_w'], p['att_c1_b'], p['att_bn'] = nrm((8, 1, 1, 1)), nrm((8,)), bn_params(8)
    p['att_ch_w'], p['att_ch_b'] = nrm((1, 8, 1, 1)), nrm((1,))
    p['att_cw_w'], p['att_cw_b'] = nrm((1, 8, 1, 1)), nrm((1,))
    p['th1_w'], p['th1_b'] = nrm((1, 1)), nrm((1,))
    p['th2_w'], p['th2_b'] = nrm((1, 1)), nrm((1,))
    # TODO(synk): threshold_linear is defined in __init__ but never used in forward; omitted.
    p['post1_w'], p['post1_b'], p['post1_bn'] = nrm((out_ch, 1, 3, 3)), nrm((out_ch,)), bn_params(out_ch)
    p['post2_w'], p['post2_b'], p['post2_bn'] = nrm((out_ch, out_ch, 3, 3)), nrm((out_ch,)), bn_params(out_ch)
    return p


if __name__ == "__main__":
    in_ch, out_ch = 4, 4
    N, H, W = 2, 16, 16

    key = jax.random.PRNGKey(0)
    kx, kp = jax.random.split(key)
    x = jax.random.normal(kx, (N, in_ch, H, W), dtype=jnp.float32)
    params = init_params(kp, in_ch, out_ch)

    fwd = jax.jit(window_trunction_forward)
    out = jax.block_until_ready(fwd(x, params))

    ref = reference_forward(x, params)
    assert out.shape == (N, out_ch, H, W), out.shape
    max_err = float(jnp.max(jnp.abs(out - ref)))
    if max_err < 1e-3:
        print("KERNEL_OK")
    else:
        print(f"MISMATCH max_err={max_err}")
</pallas_src>

<mosaic_0001>
module attributes {stable_mosaic.version = 11 : i64} {
  func.func @_stage1_kernel(%arg0: i32, %arg1: memref<2x4x256xf32, #tpu.memory_space<vmem>>, %arg2: memref<9x1x256xf32, #tpu.memory_space<vmem>>, %arg3: memref<256x16xf32, #tpu.memory_space<vmem>>, %arg4: memref<256x16xf32, #tpu.memory_space<vmem>>, %arg5: memref<16x256xf32, #tpu.memory_space<vmem>>, %arg6: memref<4xf32, #tpu.memory_space<smem>>, %arg7: memref<1xf32, #tpu.memory_space<smem>>, %arg8: memref<9xf32, #tpu.memory_space<smem>>, %arg9: memref<1xf32, #tpu.memory_space<smem>>, %arg10: memref<9xf32, #tpu.memory_space<smem>>, %arg11: memref<1xf32, #tpu.memory_space<smem>>, %arg12: memref<8xf32, #tpu.memory_space<smem>>, %arg13: memref<8xf32, #tpu.memory_space<smem>>, %arg14: memref<8xf32, #tpu.memory_space<smem>>, %arg15: memref<1xf32, #tpu.memory_space<smem>>, %arg16: memref<8xf32, #tpu.memory_space<smem>>, %arg17: memref<1xf32, #tpu.memory_space<smem>>, %arg18: memref<2x256xf32, #tpu.memory_space<vmem>>, %arg19: memref<2x1xf32, #tpu.memory_space<vmem>>) attributes {dimension_semantics = [#tpu.dimension_semantics<parallel>], iteration_bounds = array<i64: 1>, scalar_prefetch = 0 : i64, scratch_operands = 0 : i64, tpu.core_type = #tpu.core_type<tc>, window_params = [{transform_indices = @transform_0, window_bounds = array<i64: 2, 4, 256>}, {pipeline_mode = #tpu.pipeline_mode<synchronous>, transform_indices = @transform_1, window_bounds = array<i64: 9, 1, 256>}, {pipeline_mode = #tpu.pipeline_mode<synchronous>, transform_indices = @transform_2, window_bounds = array<i64: 256, 16>}, {pipeline_mode = #tpu.pipeline_mode<synchronous>, transform_indices = @transform_3, window_bounds = array<i64: 256, 16>}, {pipeline_mode = #tpu.pipeline_mode<synchronous>, transform_indices = @transform_4, window_bounds = array<i64: 16, 256>}, {transform_indices = @transform_5, window_bounds = array<i64: 4>}, {transform_indices = @transform_6, window_bounds = array<i64: 1>}, {transform_indices = @transform_7, window_bounds = array<i64: 9>}, {transform_indices = @transform_8, window_bounds = array<i64: 1>}, {transform_indices = @transform_9, window_bounds = array<i64: 9>}, {transform_indices = @transform_10, window_bounds = array<i64: 1>}, {transform_indices = @transform_11, window_bounds = array<i64: 8>}, {transform_indices = @transform_12, window_bounds = array<i64: 8>}, {transform_indices = @transform_13, window_bounds = array<i64: 8>}, {transform_indices = @transform_14, window_bounds = array<i64: 1>}, {transform_indices = @transform_15, window_bounds = array<i64: 8>}, {transform_indices = @transform_16, window_bounds = array<i64: 1>}, {transform_indices = @transform_17, window_bounds = array<i64: 2, 256>}, {transform_indices = @transform_18, window_bounds = array<i64: 2, 1>}]} {
    %c0 = arith.constant 0 : index
    %c0_0 = arith.constant 0 : index
    %c0_1 = arith.constant 0 : index
    %0 = vector.load %arg2[%c0, %c0_0, %c0_1] : memref<9x1x256xf32, #tpu.memory_space<vmem>>, vector<1x1x256xf32>
    %1 = vector.shape_cast %0 : vector<1x1x256xf32> to vector<1x256xf32>
    %c1 = arith.constant 1 : index
    %c0_2 = arith.constant 0 : index
    %c0_3 = arith.constant 0 : index
    %2 = vector.load %arg2[%c1, %c0_2, %c0_3] : memref<9x1x256xf32, #tpu.memory_space<vmem>>, vector<1x1x256xf32>
    %3 = vector.shape_cast %2 : vector<1x1x256xf32> to vector<1x256xf32>
    %c2 = arith.constant 2 : index
    %c0_4 = arith.constant 0 : index
    %c0_5 = arith.constant 0 : index
    %4 = vector.load %arg2[%c2, %c0_4, %c0_5] : memref<9x1x256xf32, #tpu.memory_space<vmem>>, vector<1x1x256xf32>
    %5 = vector.shape_cast %4 : vector<1x1x256xf32> to vector<1x256xf32>
    %c3 = arith.constant 3 : index
    %c0_6 = arith.constant 0 : index
    %c0_7 = arith.constant 0 : index
    %6 = vector.load %arg2[%c3, %c0_6, %c0_7] : memref<9x1x256xf32, #tpu.memory_space<vmem>>, vector<1x1x256xf32>
    %7 = vector.shape_cast %6 : vector<1x1x256xf32> to vector<1x256xf32>
    %c4 = arith.constant 4 : index
    %c0_8 = arith.constant 0 : index
    %c0_9 = arith.constant 0 : index
    %8 = vector.load %arg2[%c4, %c0_8, %c0_9] : memref<9x1x256xf32, #tpu.memory_space<vmem>>, vector<1x1x256xf32>
    %9 = vector.shape_cast %8 : vector<1x1x256xf32> to vector<1x256xf32>
    %c5 = arith.constant 5 : index
    %c0_10 = arith.constant 0 : index
    %c0_11 = arith.constant 0 : index
    %10 = vector.load %arg2[%c5, %c0_10, %c0_11] : memref<9x1x256xf32, #tpu.memory_space<vmem>>, vector<1x1x256xf32>
    %11 = vector.shape_cast %10 : vector<1x1x256xf32> to vector<1x256xf32>
    %c6 = arith.constant 6 : index
    %c0_12 = arith.constant 0 : index
    %c0_13 = arith.constant 0 : index
    %12 = vector.load %arg2[%c6, %c0_12, %c0_13] : memref<9x1x256xf32, #tpu.memory_space<vmem>>, vector<1x1x256xf32>
    %13 = vector.shape_cast %12 : vector<1x1x256xf32> to vector<1x256xf32>
    %c7 = arith.constant 7 : index
    %c0_14 = arith.constant 0 : index
    %c0_15 = arith.constant 0 : index
    %14 = vector.load %arg2[%c7, %c0_14, %c0_15] : memref<9x1x256xf32, #tpu.memory_space<vmem>>, vector<1x1x256xf32>
    %15 = vector.shape_cast %14 : vector<1x1x256xf32> to vector<1x256xf32>
    %c8 = arith.constant 8 : index
    %c0_16 = arith.constant 0 : index
    %c0_17 = arith.constant 0 : index
    %16 = vector.load %arg2[%c8, %c0_16, %c0_17] : memref<9x1x256xf32, #tpu.memory_space<vmem>>, vector<1x1x256xf32>
    %17 = vector.shape_cast %16 : vector<1x1x256xf32> to vector<1x256xf32>
    %c0_18 = arith.constant 0 : index
    %18 = memref.load %arg6[%c0_18] : memref<4xf32, #tpu.memory_space<smem>>
    %c0_19 = arith.constant 0 : index
    %c0_20 = arith.constant 0 : index
    %c0_21 = arith.constant 0 : index
    %19 = vector.load %arg1[%c0_19, %c0_20, %c0_21] : memref<2x4x256xf32, #tpu.memory_space<vmem>>, vector<2x1x256xf32>
    %20 = vector.shape_cast %19 : vector<2x1x256xf32> to vector<2x256xf32>
    %21 = vector.broadcast %18 : f32 to vector<2x256xf32>
    %22 = arith.mulf %21, %20 : vector<2x256xf32>
    %c1_22 = arith.constant 1 : index
    %23 = memref.load %arg6[%c1_22] : memref<4xf32, #tpu.memory_space<smem>>
    %c0_23 = arith.constant 0 : index
    %c1_24 = arith.constant 1 : index
    %c0_25 = arith.constant 0 : index
    %24 = vector.load %arg1[%c0_23, %c1_24, %c0_25] : memref<2x4x256xf32, #tpu.memory_space<vmem>>, vector<2x1x256xf32>
    %25 = vector.shape_cast %24 : vector<2x1x256xf32> to vector<2x256xf32>
    %26 = vector.broadcast %23 : f32 to vector<2x256xf32>
    %27 = arith.mulf %26, %25 : vector<2x256xf32>
    %28 = arith.addf %22, %27 : vector<2x256xf32>
    %c2_26 = arith.constant 2 : index
    %29 = memref.load %arg6[%c2_26] : memref<4xf32, #tpu.memory_space<smem>>
    %c0_27 = arith.constant 0 : index
    %c2_28 = arith.constant 2 : index
    %c0_29 = arith.constant 0 : index
    %30 = vector.load %arg1[%c0_27, %c2_28, %c0_29] : memref<2x4x256xf32, #tpu.memory_space<vmem>>, vector<2x1x256xf32>
    %31 = vector.shape_cast %30 : vector<2x1x256xf32> to vector<2x256xf32>
    %32 = vector.broadcast %29 : f32 to vector<2x256xf32>
    %33 = arith.mulf %32, %31 : vector<2x256xf32>
    %34 = arith.addf %28, %33 : vector<2x256xf32>
    %c3_30 = arith.constant 3 : index
    %35 = memref.load %arg6[%c3_30] : memref<4xf32, #tpu.memory_space<smem>>
    %c0_31 = arith.constant 0 : index
    %c3_32 = arith.constant 3 : index
    %c0_33 = arith.constant 0 : index
    %36 = vector.load %arg1[%c0_31, %c3_32, %c0_33] : memref<2x4x256xf32, #tpu.memory_space<vmem>>, vector<2x1x256xf32>
    %37 = vector.shape_cast %36 : vector<2x1x256xf32> to vector<2x256xf32>
    %38 = vector.broadcast %35 : f32 to vector<2x256xf32>
    %39 = arith.mulf %38, %37 : vector<2x256xf32>
    %40 = arith.addf %34, %39 : vector<2x256xf32>
    %c0_34 = arith.constant 0 : index
    %41 = memref.load %arg7[%c0_34] : memref<1xf32, #tpu.memory_space<smem>>
    %42 = vector.broadcast %41 : f32 to vector<2x256xf32>
    %43 = arith.addf %40, %42 : vector<2x256xf32>
    %cst = arith.constant 0.000000e+00 : f32
    %44 = vector.broadcast %cst : f32 to vector<2x256xf32>
    %45 = arith.maximumf %43, %44 : vector<2x256xf32>
    %c0_35 = arith.constant 0 : index
    %46 = memref.load %arg9[%c0_35] : memref<1xf32, #tpu.memory_space<smem>>
    %c0_36 = arith.constant 0 : index
    %47 = memref.load %arg8[%c0_36] : memref<9xf32, #tpu.memory_space<smem>>
    %c17_i32 = arith.constant 17 : i32
    %48 = tpu.dynamic_rotate %45 by %c17_i32 dim 1 : vector<2x256xf32>, i32 -> vector<2x256xf32>
    %49 = vector.broadcast %1 : vector<1x256xf32> to vector<2x256xf32>
    %50 = arith.mulf %49, %48 : vector<2x256xf32>
    %51 = vector.broadcast %47 : f32 to vector<2x256xf32>
    %52 = arith.mulf %51, %50 : vector<2x256xf32>
    %c1_37 = arith.constant 1 : index
    %53 = memref.load %arg8[%c1_37] : memref<9xf32, #tpu.memory_space<smem>>
    %c16_i32 = arith.constant 16 : i32
    %54 = tpu.dynamic_rotate %45 by %c16_i32 dim 1 : vector<2x256xf32>, i32 -> vector<2x256xf32>
    %55 = vector.broadcast %3 : vector<1x256xf32> to vector<2x256xf32>
    %56 = arith.mulf %55, %54 : vector<2x256xf32>
    %57 = vector.broadcast %53 : f32 to vector<2x256xf32>
    %58 = arith.mulf %57, %56 : vector<2x256xf32>
    %59 = arith.addf %52, %58 : vector<2x256xf32>
    %c2_38 = arith.constant 2 : index
    %60 = memref.load %arg8[%c2_38] : memref<9xf32, #tpu.memory_space<smem>>
    %c15_i32 = arith.constant 15 : i32
    %61 = tpu.dynamic_rotate %45 by %c15_i32 dim 1 : vector<2x256xf32>, i32 -> vector<2x256xf32>
    %62 = vector.broadcast %5 : vector<1x256xf32> to vector<2x256xf32>
    %63 = arith.mulf %62, %61 : vector<2x256xf32>
    %64 = vector.broadcast %60 : f32 to vector<2x256xf32>
    %65 = arith.mulf %64, %63 : vector<2x256xf32>
    %66 = arith.addf %59, %65 : vector<2x256xf32>
    %c3_39 = arith.constant 3 : index
    %67 = memref.load %arg8[%c3_39] : memref<9xf32, #tpu.memory_space<smem>>
    %c1_i32 = arith.constant 1 : i32
    %68 = tpu.dynamic_rotate %45 by %c1_i32 dim 1 : vector<2x256xf32>, i32 -> vector<2x256xf32>
    %69 = vector.broadcast %7 : vector<1x256xf32> to vector<2x256xf32>
    %70 = arith.mulf %69, %68 : vector<2x256xf32>
    %71 = vector.broadcast %67 : f32 to vector<2x256xf32>
    %72 = arith.mulf %71, %70 : vector<2x256xf32>
    %73 = arith.addf %66, %72 : vector<2x256xf32>
    %c4_40 = arith.constant 4 : index
    %74 = memref.load %arg8[%c4_40] : memref<9xf32, #tpu.memory_space<smem>>
    %75 = vector.broadcast %9 : vector<1x256xf32> to vector<2x256xf32>
    %76 = arith.mulf %75, %45 : vector<2x256xf32>
    %77 = vector.broadcast %74 : f32 to vector<2x256xf32>
    %78 = arith.mulf %77, %76 : vector<2x256xf32>
    %79 = arith.addf %73, %78 : vector<2x256xf32>
    %c5_41 = arith.constant 5 : index
    %80 = memref.load %arg8[%c5_41] : memref<9xf32, #tpu.memory_space<smem>>
    %c255_i32 = arith.constant 255 : i32
    %81 = tpu.dynamic_rotate %45 by %c255_i32 dim 1 : vector<2x256xf32>, i32 -> vector<2x256xf32>
    %82 = vector.broadcast %11 : vector<1x256xf32> to vector<2x256xf32>
    %83 = arith.mulf %82, %81 : vector<2x256xf32>
    %84 = vector.broadcast %80 : f32 to vector<2x256xf32>
    %85 = arith.mulf %84, %83 : vector<2x256xf32>
    %86 = arith.addf %79, %85 : vector<2x256xf32>
    %c6_42 = arith.constant 6 : index
    %87 = memref.load %arg8[%c6_42] : memref<9xf32, #tpu.memory_space<smem>>
    %c241_i32 = arith.constant 241 : i32
    %88 = tpu.dynamic_rotate %45 by %c241_i32 dim 1 : vector<2x256xf32>, i32 -> vector<2x256xf32>
    %89 = vector.broadcast %13 : vector<1x256xf32> to vector<2x256xf32>
    %90 = arith.mulf %89, %88 : vector<2x256xf32>
    %91 = vector.broadcast %87 : f32 to vector<2x256xf32>
    %92 = arith.mulf %91, %90 : vector<2x256xf32>
    %93 = arith.addf %86, %92 : vector<2x256xf32>
    %c7_43 = arith.constant 7 : index
    %94 = memref.load %arg8[%c7_43] : memref<9xf32, #tpu.memory_space<smem>>
    %c240_i32 = arith.constant 240 : i32
    %95 = tpu.dynamic_rotate %45 by %c240_i32 dim 1 : vector<2x256xf32>, i32 -> vector<2x256xf32>
    %96 = vector.broadcast %15 : vector<1x256xf32> to vector<2x256xf32>
    %97 = arith.mulf %96, %95 : vector<2x256xf32>
    %98 = vector.broadcast %94 : f32 to vector<2x256xf32>
    %99 = arith.mulf %98, %97 : vector<2x256xf32>
    %100 = arith.addf %93, %99 : vector<2x256xf32>
    %c8_44 = arith.constant 8 : index
    %101 = memref.load %arg8[%c8_44] : memref<9xf32, #tpu.memory_space<smem>>
    %c239_i32 = arith.constant 239 : i32
    %102 = tpu.dynamic_rotate %45 by %c239_i32 dim 1 : vector<2x256xf32>, i32 -> vector<2x256xf32>
    %103 = vector.broadcast %17 : vector<1x256xf32> to vector<2x256xf32>
    %104 = arith.mulf %103, %102 : vector<2x256xf32>
    %105 = vector.broadcast %101 : f32 to vector<2x256xf32>
    %106 = arith.mulf %105, %104 : vector<2x256xf32>
    %107 = arith.addf %100, %106 : vector<2x256xf32>
    %108 = vector.broadcast %46 : f32 to vector<2x256xf32>
    %109 = arith.addf %107, %108 : vector<2x256xf32>
    %cst_45 = arith.constant 0.000000e+00 : f32
    %110 = vector.broadcast %cst_45 : f32 to vector<2x256xf32>
    %111 = arith.maximumf %109, %110 : vector<2x256xf32>
    %c0_46 = arith.constant 0 : index
    %112 = memref.load %arg11[%c0_46] : memref<1xf32, #tpu.memory_space<smem>>
    %c0_47 = arith.constant 0 : index
    %113 = memref.load %arg10[%c0_47] : memref<9xf32, #tpu.memory_space<smem>>
    %c17_i32_48 = arith.constant 17 : i32
    %114 = tpu.dynamic_rotate %111 by %c17_i32_48 dim 1 : vector<2x256xf32>, i32 -> vector<2x256xf32>
    %115 = vector.broadcast %1 : vector<1x256xf32> to vector<2x256xf32>
    %116 = arith.mulf %115, %114 : vector<2x256xf32>
    %117 = vector.broadcast %113 : f32 to vector<2x256xf32>
    %118 = arith.mulf %117, %116 : vector<2x256xf32>
    %c1_49 = arith.constant 1 : index
    %119 = memref.load %arg10[%c1_49] : memref<9xf32, #tpu.memory_space<smem>>
    %c16_i32_50 = arith.constant 16 : i32
    %120 = tpu.dynamic_rotate %111 by %c16_i32_50 dim 1 : vector<2x256xf32>, i32 -> vector<2x256xf32>
    %121 = vector.broadcast %3 : vector<1x256xf32> to vector<2x256xf32>
    %122 = arith.mulf %121, %120 : vector<2x256xf32>
    %123 = vector.broadcast %119 : f32 to vector<2x256xf32>
    %124 = arith.mulf %123, %122 : vector<2x256xf32>
    %125 = arith.addf %118, %124 : vector<2x256xf32>
    %c2_51 = arith.constant 2 : index
    %126 = memref.load %arg10[%c2_51] : memref<9xf32, #tpu.memory_space<smem>>
    %c15_i32_52 = arith.constant 15 : i32
    %127 = tpu.dynamic_rotate %111 by %c15_i32_52 dim 1 : vector<2x256xf32>, i32 -> vector<2x256xf32>
    %128 = vector.broadcast %5 : vector<1x256xf32> to vector<2x256xf32>
    %129 = arith.mulf %128, %127 : vector<2x256xf32>
    %130 = vector.broadcast %126 : f32 to vector<2x256xf32>
    %131 = arith.mulf %130, %129 : vector<2x256xf32>
    %132 = arith.addf %125, %131 : vector<2x256xf32>
    %c3_53 = arith.constant 3 : index
    %133 = memref.load %arg10[%c3_53] : memref<9xf32, #tpu.memory_space<smem>>
    %c1_i32_54 = arith.constant 1 : i32
    %134 = tpu.dynamic_rotate %111 by %c1_i32_54 dim 1 : vector<2x256xf32>, i32 -> vector<2x256xf32>
    %135 = vector.broadcast %7 : vector<1x256xf32> to vector<2x256xf32>
    %136 = arith.mulf %135, %134 : vector<2x256xf32>
    %137 = vector.broadcast %133 : f32 to vector<2x256xf32>
    %138 = arith.mulf %137, %136 : vector<2x256xf32>
    %139 = arith.addf %132, %138 : vector<2x256xf32>
    %c4_55 = arith.constant 4 : index
    %140 = memref.load %arg10[%c4_55] : memref<9xf32, #tpu.memory_space<smem>>
    %141 = vector.broadcast %9 : vector<1x256xf32> to vector<2x256xf32>
    %142 = arith.mulf %141, %111 : vector<2x256xf32>
    %143 = vector.broadcast %140 : f32 to vector<2x256xf32>
    %144 = arith.mulf %143, %142 : vector<2x256xf32>
    %145 = arith.addf %139, %144 : vector<2x256xf32>
    %c5_56 = arith.constant 5 : index
    %146 = memref.load %arg10[%c5_56] : memref<9xf32, #tpu.memory_space<smem>>
    %c255_i32_57 = arith.constant 255 : i32
    %147 = tpu.dynamic_rotate %111 by %c255_i32_57 dim 1 : vector<2x256xf32>, i32 -> vector<2x256xf32>
    %148 = vector.broadcast %11 : vector<1x256xf32> to vector<2x256xf32>
    %149 = arith.mulf %148, %147 : vector<2x256xf32>
    %150 = vector.broadcast %146 : f32 to vector<2x256xf32>
    %151 = arith.mulf %150, %149 : vector<2x256xf32>
    %152 = arith.addf %145, %151 : vector<2x256xf32>
    %c6_58 = arith.constant 6 : index
    %153 = memref.load %arg10[%c6_58] : memref<9xf32, #tpu.memory_space<smem>>
    %c241_i32_59 = arith.constant 241 : i32
    %154 = tpu.dynamic_rotate %111 by %c241_i32_59 dim 1 : vector<2x256xf32>, i32 -> vector<2x256xf32>
    %155 = vector.broadcast %13 : vector<1x256xf32> to vector<2x256xf32>
    %156 = arith.mulf %155, %154 : vector<2x256xf32>
    %157 = vector.broadcast %153 : f32 to vector<2x256xf32>
    %158 = arith.mulf %157, %156 : vector<2x256xf32>
    %159 = arith.addf %152, %158 : vector<2x256xf32>
    %c7_60 = arith.constant 7 : index
    %160 = memref.load %arg10[%c7_60] : memref<9xf32, #tpu.memory_space<smem>>
    %c240_i32_61 = arith.constant 240 : i32
    %161 = tpu.dynamic_rotate %111 by %c240_i32_61 dim 1 : vector<2x256xf32>, i32 -> vector<2x256xf32>
    %162 = vector.broadcast %15 : vector<1x256xf32> to vector<2x256xf32>
    %163 = arith.mulf %162, %161 : vector<2x256xf32>
    %164 = vector.broadcast %160 : f32 to vector<2x256xf32>
    %165 = arith.mulf %164, %163 : vector<2x256xf32>
    %166 = arith.addf %159, %165 : vector<2x256xf32>
    %c8_62 = arith.constant 8 : index
    %167 = memref.load %arg10[%c8_62] : memref<9xf32, #tpu.memory_space<smem>>
    %c239_i32_63 = arith.constant 239 : i32
    %168 = tpu.dynamic_rotate %111 by %c239_i32_63 dim 1 : vector<2x256xf32>, i32 -> vector<2x256xf32>
    %169 = vector.broadcast %17 : vector<1x256xf32> to vector<2x256xf32>
    %170 = arith.mulf %169, %168 : vector<2x256xf32>
    %171 = vector.broadcast %167 : f32 to vector<2x256xf32>
    %172 = arith.mulf %171, %170 : vector<2x256xf32>
    %173 = arith.addf %166, %172 : vector<2x256xf32>
    %174 = vector.broadcast %112 : f32 to vector<2x256xf32>
    %175 = arith.addf %173, %174 : vector<2x256xf32>
    %cst_64 = arith.constant 0.000000e+00 : f32
    %176 = vector.broadcast %cst_64 : f32 to vector<2x256xf32>
    %177 = arith.maximumf %175, %176 : vector<2x256xf32>
    %178 = arith.addf %45, %177 : vector<2x256xf32>
    %c0_65 = arith.constant 0 : index
    %c0_66 = arith.constant 0 : index
    %179 = vector.load %arg18[%c0_65, %c0_66] : memref<2x256xf32, #tpu.memory_space<vmem>>, vector<2x256xf32>
    tpu.vector_store %arg18[%c0_65, %c0_66], %178 {strides = array<i32>} : memref<2x256xf32, #tpu.memory_space<vmem>>, vector<2x256xf32>,
    %c0_67 = arith.constant 0 : index
    %c0_68 = arith.constant 0 : index
    %180 = vector.load %arg3[%c0_67, %c0_68] : memref<256x16xf32, #tpu.memory_space<vmem>>, vector<256x16xf32>
    %cst_69 = arith.constant dense<0.000000e+00> : vector<2x16xf32>
    %181 = tpu.matmul %178, %180, %cst_69 {dimension_numbers = #tpu.dot_dimension_numbers<[1], [0], [0], [1], [0, 0, 1, 1], [], []>} : vector<2x256xf32>, vector<256x16xf32>, vector<2x16xf32> -> vector<2x16xf32>
    %c0_70 = arith.constant 0 : index
    %c0_71 = arith.constant 0 : index
    %182 = vector.load %arg4[%c0_70, %c0_71] : memref<256x16xf32, #tpu.memory_space<vmem>>, vector<256x16xf32>
    %cst_72 = arith.constant dense<0.000000e+00> : vector<2x16xf32>
    %183 = tpu.matmul %178, %182, %cst_72 {dimension_numbers = #tpu.dot_dimension_numbers<[1], [0], [0], [1], [0, 0, 1, 1], [], []>} : vector<2x256xf32>, vector<256x16xf32>, vector<2x16xf32> -> vector<2x16xf32>
    %c0_73 = arith.constant 0 : index
    %184 = memref.load %arg12[%c0_73] : memref<8xf32, #tpu.memory_space<smem>>
    %185 = vector.broadcast %184 : f32 to vector<2x16xf32>
    %186 = arith.mulf %185, %181 : vector<2x16xf32>
    %c0_74 = arith.constant 0 : index
    %187 = memref.load %arg13[%c0_74] : memref<8xf32, #tpu.memory_space<smem>>
    %188 = vector.broadcast %187 : f32 to vector<2x16xf32>
    %189 = arith.addf %186, %188 : vector<2x16xf32>
    %cst_75 = arith.constant 3.000000e+00 : f32
    %190 = vector.broadcast %cst_75 : f32 to vector<2x16xf32>
    %191 = arith.addf %189, %190 : vector<2x16xf32>
    %cst_76 = arith.constant 0.000000e+00 : f32
    %cst_77 = arith.constant 6.000000e+00 : f32
    %192 = vector.broadcast %cst_76 : f32 to vector<2x16xf32>
    %193 = arith.maximumf %192, %191 : vector<2x16xf32>
    %194 = vector.broadcast %cst_77 : f32 to vector<2x16xf32>
    %195 = arith.minimumf %194, %193 : vector<2x16xf32>
    %196 = arith.mulf %189, %195 : vector<2x16xf32>
    %cst_78 = arith.constant 0.166666672 : f32
    %197 = vector.broadcast %cst_78 : f32 to vector<2x16xf32>
    %198 = arith.mulf %196, %197 : vector<2x16xf32>
    %c0_79 = arith.constant 0 : index
    %199 = memref.load %arg12[%c0_79] : memref<8xf32, #tpu.memory_space<smem>>
    %200 = vector.broadcast %199 : f32 to vector<2x16xf32>
    %201 = arith.mulf %200, %183 : vector<2x16xf32>
    %c0_80 = arith.constant 0 : index
    %202 = memref.load %arg13[%c0_80] : memref<8xf32, #tpu.memory_space<smem>>
    %203 = vector.broadcast %202 : f32 to vector<2x16xf32>
    %204 = arith.addf %201, %203 : vector<2x16xf32>
    %cst_81 = arith.constant 3.000000e+00 : f32
    %205 = vector.broadcast %cst_81 : f32 to vector<2x16xf32>
    %206 = arith.addf %204, %205 : vector<2x16xf32>
    %cst_82 = arith.constant 0.000000e+00 : f32
    %cst_83 = arith.constant 6.000000e+00 : f32
    %207 = vector.broadcast %cst_82 : f32 to vector<2x16xf32>
    %208 = arith.maximumf %207, %206 : vector<2x16xf32>
    %209 = vector.broadcast %cst_83 : f32 to vector<2x16xf32>
    %210 = arith.minimumf %209, %208 : vector<2x16xf32>
    %211 = arith.mulf %204, %210 : vector<2x16xf32>
    %cst_84 = arith.constant 0.166666672 : f32
    %212 = vector.broadcast %cst_84 : f32 to vector<2x16xf32>
    %213 = arith.mulf %211, %212 : vector<2x16xf32>
    %c0_85 = arith.constant 0 : index
    %214 = memref.load %arg14[%c0_85] : memref<8xf32, #tpu.memory_space<smem>>
    %215 = vector.broadcast %214 : f32 to vector<2x16xf32>
    %216 = arith.mulf %215, %198 : vector<2x16xf32>
    %c0_86 = arith.constant 0 : index
    %217 = memref.load %arg16[%c0_86] : memref<8xf32, #tpu.memory_space<smem>>
    %218 = vector.broadcast %217 : f32 to vector<2x16xf32>
    %219 = arith.mulf %218, %213 : vector<2x16xf32>
    %c1_87 = arith.constant 1 : index
    %220 = memref.load %arg12[%c1_87] : memref<8xf32, #tpu.memory_space<smem>>
    %221 = vector.broadcast %220 : f32 to vector<2x16xf32>
    %222 = arith.mulf %221, %181 : vector<2x16xf32>
    %c1_88 = arith.constant 1 : index
    %223 = memref.load %arg13[%c1_88] : memref<8xf32, #tpu.memory_space<smem>>
    %224 = vector.broadcast %223 : f32 to vector<2x16xf32>
    %225 = arith.addf %222, %224 : vector<2x16xf32>
    %cst_89 = arith.constant 3.000000e+00 : f32
    %226 = vector.broadcast %cst_89 : f32 to vector<2x16xf32>
    %227 = arith.addf %225, %226 : vector<2x16xf32>
    %cst_90 = arith.constant 0.000000e+00 : f32
    %cst_91 = arith.constant 6.000000e+00 : f32
    %228 = vector.broadcast %cst_90 : f32 to vector<2x16xf32>
    %229 = arith.maximumf %228, %227 : vector<2x16xf32>
    %230 = vector.broadcast %cst_91 : f32 to vector<2x16xf32>
    %231 = arith.minimumf %230, %229 : vector<2x16xf32>
    %232 = arith.mulf %225, %231 : vector<2x16xf32>
    %cst_92 = arith.constant 0.166666672 : f32
    %233 = vector.broadcast %cst_92 : f32 to vector<2x16xf32>
    %234 = arith.mulf %232, %233 : vector<2x16xf32>
    %c1_93 = arith.constant 1 : index
    %235 = memref.load %arg12[%c1_93] : memref<8xf32, #tpu.memory_space<smem>>
    %236 = vector.broadcast %235 : f32 to vector<2x16xf32>
    %237 = arith.mulf %236, %183 : vector<2x16xf32>
    %c1_94 = arith.constant 1 : index
    %238 = memref.load %arg13[%c1_94] : memref<8xf32, #tpu.memory_space<smem>>
    %239 = vector.broadcast %238 : f32 to vector<2x16xf32>
    %240 = arith.addf %237, %239 : vector<2x16xf32>
    %cst_95 = arith.constant 3.000000e+00 : f32
    %241 = vector.broadcast %cst_95 : f32 to vector<2x16xf32>
    %242 = arith.addf %240, %241 : vector<2x16xf32>
    %cst_96 = arith.constant 0.000000e+00 : f32
    %cst_97 = arith.constant 6.000000e+00 : f32
    %243 = vector.broadcast %cst_96 : f32 to vector<2x16xf32>
    %244 = arith.maximumf %243, %242 : vector<2x16xf32>
    %245 = vector.broadcast %cst_97 : f32 to vector<2x16xf32>
    %246 = arith.minimumf %245, %244 : vector<2x16xf32>
    %247 = arith.mulf %240, %246 : vector<2x16xf32>
    %cst_98 = arith.constant 0.166666672 : f32
    %248 = vector.broadcast %cst_98 : f32 to vector<2x16xf32>
    %249 = arith.mulf %247, %248 : vector<2x16xf32>
    %c1_99 = arith.constant 1 : index
    %250 = memref.load %arg14[%c1_99] : memref<8xf32, #tpu.memory_space<smem>>
    %251 = vector.broadcast %250 : f32 to vector<2x16xf32>
    %252 = arith.mulf %251, %234 : vector<2x16xf32>
    %c1_100 = arith.constant 1 : index
    %253 = memref.load %arg16[%c1_100] : memref<8xf32, #tpu.memory_space<smem>>
    %254 = vector.broadcast %253 : f32 to vector<2x16xf32>
    %255 = arith.mulf %254, %249 : vector<2x16xf32>
    %256 = arith.addf %216, %252 : vector<2x16xf32>
    %257 = arith.addf %219, %255 : vector<2x16xf32>
    %c2_101 = arith.constant 2 : index
    %258 = memref.load %arg12[%c2_101] : memref<8xf32, #tpu.memory_space<smem>>
    %259 = vector.broadcast %258 : f32 to vector<2x16xf32>
    %260 = arith.mulf %259, %181 : vector<2x16xf32>
    %c2_102 = arith.constant 2 : index
    %261 = memref.load %arg13[%c2_102] : memref<8xf32, #tpu.memory_space<smem>>
    %262 = vector.broadcast %261 : f32 to vector<2x16xf32>
    %263 = arith.addf %260, %262 : vector<2x16xf32>
    %cst_103 = arith.constant 3.000000e+00 : f32
    %264 = vector.broadcast %cst_103 : f32 to vector<2x16xf32>
    %265 = arith.addf %263, %264 : vector<2x16xf32>
    %cst_104 = arith.constant 0.000000e+00 : f32
    %cst_105 = arith.constant 6.000000e+00 : f32
    %266 = vector.broadcast %cst_104 : f32 to vector<2x16xf32>
    %267 = arith.maximumf %266, %265 : vector<2x16xf32>
    %268 = vector.broadcast %cst_105 : f32 to vector<2x16xf32>
    %269 = arith.minimumf %268, %267 : vector<2x16xf32>
    %270 = arith.mulf %263, %269 : vector<2x16xf32>
    %cst_106 = arith.constant 0.166666672 : f32
    %271 = vector.broadcast %cst_106 : f32 to vector<2x16xf32>
    %272 = arith.mulf %270, %271 : vector<2x16xf32>
    %c2_107 = arith.constant 2 : index
    %273 = memref.load %arg12[%c2_107] : memref<8xf32, #tpu.memory_space<smem>>
    %274 = vector.broadcast %273 : f32 to vector<2x16xf32>
    %275 = arith.mulf %274, %183 : vector<2x16xf32>
    %c2_108 = arith.constant 2 : index
    %276 = memref.load %arg13[%c2_108] : memref<8xf32, #tpu.memory_space<smem>>
    %277 = vector.broadcast %276 : f32 to vector<2x16xf32>
    %278 = arith.addf %275, %277 : vector<2x16xf32>
    %cst_109 = arith.constant 3.000000e+00 : f32
    %279 = vector.broadcast %cst_109 : f32 to vector<2x16xf32>
    %280 = arith.addf %278, %279 : vector<2x16xf32>
    %cst_110 = arith.constant 0.000000e+00 : f32
    %cst_111 = arith.constant 6.000000e+00 : f32
    %281 = vector.broadcast %cst_110 : f32 to vector<2x16xf32>
    %282 = arith.maximumf %281, %280 : vector<2x16xf32>
    %283 = vector.broadcast %cst_111 : f32 to vector<2x16xf32>
    %284 = arith.minimumf %283, %282 : vector<2x16xf32>
    %285 = arith.mulf %278, %284 : vector<2x16xf32>
    %cst_112 = arith.constant 0.166666672 : f32
    %286 = vector.broadcast %cst_112 : f32 to vector<2x16xf32>
    %287 = arith.mulf %285, %286 : vector<2x16xf32>
    %c2_113 = arith.constant 2 : index
    %288 = memref.load %arg14[%c2_113] : memref<8xf32, #tpu.memory_space<smem>>
    %289 = vector.broadcast %288 : f32 to vector<2x16xf32>
    %290 = arith.mulf %289, %272 : vector<2x16xf32>
    %c2_114 = arith.constant 2 : index
    %291 = memref.load %arg16[%c2_114] : memref<8xf32, #tpu.memory_space<smem>>
    %292 = vector.broadcast %291 : f32 to vector<2x16xf32>
    %293 = arith.mulf %292, %287 : vector<2x16xf32>
    %294 = arith.addf %256, %290 : vector<2x16xf32>
    %295 = arith.addf %257, %293 : vector<2x16xf32>
    %c3_115 = arith.constant 3 : index
    %296 = memref.load %arg12[%c3_115] : memref<8xf32, #tpu.memory_space<smem>>
    %297 = vector.broadcast %296 : f32 to vector<2x16xf32>
    %298 = arith.mulf %297, %181 : vector<2x16xf32>
    %c3_116 = arith.constant 3 : index
    %299 = memref.load %arg13[%c3_116] : memref<8xf32, #tpu.memory_space<smem>>
    %300 = vector.broadcast %299 : f32 to vector<2x16xf32>
    %301 = arith.addf %298, %300 : vector<2x16xf32>
    %cst_117 = arith.constant 3.000000e+00 : f32
    %302 = vector.broadcast %cst_117 : f32 to vector<2x16xf32>
    %303 = arith.addf %301, %302 : vector<2x16xf32>
    %cst_118 = arith.constant 0.000000e+00 : f32
    %cst_119 = arith.constant 6.000000e+00 : f32
    %304 = vector.broadcast %cst_118 : f32 to vector<2x16xf32>
    %305 = arith.maximumf %304, %303 : vector<2x16xf32>
    %306 = vector.broadcast %cst_119 : f32 to vector<2x16xf32>
    %307 = arith.minimumf %306, %305 : vector<2x16xf32>
    %308 = arith.mulf %301, %307 : vector<2x16xf32>
    %cst_120 = arith.constant 0.166666672 : f32
    %309 = vector.broadcast %cst_120 : f32 to vector<2x16xf32>
    %310 = arith.mulf %308, %309 : vector<2x16xf32>
    %c3_121 = arith.constant 3 : index
    %311 = memref.load %arg12[%c3_121] : memref<8xf32, #tpu.memory_space<smem>>
    %312 = vector.broadcast %311 : f32 to vector<2x16xf32>
    %313 = arith.mulf %312, %183 : vector<2x16xf32>
    %c3_122 = arith.constant 3 : index
    %314 = memref.load %arg13[%c3_122] : memref<8xf32, #tpu.memory_space<smem>>
    %315 = vector.broadcast %314 : f32 to vector<2x16xf32>
    %316 = arith.addf %313, %315 : vector<2x16xf32>
    %cst_123 = arith.constant 3.000000e+00 : f32
    %317 = vector.broadcast %cst_123 : f32 to vector<2x16xf32>
    %318 = arith.addf %316, %317 : vector<2x16xf32>
    %cst_124 = arith.constant 0.000000e+00 : f32
    %cst_125 = arith.constant 6.000000e+00 : f32
    %319 = vector.broadcast %cst_124 : f32 to vector<2x16xf32>
    %320 = arith.maximumf %319, %318 : vector<2x16xf32>
    %321 = vector.broadcast %cst_125 : f32 to vector<2x16xf32>
    %322 = arith.minimumf %321, %320 : vector<2x16xf32>
    %323 = arith.mulf %316, %322 : vector<2x16xf32>
    %cst_126 = arith.constant 0.166666672 : f32
    %324 = vector.broadcast %cst_126 : f32 to vector<2x16xf32>
    %325 = arith.mulf %323, %324 : vector<2x16xf32>
    %c3_127 = arith.constant 3 : index
    %326 = memref.load %arg14[%c3_127] : memref<8xf32, #tpu.memory_space<smem>>
    %327 = vector.broadcast %326 : f32 to vector<2x16xf32>
    %328 = arith.mulf %327, %310 : vector<2x16xf32>
    %c3_128 = arith.constant 3 : index
    %329 = memref.load %arg16[%c3_128] : memref<8xf32, #tpu.memory_space<smem>>
    %330 = vector.broadcast %329 : f32 to vector<2x16xf32>
    %331 = arith.mulf %330, %325 : vector<2x16xf32>
    %332 = arith.addf %294, %328 : vector<2x16xf32>
    %333 = arith.addf %295, %331 : vector<2x16xf32>
    %c4_129 = arith.constant 4 : index
    %334 = memref.load %arg12[%c4_129] : memref<8xf32, #tpu.memory_space<smem>>
    %335 = vector.broadcast %334 : f32 to vector<2x16xf32>
    %336 = arith.mulf %335, %181 : vector<2x16xf32>
    %c4_130 = arith.constant 4 : index
    %337 = memref.load %arg13[%c4_130] : memref<8xf32, #tpu.memory_space<smem>>
    %338 = vector.broadcast %337 : f32 to vector<2x16xf32>
    %339 = arith.addf %336, %338 : vector<2x16xf32>
    %cst_131 = arith.constant 3.000000e+00 : f32
    %340 = vector.broadcast %cst_131 : f32 to vector<2x16xf32>
    %341 = arith.addf %339, %340 : vector<2x16xf32>
    %cst_132 = arith.constant 0.000000e+00 : f32
    %cst_133 = arith.constant 6.000000e+00 : f32
    %342 = vector.broadcast %cst_132 : f32 to vector<2x16xf32>
    %343 = arith.maximumf %342, %341 : vector<2x16xf32>
    %344 = vector.broadcast %cst_133 : f32 to vector<2x16xf32>
    %345 = arith.minimumf %344, %343 : vector<2x16xf32>
    %346 = arith.mulf %339, %345 : vector<2x16xf32>
    %cst_134 = arith.constant 0.166666672 : f32
    %347 = vector.broadcast %cst_134 : f32 to vector<2x16xf32>
    %348 = arith.mulf %346, %347 : vector<2x16xf32>
    %c4_135 = arith.constant 4 : index
    %349 = memref.load %arg12[%c4_135] : memref<8xf32, #tpu.memory_space<smem>>
    %350 = vector.broadcast %349 : f32 to vector<2x16xf32>
    %351 = arith.mulf %350, %183 : vector<2x16xf32>
    %c4_136 = arith.constant 4 : index
    %352 = memref.load %arg13[%c4_136] : memref<8xf32, #tpu.memory_space<smem>>
    %353 = vector.broadcast %352 : f32 to vector<2x16xf32>
    %354 = arith.addf %351, %353 : vector<2x16xf32>
    %cst_137 = arith.constant 3.000000e+00 : f32
    %355 = vector.broadcast %cst_137 : f32 to vector<2x16xf32>
    %356 = arith.addf %354, %355 : vector<2x16xf32>
    %cst_138 = arith.constant 0.000000e+00 : f32
    %cst_139 = arith.constant 6.000000e+00 : f32
    %357 = vector.broadcast %cst_138 : f32 to vector<2x16xf32>
    %358 = arith.maximumf %357, %356 : vector<2x16xf32>
    %359 = vector.broadcast %cst_139 : f32 to vector<2x16xf32>
    %360 = arith.minimumf %359, %358 : vector<2x16xf32>
    %361 = arith.mulf %354, %360 : vector<2x16xf32>
    %cst_140 = arith.constant 0.166666672 : f32
    %362 = vector.broadcast %cst_140 : f32 to vector<2x16xf32>
    %363 = arith.mulf %361, %362 : vector<2x16xf32>
    %c4_141 = arith.constant 4 : index
    %364 = memref.load %arg14[%c4_141] : memref<8xf32, #tpu.memory_space<smem>>
    %365 = vector.broadcast %364 : f32 to vector<2x16xf32>
    %366 = arith.mulf %365, %348 : vector<2x16xf32>
    %c4_142 = arith.constant 4 : index
    %367 = memref.load %arg16[%c4_142] : memref<8xf32, #tpu.memory_space<smem>>
    %368 = vector.broadcast %367 : f32 to vector<2x16xf32>
    %369 = arith.mulf %368, %363 : vector<2x16xf32>
    %370 = arith.addf %332, %366 : vector<2x16xf32>
    %371 = arith.addf %333, %369 : vector<2x16xf32>
    %c5_143 = arith.constant 5 : index
    %372 = memref.load %arg12[%c5_143] : memref<8xf32, #tpu.memory_space<smem>>
    %373 = vector.broadcast %372 : f32 to vector<2x16xf32>
    %374 = arith.mulf %373, %181 : vector<2x16xf32>
    %c5_144 = arith.constant 5 : index
    %375 = memref.load %arg13[%c5_144] : memref<8xf32, #tpu.memory_space<smem>>
    %376 = vector.broadcast %375 : f32 to vector<2x16xf32>
    %377 = arith.addf %374, %376 : vector<2x16xf32>
    %cst_145 = arith.constant 3.000000e+00 : f32
    %378 = vector.broadcast %cst_145 : f32 to vector<2x16xf32>
    %379 = arith.addf %377, %378 : vector<2x16xf32>
    %cst_146 = arith.constant 0.000000e+00 : f32
    %cst_147 = arith.constant 6.000000e+00 : f32
    %380 = vector.broadcast %cst_146 : f32 to vector<2x16xf32>
    %381 = arith.maximumf %380, %379 : vector<2x16xf32>
    %382 = vector.broadcast %cst_147 : f32 to vector<2x16xf32>
    %383 = arith.minimumf %382, %381 : vector<2x16xf32>
    %384 = arith.mulf %377, %383 : vector<2x16xf32>
    %cst_148 = arith.constant 0.166666672 : f32
    %385 = vector.broadcast %cst_148 : f32 to vector<2x16xf32>
    %386 = arith.mulf %384, %385 : vector<2x16xf32>
    %c5_149 = arith.constant 5 : index
    %387 = memref.load %arg12[%c5_149] : memref<8xf32, #tpu.memory_space<smem>>
    %388 = vector.broadcast %387 : f32 to vector<2x16xf32>
    %389 = arith.mulf %388, %183 : vector<2x16xf32>
    %c5_150 = arith.constant 5 : index
    %390 = memref.load %arg13[%c5_150] : memref<8xf32, #tpu.memory_space<smem>>
    %391 = vector.broadcast %390 : f32 to vector<2x16xf32>
    %392 = arith.addf %389, %391 : vector<2x16xf32>
    %cst_151 = arith.constant 3.000000e+00 : f32
    %393 = vector.broadcast %cst_151 : f32 to vector<2x16xf32>
    %394 = arith.addf %392, %393 : vector<2x16xf32>
    %cst_152 = arith.constant 0.000000e+00 : f32
    %cst_153 = arith.constant 6.000000e+00 : f32
    %395 = vector.broadcast %cst_152 : f32 to vector<2x16xf32>
    %396 = arith.maximumf %395, %394 : vector<2x16xf32>
    %397 = vector.broadcast %cst_153 : f32 to vector<2x16xf32>
    %398 = arith.minimumf %397, %396 : vector<2x16xf32>
    %399 = arith.mulf %392, %398 : vector<2x16xf32>
    %cst_154 = arith.constant 0.166666672 : f32
    %400 = vector.broadcast %cst_154 : f32 to vector<2x16xf32>
    %401 = arith.mulf %399, %400 : vector<2x16xf32>
    %c5_155 = arith.constant 5 : index
    %402 = memref.load %arg14[%c5_155] : memref<8xf32, #tpu.memory_space<smem>>
    %403 = vector.broadcast %402 : f32 to vector<2x16xf32>
    %404 = arith.mulf %403, %386 : vector<2x16xf32>
    %c5_156 = arith.constant 5 : index
    %405 = memref.load %arg16[%c5_156] : memref<8xf32, #tpu.memory_space<smem>>
    %406 = vector.broadcast %405 : f32 to vector<2x16xf32>
    %407 = arith.mulf %406, %401 : vector<2x16xf32>
    %408 = arith.addf %370, %404 : vector<2x16xf32>
    %409 = arith.addf %371, %407 : vector<2x16xf32>
    %c6_157 = arith.constant 6 : index
    %410 = memref.load %arg12[%c6_157] : memref<8xf32, #tpu.memory_space<smem>>
    %411 = vector.broadcast %410 : f32 to vector<2x16xf32>
    %412 = arith.mulf %411, %181 : vector<2x16xf32>
    %c6_158 = arith.constant 6 : index
    %413 = memref.load %arg13[%c6_158] : memref<8xf32, #tpu.memory_space<smem>>
    %414 = vector.broadcast %413 : f32 to vector<2x16xf32>
    %415 = arith.addf %412, %414 : vector<2x16xf32>
    %cst_159 = arith.constant 3.000000e+00 : f32
    %416 = vector.broadcast %cst_159 : f32 to vector<2x16xf32>
    %417 = arith.addf %415, %416 : vector<2x16xf32>
    %cst_160 = arith.constant 0.000000e+00 : f32
    %cst_161 = arith.constant 6.000000e+00 : f32
    %418 = vector.broadcast %cst_160 : f32 to vector<2x16xf32>
    %419 = arith.maximumf %418, %417 : vector<2x16xf32>
    %420 = vector.broadcast %cst_161 : f32 to vector<2x16xf32>
    %421 = arith.minimumf %420, %419 : vector<2x16xf32>
    %422 = arith.mulf %415, %421 : vector<2x16xf32>
    %cst_162 = arith.constant 0.166666672 : f32
    %423 = vector.broadcast %cst_162 : f32 to vector<2x16xf32>
    %424 = arith.mulf %422, %423 : vector<2x16xf32>
    %c6_163 = arith.constant 6 : index
    %425 = memref.load %arg12[%c6_163] : memref<8xf32, #tpu.memory_space<smem>>
    %426 = vector.broadcast %425 : f32 to vector<2x16xf32>
    %427 = arith.mulf %426, %183 : vector<2x16xf32>
    %c6_164 = arith.constant 6 : index
    %428 = memref.load %arg13[%c6_164] : memref<8xf32, #tpu.memory_space<smem>>
    %429 = vector.broadcast %428 : f32 to vector<2x16xf32>
    %430 = arith.addf %427, %429 : vector<2x16xf32>
    %cst_165 = arith.constant 3.000000e+00 : f32
    %431 = vector.broadcast %cst_165 : f32 to vector<2x16xf32>
    %432 = arith.addf %430, %431 : vector<2x16xf32>
    %cst_166 = arith.constant 0.000000e+00 : f32
    %cst_167 = arith.constant 6.000000e+00 : f32
    %433 = vector.broadcast %cst_166 : f32 to vector<2x16xf32>
    %434 = arith.maximumf %433, %432 : vector<2x16xf32>
    %435 = vector.broadcast %cst_167 : f32 to vector<2x16xf32>
    %436 = arith.minimumf %435, %434 : vector<2x16xf32>
    %437 = arith.mulf %430, %436 : vector<2x16xf32>
    %cst_168 = arith.constant 0.166666672 : f32
    %438 = vector.broadcast %cst_168 : f32 to vector<2x16xf32>
    %439 = arith.mulf %437, %438 : vector<2x16xf32>
    %c6_169 = arith.constant 6 : index
    %440 = memref.load %arg14[%c6_169] : memref<8xf32, #tpu.memory_space<smem>>
    %441 = vector.broadcast %440 : f32 to vector<2x16xf32>
    %442 = arith.mulf %441, %424 : vector<2x16xf32>
    %c6_170 = arith.constant 6 : index
    %443 = memref.load %arg16[%c6_170] : memref<8xf32, #tpu.memory_space<smem>>
    %444 = vector.broadcast %443 : f32 to vector<2x16xf32>
    %445 = arith.mulf %444, %439 : vector<2x16xf32>
    %446 = arith.addf %408, %442 : vector<2x16xf32>
    %447 = arith.addf %409, %445 : vector<2x16xf32>
    %c7_171 = arith.constant 7 : index
    %448 = memref.load %arg12[%c7_171] : memref<8xf32, #tpu.memory_space<smem>>
    %449 = vector.broadcast %448 : f32 to vector<2x16xf32>
    %450 = arith.mulf %449, %181 : vector<2x16xf32>
    %c7_172 = arith.constant 7 : index
    %451 = memref.load %arg13[%c7_172] : memref<8xf32, #tpu.memory_space<smem>>
    %452 = vector.broadcast %451 : f32 to vector<2x16xf32>
    %453 = arith.addf %450, %452 : vector<2x16xf32>
    %cst_173 = arith.constant 3.000000e+00 : f32
    %454 = vector.broadcast %cst_173 : f32 to vector<2x16xf32>
    %455 = arith.addf %453, %454 : vector<2x16xf32>
    %cst_174 = arith.constant 0.000000e+00 : f32
    %cst_175 = arith.constant 6.000000e+00 : f32
    %456 = vector.broadcast %cst_174 : f32 to vector<2x16xf32>
    %457 = arith.maximumf %456, %455 : vector<2x16xf32>
    %458 = vector.broadcast %cst_175 : f32 to vector<2x16xf32>
    %459 = arith.minimumf %458, %457 : vector<2x16xf32>
    %460 = arith.mulf %453, %459 : vector<2x16xf32>
    %cst_176 = arith.constant 0.166666672 : f32
    %461 = vector.broadcast %cst_176 : f32 to vector<2x16xf32>
    %462 = arith.mulf %460, %461 : vector<2x16xf32>
    %c7_177 = arith.constant 7 : index
    %463 = memref.load %arg12[%c7_177] : memref<8xf32, #tpu.memory_space<smem>>
    %464 = vector.broadcast %463 : f32 to vector<2x16xf32>
    %465 = arith.mulf %464, %183 : vector<2x16xf32>
    %c7_178 = arith.constant 7 : index
    %466 = memref.load %arg13[%c7_178] : memref<8xf32, #tpu.memory_space<smem>>
    %467 = vector.broadcast %466 : f32 to vector<2x16xf32>
    %468 = arith.addf %465, %467 : vector<2x16xf32>
    %cst_179 = arith.constant 3.000000e+00 : f32
    %469 = vector.broadcast %cst_179 : f32 to vector<2x16xf32>
    %470 = arith.addf %468, %469 : vector<2x16xf32>
    %cst_180 = arith.constant 0.000000e+00 : f32
    %cst_181 = arith.constant 6.000000e+00 : f32
    %471 = vector.broadcast %cst_180 : f32 to vector<2x16xf32>
    %472 = arith.maximumf %471, %470 : vector<2x16xf32>
    %473 = vector.broadcast %cst_181 : f32 to vector<2x16xf32>
    %474 = arith.minimumf %473, %472 : vector<2x16xf32>
    %475 = arith.mulf %468, %474 : vector<2x16xf32>
    %cst_182 = arith.constant 0.166666672 : f32
    %476 = vector.broadcast %cst_182 : f32 to vector<2x16xf32>
    %477 = arith.mulf %475, %476 : vector<2x16xf32>
    %c7_183 = arith.constant 7 : index
    %478 = memref.load %arg14[%c7_183] : memref<8xf32, #tpu.memory_space<smem>>
    %479 = vector.broadcast %478 : f32 to vector<2x16xf32>
    %480 = arith.mulf %479, %462 : vector<2x16xf32>
    %c7_184 = arith.constant 7 : index
    %481 = memref.load %arg16[%c7_184] : memref<8xf32, #tpu.memory_space<smem>>
    %482 = vector.broadcast %481 : f32 to vector<2x16xf32>
    %483 = arith.mulf %482, %477 : vector<2x16xf32>
    %484 = arith.addf %446, %480 : vector<2x16xf32>
    %485 = arith.addf %447, %483 : vector<2x16xf32>
    %c0_185 = arith.constant 0 : index
    %486 = memref.load %arg15[%c0_185] : memref<1xf32, #tpu.memory_space<smem>>
    %487 = vector.broadcast %486 : f32 to vector<2x16xf32>
    %488 = arith.addf %484, %487 : vector<2x16xf32>
    %cst_186 = arith.constant 0.000000e+00 : f32
    %489 = vector.broadcast %cst_186 : f32 to vector<2x16xf32>
    %490 = arith.subf %489, %488 : vector<2x16xf32>
    %491 = math.exp %490 : vector<2x16xf32>
    %cst_187 = arith.constant 1.000000e+00 : f32
    %492 = vector.broadcast %cst_187 : f32 to vector<2x16xf32>
    %493 = arith.addf %492, %491 : vector<2x16xf32>
    %cst_188 = arith.constant 1.000000e+00 : f32
    %494 = vector.broadcast %cst_188 : f32 to vector<2x16xf32>
    %495 = arith.divf %494, %493 : vector<2x16xf32>
    %c0_189 = arith.constant 0 : index
    %496 = memref.load %arg17[%c0_189] : memref<1xf32, #tpu.memory_space<smem>>
    %497 = vector.broadcast %496 : f32 to vector<2x16xf32>
    %498 = arith.addf %485, %497 : vector<2x16xf32>
    %cst_190 = arith.constant 0.000000e+00 : f32
    %499 = vector.broadcast %cst_190 : f32 to vector<2x16xf32>
    %500 = arith.subf %499, %498 : vector<2x16xf32>
    %501 = math.exp %500 : vector<2x16xf32>
    %cst_191 = arith.constant 1.000000e+00 : f32
    %502 = vector.broadcast %cst_191 : f32 to vector<2x16xf32>
    %503 = arith.addf %502, %501 : vector<2x16xf32>
    %cst_192 = arith.constant 1.000000e+00 : f32
    %504 = vector.broadcast %cst_192 : f32 to vector<2x16xf32>
    %505 = arith.divf %504, %503 : vector<2x16xf32>
    %c0_193 = arith.constant 0 : index
    %c0_194 = arith.constant 0 : index
    %506 = vector.load %arg5[%c0_193, %c0_194] : memref<16x256xf32, #tpu.memory_space<vmem>>, vector<16x256xf32>
    %cst_195 = arith.constant dense<0.000000e+00> : vector<2x256xf32>
    %507 = tpu.matmul %505, %506, %cst_195 {dimension_numbers = #tpu.dot_dimension_numbers<[1], [0], [0], [1], [0, 0, 1, 1], [], []>} : vector<2x16xf32>, vector<16x256xf32>, vector<2x256xf32> -> vector<2x256xf32>
    %508 = arith.mulf %178, %507 : vector<2x256xf32>
    %cst_196 = arith.constant dense<0.000000e+00> : vector<2x16xf32>
    %509 = tpu.matmul %508, %180, %cst_196 {dimension_numbers = #tpu.dot_dimension_numbers<[1], [0], [0], [1], [0, 0, 1, 1], [], []>} : vector<2x256xf32>, vector<256x16xf32>, vector<2x16xf32> -> vector<2x16xf32>
    %510 = arith.mulf %509, %495 : vector<2x16xf32>
    %cst_197 = arith.constant dense<0.000000e+00> : vector<2xf32>
    %511 = vector.multi_reduction <add>, %510, %cst_197 [1] : vector<2x16xf32> to vector<2xf32>
    %512 = vector.shape_cast %511 : vector<2xf32> to vector<2x1xf32>
    %cst_198 = arith.constant 6.250000e-02 : f32
    %513 = vector.broadcast %cst_198 : f32 to vector<2x1xf32>
    %514 = arith.mulf %512, %513 : vector<2x1xf32>
    %c0_199 = arith.constant 0 : index
    %c0_200 = arith.constant 0 : index
    %515 = vector.load %arg19[%c0_199, %c0_200] : memref<2x1xf32, #tpu.memory_space<vmem>>, vector<2x1xf32>
    tpu.vector_store %arg19[%c0_199, %c0_200], %514 {strides = array<i32>} : memref<2x1xf32, #tpu.memory_space<vmem>>, vector<2x1xf32>,
    return
  }
  func.func @transform_0(%arg0: i32) -> (i32, i32, i32) {
    %c0_i32 = arith.constant 0 : i32
    %c0_i32_0 = arith.constant 0 : i32
    %c0_i32_1 = arith.constant 0 : i32
    return %arg0, %c0_i32, %c0_i32_0 : i32, i32, i32
  }
  func.func @transform_1(%arg0: i32) -> (i32, i32, i32) {
    %c0_i32 = arith.constant 0 : i32
    %c0_i32_0 = arith.constant 0 : i32
    %c0_i32_1 = arith.constant 0 : i32
    %c0_i32_2 = arith.constant 0 : i32
    return %c0_i32, %c0_i32_0, %c0_i32_1 : i32, i32, i32
  }
  func.func @transform_2(%arg0: i32) -> (i32, i32) {
    %c0_i32 = arith.constant 0 : i32
    %c0_i32_0 = arith.constant 0 : i32
    %c0_i32_1 = arith.constant 0 : i32
    return %c0_i32, %c0_i32_0 : i32, i32
  }
  func.func @transform_3(%arg0: i32) -> (i32, i32) {
    %c0_i32 = arith.constant 0 : i32
    %c0_i32_0 = arith.constant 0 : i32
    %c0_i32_1 = arith.constant 0 : i32
    return %c0_i32, %c0_i32_0 : i32, i32
  }
  func.func @transform_4(%arg0: i32) -> (i32, i32) {
    %c0_i32 = arith.constant 0 : i32
    %c0_i32_0 = arith.constant 0 : i32
    %c0_i32_1 = arith.constant 0 : i32
    return %c0_i32, %c0_i32_0 : i32, i32
  }
  func.func @transform_5(%arg0: i32) -> i32 {
    %c0_i32 = arith.constant 0 : i32
    %c0_i32_0 = arith.constant 0 : i32
    return %c0_i32 : i32
  }
  func.func @transform_6(%arg0: i32) -> i32 {
    %c0_i32 = arith.constant 0 : i32
    %c0_i32_0 = arith.constant 0 : i32
    return %c0_i32 : i32
  }
  func.func @transform_7(%arg0: i32) -> i32 {
    %c0_i32 = arith.constant 0 : i32
    %c0_i32_0 = arith.constant 0 : i32
    return %c0_i32 : i32
  }
  func.func @transform_8(%arg0: i32) -> i32 {
    %c0_i32 = arith.constant 0 : i32
    %c0_i32_0 = arith.constant 0 : i32
    return %c0_i32 : i32
  }
  func.func @transform_9(%arg0: i32) -> i32 {
    %c0_i32 = arith.constant 0 : i32
    %c0_i32_0 = arith.constant 0 : i32
    return %c0_i32 : i32
  }
  func.func @transform_10(%arg0: i32) -> i32 {
    %c0_i32 = arith.constant 0 : i32
    %c0_i32_0 = arith.constant 0 : i32
    return %c0_i32 : i32
  }
  func.func @transform_11(%arg0: i32) -> i32 {
    %c0_i32 = arith.constant 0 : i32
    %c0_i32_0 = arith.constant 0 : i32
    return %c0_i32 : i32
  }
  func.func @transform_12(%arg0: i32) -> i32 {
    %c0_i32 = arith.constant 0 : i32
    %c0_i32_0 = arith.constant 0 : i32
    return %c0_i32 : i32
  }
  func.func @transform_13(%arg0: i32) -> i32 {
    %c0_i32 = arith.constant 0 : i32
    %c0_i32_0 = arith.constant 0 : i32
    return %c0_i32 : i32
  }
  func.func @transform_14(%arg0: i32) -> i32 {
    %c0_i32 = arith.constant 0 : i32
    %c0_i32_0 = arith.constant 0 : i32
    return %c0_i32 : i32
  }
  func.func @transform_15(%arg0: i32) -> i32 {
    %c0_i32 = arith.constant 0 : i32
    %c0_i32_0 = arith.constant 0 : i32
    return %c0_i32 : i32
  }
  func.func @transform_16(%arg0: i32) -> i32 {
    %c0_i32 = arith.constant 0 : i32
    %c0_i32_0 = arith.constant 0 : i32
    return %c0_i32 : i32
  }
  func.func @transform_17(%arg0: i32) -> (i32, i32) {
    %c0_i32 = arith.constant 0 : i32
    %c0_i32_0 = arith.constant 0 : i32
    return %arg0, %c0_i32 : i32, i32
  }
  func.func @transform_18(%arg0: i32) -> (i32, i32) {
    %c0_i32 = arith.constant 0 : i32
    %c0_i32_0 = arith.constant 0 : i32
    return %arg0, %c0_i32 : i32, i32
  }
}

module attributes {stable_mosaic.version = 11 : i64} {
  func.func @_stage2_kernel(%arg0: i32, %arg1: memref<2x256xf32, #tpu.memory_space<vmem>>, %arg2: memref<9x1x256xf32, #tpu.memory_space<vmem>>, %arg3: memref<1xf32, #tpu.memory_space<smem>>, %arg4: memref<36xf32, #tpu.memory_space<smem>>, %arg5: memref<4xf32, #tpu.memory_space<smem>>, %arg6: memref<144xf32, #tpu.memory_space<smem>>, %arg7: memref<4xf32, #tpu.memory_space<smem>>, %arg8: memref<2x4x256xf32, #tpu.memory_space<vmem>>) attributes {dimension_semantics = [#tpu.dimension_semantics<parallel>], iteration_bounds = array<i64: 1>, scalar_prefetch = 0 : i64, scratch_operands = 0 : i64, tpu.core_type = #tpu.core_type<tc>, window_params = [{transform_indices = @transform_0, window_bounds = array<i64: 2, 256>}, {pipeline_mode = #tpu.pipeline_mode<synchronous>, transform_indices = @transform_1, window_bounds = array<i64: 9, 1, 256>}, {transform_indices = @transform_2, window_bounds = array<i64: 1>}, {transform_indices = @transform_3, window_bounds = array<i64: 36>}, {transform_indices = @transform_4, window_bounds = array<i64: 4>}, {transform_indices = @transform_5, window_bounds = array<i64: 144>}, {transform_indices = @transform_6, window_bounds = array<i64: 4>}, {transform_indices = @transform_7, window_bounds = array<i64: 2, 4, 256>}]} {
    %c0 = arith.constant 0 : index
    %c0_0 = arith.constant 0 : index
    %c0_1 = arith.constant 0 : index
    %0 = vector.load %arg2[%c0, %c0_0, %c0_1] : memref<9x1x256xf32, #tpu.memory_space<vmem>>, vector<1x1x256xf32>
    %1 = vector.shape_cast %0 : vector<1x1x256xf32> to vector<1x256xf32>
    %c1 = arith.constant 1 : index
    %c0_2 = arith.constant 0 : index
    %c0_3 = arith.constant 0 : index
    %2 = vector.load %arg2[%c1, %c0_2, %c0_3] : memref<9x1x256xf32, #tpu.memory_space<vmem>>, vector<1x1x256xf32>
    %3 = vector.shape_cast %2 : vector<1x1x256xf32> to vector<1x256xf32>
    %c2 = arith.constant 2 : index
    %c0_4 = arith.constant 0 : index
    %c0_5 = arith.constant 0 : index
    %4 = vector.load %arg2[%c2, %c0_4, %c0_5] : memref<9x1x256xf32, #tpu.memory_space<vmem>>, vector<1x1x256xf32>
    %5 = vector.shape_cast %4 : vector<1x1x256xf32> to vector<1x256xf32>
    %c3 = arith.constant 3 : index
    %c0_6 = arith.constant 0 : index
    %c0_7 = arith.constant 0 : index
    %6 = vector.load %arg2[%c3, %c0_6, %c0_7] : memref<9x1x256xf32, #tpu.memory_space<vmem>>, vector<1x1x256xf32>
    %7 = vector.shape_cast %6 : vector<1x1x256xf32> to vector<1x256xf32>
    %c4 = arith.constant 4 : index
    %c0_8 = arith.constant 0 : index
    %c0_9 = arith.constant 0 : index
    %8 = vector.load %arg2[%c4, %c0_8, %c0_9] : memref<9x1x256xf32, #tpu.memory_space<vmem>>, vector<1x1x256xf32>
    %9 = vector.shape_cast %8 : vector<1x1x256xf32> to vector<1x256xf32>
    %c5 = arith.constant 5 : index
    %c0_10 = arith.constant 0 : index
    %c0_11 = arith.constant 0 : index
    %10 = vector.load %arg2[%c5, %c0_10, %c0_11] : memref<9x1x256xf32, #tpu.memory_space<vmem>>, vector<1x1x256xf32>
    %11 = vector.shape_cast %10 : vector<1x1x256xf32> to vector<1x256xf32>
    %c6 = arith.constant 6 : index
    %c0_12 = arith.constant 0 : index
    %c0_13 = arith.constant 0 : index
    %12 = vector.load %arg2[%c6, %c0_12, %c0_13] : memref<9x1x256xf32, #tpu.memory_space<vmem>>, vector<1x1x256xf32>
    %13 = vector.shape_cast %12 : vector<1x1x256xf32> to vector<1x256xf32>
    %c7 = arith.constant 7 : index
    %c0_14 = arith.constant 0 : index
    %c0_15 = arith.constant 0 : index
    %14 = vector.load %arg2[%c7, %c0_14, %c0_15] : memref<9x1x256xf32, #tpu.memory_space<vmem>>, vector<1x1x256xf32>
    %15 = vector.shape_cast %14 : vector<1x1x256xf32> to vector<1x256xf32>
    %c8 = arith.constant 8 : index
    %c0_16 = arith.constant 0 : index
    %c0_17 = arith.constant 0 : index
    %16 = vector.load %arg2[%c8, %c0_16, %c0_17] : memref<9x1x256xf32, #tpu.memory_space<vmem>>, vector<1x1x256xf32>
    %17 = vector.shape_cast %16 : vector<1x1x256xf32> to vector<1x256xf32>
    %c0_18 = arith.constant 0 : index
    %c0_19 = arith.constant 0 : index
    %18 = vector.load %arg1[%c0_18, %c0_19] : memref<2x256xf32, #tpu.memory_space<vmem>>, vector<2x256xf32>
    %cst = arith.constant 9.99999997E-7 : f32
    %19 = vector.broadcast %cst : f32 to vector<2x256xf32>
    %20 = arith.maximumf %18, %19 : vector<2x256xf32>
    %c0_20 = arith.constant 0 : index
    %21 = memref.load %arg3[%c0_20] : memref<1xf32, #tpu.memory_space<smem>>
    %22 = vector.broadcast %21 : f32 to vector<2x256xf32>
    %23 = arith.minimumf %20, %22 : vector<2x256xf32>
    %c17_i32 = arith.constant 17 : i32
    %24 = tpu.dynamic_rotate %23 by %c17_i32 dim 1 : vector<2x256xf32>, i32 -> vector<2x256xf32>
    %25 = vector.broadcast %1 : vector<1x256xf32> to vector<2x256xf32>
    %26 = arith.mulf %25, %24 : vector<2x256xf32>
    %c16_i32 = arith.constant 16 : i32
    %27 = tpu.dynamic_rotate %23 by %c16_i32 dim 1 : vector<2x256xf32>, i32 -> vector<2x256xf32>
    %28 = vector.broadcast %3 : vector<1x256xf32> to vector<2x256xf32>
    %29 = arith.mulf %28, %27 : vector<2x256xf32>
    %c15_i32 = arith.constant 15 : i32
    %30 = tpu.dynamic_rotate %23 by %c15_i32 dim 1 : vector<2x256xf32>, i32 -> vector<2x256xf32>
    %31 = vector.broadcast %5 : vector<1x256xf32> to vector<2x256xf32>
    %32 = arith.mulf %31, %30 : vector<2x256xf32>
    %c1_i32 = arith.constant 1 : i32
    %33 = tpu.dynamic_rotate %23 by %c1_i32 dim 1 : vector<2x256xf32>, i32 -> vector<2x256xf32>
    %34 = vector.broadcast %7 : vector<1x256xf32> to vector<2x256xf32>
    %35 = arith.mulf %34, %33 : vector<2x256xf32>
    %36 = vector.broadcast %9 : vector<1x256xf32> to vector<2x256xf32>
    %37 = arith.mulf %36, %23 : vector<2x256xf32>
    %c255_i32 = arith.constant 255 : i32
    %38 = tpu.dynamic_rotate %23 by %c255_i32 dim 1 : vector<2x256xf32>, i32 -> vector<2x256xf32>
    %39 = vector.broadcast %11 : vector<1x256xf32> to vector<2x256xf32>
    %40 = arith.mulf %39, %38 : vector<2x256xf32>
    %c241_i32 = arith.constant 241 : i32
    %41 = tpu.dynamic_rotate %23 by %c241_i32 dim 1 : vector<2x256xf32>, i32 -> vector<2x256xf32>
    %42 = vector.broadcast %13 : vector<1x256xf32> to vector<2x256xf32>
    %43 = arith.mulf %42, %41 : vector<2x256xf32>
    %c240_i32 = arith.constant 240 : i32
    %44 = tpu.dynamic_rotate %23 by %c240_i32 dim 1 : vector<2x256xf32>, i32 -> vector<2x256xf32>
    %45 = vector.broadcast %15 : vector<1x256xf32> to vector<2x256xf32>
    %46 = arith.mulf %45, %44 : vector<2x256xf32>
    %c239_i32 = arith.constant 239 : i32
    %47 = tpu.dynamic_rotate %23 by %c239_i32 dim 1 : vector<2x256xf32>, i32 -> vector<2x256xf32>
    %48 = vector.broadcast %17 : vector<1x256xf32> to vector<2x256xf32>
    %49 = arith.mulf %48, %47 : vector<2x256xf32>
    %c0_21 = arith.constant 0 : index
    %50 = memref.load %arg4[%c0_21] : memref<36xf32, #tpu.memory_space<smem>>
    %51 = vector.broadcast %50 : f32 to vector<2x256xf32>
    %52 = arith.mulf %51, %26 : vector<2x256xf32>
    %c1_22 = arith.constant 1 : index
    %53 = memref.load %arg4[%c1_22] : memref<36xf32, #tpu.memory_space<smem>>
    %54 = vector.broadcast %53 : f32 to vector<2x256xf32>
    %55 = arith.mulf %54, %29 : vector<2x256xf32>
    %56 = arith.addf %52, %55 : vector<2x256xf32>
    %c2_23 = arith.constant 2 : index
    %57 = memref.load %arg4[%c2_23] : memref<36xf32, #tpu.memory_space<smem>>
    %58 = vector.broadcast %57 : f32 to vector<2x256xf32>
    %59 = arith.mulf %58, %32 : vector<2x256xf32>
    %60 = arith.addf %56, %59 : vector<2x256xf32>
    %c3_24 = arith.constant 3 : index
    %61 = memref.load %arg4[%c3_24] : memref<36xf32, #tpu.memory_space<smem>>
    %62 = vector.broadcast %61 : f32 to vector<2x256xf32>
    %63 = arith.mulf %62, %35 : vector<2x256xf32>
    %64 = arith.addf %60, %63 : vector<2x256xf32>
    %c4_25 = arith.constant 4 : index
    %65 = memref.load %arg4[%c4_25] : memref<36xf32, #tpu.memory_space<smem>>
    %66 = vector.broadcast %65 : f32 to vector<2x256xf32>
    %67 = arith.mulf %66, %37 : vector<2x256xf32>
    %68 = arith.addf %64, %67 : vector<2x256xf32>
    %c5_26 = arith.constant 5 : index
    %69 = memref.load %arg4[%c5_26] : memref<36xf32, #tpu.memory_space<smem>>
    %70 = vector.broadcast %69 : f32 to vector<2x256xf32>
    %71 = arith.mulf %70, %40 : vector<2x256xf32>
    %72 = arith.addf %68, %71 : vector<2x256xf32>
    %c6_27 = arith.constant 6 : index
    %73 = memref.load %arg4[%c6_27] : memref<36xf32, #tpu.memory_space<smem>>
    %74 = vector.broadcast %73 : f32 to vector<2x256xf32>
    %75 = arith.mulf %74, %43 : vector<2x256xf32>
    %76 = arith.addf %72, %75 : vector<2x256xf32>
    %c7_28 = arith.constant 7 : index
    %77 = memref.load %arg4[%c7_28] : memref<36xf32, #tpu.memory_space<smem>>
    %78 = vector.broadcast %77 : f32 to vector<2x256xf32>
    %79 = arith.mulf %78, %46 : vector<2x256xf32>
    %80 = arith.addf %76, %79 : vector<2x256xf32>
    %c8_29 = arith.constant 8 : index
    %81 = memref.load %arg4[%c8_29] : memref<36xf32, #tpu.memory_space<smem>>
    %82 = vector.broadcast %81 : f32 to vector<2x256xf32>
    %83 = arith.mulf %82, %49 : vector<2x256xf32>
    %84 = arith.addf %80, %83 : vector<2x256xf32>
    %c0_30 = arith.constant 0 : index
    %85 = memref.load %arg5[%c0_30] : memref<4xf32, #tpu.memory_space<smem>>
    %86 = vector.broadcast %85 : f32 to vector<2x256xf32>
    %87 = arith.addf %84, %86 : vector<2x256xf32>
    %cst_31 = arith.constant 0.000000e+00 : f32
    %88 = vector.broadcast %cst_31 : f32 to vector<2x256xf32>
    %89 = arith.maximumf %87, %88 : vector<2x256xf32>
    %c9 = arith.constant 9 : index
    %90 = memref.load %arg4[%c9] : memref<36xf32, #tpu.memory_space<smem>>
    %91 = vector.broadcast %90 : f32 to vector<2x256xf32>
    %92 = arith.mulf %91, %26 : vector<2x256xf32>
    %c10 = arith.constant 10 : index
    %93 = memref.load %arg4[%c10] : memref<36xf32, #tpu.memory_space<smem>>
    %94 = vector.broadcast %93 : f32 to vector<2x256xf32>
    %95 = arith.mulf %94, %29 : vector<2x256xf32>
    %96 = arith.addf %92, %95 : vector<2x256xf32>
    %c11 = arith.constant 11 : index
    %97 = memref.load %arg4[%c11] : memref<36xf32, #tpu.memory_space<smem>>
    %98 = vector.broadcast %97 : f32 to vector<2x256xf32>
    %99 = arith.mulf %98, %32 : vector<2x256xf32>
    %100 = arith.addf %96, %99 : vector<2x256xf32>
    %c12 = arith.constant 12 : index
    %101 = memref.load %arg4[%c12] : memref<36xf32, #tpu.memory_space<smem>>
    %102 = vector.broadcast %101 : f32 to vector<2x256xf32>
    %103 = arith.mulf %102, %35 : vector<2x256xf32>
    %104 = arith.addf %100, %103 : vector<2x256xf32>
    %c13 = arith.constant 13 : index
    %105 = memref.load %arg4[%c13] : memref<36xf32, #tpu.memory_space<smem>>
    %106 = vector.broadcast %105 : f32 to vector<2x256xf32>
    %107 = arith.mulf %106, %37 : vector<2x256xf32>
    %108 = arith.addf %104, %107 : vector<2x256xf32>
    %c14 = arith.constant 14 : index
    %109 = memref.load %arg4[%c14] : memref<36xf32, #tpu.memory_space<smem>>
    %110 = vector.broadcast %109 : f32 to vector<2x256xf32>
    %111 = arith.mulf %110, %40 : vector<2x256xf32>
    %112 = arith.addf %108, %111 : vector<2x256xf32>
    %c15 = arith.constant 15 : index
    %113 = memref.load %arg4[%c15] : memref<36xf32, #tpu.memory_space<smem>>
    %114 = vector.broadcast %113 : f32 to vector<2x256xf32>
    %115 = arith.mulf %114, %43 : vector<2x256xf32>
    %116 = arith.addf %112, %115 : vector<2x256xf32>
    %c16 = arith.constant 16 : index
    %117 = memref.load %arg4[%c16] : memref<36xf32, #tpu.memory_space<smem>>
    %118 = vector.broadcast %117 : f32 to vector<2x256xf32>
    %119 = arith.mulf %118, %46 : vector<2x256xf32>
    %120 = arith.addf %116, %119 : vector<2x256xf32>
    %c17 = arith.constant 17 : index
    %121 = memref.load %arg4[%c17] : memref<36xf32, #tpu.memory_space<smem>>
    %122 = vector.broadcast %121 : f32 to vector<2x256xf32>
    %123 = arith.mulf %122, %49 : vector<2x256xf32>
    %124 = arith.addf %120, %123 : vector<2x256xf32>
    %c1_32 = arith.constant 1 : index
    %125 = memref.load %arg5[%c1_32] : memref<4xf32, #tpu.memory_space<smem>>
    %126 = vector.broadcast %125 : f32 to vector<2x256xf32>
    %127 = arith.addf %124, %126 : vector<2x256xf32>
    %cst_33 = arith.constant 0.000000e+00 : f32
    %128 = vector.broadcast %cst_33 : f32 to vector<2x256xf32>
    %129 = arith.maximumf %127, %128 : vector<2x256xf32>
    %c18 = arith.constant 18 : index
    %130 = memref.load %arg4[%c18] : memref<36xf32, #tpu.memory_space<smem>>
    %131 = vector.broadcast %130 : f32 to vector<2x256xf32>
    %132 = arith.mulf %131, %26 : vector<2x256xf32>
    %c19 = arith.constant 19 : index
    %133 = memref.load %arg4[%c19] : memref<36xf32, #tpu.memory_space<smem>>
    %134 = vector.broadcast %133 : f32 to vector<2x256xf32>
    %135 = arith.mulf %134, %29 : vector<2x256xf32>
    %136 = arith.addf %132, %135 : vector<2x256xf32>
    %c20 = arith.constant 20 : index
    %137 = memref.load %arg4[%c20] : memref<36xf32, #tpu.memory_space<smem>>
    %138 = vector.broadcast %137 : f32 to vector<2x256xf32>
    %139 = arith.mulf %138, %32 : vector<2x256xf32>
    %140 = arith.addf %136, %139 : vector<2x256xf32>
    %c21 = arith.constant 21 : index
    %141 = memref.load %arg4[%c21] : memref<36xf32, #tpu.memory_space<smem>>
    %142 = vector.broadcast %141 : f32 to vector<2x256xf32>
    %143 = arith.mulf %142, %35 : vector<2x256xf32>
    %144 = arith.addf %140, %143 : vector<2x256xf32>
    %c22 = arith.constant 22 : index
    %145 = memref.load %arg4[%c22] : memref<36xf32, #tpu.memory_space<smem>>
    %146 = vector.broadcast %145 : f32 to vector<2x256xf32>
    %147 = arith.mulf %146, %37 : vector<2x256xf32>
    %148 = arith.addf %144, %147 : vector<2x256xf32>
    %c23 = arith.constant 23 : index
    %149 = memref.load %arg4[%c23] : memref<36xf32, #tpu.memory_space<smem>>
    %150 = vector.broadcast %149 : f32 to vector<2x256xf32>
    %151 = arith.mulf %150, %40 : vector<2x256xf32>
    %152 = arith.addf %148, %151 : vector<2x256xf32>
    %c24 = arith.constant 24 : index
    %153 = memref.load %arg4[%c24] : memref<36xf32, #tpu.memory_space<smem>>
    %154 = vector.broadcast %153 : f32 to vector<2x256xf32>
    %155 = arith.mulf %154, %43 : vector<2x256xf32>
    %156 = arith.addf %152, %155 : vector<2x256xf32>
    %c25 = arith.constant 25 : index
    %157 = memref.load %arg4[%c25] : memref<36xf32, #tpu.memory_space<smem>>
    %158 = vector.broadcast %157 : f32 to vector<2x256xf32>
    %159 = arith.mulf %158, %46 : vector<2x256xf32>
    %160 = arith.addf %156, %159 : vector<2x256xf32>
    %c26 = arith.constant 26 : index
    %161 = memref.load %arg4[%c26] : memref<36xf32, #tpu.memory_space<smem>>
    %162 = vector.broadcast %161 : f32 to vector<2x256xf32>
    %163 = arith.mulf %162, %49 : vector<2x256xf32>
    %164 = arith.addf %160, %163 : vector<2x256xf32>
    %c2_34 = arith.constant 2 : index
    %165 = memref.load %arg5[%c2_34] : memref<4xf32, #tpu.memory_space<smem>>
    %166 = vector.broadcast %165 : f32 to vector<2x256xf32>
    %167 = arith.addf %164, %166 : vector<2x256xf32>
    %cst_35 = arith.constant 0.000000e+00 : f32
    %168 = vector.broadcast %cst_35 : f32 to vector<2x256xf32>
    %169 = arith.maximumf %167, %168 : vector<2x256xf32>
    %c27 = arith.constant 27 : index
    %170 = memref.load %arg4[%c27] : memref<36xf32, #tpu.memory_space<smem>>
    %171 = vector.broadcast %170 : f32 to vector<2x256xf32>
    %172 = arith.mulf %171, %26 : vector<2x256xf32>
    %c28 = arith.constant 28 : index
    %173 = memref.load %arg4[%c28] : memref<36xf32, #tpu.memory_space<smem>>
    %174 = vector.broadcast %173 : f32 to vector<2x256xf32>
    %175 = arith.mulf %174, %29 : vector<2x256xf32>
    %176 = arith.addf %172, %175 : vector<2x256xf32>
    %c29 = arith.constant 29 : index
    %177 = memref.load %arg4[%c29] : memref<36xf32, #tpu.memory_space<smem>>
    %178 = vector.broadcast %177 : f32 to vector<2x256xf32>
    %179 = arith.mulf %178, %32 : vector<2x256xf32>
    %180 = arith.addf %176, %179 : vector<2x256xf32>
    %c30 = arith.constant 30 : index
    %181 = memref.load %arg4[%c30] : memref<36xf32, #tpu.memory_space<smem>>
    %182 = vector.broadcast %181 : f32 to vector<2x256xf32>
    %183 = arith.mulf %182, %35 : vector<2x256xf32>
    %184 = arith.addf %180, %183 : vector<2x256xf32>
    %c31 = arith.constant 31 : index
    %185 = memref.load %arg4[%c31] : memref<36xf32, #tpu.memory_space<smem>>
    %186 = vector.broadcast %185 : f32 to vector<2x256xf32>
    %187 = arith.mulf %186, %37 : vector<2x256xf32>
    %188 = arith.addf %184, %187 : vector<2x256xf32>
    %c32 = arith.constant 32 : index
    %189 = memref.load %arg4[%c32] : memref<36xf32, #tpu.memory_space<smem>>
    %190 = vector.broadcast %189 : f32 to vector<2x256xf32>
    %191 = arith.mulf %190, %40 : vector<2x256xf32>
    %192 = arith.addf %188, %191 : vector<2x256xf32>
    %c33 = arith.constant 33 : index
    %193 = memref.load %arg4[%c33] : memref<36xf32, #tpu.memory_space<smem>>
    %194 = vector.broadcast %193 : f32 to vector<2x256xf32>
    %195 = arith.mulf %194, %43 : vector<2x256xf32>
    %196 = arith.addf %192, %195 : vector<2x256xf32>
    %c34 = arith.constant 34 : index
    %197 = memref.load %arg4[%c34] : memref<36xf32, #tpu.memory_space<smem>>
    %198 = vector.broadcast %197 : f32 to vector<2x256xf32>
    %199 = arith.mulf %198, %46 : vector<2x256xf32>
    %200 = arith.addf %196, %199 : vector<2x256xf32>
    %c35 = arith.constant 35 : index
    %201 = memref.load %arg4[%c35] : memref<36xf32, #tpu.memory_space<smem>>
    %202 = vector.broadcast %201 : f32 to vector<2x256xf32>
    %203 = arith.mulf %202, %49 : vector<2x256xf32>
    %204 = arith.addf %200, %203 : vector<2x256xf32>
    %c3_36 = arith.constant 3 : index
    %205 = memref.load %arg5[%c3_36] : memref<4xf32, #tpu.memory_space<smem>>
    %206 = vector.broadcast %205 : f32 to vector<2x256xf32>
    %207 = arith.addf %204, %206 : vector<2x256xf32>
    %cst_37 = arith.constant 0.000000e+00 : f32
    %208 = vector.broadcast %cst_37 : f32 to vector<2x256xf32>
    %209 = arith.maximumf %207, %208 : vector<2x256xf32>
    %c17_i32_38 = arith.constant 17 : i32
    %210 = tpu.dynamic_rotate %89 by %c17_i32_38 dim 1 : vector<2x256xf32>, i32 -> vector<2x256xf32>
    %211 = vector.broadcast %1 : vector<1x256xf32> to vector<2x256xf32>
    %212 = arith.mulf %211, %210 : vector<2x256xf32>
    %c16_i32_39 = arith.constant 16 : i32
    %213 = tpu.dynamic_rotate %89 by %c16_i32_39 dim 1 : vector<2x256xf32>, i32 -> vector<2x256xf32>
    %214 = vector.broadcast %3 : vector<1x256xf32> to vector<2x256xf32>
    %215 = arith.mulf %214, %213 : vector<2x256xf32>
    %c15_i32_40 = arith.constant 15 : i32
    %216 = tpu.dynamic_rotate %89 by %c15_i32_40 dim 1 : vector<2x256xf32>, i32 -> vector<2x256xf32>
    %217 = vector.broadcast %5 : vector<1x256xf32> to vector<2x256xf32>
    %218 = arith.mulf %217, %216 : vector<2x256xf32>
    %c1_i32_41 = arith.constant 1 : i32
    %219 = tpu.dynamic_rotate %89 by %c1_i32_41 dim 1 : vector<2x256xf32>, i32 -> vector<2x256xf32>
    %220 = vector.broadcast %7 : vector<1x256xf32> to vector<2x256xf32>
    %221 = arith.mulf %220, %219 : vector<2x256xf32>
    %222 = vector.broadcast %9 : vector<1x256xf32> to vector<2x256xf32>
    %223 = arith.mulf %222, %89 : vector<2x256xf32>
    %c255_i32_42 = arith.constant 255 : i32
    %224 = tpu.dynamic_rotate %89 by %c255_i32_42 dim 1 : vector<2x256xf32>, i32 -> vector<2x256xf32>
    %225 = vector.broadcast %11 : vector<1x256xf32> to vector<2x256xf32>
    %226 = arith.mulf %225, %224 : vector<2x256xf32>
    %c241_i32_43 = arith.constant 241 : i32
    %227 = tpu.dynamic_rotate %89 by %c241_i32_43 dim 1 : vector<2x256xf32>, i32 -> vector<2x256xf32>
    %228 = vector.broadcast %13 : vector<1x256xf32> to vector<2x256xf32>
    %229 = arith.mulf %228, %227 : vector<2x256xf32>
    %c240_i32_44 = arith.constant 240 : i32
    %230 = tpu.dynamic_rotate %89 by %c240_i32_44 dim 1 : vector<2x256xf32>, i32 -> vector<2x256xf32>
    %231 = vector.broadcast %15 : vector<1x256xf32> to vector<2x256xf32>
    %232 = arith.mulf %231, %230 : vector<2x256xf32>
    %c239_i32_45 = arith.constant 239 : i32
    %233 = tpu.dynamic_rotate %89 by %c239_i32_45 dim 1 : vector<2x256xf32>, i32 -> vector<2x256xf32>
    %234 = vector.broadcast %17 : vector<1x256xf32> to vector<2x256xf32>
    %235 = arith.mulf %234, %233 : vector<2x256xf32>
    %c0_46 = arith.constant 0 : index
    %236 = memref.load %arg6[%c0_46] : memref<144xf32, #tpu.memory_space<smem>>
    %237 = vector.broadcast %236 : f32 to vector<2x256xf32>
    %238 = arith.mulf %237, %212 : vector<2x256xf32>
    %c1_47 = arith.constant 1 : index
    %239 = memref.load %arg6[%c1_47] : memref<144xf32, #tpu.memory_space<smem>>
    %240 = vector.broadcast %239 : f32 to vector<2x256xf32>
    %241 = arith.mulf %240, %215 : vector<2x256xf32>
    %242 = arith.addf %238, %241 : vector<2x256xf32>
    %c2_48 = arith.constant 2 : index
    %243 = memref.load %arg6[%c2_48] : memref<144xf32, #tpu.memory_space<smem>>
    %244 = vector.broadcast %243 : f32 to vector<2x256xf32>
    %245 = arith.mulf %244, %218 : vector<2x256xf32>
    %246 = arith.addf %242, %245 : vector<2x256xf32>
    %c3_49 = arith.constant 3 : index
    %247 = memref.load %arg6[%c3_49] : memref<144xf32, #tpu.memory_space<smem>>
    %248 = vector.broadcast %247 : f32 to vector<2x256xf32>
    %249 = arith.mulf %248, %221 : vector<2x256xf32>
    %250 = arith.addf %246, %249 : vector<2x256xf32>
    %c4_50 = arith.constant 4 : index
    %251 = memref.load %arg6[%c4_50] : memref<144xf32, #tpu.memory_space<smem>>
    %252 = vector.broadcast %251 : f32 to vector<2x256xf32>
    %253 = arith.mulf %252, %223 : vector<2x256xf32>
    %254 = arith.addf %250, %253 : vector<2x256xf32>
    %c5_51 = arith.constant 5 : index
    %255 = memref.load %arg6[%c5_51] : memref<144xf32, #tpu.memory_space<smem>>
    %256 = vector.broadcast %255 : f32 to vector<2x256xf32>
    %257 = arith.mulf %256, %226 : vector<2x256xf32>
    %258 = arith.addf %254, %257 : vector<2x256xf32>
    %c6_52 = arith.constant 6 : index
    %259 = memref.load %arg6[%c6_52] : memref<144xf32, #tpu.memory_space<smem>>
    %260 = vector.broadcast %259 : f32 to vector<2x256xf32>
    %261 = arith.mulf %260, %229 : vector<2x256xf32>
    %262 = arith.addf %258, %261 : vector<2x256xf32>
    %c7_53 = arith.constant 7 : index
    %263 = memref.load %arg6[%c7_53] : memref<144xf32, #tpu.memory_space<smem>>
    %264 = vector.broadcast %263 : f32 to vector<2x256xf32>
    %265 = arith.mulf %264, %232 : vector<2x256xf32>
    %266 = arith.addf %262, %265 : vector<2x256xf32>
    %c8_54 = arith.constant 8 : index
    %267 = memref.load %arg6[%c8_54] : memref<144xf32, #tpu.memory_space<smem>>
    %268 = vector.broadcast %267 : f32 to vector<2x256xf32>
    %269 = arith.mulf %268, %235 : vector<2x256xf32>
    %270 = arith.addf %266, %269 : vector<2x256xf32>
    %c36 = arith.constant 36 : index
    %271 = memref.load %arg6[%c36] : memref<144xf32, #tpu.memory_space<smem>>
    %272 = vector.broadcast %271 : f32 to vector<2x256xf32>
    %273 = arith.mulf %272, %212 : vector<2x256xf32>
    %c37 = arith.constant 37 : index
    %274 = memref.load %arg6[%c37] : memref<144xf32, #tpu.memory_space<smem>>
    %275 = vector.broadcast %274 : f32 to vector<2x256xf32>
    %276 = arith.mulf %275, %215 : vector<2x256xf32>
    %277 = arith.addf %273, %276 : vector<2x256xf32>
    %c38 = arith.constant 38 : index
    %278 = memref.load %arg6[%c38] : memref<144xf32, #tpu.memory_space<smem>>
    %279 = vector.broadcast %278 : f32 to vector<2x256xf32>
    %280 = arith.mulf %279, %218 : vector<2x256xf32>
    %281 = arith.addf %277, %280 : vector<2x256xf32>
    %c39 = arith.constant 39 : index
    %282 = memref.load %arg6[%c39] : memref<144xf32, #tpu.memory_space<smem>>
    %283 = vector.broadcast %282 : f32 to vector<2x256xf32>
    %284 = arith.mulf %283, %221 : vector<2x256xf32>
    %285 = arith.addf %281, %284 : vector<2x256xf32>
    %c40 = arith.constant 40 : index
    %286 = memref.load %arg6[%c40] : memref<144xf32, #tpu.memory_space<smem>>
    %287 = vector.broadcast %286 : f32 to vector<2x256xf32>
    %288 = arith.mulf %287, %223 : vector<2x256xf32>
    %289 = arith.addf %285, %288 : vector<2x256xf32>
    %c41 = arith.constant 41 : index
    %290 = memref.load %arg6[%c41] : memref<144xf32, #tpu.memory_space<smem>>
    %291 = vector.broadcast %290 : f32 to vector<2x256xf32>
    %292 = arith.mulf %291, %226 : vector<2x256xf32>
    %293 = arith.addf %289, %292 : vector<2x256xf32>
    %c42 = arith.constant 42 : index
    %294 = memref.load %arg6[%c42] : memref<144xf32, #tpu.memory_space<smem>>
    %295 = vector.broadcast %294 : f32 to vector<2x256xf32>
    %296 = arith.mulf %295, %229 : vector<2x256xf32>
    %297 = arith.addf %293, %296 : vector<2x256xf32>
    %c43 = arith.constant 43 : index
    %298 = memref.load %arg6[%c43] : memref<144xf32, #tpu.memory_space<smem>>
    %299 = vector.broadcast %298 : f32 to vector<2x256xf32>
    %300 = arith.mulf %299, %232 : vector<2x256xf32>
    %301 = arith.addf %297, %300 : vector<2x256xf32>
    %c44 = arith.constant 44 : index
    %302 = memref.load %arg6[%c44] : memref<144xf32, #tpu.memory_space<smem>>
    %303 = vector.broadcast %302 : f32 to vector<2x256xf32>
    %304 = arith.mulf %303, %235 : vector<2x256xf32>
    %305 = arith.addf %301, %304 : vector<2x256xf32>
    %c72 = arith.constant 72 : index
    %306 = memref.load %arg6[%c72] : memref<144xf32, #tpu.memory_space<smem>>
    %307 = vector.broadcast %306 : f32 to vector<2x256xf32>
    %308 = arith.mulf %307, %212 : vector<2x256xf32>
    %c73 = arith.constant 73 : index
    %309 = memref.load %arg6[%c73] : memref<144xf32, #tpu.memory_space<smem>>
    %310 = vector.broadcast %309 : f32 to vector<2x256xf32>
    %311 = arith.mulf %310, %215 : vector<2x256xf32>
    %312 = arith.addf %308, %311 : vector<2x256xf32>
    %c74 = arith.constant 74 : index
    %313 = memref.load %arg6[%c74] : memref<144xf32, #tpu.memory_space<smem>>
    %314 = vector.broadcast %313 : f32 to vector<2x256xf32>
    %315 = arith.mulf %314, %218 : vector<2x256xf32>
    %316 = arith.addf %312, %315 : vector<2x256xf32>
    %c75 = arith.constant 75 : index
    %317 = memref.load %arg6[%c75] : memref<144xf32, #tpu.memory_space<smem>>
    %318 = vector.broadcast %317 : f32 to vector<2x256xf32>
    %319 = arith.mulf %318, %221 : vector<2x256xf32>
    %320 = arith.addf %316, %319 : vector<2x256xf32>
    %c76 = arith.constant 76 : index
    %321 = memref.load %arg6[%c76] : memref<144xf32, #tpu.memory_space<smem>>
    %322 = vector.broadcast %321 : f32 to vector<2x256xf32>
    %323 = arith.mulf %322, %223 : vector<2x256xf32>
    %324 = arith.addf %320, %323 : vector<2x256xf32>
    %c77 = arith.constant 77 : index
    %325 = memref.load %arg6[%c77] : memref<144xf32, #tpu.memory_space<smem>>
    %326 = vector.broadcast %325 : f32 to vector<2x256xf32>
    %327 = arith.mulf %326, %226 : vector<2x256xf32>
    %328 = arith.addf %324, %327 : vector<2x256xf32>
    %c78 = arith.constant 78 : index
    %329 = memref.load %arg6[%c78] : memref<144xf32, #tpu.memory_space<smem>>
    %330 = vector.broadcast %329 : f32 to vector<2x256xf32>
    %331 = arith.mulf %330, %229 : vector<2x256xf32>
    %332 = arith.addf %328, %331 : vector<2x256xf32>
    %c79 = arith.constant 79 : index
    %333 = memref.load %arg6[%c79] : memref<144xf32, #tpu.memory_space<smem>>
    %334 = vector.broadcast %333 : f32 to vector<2x256xf32>
    %335 = arith.mulf %334, %232 : vector<2x256xf32>
    %336 = arith.addf %332, %335 : vector<2x256xf32>
    %c80 = arith.constant 80 : index
    %337 = memref.load %arg6[%c80] : memref<144xf32, #tpu.memory_space<smem>>
    %338 = vector.broadcast %337 : f32 to vector<2x256xf32>
    %339 = arith.mulf %338, %235 : vector<2x256xf32>
    %340 = arith.addf %336, %339 : vector<2x256xf32>
    %c108 = arith.constant 108 : index
    %341 = memref.load %arg6[%c108] : memref<144xf32, #tpu.memory_space<smem>>
    %342 = vector.broadcast %341 : f32 to vector<2x256xf32>
    %343 = arith.mulf %342, %212 : vector<2x256xf32>
    %c109 = arith.constant 109 : index
    %344 = memref.load %arg6[%c109] : memref<144xf32, #tpu.memory_space<smem>>
    %345 = vector.broadcast %344 : f32 to vector<2x256xf32>
    %346 = arith.mulf %345, %215 : vector<2x256xf32>
    %347 = arith.addf %343, %346 : vector<2x256xf32>
    %c110 = arith.constant 110 : index
    %348 = memref.load %arg6[%c110] : memref<144xf32, #tpu.memory_space<smem>>
    %349 = vector.broadcast %348 : f32 to vector<2x256xf32>
    %350 = arith.mulf %349, %218 : vector<2x256xf32>
    %351 = arith.addf %347, %350 : vector<2x256xf32>
    %c111 = arith.constant 111 : index
    %352 = memref.load %arg6[%c111] : memref<144xf32, #tpu.memory_space<smem>>
    %353 = vector.broadcast %352 : f32 to vector<2x256xf32>
    %354 = arith.mulf %353, %221 : vector<2x256xf32>
    %355 = arith.addf %351, %354 : vector<2x256xf32>
    %c112 = arith.constant 112 : index
    %356 = memref.load %arg6[%c112] : memref<144xf32, #tpu.memory_space<smem>>
    %357 = vector.broadcast %356 : f32 to vector<2x256xf32>
    %358 = arith.mulf %357, %223 : vector<2x256xf32>
    %359 = arith.addf %355, %358 : vector<2x256xf32>
    %c113 = arith.constant 113 : index
    %360 = memref.load %arg6[%c113] : memref<144xf32, #tpu.memory_space<smem>>
    %361 = vector.broadcast %360 : f32 to vector<2x256xf32>
    %362 = arith.mulf %361, %226 : vector<2x256xf32>
    %363 = arith.addf %359, %362 : vector<2x256xf32>
    %c114 = arith.constant 114 : index
    %364 = memref.load %arg6[%c114] : memref<144xf32, #tpu.memory_space<smem>>
    %365 = vector.broadcast %364 : f32 to vector<2x256xf32>
    %366 = arith.mulf %365, %229 : vector<2x256xf32>
    %367 = arith.addf %363, %366 : vector<2x256xf32>
    %c115 = arith.constant 115 : index
    %368 = memref.load %arg6[%c115] : memref<144xf32, #tpu.memory_space<smem>>
    %369 = vector.broadcast %368 : f32 to vector<2x256xf32>
    %370 = arith.mulf %369, %232 : vector<2x256xf32>
    %371 = arith.addf %367, %370 : vector<2x256xf32>
    %c116 = arith.constant 116 : index
    %372 = memref.load %arg6[%c116] : memref<144xf32, #tpu.memory_space<smem>>
    %373 = vector.broadcast %372 : f32 to vector<2x256xf32>
    %374 = arith.mulf %373, %235 : vector<2x256xf32>
    %375 = arith.addf %371, %374 : vector<2x256xf32>
    %c17_i32_55 = arith.constant 17 : i32
    %376 = tpu.dynamic_rotate %129 by %c17_i32_55 dim 1 : vector<2x256xf32>, i32 -> vector<2x256xf32>
    %377 = vector.broadcast %1 : vector<1x256xf32> to vector<2x256xf32>
    %378 = arith.mulf %377, %376 : vector<2x256xf32>
    %c16_i32_56 = arith.constant 16 : i32
    %379 = tpu.dynamic_rotate %129 by %c16_i32_56 dim 1 : vector<2x256xf32>, i32 -> vector<2x256xf32>
    %380 = vector.broadcast %3 : vector<1x256xf32> to vector<2x256xf32>
    %381 = arith.mulf %380, %379 : vector<2x256xf32>
    %c15_i32_57 = arith.constant 15 : i32
    %382 = tpu.dynamic_rotate %129 by %c15_i32_57 dim 1 : vector<2x256xf32>, i32 -> vector<2x256xf32>
    %383 = vector.broadcast %5 : vector<1x256xf32> to vector<2x256xf32>
    %384 = arith.mulf %383, %382 : vector<2x256xf32>
    %c1_i32_58 = arith.constant 1 : i32
    %385 = tpu.dynamic_rotate %129 by %c1_i32_58 dim 1 : vector<2x256xf32>, i32 -> vector<2x256xf32>
    %386 = vector.broadcast %7 : vector<1x256xf32> to vector<2x256xf32>
    %387 = arith.mulf %386, %385 : vector<2x256xf32>
    %388 = vector.broadcast %9 : vector<1x256xf32> to vector<2x256xf32>
    %389 = arith.mulf %388, %129 : vector<2x256xf32>
    %c255_i32_59 = arith.constant 255 : i32
    %390 = tpu.dynamic_rotate %129 by %c255_i32_59 dim 1 : vector<2x256xf32>, i32 -> vector<2x256xf32>
    %391 = vector.broadcast %11 : vector<1x256xf32> to vector<2x256xf32>
    %392 = arith.mulf %391, %390 : vector<2x256xf32>
    %c241_i32_60 = arith.constant 241 : i32
    %393 = tpu.dynamic_rotate %129 by %c241_i32_60 dim 1 : vector<2x256xf32>, i32 -> vector<2x256xf32>
    %394 = vector.broadcast %13 : vector<1x256xf32> to vector<2x256xf32>
    %395 = arith.mulf %394, %393 : vector<2x256xf32>
    %c240_i32_61 = arith.constant 240 : i32
    %396 = tpu.dynamic_rotate %129 by %c240_i32_61 dim 1 : vector<2x256xf32>, i32 -> vector<2x256xf32>
    %397 = vector.broadcast %15 : vector<1x256xf32> to vector<2x256xf32>
    %398 = arith.mulf %397, %396 : vector<2x256xf32>
    %c239_i32_62 = arith.constant 239 : i32
    %399 = tpu.dynamic_rotate %129 by %c239_i32_62 dim 1 : vector<2x256xf32>, i32 -> vector<2x256xf32>
    %400 = vector.broadcast %17 : vector<1x256xf32> to vector<2x256xf32>
    %401 = arith.mulf %400, %399 : vector<2x256xf32>
    %c9_63 = arith.constant 9 : index
    %402 = memref.load %arg6[%c9_63] : memref<144xf32, #tpu.memory_space<smem>>
    %403 = vector.broadcast %402 : f32 to vector<2x256xf32>
    %404 = arith.mulf %403, %378 : vector<2x256xf32>
    %c10_64 = arith.constant 10 : index
    %405 = memref.load %arg6[%c10_64] : memref<144xf32, #tpu.memory_space<smem>>
    %406 = vector.broadcast %405 : f32 to vector<2x256xf32>
    %407 = arith.mulf %406, %381 : vector<2x256xf32>
    %408 = arith.addf %404, %407 : vector<2x256xf32>
    %c11_65 = arith.constant 11 : index
    %409 = memref.load %arg6[%c11_65] : memref<144xf32, #tpu.memory_space<smem>>
    %410 = vector.broadcast %409 : f32 to vector<2x256xf32>
    %411 = arith.mulf %410, %384 : vector<2x256xf32>
    %412 = arith.addf %408, %411 : vector<2x256xf32>
    %c12_66 = arith.constant 12 : index
    %413 = memref.load %arg6[%c12_66] : memref<144xf32, #tpu.memory_space<smem>>
    %414 = vector.broadcast %413 : f32 to vector<2x256xf32>
    %415 = arith.mulf %414, %387 : vector<2x256xf32>
    %416 = arith.addf %412, %415 : vector<2x256xf32>
    %c13_67 = arith.constant 13 : index
    %417 = memref.load %arg6[%c13_67] : memref<144xf32, #tpu.memory_space<smem>>
    %418 = vector.broadcast %417 : f32 to vector<2x256xf32>
    %419 = arith.mulf %418, %389 : vector<2x256xf32>
    %420 = arith.addf %416, %419 : vector<2x256xf32>
    %c14_68 = arith.constant 14 : index
    %421 = memref.load %arg6[%c14_68] : memref<144xf32, #tpu.memory_space<smem>>
    %422 = vector.broadcast %421 : f32 to vector<2x256xf32>
    %423 = arith.mulf %422, %392 : vector<2x256xf32>
    %424 = arith.addf %420, %423 : vector<2x256xf32>
    %c15_69 = arith.constant 15 : index
    %425 = memref.load %arg6[%c15_69] : memref<144xf32, #tpu.memory_space<smem>>
    %426 = vector.broadcast %425 : f32 to vector<2x256xf32>
    %427 = arith.mulf %426, %395 : vector<2x256xf32>
    %428 = arith.addf %424, %427 : vector<2x256xf32>
    %c16_70 = arith.constant 16 : index
    %429 = memref.load %arg6[%c16_70] : memref<144xf32, #tpu.memory_space<smem>>
    %430 = vector.broadcast %429 : f32 to vector<2x256xf32>
    %431 = arith.mulf %430, %398 : vector<2x256xf32>
    %432 = arith.addf %428, %431 : vector<2x256xf32>
    %c17_71 = arith.constant 17 : index
    %433 = memref.load %arg6[%c17_71] : memref<144xf32, #tpu.memory_space<smem>>
    %434 = vector.broadcast %433 : f32 to vector<2x256xf32>
    %435 = arith.mulf %434, %401 : vector<2x256xf32>
    %436 = arith.addf %432, %435 : vector<2x256xf32>
    %437 = arith.addf %270, %436 : vector<2x256xf32>
    %c45 = arith.constant 45 : index
    %438 = memref.load %arg6[%c45] : memref<144xf32, #tpu.memory_space<smem>>
    %439 = vector.broadcast %438 : f32 to vector<2x256xf32>
    %440 = arith.mulf %439, %378 : vector<2x256xf32>
    %c46 = arith.constant 46 : index
    %441 = memref.load %arg6[%c46] : memref<144xf32, #tpu.memory_space<smem>>
    %442 = vector.broadcast %441 : f32 to vector<2x256xf32>
    %443 = arith.mulf %442, %381 : vector<2x256xf32>
    %444 = arith.addf %440, %443 : vector<2x256xf32>
    %c47 = arith.constant 47 : index
    %445 = memref.load %arg6[%c47] : memref<144xf32, #tpu.memory_space<smem>>
    %446 = vector.broadcast %445 : f32 to vector<2x256xf32>
    %447 = arith.mulf %446, %384 : vector<2x256xf32>
    %448 = arith.addf %444, %447 : vector<2x256xf32>
    %c48 = arith.constant 48 : index
    %449 = memref.load %arg6[%c48] : memref<144xf32, #tpu.memory_space<smem>>
    %450 = vector.broadcast %449 : f32 to vector<2x256xf32>
    %451 = arith.mulf %450, %387 : vector<2x256xf32>
    %452 = arith.addf %448, %451 : vector<2x256xf32>
    %c49 = arith.constant 49 : index
    %453 = memref.load %arg6[%c49] : memref<144xf32, #tpu.memory_space<smem>>
    %454 = vector.broadcast %453 : f32 to vector<2x256xf32>
    %455 = arith.mulf %454, %389 : vector<2x256xf32>
    %456 = arith.addf %452, %455 : vector<2x256xf32>
    %c50 = arith.constant 50 : index
    %457 = memref.load %arg6[%c50] : memref<144xf32, #tpu.memory_space<smem>>
    %458 = vector.broadcast %457 : f32 to vector<2x256xf32>
    %459 = arith.mulf %458, %392 : vector<2x256xf32>
    %460 = arith.addf %456, %459 : vector<2x256xf32>
    %c51 = arith.constant 51 : index
    %461 = memref.load %arg6[%c51] : memref<144xf32, #tpu.memory_space<smem>>
    %462 = vector.broadcast %461 : f32 to vector<2x256xf32>
    %463 = arith.mulf %462, %395 : vector<2x256xf32>
    %464 = arith.addf %460, %463 : vector<2x256xf32>
    %c52 = arith.constant 52 : index
    %465 = memref.load %arg6[%c52] : memref<144xf32, #tpu.memory_space<smem>>
    %466 = vector.broadcast %465 : f32 to vector<2x256xf32>
    %467 = arith.mulf %466, %398 : vector<2x256xf32>
    %468 = arith.addf %464, %467 : vector<2x256xf32>
    %c53 = arith.constant 53 : index
    %469 = memref.load %arg6[%c53] : memref<144xf32, #tpu.memory_space<smem>>
    %470 = vector.broadcast %469 : f32 to vector<2x256xf32>
    %471 = arith.mulf %470, %401 : vector<2x256xf32>
    %472 = arith.addf %468, %471 : vector<2x256xf32>
    %473 = arith.addf %305, %472 : vector<2x256xf32>
    %c81 = arith.constant 81 : index
    %474 = memref.load %arg6[%c81] : memref<144xf32, #tpu.memory_space<smem>>
    %475 = vector.broadcast %474 : f32 to vector<2x256xf32>
    %476 = arith.mulf %475, %378 : vector<2x256xf32>
    %c82 = arith.constant 82 : index
    %477 = memref.load %arg6[%c82] : memref<144xf32, #tpu.memory_space<smem>>
    %478 = vector.broadcast %477 : f32 to vector<2x256xf32>
    %479 = arith.mulf %478, %381 : vector<2x256xf32>
    %480 = arith.addf %476, %479 : vector<2x256xf32>
    %c83 = arith.constant 83 : index
    %481 = memref.load %arg6[%c83] : memref<144xf32, #tpu.memory_space<smem>>
    %482 = vector.broadcast %481 : f32 to vector<2x256xf32>
    %483 = arith.mulf %482, %384 : vector<2x256xf32>
    %484 = arith.addf %480, %483 : vector<2x256xf32>
    %c84 = arith.constant 84 : index
    %485 = memref.load %arg6[%c84] : memref<144xf32, #tpu.memory_space<smem>>
    %486 = vector.broadcast %485 : f32 to vector<2x256xf32>
    %487 = arith.mulf %486, %387 : vector<2x256xf32>
    %488 = arith.addf %484, %487 : vector<2x256xf32>
    %c85 = arith.constant 85 : index
    %489 = memref.load %arg6[%c85] : memref<144xf32, #tpu.memory_space<smem>>
    %490 = vector.broadcast %489 : f32 to vector<2x256xf32>
    %491 = arith.mulf %490, %389 : vector<2x256xf32>
    %492 = arith.addf %488, %491 : vector<2x256xf32>
    %c86 = arith.constant 86 : index
    %493 = memref.load %arg6[%c86] : memref<144xf32, #tpu.memory_space<smem>>
    %494 = vector.broadcast %493 : f32 to vector<2x256xf32>
    %495 = arith.mulf %494, %392 : vector<2x256xf32>
    %496 = arith.addf %492, %495 : vector<2x256xf32>
    %c87 = arith.constant 87 : index
    %497 = memref.load %arg6[%c87] : memref<144xf32, #tpu.memory_space<smem>>
    %498 = vector.broadcast %497 : f32 to vector<2x256xf32>
    %499 = arith.mulf %498, %395 : vector<2x256xf32>
    %500 = arith.addf %496, %499 : vector<2x256xf32>
    %c88 = arith.constant 88 : index
    %501 = memref.load %arg6[%c88] : memref<144xf32, #tpu.memory_space<smem>>
    %502 = vector.broadcast %501 : f32 to vector<2x256xf32>
    %503 = arith.mulf %502, %398 : vector<2x256xf32>
    %504 = arith.addf %500, %503 : vector<2x256xf32>
    %c89 = arith.constant 89 : index
    %505 = memref.load %arg6[%c89] : memref<144xf32, #tpu.memory_space<smem>>
    %506 = vector.broadcast %505 : f32 to vector<2x256xf32>
    %507 = arith.mulf %506, %401 : vector<2x256xf32>
    %508 = arith.addf %504, %507 : vector<2x256xf32>
    %509 = arith.addf %340, %508 : vector<2x256xf32>
    %c117 = arith.constant 117 : index
    %510 = memref.load %arg6[%c117] : memref<144xf32, #tpu.memory_space<smem>>
    %511 = vector.broadcast %510 : f32 to vector<2x256xf32>
    %512 = arith.mulf %511, %378 : vector<2x256xf32>
    %c118 = arith.constant 118 : index
    %513 = memref.load %arg6[%c118] : memref<144xf32, #tpu.memory_space<smem>>
    %514 = vector.broadcast %513 : f32 to vector<2x256xf32>
    %515 = arith.mulf %514, %381 : vector<2x256xf32>
    %516 = arith.addf %512, %515 : vector<2x256xf32>
    %c119 = arith.constant 119 : index
    %517 = memref.load %arg6[%c119] : memref<144xf32, #tpu.memory_space<smem>>
    %518 = vector.broadcast %517 : f32 to vector<2x256xf32>
    %519 = arith.mulf %518, %384 : vector<2x256xf32>
    %520 = arith.addf %516, %519 : vector<2x256xf32>
    %c120 = arith.constant 120 : index
    %521 = memref.load %arg6[%c120] : memref<144xf32, #tpu.memory_space<smem>>
    %522 = vector.broadcast %521 : f32 to vector<2x256xf32>
    %523 = arith.mulf %522, %387 : vector<2x256xf32>
    %524 = arith.addf %520, %523 : vector<2x256xf32>
    %c121 = arith.constant 121 : index
    %525 = memref.load %arg6[%c121] : memref<144xf32, #tpu.memory_space<smem>>
    %526 = vector.broadcast %525 : f32 to vector<2x256xf32>
    %527 = arith.mulf %526, %389 : vector<2x256xf32>
    %528 = arith.addf %524, %527 : vector<2x256xf32>
    %c122 = arith.constant 122 : index
    %529 = memref.load %arg6[%c122] : memref<144xf32, #tpu.memory_space<smem>>
    %530 = vector.broadcast %529 : f32 to vector<2x256xf32>
    %531 = arith.mulf %530, %392 : vector<2x256xf32>
    %532 = arith.addf %528, %531 : vector<2x256xf32>
    %c123 = arith.constant 123 : index
    %533 = memref.load %arg6[%c123] : memref<144xf32, #tpu.memory_space<smem>>
    %534 = vector.broadcast %533 : f32 to vector<2x256xf32>
    %535 = arith.mulf %534, %395 : vector<2x256xf32>
    %536 = arith.addf %532, %535 : vector<2x256xf32>
    %c124 = arith.constant 124 : index
    %537 = memref.load %arg6[%c124] : memref<144xf32, #tpu.memory_space<smem>>
    %538 = vector.broadcast %537 : f32 to vector<2x256xf32>
    %539 = arith.mulf %538, %398 : vector<2x256xf32>
    %540 = arith.addf %536, %539 : vector<2x256xf32>
    %c125 = arith.constant 125 : index
    %541 = memref.load %arg6[%c125] : memref<144xf32, #tpu.memory_space<smem>>
    %542 = vector.broadcast %541 : f32 to vector<2x256xf32>
    %543 = arith.mulf %542, %401 : vector<2x256xf32>
    %544 = arith.addf %540, %543 : vector<2x256xf32>
    %545 = arith.addf %375, %544 : vector<2x256xf32>
    %c17_i32_72 = arith.constant 17 : i32
    %546 = tpu.dynamic_rotate %169 by %c17_i32_72 dim 1 : vector<2x256xf32>, i32 -> vector<2x256xf32>
    %547 = vector.broadcast %1 : vector<1x256xf32> to vector<2x256xf32>
    %548 = arith.mulf %547, %546 : vector<2x256xf32>
    %c16_i32_73 = arith.constant 16 : i32
    %549 = tpu.dynamic_rotate %169 by %c16_i32_73 dim 1 : vector<2x256xf32>, i32 -> vector<2x256xf32>
    %550 = vector.broadcast %3 : vector<1x256xf32> to vector<2x256xf32>
    %551 = arith.mulf %550, %549 : vector<2x256xf32>
    %c15_i32_74 = arith.constant 15 : i32
    %552 = tpu.dynamic_rotate %169 by %c15_i32_74 dim 1 : vector<2x256xf32>, i32 -> vector<2x256xf32>
    %553 = vector.broadcast %5 : vector<1x256xf32> to vector<2x256xf32>
    %554 = arith.mulf %553, %552 : vector<2x256xf32>
    %c1_i32_75 = arith.constant 1 : i32
    %555 = tpu.dynamic_rotate %169 by %c1_i32_75 dim 1 : vector<2x256xf32>, i32 -> vector<2x256xf32>
    %556 = vector.broadcast %7 : vector<1x256xf32> to vector<2x256xf32>
    %557 = arith.mulf %556, %555 : vector<2x256xf32>
    %558 = vector.broadcast %9 : vector<1x256xf32> to vector<2x256xf32>
    %559 = arith.mulf %558, %169 : vector<2x256xf32>
    %c255_i32_76 = arith.constant 255 : i32
    %560 = tpu.dynamic_rotate %169 by %c255_i32_76 dim 1 : vector<2x256xf32>, i32 -> vector<2x256xf32>
    %561 = vector.broadcast %11 : vector<1x256xf32> to vector<2x256xf32>
    %562 = arith.mulf %561, %560 : vector<2x256xf32>
    %c241_i32_77 = arith.constant 241 : i32
    %563 = tpu.dynamic_rotate %169 by %c241_i32_77 dim 1 : vector<2x256xf32>, i32 -> vector<2x256xf32>
    %564 = vector.broadcast %13 : vector<1x256xf32> to vector<2x256xf32>
    %565 = arith.mulf %564, %563 : vector<2x256xf32>
    %c240_i32_78 = arith.constant 240 : i32
    %566 = tpu.dynamic_rotate %169 by %c240_i32_78 dim 1 : vector<2x256xf32>, i32 -> vector<2x256xf32>
    %567 = vector.broadcast %15 : vector<1x256xf32> to vector<2x256xf32>
    %568 = arith.mulf %567, %566 : vector<2x256xf32>
    %c239_i32_79 = arith.constant 239 : i32
    %569 = tpu.dynamic_rotate %169 by %c239_i32_79 dim 1 : vector<2x256xf32>, i32 -> vector<2x256xf32>
    %570 = vector.broadcast %17 : vector<1x256xf32> to vector<2x256xf32>
    %571 = arith.mulf %570, %569 : vector<2x256xf32>
    %c18_80 = arith.constant 18 : index
    %572 = memref.load %arg6[%c18_80] : memref<144xf32, #tpu.memory_space<smem>>
    %573 = vector.broadcast %572 : f32 to vector<2x256xf32>
    %574 = arith.mulf %573, %548 : vector<2x256xf32>
    %c19_81 = arith.constant 19 : index
    %575 = memref.load %arg6[%c19_81] : memref<144xf32, #tpu.memory_space<smem>>
    %576 = vector.broadcast %575 : f32 to vector<2x256xf32>
    %577 = arith.mulf %576, %551 : vector<2x256xf32>
    %578 = arith.addf %574, %577 : vector<2x256xf32>
    %c20_82 = arith.constant 20 : index
    %579 = memref.load %arg6[%c20_82] : memref<144xf32, #tpu.memory_space<smem>>
    %580 = vector.broadcast %579 : f32 to vector<2x256xf32>
    %581 = arith.mulf %580, %554 : vector<2x256xf32>
    %582 = arith.addf %578, %581 : vector<2x256xf32>
    %c21_83 = arith.constant 21 : index
    %583 = memref.load %arg6[%c21_83] : memref<144xf32, #tpu.memory_space<smem>>
    %584 = vector.broadcast %583 : f32 to vector<2x256xf32>
    %585 = arith.mulf %584, %557 : vector<2x256xf32>
    %586 = arith.addf %582, %585 : vector<2x256xf32>
    %c22_84 = arith.constant 22 : index
    %587 = memref.load %arg6[%c22_84] : memref<144xf32, #tpu.memory_space<smem>>
    %588 = vector.broadcast %587 : f32 to vector<2x256xf32>
    %589 = arith.mulf %588, %559 : vector<2x256xf32>
    %590 = arith.addf %586, %589 : vector<2x256xf32>
    %c23_85 = arith.constant 23 : index
    %591 = memref.load %arg6[%c23_85] : memref<144xf32, #tpu.memory_space<smem>>
    %592 = vector.broadcast %591 : f32 to vector<2x256xf32>
    %593 = arith.mulf %592, %562 : vector<2x256xf32>
    %594 = arith.addf %590, %593 : vector<2x256xf32>
    %c24_86 = arith.constant 24 : index
    %595 = memref.load %arg6[%c24_86] : memref<144xf32, #tpu.memory_space<smem>>
    %596 = vector.broadcast %595 : f32 to vector<2x256xf32>
    %597 = arith.mulf %596, %565 : vector<2x256xf32>
    %598 = arith.addf %594, %597 : vector<2x256xf32>
    %c25_87 = arith.constant 25 : index
    %599 = memref.load %arg6[%c25_87] : memref<144xf32, #tpu.memory_space<smem>>
    %600 = vector.broadcast %599 : f32 to vector<2x256xf32>
    %601 = arith.mulf %600, %568 : vector<2x256xf32>
    %602 = arith.addf %598, %601 : vector<2x256xf32>
    %c26_88 = arith.constant 26 : index
    %603 = memref.load %arg6[%c26_88] : memref<144xf32, #tpu.memory_space<smem>>
    %604 = vector.broadcast %603 : f32 to vector<2x256xf32>
    %605 = arith.mulf %604, %571 : vector<2x256xf32>
    %606 = arith.addf %602, %605 : vector<2x256xf32>
    %607 = arith.addf %437, %606 : vector<2x256xf32>
    %c54 = arith.constant 54 : index
    %608 = memref.load %arg6[%c54] : memref<144xf32, #tpu.memory_space<smem>>
    %609 = vector.broadcast %608 : f32 to vector<2x256xf32>
    %610 = arith.mulf %609, %548 : vector<2x256xf32>
    %c55 = arith.constant 55 : index
    %611 = memref.load %arg6[%c55] : memref<144xf32, #tpu.memory_space<smem>>
    %612 = vector.broadcast %611 : f32 to vector<2x256xf32>
    %613 = arith.mulf %612, %551 : vector<2x256xf32>
    %614 = arith.addf %610, %613 : vector<2x256xf32>
    %c56 = arith.constant 56 : index
    %615 = memref.load %arg6[%c56] : memref<144xf32, #tpu.memory_space<smem>>
    %616 = vector.broadcast %615 : f32 to vector<2x256xf32>
    %617 = arith.mulf %616, %554 : vector<2x256xf32>
    %618 = arith.addf %614, %617 : vector<2x256xf32>
    %c57 = arith.constant 57 : index
    %619 = memref.load %arg6[%c57] : memref<144xf32, #tpu.memory_space<smem>>
    %620 = vector.broadcast %619 : f32 to vector<2x256xf32>
    %621 = arith.mulf %620, %557 : vector<2x256xf32>
    %622 = arith.addf %618, %621 : vector<2x256xf32>
    %c58 = arith.constant 58 : index
    %623 = memref.load %arg6[%c58] : memref<144xf32, #tpu.memory_space<smem>>
    %624 = vector.broadcast %623 : f32 to vector<2x256xf32>
    %625 = arith.mulf %624, %559 : vector<2x256xf32>
    %626 = arith.addf %622, %625 : vector<2x256xf32>
    %c59 = arith.constant 59 : index
    %627 = memref.load %arg6[%c59] : memref<144xf32, #tpu.memory_space<smem>>
    %628 = vector.broadcast %627 : f32 to vector<2x256xf32>
    %629 = arith.mulf %628, %562 : vector<2x256xf32>
    %630 = arith.addf %626, %629 : vector<2x256xf32>
    %c60 = arith.constant 60 : index
    %631 = memref.load %arg6[%c60] : memref<144xf32, #tpu.memory_space<smem>>
    %632 = vector.broadcast %631 : f32 to vector<2x256xf32>
    %633 = arith.mulf %632, %565 : vector<2x256xf32>
    %634 = arith.addf %630, %633 : vector<2x256xf32>
    %c61 = arith.constant 61 : index
    %635 = memref.load %arg6[%c61] : memref<144xf32, #tpu.memory_space<smem>>
    %636 = vector.broadcast %635 : f32 to vector<2x256xf32>
    %637 = arith.mulf %636, %568 : vector<2x256xf32>
    %638 = arith.addf %634, %637 : vector<2x256xf32>
    %c62 = arith.constant 62 : index
    %639 = memref.load %arg6[%c62] : memref<144xf32, #tpu.memory_space<smem>>
    %640 = vector.broadcast %639 : f32 to vector<2x256xf32>
    %641 = arith.mulf %640, %571 : vector<2x256xf32>
    %642 = arith.addf %638, %641 : vector<2x256xf32>
    %643 = arith.addf %473, %642 : vector<2x256xf32>
    %c90 = arith.constant 90 : index
    %644 = memref.load %arg6[%c90] : memref<144xf32, #tpu.memory_space<smem>>
    %645 = vector.broadcast %644 : f32 to vector<2x256xf32>
    %646 = arith.mulf %645, %548 : vector<2x256xf32>
    %c91 = arith.constant 91 : index
    %647 = memref.load %arg6[%c91] : memref<144xf32, #tpu.memory_space<smem>>
    %648 = vector.broadcast %647 : f32 to vector<2x256xf32>
    %649 = arith.mulf %648, %551 : vector<2x256xf32>
    %650 = arith.addf %646, %649 : vector<2x256xf32>
    %c92 = arith.constant 92 : index
    %651 = memref.load %arg6[%c92] : memref<144xf32, #tpu.memory_space<smem>>
    %652 = vector.broadcast %651 : f32 to vector<2x256xf32>
    %653 = arith.mulf %652, %554 : vector<2x256xf32>
    %654 = arith.addf %650, %653 : vector<2x256xf32>
    %c93 = arith.constant 93 : index
    %655 = memref.load %arg6[%c93] : memref<144xf32, #tpu.memory_space<smem>>
    %656 = vector.broadcast %655 : f32 to vector<2x256xf32>
    %657 = arith.mulf %656, %557 : vector<2x256xf32>
    %658 = arith.addf %654, %657 : vector<2x256xf32>
    %c94 = arith.constant 94 : index
    %659 = memref.load %arg6[%c94] : memref<144xf32, #tpu.memory_space<smem>>
    %660 = vector.broadcast %659 : f32 to vector<2x256xf32>
    %661 = arith.mulf %660, %559 : vector<2x256xf32>
    %662 = arith.addf %658, %661 : vector<2x256xf32>
    %c95 = arith.constant 95 : index
    %663 = memref.load %arg6[%c95] : memref<144xf32, #tpu.memory_space<smem>>
    %664 = vector.broadcast %663 : f32 to vector<2x256xf32>
    %665 = arith.mulf %664, %562 : vector<2x256xf32>
    %666 = arith.addf %662, %665 : vector<2x256xf32>
    %c96 = arith.constant 96 : index
    %667 = memref.load %arg6[%c96] : memref<144xf32, #tpu.memory_space<smem>>
    %668 = vector.broadcast %667 : f32 to vector<2x256xf32>
    %669 = arith.mulf %668, %565 : vector<2x256xf32>
    %670 = arith.addf %666, %669 : vector<2x256xf32>
    %c97 = arith.constant 97 : index
    %671 = memref.load %arg6[%c97] : memref<144xf32, #tpu.memory_space<smem>>
    %672 = vector.broadcast %671 : f32 to vector<2x256xf32>
    %673 = arith.mulf %672, %568 : vector<2x256xf32>
    %674 = arith.addf %670, %673 : vector<2x256xf32>
    %c98 = arith.constant 98 : index
    %675 = memref.load %arg6[%c98] : memref<144xf32, #tpu.memory_space<smem>>
    %676 = vector.broadcast %675 : f32 to vector<2x256xf32>
    %677 = arith.mulf %676, %571 : vector<2x256xf32>
    %678 = arith.addf %674, %677 : vector<2x256xf32>
    %679 = arith.addf %509, %678 : vector<2x256xf32>
    %c126 = arith.constant 126 : index
    %680 = memref.load %arg6[%c126] : memref<144xf32, #tpu.memory_space<smem>>
    %681 = vector.broadcast %680 : f32 to vector<2x256xf32>
    %682 = arith.mulf %681, %548 : vector<2x256xf32>
    %c127 = arith.constant 127 : index
    %683 = memref.load %arg6[%c127] : memref<144xf32, #tpu.memory_space<smem>>
    %684 = vector.broadcast %683 : f32 to vector<2x256xf32>
    %685 = arith.mulf %684, %551 : vector<2x256xf32>
    %686 = arith.addf %682, %685 : vector<2x256xf32>
    %c128 = arith.constant 128 : index
    %687 = memref.load %arg6[%c128] : memref<144xf32, #tpu.memory_space<smem>>
    %688 = vector.broadcast %687 : f32 to vector<2x256xf32>
    %689 = arith.mulf %688, %554 : vector<2x256xf32>
    %690 = arith.addf %686, %689 : vector<2x256xf32>
    %c129 = arith.constant 129 : index
    %691 = memref.load %arg6[%c129] : memref<144xf32, #tpu.memory_space<smem>>
    %692 = vector.broadcast %691 : f32 to vector<2x256xf32>
    %693 = arith.mulf %692, %557 : vector<2x256xf32>
    %694 = arith.addf %690, %693 : vector<2x256xf32>
    %c130 = arith.constant 130 : index
    %695 = memref.load %arg6[%c130] : memref<144xf32, #tpu.memory_space<smem>>
    %696 = vector.broadcast %695 : f32 to vector<2x256xf32>
    %697 = arith.mulf %696, %559 : vector<2x256xf32>
    %698 = arith.addf %694, %697 : vector<2x256xf32>
    %c131 = arith.constant 131 : index
    %699 = memref.load %arg6[%c131] : memref<144xf32, #tpu.memory_space<smem>>
    %700 = vector.broadcast %699 : f32 to vector<2x256xf32>
    %701 = arith.mulf %700, %562 : vector<2x256xf32>
    %702 = arith.addf %698, %701 : vector<2x256xf32>
    %c132 = arith.constant 132 : index
    %703 = memref.load %arg6[%c132] : memref<144xf32, #tpu.memory_space<smem>>
    %704 = vector.broadcast %703 : f32 to vector<2x256xf32>
    %705 = arith.mulf %704, %565 : vector<2x256xf32>
    %706 = arith.addf %702, %705 : vector<2x256xf32>
    %c133 = arith.constant 133 : index
    %707 = memref.load %arg6[%c133] : memref<144xf32, #tpu.memory_space<smem>>
    %708 = vector.broadcast %707 : f32 to vector<2x256xf32>
    %709 = arith.mulf %708, %568 : vector<2x256xf32>
    %710 = arith.addf %706, %709 : vector<2x256xf32>
    %c134 = arith.constant 134 : index
    %711 = memref.load %arg6[%c134] : memref<144xf32, #tpu.memory_space<smem>>
    %712 = vector.broadcast %711 : f32 to vector<2x256xf32>
    %713 = arith.mulf %712, %571 : vector<2x256xf32>
    %714 = arith.addf %710, %713 : vector<2x256xf32>
    %715 = arith.addf %545, %714 : vector<2x256xf32>
    %c17_i32_89 = arith.constant 17 : i32
    %716 = tpu.dynamic_rotate %209 by %c17_i32_89 dim 1 : vector<2x256xf32>, i32 -> vector<2x256xf32>
    %717 = vector.broadcast %1 : vector<1x256xf32> to vector<2x256xf32>
    %718 = arith.mulf %717, %716 : vector<2x256xf32>
    %c16_i32_90 = arith.constant 16 : i32
    %719 = tpu.dynamic_rotate %209 by %c16_i32_90 dim 1 : vector<2x256xf32>, i32 -> vector<2x256xf32>
    %720 = vector.broadcast %3 : vector<1x256xf32> to vector<2x256xf32>
    %721 = arith.mulf %720, %719 : vector<2x256xf32>
    %c15_i32_91 = arith.constant 15 : i32
    %722 = tpu.dynamic_rotate %209 by %c15_i32_91 dim 1 : vector<2x256xf32>, i32 -> vector<2x256xf32>
    %723 = vector.broadcast %5 : vector<1x256xf32> to vector<2x256xf32>
    %724 = arith.mulf %723, %722 : vector<2x256xf32>
    %c1_i32_92 = arith.constant 1 : i32
    %725 = tpu.dynamic_rotate %209 by %c1_i32_92 dim 1 : vector<2x256xf32>, i32 -> vector<2x256xf32>
    %726 = vector.broadcast %7 : vector<1x256xf32> to vector<2x256xf32>
    %727 = arith.mulf %726, %725 : vector<2x256xf32>
    %728 = vector.broadcast %9 : vector<1x256xf32> to vector<2x256xf32>
    %729 = arith.mulf %728, %209 : vector<2x256xf32>
    %c255_i32_93 = arith.constant 255 : i32
    %730 = tpu.dynamic_rotate %209 by %c255_i32_93 dim 1 : vector<2x256xf32>, i32 -> vector<2x256xf32>
    %731 = vector.broadcast %11 : vector<1x256xf32> to vector<2x256xf32>
    %732 = arith.mulf %731, %730 : vector<2x256xf32>
    %c241_i32_94 = arith.constant 241 : i32
    %733 = tpu.dynamic_rotate %209 by %c241_i32_94 dim 1 : vector<2x256xf32>, i32 -> vector<2x256xf32>
    %734 = vector.broadcast %13 : vector<1x256xf32> to vector<2x256xf32>
    %735 = arith.mulf %734, %733 : vector<2x256xf32>
    %c240_i32_95 = arith.constant 240 : i32
    %736 = tpu.dynamic_rotate %209 by %c240_i32_95 dim 1 : vector<2x256xf32>, i32 -> vector<2x256xf32>
    %737 = vector.broadcast %15 : vector<1x256xf32> to vector<2x256xf32>
    %738 = arith.mulf %737, %736 : vector<2x256xf32>
    %c239_i32_96 = arith.constant 239 : i32
    %739 = tpu.dynamic_rotate %209 by %c239_i32_96 dim 1 : vector<2x256xf32>, i32 -> vector<2x256xf32>
    %740 = vector.broadcast %17 : vector<1x256xf32> to vector<2x256xf32>
    %741 = arith.mulf %740, %739 : vector<2x256xf32>
    %c27_97 = arith.constant 27 : index
    %742 = memref.load %arg6[%c27_97] : memref<144xf32, #tpu.memory_space<smem>>
    %743 = vector.broadcast %742 : f32 to vector<2x256xf32>
    %744 = arith.mulf %743, %718 : vector<2x256xf32>
    %c28_98 = arith.constant 28 : index
    %745 = memref.load %arg6[%c28_98] : memref<144xf32, #tpu.memory_space<smem>>
    %746 = vector.broadcast %745 : f32 to vector<2x256xf32>
    %747 = arith.mulf %746, %721 : vector<2x256xf32>
    %748 = arith.addf %744, %747 : vector<2x256xf32>
    %c29_99 = arith.constant 29 : index
    %749 = memref.load %arg6[%c29_99] : memref<144xf32, #tpu.memory_space<smem>>
    %750 = vector.broadcast %749 : f32 to vector<2x256xf32>
    %751 = arith.mulf %750, %724 : vector<2x256xf32>
    %752 = arith.addf %748, %751 : vector<2x256xf32>
    %c30_100 = arith.constant 30 : index
    %753 = memref.load %arg6[%c30_100] : memref<144xf32, #tpu.memory_space<smem>>
    %754 = vector.broadcast %753 : f32 to vector<2x256xf32>
    %755 = arith.mulf %754, %727 : vector<2x256xf32>
    %756 = arith.addf %752, %755 : vector<2x256xf32>
    %c31_101 = arith.constant 31 : index
    %757 = memref.load %arg6[%c31_101] : memref<144xf32, #tpu.memory_space<smem>>
    %758 = vector.broadcast %757 : f32 to vector<2x256xf32>
    %759 = arith.mulf %758, %729 : vector<2x256xf32>
    %760 = arith.addf %756, %759 : vector<2x256xf32>
    %c32_102 = arith.constant 32 : index
    %761 = memref.load %arg6[%c32_102] : memref<144xf32, #tpu.memory_space<smem>>
    %762 = vector.broadcast %761 : f32 to vector<2x256xf32>
    %763 = arith.mulf %762, %732 : vector<2x256xf32>
    %764 = arith.addf %760, %763 : vector<2x256xf32>
    %c33_103 = arith.constant 33 : index
    %765 = memref.load %arg6[%c33_103] : memref<144xf32, #tpu.memory_space<smem>>
    %766 = vector.broadcast %765 : f32 to vector<2x256xf32>
    %767 = arith.mulf %766, %735 : vector<2x256xf32>
    %768 = arith.addf %764, %767 : vector<2x256xf32>
    %c34_104 = arith.constant 34 : index
    %769 = memref.load %arg6[%c34_104] : memref<144xf32, #tpu.memory_space<smem>>
    %770 = vector.broadcast %769 : f32 to vector<2x256xf32>
    %771 = arith.mulf %770, %738 : vector<2x256xf32>
    %772 = arith.addf %768, %771 : vector<2x256xf32>
    %c35_105 = arith.constant 35 : index
    %773 = memref.load %arg6[%c35_105] : memref<144xf32, #tpu.memory_space<smem>>
    %774 = vector.broadcast %773 : f32 to vector<2x256xf32>
    %775 = arith.mulf %774, %741 : vector<2x256xf32>
    %776 = arith.addf %772, %775 : vector<2x256xf32>
    %777 = arith.addf %607, %776 : vector<2x256xf32>
    %c63 = arith.constant 63 : index
    %778 = memref.load %arg6[%c63] : memref<144xf32, #tpu.memory_space<smem>>
    %779 = vector.broadcast %778 : f32 to vector<2x256xf32>
    %780 = arith.mulf %779, %718 : vector<2x256xf32>
    %c64 = arith.constant 64 : index
    %781 = memref.load %arg6[%c64] : memref<144xf32, #tpu.memory_space<smem>>
    %782 = vector.broadcast %781 : f32 to vector<2x256xf32>
    %783 = arith.mulf %782, %721 : vector<2x256xf32>
    %784 = arith.addf %780, %783 : vector<2x256xf32>
    %c65 = arith.constant 65 : index
    %785 = memref.load %arg6[%c65] : memref<144xf32, #tpu.memory_space<smem>>
    %786 = vector.broadcast %785 : f32 to vector<2x256xf32>
    %787 = arith.mulf %786, %724 : vector<2x256xf32>
    %788 = arith.addf %784, %787 : vector<2x256xf32>
    %c66 = arith.constant 66 : index
    %789 = memref.load %arg6[%c66] : memref<144xf32, #tpu.memory_space<smem>>
    %790 = vector.broadcast %789 : f32 to vector<2x256xf32>
    %791 = arith.mulf %790, %727 : vector<2x256xf32>
    %792 = arith.addf %788, %791 : vector<2x256xf32>
    %c67 = arith.constant 67 : index
    %793 = memref.load %arg6[%c67] : memref<144xf32, #tpu.memory_space<smem>>
    %794 = vector.broadcast %793 : f32 to vector<2x256xf32>
    %795 = arith.mulf %794, %729 : vector<2x256xf32>
    %796 = arith.addf %792, %795 : vector<2x256xf32>
    %c68 = arith.constant 68 : index
    %797 = memref.load %arg6[%c68] : memref<144xf32, #tpu.memory_space<smem>>
    %798 = vector.broadcast %797 : f32 to vector<2x256xf32>
    %799 = arith.mulf %798, %732 : vector<2x256xf32>
    %800 = arith.addf %796, %799 : vector<2x256xf32>
    %c69 = arith.constant 69 : index
    %801 = memref.load %arg6[%c69] : memref<144xf32, #tpu.memory_space<smem>>
    %802 = vector.broadcast %801 : f32 to vector<2x256xf32>
    %803 = arith.mulf %802, %735 : vector<2x256xf32>
    %804 = arith.addf %800, %803 : vector<2x256xf32>
    %c70 = arith.constant 70 : index
    %805 = memref.load %arg6[%c70] : memref<144xf32, #tpu.memory_space<smem>>
    %806 = vector.broadcast %805 : f32 to vector<2x256xf32>
    %807 = arith.mulf %806, %738 : vector<2x256xf32>
    %808 = arith.addf %804, %807 : vector<2x256xf32>
    %c71 = arith.constant 71 : index
    %809 = memref.load %arg6[%c71] : memref<144xf32, #tpu.memory_space<smem>>
    %810 = vector.broadcast %809 : f32 to vector<2x256xf32>
    %811 = arith.mulf %810, %741 : vector<2x256xf32>
    %812 = arith.addf %808, %811 : vector<2x256xf32>
    %813 = arith.addf %643, %812 : vector<2x256xf32>
    %c99 = arith.constant 99 : index
    %814 = memref.load %arg6[%c99] : memref<144xf32, #tpu.memory_space<smem>>
    %815 = vector.broadcast %814 : f32 to vector<2x256xf32>
    %816 = arith.mulf %815, %718 : vector<2x256xf32>
    %c100 = arith.constant 100 : index
    %817 = memref.load %arg6[%c100] : memref<144xf32, #tpu.memory_space<smem>>
    %818 = vector.broadcast %817 : f32 to vector<2x256xf32>
    %819 = arith.mulf %818, %721 : vector<2x256xf32>
    %820 = arith.addf %816, %819 : vector<2x256xf32>
    %c101 = arith.constant 101 : index
    %821 = memref.load %arg6[%c101] : memref<144xf32, #tpu.memory_space<smem>>
    %822 = vector.broadcast %821 : f32 to vector<2x256xf32>
    %823 = arith.mulf %822, %724 : vector<2x256xf32>
    %824 = arith.addf %820, %823 : vector<2x256xf32>
    %c102 = arith.constant 102 : index
    %825 = memref.load %arg6[%c102] : memref<144xf32, #tpu.memory_space<smem>>
    %826 = vector.broadcast %825 : f32 to vector<2x256xf32>
    %827 = arith.mulf %826, %727 : vector<2x256xf32>
    %828 = arith.addf %824, %827 : vector<2x256xf32>
    %c103 = arith.constant 103 : index
    %829 = memref.load %arg6[%c103] : memref<144xf32, #tpu.memory_space<smem>>
    %830 = vector.broadcast %829 : f32 to vector<2x256xf32>
    %831 = arith.mulf %830, %729 : vector<2x256xf32>
    %832 = arith.addf %828, %831 : vector<2x256xf32>
    %c104 = arith.constant 104 : index
    %833 = memref.load %arg6[%c104] : memref<144xf32, #tpu.memory_space<smem>>
    %834 = vector.broadcast %833 : f32 to vector<2x256xf32>
    %835 = arith.mulf %834, %732 : vector<2x256xf32>
    %836 = arith.addf %832, %835 : vector<2x256xf32>
    %c105 = arith.constant 105 : index
    %837 = memref.load %arg6[%c105] : memref<144xf32, #tpu.memory_space<smem>>
    %838 = vector.broadcast %837 : f32 to vector<2x256xf32>
    %839 = arith.mulf %838, %735 : vector<2x256xf32>
    %840 = arith.addf %836, %839 : vector<2x256xf32>
    %c106 = arith.constant 106 : index
    %841 = memref.load %arg6[%c106] : memref<144xf32, #tpu.memory_space<smem>>
    %842 = vector.broadcast %841 : f32 to vector<2x256xf32>
    %843 = arith.mulf %842, %738 : vector<2x256xf32>
    %844 = arith.addf %840, %843 : vector<2x256xf32>
    %c107 = arith.constant 107 : index
    %845 = memref.load %arg6[%c107] : memref<144xf32, #tpu.memory_space<smem>>
    %846 = vector.broadcast %845 : f32 to vector<2x256xf32>
    %847 = arith.mulf %846, %741 : vector<2x256xf32>
    %848 = arith.addf %844, %847 : vector<2x256xf32>
    %849 = arith.addf %679, %848 : vector<2x256xf32>
    %c135 = arith.constant 135 : index
    %850 = memref.load %arg6[%c135] : memref<144xf32, #tpu.memory_space<smem>>
    %851 = vector.broadcast %850 : f32 to vector<2x256xf32>
    %852 = arith.mulf %851, %718 : vector<2x256xf32>
    %c136 = arith.constant 136 : index
    %853 = memref.load %arg6[%c136] : memref<144xf32, #tpu.memory_space<smem>>
    %854 = vector.broadcast %853 : f32 to vector<2x256xf32>
    %855 = arith.mulf %854, %721 : vector<2x256xf32>
    %856 = arith.addf %852, %855 : vector<2x256xf32>
    %c137 = arith.constant 137 : index
    %857 = memref.load %arg6[%c137] : memref<144xf32, #tpu.memory_space<smem>>
    %858 = vector.broadcast %857 : f32 to vector<2x256xf32>
    %859 = arith.mulf %858, %724 : vector<2x256xf32>
    %860 = arith.addf %856, %859 : vector<2x256xf32>
    %c138 = arith.constant 138 : index
    %861 = memref.load %arg6[%c138] : memref<144xf32, #tpu.memory_space<smem>>
    %862 = vector.broadcast %861 : f32 to vector<2x256xf32>
    %863 = arith.mulf %862, %727 : vector<2x256xf32>
    %864 = arith.addf %860, %863 : vector<2x256xf32>
    %c139 = arith.constant 139 : index
    %865 = memref.load %arg6[%c139] : memref<144xf32, #tpu.memory_space<smem>>
    %866 = vector.broadcast %865 : f32 to vector<2x256xf32>
    %867 = arith.mulf %866, %729 : vector<2x256xf32>
    %868 = arith.addf %864, %867 : vector<2x256xf32>
    %c140 = arith.constant 140 : index
    %869 = memref.load %arg6[%c140] : memref<144xf32, #tpu.memory_space<smem>>
    %870 = vector.broadcast %869 : f32 to vector<2x256xf32>
    %871 = arith.mulf %870, %732 : vector<2x256xf32>
    %872 = arith.addf %868, %871 : vector<2x256xf32>
    %c141 = arith.constant 141 : index
    %873 = memref.load %arg6[%c141] : memref<144xf32, #tpu.memory_space<smem>>
    %874 = vector.broadcast %873 : f32 to vector<2x256xf32>
    %875 = arith.mulf %874, %735 : vector<2x256xf32>
    %876 = arith.addf %872, %875 : vector<2x256xf32>
    %c142 = arith.constant 142 : index
    %877 = memref.load %arg6[%c142] : memref<144xf32, #tpu.memory_space<smem>>
    %878 = vector.broadcast %877 : f32 to vector<2x256xf32>
    %879 = arith.mulf %878, %738 : vector<2x256xf32>
    %880 = arith.addf %876, %879 : vector<2x256xf32>
    %c143 = arith.constant 143 : index
    %881 = memref.load %arg6[%c143] : memref<144xf32, #tpu.memory_space<smem>>
    %882 = vector.broadcast %881 : f32 to vector<2x256xf32>
    %883 = arith.mulf %882, %741 : vector<2x256xf32>
    %884 = arith.addf %880, %883 : vector<2x256xf32>
    %885 = arith.addf %715, %884 : vector<2x256xf32>
    %c0_106 = arith.constant 0 : index
    %886 = memref.load %arg7[%c0_106] : memref<4xf32, #tpu.memory_space<smem>>
    %887 = vector.broadcast %886 : f32 to vector<2x256xf32>
    %888 = arith.addf %777, %887 : vector<2x256xf32>
    %cst_107 = arith.constant 0.000000e+00 : f32
    %889 = vector.broadcast %cst_107 : f32 to vector<2x256xf32>
    %890 = arith.maximumf %888, %889 : vector<2x256xf32>
    %c0_108 = arith.constant 0 : index
    %c0_109 = arith.constant 0 : index
    %c0_110 = arith.constant 0 : index
    %891 = vector.load %arg8[%c0_108, %c0_109, %c0_110] : memref<2x4x256xf32, #tpu.memory_space<vmem>>, vector<2x1x256xf32>
    %892 = vector.shape_cast %891 : vector<2x1x256xf32> to vector<2x256xf32>
    %893 = vector.shape_cast %890 : vector<2x256xf32> to vector<2x1x256xf32>
    tpu.vector_store %arg8[%c0_108, %c0_109, %c0_110], %893 {strides = array<i32>} : memref<2x4x256xf32, #tpu.memory_space<vmem>>, vector<2x1x256xf32>,
    %c1_111 = arith.constant 1 : index
    %894 = memref.load %arg7[%c1_111] : memref<4xf32, #tpu.memory_space<smem>>
    %895 = vector.broadcast %894 : f32 to vector<2x256xf32>
    %896 = arith.addf %813, %895 : vector<2x256xf32>
    %cst_112 = arith.constant 0.000000e+00 : f32
    %897 = vector.broadcast %cst_112 : f32 to vector<2x256xf32>
    %898 = arith.maximumf %896, %897 : vector<2x256xf32>
    %c0_113 = arith.constant 0 : index
    %c1_114 = arith.constant 1 : index
    %c0_115 = arith.constant 0 : index
    %899 = vector.load %arg8[%c0_113, %c1_114, %c0_115] : memref<2x4x256xf32, #tpu.memory_space<vmem>>, vector<2x1x256xf32>
    %900 = vector.shape_cast %899 : vector<2x1x256xf32> to vector<2x256xf32>
    %901 = vector.shape_cast %898 : vector<2x256xf32> to vector<2x1x256xf32>
    tpu.vector_store %arg8[%c0_113, %c1_114, %c0_115], %901 {strides = array<i32>} : memref<2x4x256xf32, #tpu.memory_space<vmem>>, vector<2x1x256xf32>,
    %c2_116 = arith.constant 2 : index
    %902 = memref.load %arg7[%c2_116] : memref<4xf32, #tpu.memory_space<smem>>
    %903 = vector.broadcast %902 : f32 to vector<2x256xf32>
    %904 = arith.addf %849, %903 : vector<2x256xf32>
    %cst_117 = arith.constant 0.000000e+00 : f32
    %905 = vector.broadcast %cst_117 : f32 to vector<2x256xf32>
    %906 = arith.maximumf %904, %905 : vector<2x256xf32>
    %c0_118 = arith.constant 0 : index
    %c2_119 = arith.constant 2 : index
    %c0_120 = arith.constant 0 : index
    %907 = vector.load %arg8[%c0_118, %c2_119, %c0_120] : memref<2x4x256xf32, #tpu.memory_space<vmem>>, vector<2x1x256xf32>
    %908 = vector.shape_cast %907 : vector<2x1x256xf32> to vector<2x256xf32>
    %909 = vector.shape_cast %906 : vector<2x256xf32> to vector<2x1x256xf32>
    tpu.vector_store %arg8[%c0_118, %c2_119, %c0_120], %909 {strides = array<i32>} : memref<2x4x256xf32, #tpu.memory_space<vmem>>, vector<2x1x256xf32>,
    %c3_121 = arith.constant 3 : index
    %910 = memref.load %arg7[%c3_121] : memref<4xf32, #tpu.memory_space<smem>>
    %911 = vector.broadcast %910 : f32 to vector<2x256xf32>
    %912 = arith.addf %885, %911 : vector<2x256xf32>
    %cst_122 = arith.constant 0.000000e+00 : f32
    %913 = vector.broadcast %cst_122 : f32 to vector<2x256xf32>
    %914 = arith.maximumf %912, %913 : vector<2x256xf32>
    %c0_123 = arith.constant 0 : index
    %c3_124 = arith.constant 3 : index
    %c0_125 = arith.constant 0 : index
    %915 = vector.load %arg8[%c0_123, %c3_124, %c0_125] : memref<2x4x256xf32, #tpu.memory_space<vmem>>, vector<2x1x256xf32>
    %916 = vector.shape_cast %915 : vector<2x1x256xf32> to vector<2x256xf32>
    %917 = vector.shape_cast %914 : vector<2x256xf32> to vector<2x1x256xf32>
    tpu.vector_store %arg8[%c0_123, %c3_124, %c0_125], %917 {strides = array<i32>} : memref<2x4x256xf32, #tpu.memory_space<vmem>>, vector<2x1x256xf32>,
    return
  }
  func.func @transform_0(%arg0: i32) -> (i32, i32) {
    %c0_i32 = arith.constant 0 : i32
    %c0_i32_0 = arith.constant 0 : i32
    return %arg0, %c0_i32 : i32, i32
  }
  func.func @transform_1(%arg0: i32) -> (i32, i32, i32) {
    %c0_i32 = arith.constant 0 : i32
    %c0_i32_0 = arith.constant 0 : i32
    %c0_i32_1 = arith.constant 0 : i32
    %c0_i32_2 = arith.constant 0 : i32
    return %c0_i32, %c0_i32_0, %c0_i32_1 : i32, i32, i32
  }
  func.func @transform_2(%arg0: i32) -> i32 {
    %c0_i32 = arith.constant 0 : i32
    %c0_i32_0 = arith.constant 0 : i32
    return %c0_i32 : i32
  }
  func.func @transform_3(%arg0: i32) -> i32 {
    %c0_i32 = arith.constant 0 : i32
    %c0_i32_0 = arith.constant 0 : i32
    return %c0_i32 : i32
  }
  func.func @transform_4(%arg0: i32) -> i32 {
    %c0_i32 = arith.constant 0 : i32
    %c0_i32_0 = arith.constant 0 : i32
    return %c0_i32 : i32
  }
  func.func @transform_5(%arg0: i32) -> i32 {
    %c0_i32 = arith.constant 0 : i32
    %c0_i32_0 = arith.constant 0 : i32
    return %c0_i32 : i32
  }
  func.func @transform_6(%arg0: i32) -> i32 {
    %c0_i32 = arith.constant 0 : i32
    %c0_i32_0 = arith.constant 0 : i32
    return %c0_i32 : i32
  }
  func.func @transform_7(%arg0: i32) -> (i32, i32, i32) {
    %c0_i32 = arith.constant 0 : i32
    %c0_i32_0 = arith.constant 0 : i32
    %c0_i32_1 = arith.constant 0 : i32
    return %arg0, %c0_i32, %c0_i32_0 : i32, i32, i32
  }
}

</mosaic_0001>

<bundles_post_ra>
// kernel: window_trunction_forward.2
= control target key start
LH: loop header
LB: loop body
LE: loop exit
PB: predicated region body
PF: predicated region fallthrough
CT: control target
= control target key end

     0   :  { %s2798_s0 = inlined_call_operand.hbm [shape: f32[2,4,256], index: 0, kind: input, shape index: {}]   ;;  %s2799_s1 = inlined_call_operand.hbm [shape: f32[9,1,256], index: 1, kind: input, shape index: {}]   ;;  %s2800_s2 = inlined_call_operand.hbm [shape: f32[256,16], index: 2, kind: input, shape index: {}]   ;;  %s2801_s3 = inlined_call_operand.hbm [shape: f32[256,16], index: 3, kind: input, shape index: {}]   ;;  %s2802_s4 = inlined_call_operand.hbm [shape: f32[16,256], index: 4, kind: input, shape index: {}]   ;;  %s2803_s5 = inlined_call_operand.hbm [shape: f32[4], index: 5, kind: input, shape index: {}]   ;;  %s2804_s6 = inlined_call_operand.<no memory space> [shape: f32[1], index: 6, kind: input, shape index: {}]   ;;  %s2805_s7 = inlined_call_operand.hbm [shape: f32[9], index: 7, kind: input, shape index: {}]   ;;  %s2806_s8 = inlined_call_operand.<no memory space> [shape: f32[1], index: 8, kind: input, shape index: {}]   ;;  %s2807_s9 = inlined_call_operand.hbm [shape: f32[9], index: 9, kind: input, shape index: {}]   ;;  %s2808_s10 = inlined_call_operand.<no memory space> [shape: f32[1], index: 10, kind: input, shape index: {}]   ;;  %s2809_s11 = inlined_call_operand.hbm [shape: f32[8], index: 11, kind: input, shape index: {}]   ;;  %s2810_s12 = inlined_call_operand.hbm [shape: f32[8], index: 12, kind: input, shape index: {}]   ;;  %s2811_s13 = inlined_call_operand.hbm [shape: f32[8], index: 13, kind: input, shape index: {}]   ;;  %s2812_s14 = inlined_call_operand.<no memory space> [shape: f32[1], index: 14, kind: input, shape index: {}]   ;;  %s2813_s15 = inlined_call_operand.hbm [shape: f32[8], index: 15, kind: input, shape index: {}]   ;;  %s2814_s16 = inlined_call_operand.<no memory space> [shape: f32[1], index: 16, kind: input, shape index: {}]   ;;  %s2815_s17 = inlined_call_operand.hbm [shape: f32[2,256], index: 17, kind: output, shape index: {0}]   ;;  %s2816_s18 = inlined_call_operand.hbm [shape: f32[2,1], index: 18, kind: output, shape index: {1}]  }
   0x1   :  { %2821 = sst [smem:[#allocation39_spill]] %s2798_s0 }
   0x2   :  { %2822 = sst [smem:[#allocation40_spill]] %s2799_s1 }
   0x3   :  { %2823 = sst [smem:[#allocation41_spill]] %s2800_s2 }
   0x4   :  { %2824 = sst [smem:[#allocation42_spill]] %s2816_s18 }
   0x5   :  { %29 = vsyncpa [#allocation8], 0 }
   0x6   :  { %30 = vsyncpa [#allocation12], 0 }
   0x7   :  { %31 = vsyncpa [#allocation15], 0 }
   0x8   :  { %32 = vsyncpa [#allocation10], 0 }
   0x9   :  { %33 = vsyncpa [#allocation19], 0 }
   0xa   :  { %34 = vsyncpa [#allocation22], 0 }
   0xb   :  { %35 = vsyncpa [#allocation25], 0 }
   0xc   :  { %36 = vsyncpa [#allocation9], 0 }
   0xd   :  { %37 = vsyncpa [#allocation29], 0  ;;  %s1919_s27 = smov [#allocation11]   ;;  %s2825_s0 = sld [smem:[#allocation40_spill]] }
   0xe   :  { %s55_s28 = sshll.u32 %s1919_s27, 4  ;;  %s56_s28 = int_to_ptr.vmem [resolvable:$true] %s55_s28 }
  0x13   :  { %s1677_s19 = scalar_lea.hbm %s2825_s0, 288 }
  0x14   :  { %p1678_p0 = scmp.ne.s32.totalorder %s2825_s0, %s1677_s19  ;;  %p1681_p1 = scmp.lt.u32.totalorder %s1677_s19, %s2825_s0 }
  0x16   :  { %p1683_p2 = pnand %p1681_p1, %p1678_p0 }
  0x18   :  { %1686 = shalt.err (!%p1683_p2)
}
  0x19   :  { %s1687_s2 = scalar_lea.vmem %s56_s28, 288  ;;  %p1692_p4 = scmp.lt.s32.totalorder %s56_s28, %s56_s28 }
  0x1a   :  { %p1688_p3 = scmp.ne.s32.totalorder %s56_s28, %s1687_s2  ;;  %p1693_p5 = scmp.lt.s32.totalorder %s1687_s2, %s1687_s2 }
  0x1c   :  { %p1694_p6 = por %p1693_p5, %p1692_p4 }
  0x1e   :  { %p1695_p7 = pnand %p1694_p6, %p1688_p3 }
  0x20   :  { %1698 = shalt.err (!%p1695_p7)
}
  0x21   :  { %s1920_s23 = smov 32   ;;  %s1921_s24 = smov 2  }
  0x22   :  { %61 = dma.hbm_to_vmem [thread:$0]  %s2825_s0, 288, %s56_s28, [#allocation12], %s1920_s23, %s1920_s23, %s1921_s24  }
  0x23   :  { %s1922_s27 = smov [#allocation14]   ;;  %s1699_s1 = scalar_lea.hbm %s2801_s3, 4096 }
  0x24   :  { %s79_s29 = sshll.u32 %s1922_s27, 4  ;;  %p1700_p8 = scmp.ne.s32.totalorder %s2801_s3, %s1699_s1  ;;  %s80_s29 = int_to_ptr.vmem [resolvable:$true] %s79_s29 }
  0x25   :  { %p1703_p9 = scmp.lt.u32.totalorder %s1699_s1, %s2801_s3 }
  0x27   :  { %p1705_p10 = pnand %p1703_p9, %p1700_p8 }
  0x29   :  { %1708 = shalt.err (!%p1705_p10)
}
  0x2a   :  { %s1709_s18 = scalar_lea.vmem %s80_s29, 4096  ;;  %p1714_p12 = scmp.lt.s32.totalorder %s80_s29, %s80_s29 }
  0x2b   :  { %p1710_p11 = scmp.ne.s32.totalorder %s80_s29, %s1709_s18  ;;  %p1715_p13 = scmp.lt.s32.totalorder %s1709_s18, %s1709_s18 }
  0x2d   :  { %p1716_p0 = por %p1715_p13, %p1714_p12 }
  0x2f   :  { %p1717_p1 = pnand %p1716_p0, %p1710_p11 }
  0x31   :  { %1720 = shalt.err (!%p1717_p1)
}
  0x32   :  { %s1923_s28 = smov 128   ;;  %s1924_s0 = smov 8  }
  0x33   :  { %85 = dma.hbm_to_vmem [thread:$0]  %s2801_s3, 4096, %s80_s29, [#allocation15], %s1923_s28, %s1923_s28, %s1924_s0  }
  0x34   :  { %s1721_s27 = scalar_lea.hbm %s2805_s7, 16 }
  0x35   :  { %p1722_p2 = scmp.ne.s32.totalorder %s2805_s7, %s1721_s27  ;;  %p1725_p3 = scmp.lt.u32.totalorder %s1721_s27, %s2805_s7 }
  0x37   :  { %p1727_p4 = pnand %p1725_p3, %p1722_p2 }
  0x39   :  { %1730 = shalt.err (!%p1727_p4)
}
  0x3a   :  { %s1925_s20 = smov [#allocation18]   ;;  %s1731_s2 = scalar_lea.hbm %s2809_s11, 16 }
  0x3b   :  { %115 = dma.hbm_to_smem %s2805_s7, 16, %s1925_s20, [#allocation19]  }
  0x3c   :  { %p1732_p5 = scmp.ne.s32.totalorder %s2809_s11, %s1731_s2  ;;  %p1735_p6 = scmp.lt.u32.totalorder %s1731_s2, %s2809_s11 }
  0x3e   :  { %p1737_p7 = pnand %p1735_p6, %p1732_p5 }
  0x40   :  { %1740 = shalt.err (!%p1737_p7)
}
  0x41   :  { %s1926_s27 = smov [#allocation21]   ;;  %s1741_s1 = scalar_lea.hbm %s2811_s13, 16 }
  0x42   :  { %135 = dma.hbm_to_smem %s2809_s11, 16, %s1926_s27, [#allocation22]  }
  0x43   :  { %p1742_p8 = scmp.ne.s32.totalorder %s2811_s13, %s1741_s1  ;;  %p1745_p9 = scmp.lt.u32.totalorder %s1741_s1, %s2811_s13 }
  0x45   :  { %p1747_p10 = pnand %p1745_p9, %p1742_p8 }
  0x47   :  { %1750 = shalt.err (!%p1747_p10)
}
  0x48   :  { %s1927_s29 = smov [#allocation24]   ;;  %s1928_s11 = smov [#allocation7]  }
  0x49   :  { %151 = dma.hbm_to_smem %s2811_s13, 16, %s1927_s29, [#allocation25]  }
  0x4a   :  { %s43_s24 = sshll.u32 %s1928_s11, 4  ;;  %s1929_s25 = smov [#allocation13]   ;;  %s44_s24 = int_to_ptr.vmem [resolvable:$true] %s43_s24 }
  0x4b   :  { %s67_s26 = sshll.u32 %s1929_s25, 4  ;;  %s2826_s19 = sld [smem:[#allocation39_spill]]  ;;  %s68_s26 = int_to_ptr.vmem [resolvable:$true] %s67_s26 }
  0x51   :  { %s1751_s7 = scalar_lea.hbm %s2826_s19, 256 }
  0x52   :  { %p1752_p11 = scmp.ne.s32.totalorder %s2826_s19, %s1751_s7  ;;  %p1755_p12 = scmp.lt.u32.totalorder %s1751_s7, %s2826_s19 }
  0x54   :  { %p1757_p13 = pnand %p1755_p12, %p1752_p11 }
  0x56   :  { %1760 = shalt.err (!%p1757_p13)
}
  0x57   :  { %s1761_s13 = scalar_lea.vmem %s44_s24, 256  ;;  %p1766_p1 = scmp.lt.s32.totalorder %s44_s24, %s44_s24 }
  0x58   :  { %p1762_p0 = scmp.ne.s32.totalorder %s44_s24, %s1761_s13  ;;  %p1767_p2 = scmp.lt.s32.totalorder %s1761_s13, %s1761_s13 }
  0x5a   :  { %p1768_p3 = por %p1767_p2, %p1766_p1 }
  0x5c   :  { %p1769_p4 = pnand %p1768_p3, %p1762_p0 }
  0x5e   :  { %1772 = shalt.err (!%p1769_p4)
}
  0x5f   :  { %49 = dma.hbm_to_vmem [thread:$0]  %s2826_s19, 256, %s44_s24, [#allocation8], %s1923_s28, %s1923_s28, %s1924_s0  }
  0x60   :  { %s2827_s23 = sld [smem:[#allocation41_spill]] }
  0x66   :  { %s1773_s11 = scalar_lea.hbm %s2827_s23, 4096 }
  0x67   :  { %p1774_p5 = scmp.ne.s32.totalorder %s2827_s23, %s1773_s11  ;;  %p1777_p6 = scmp.lt.u32.totalorder %s1773_s11, %s2827_s23 }
  0x69   :  { %p1779_p7 = pnand %p1777_p6, %p1774_p5 }
  0x6b   :  { %1782 = shalt.err (!%p1779_p7)
}
  0x6c   :  { %s1783_s18 = scalar_lea.vmem %s68_s26, 4096  ;;  %p1788_p9 = scmp.lt.s32.totalorder %s68_s26, %s68_s26 }
  0x6d   :  { %p1784_p8 = scmp.ne.s32.totalorder %s68_s26, %s1783_s18  ;;  %p1789_p10 = scmp.lt.s32.totalorder %s1783_s18, %s1783_s18 }
  0x6f   :  { %p1790_p11 = por %p1789_p10, %p1788_p9 }
  0x71   :  { %p1791_p12 = pnand %p1790_p11, %p1784_p8 }
  0x73   :  { %1794 = shalt.err (!%p1791_p12)
}
  0x74   :  { %73 = dma.hbm_to_vmem [thread:$0]  %s2827_s23, 4096, %s68_s26, [#allocation12], %s1923_s28, %s1923_s28, %s1924_s0  }
  0x75   :  { %s1930_s20 = smov [#allocation16]   ;;  %s1795_s22 = scalar_lea.hbm %s2802_s4, 512 }
  0x76   :  { %s91_s1 = sshll.u32 %s1930_s20, 4  ;;  %p1796_p13 = scmp.ne.s32.totalorder %s2802_s4, %s1795_s22  ;;  %s92_s1 = int_to_ptr.vmem [resolvable:$true] %s91_s1 }
  0x77   :  { %p1799_p0 = scmp.lt.u32.totalorder %s1795_s22, %s2802_s4 }
  0x79   :  { %p1801_p1 = pnand %p1799_p0, %p1796_p13 }
  0x7b   :  { %1804 = shalt.err (!%p1801_p1)
}
  0x7c   :  { %s1805_s25 = scalar_lea.vmem %s92_s1, 512  ;;  %p1810_p3 = scmp.lt.s32.totalorder %s92_s1, %s92_s1 }
  0x7d   :  { %p1806_p2 = scmp.ne.s32.totalorder %s92_s1, %s1805_s25  ;;  %p1811_p4 = scmp.lt.s32.totalorder %s1805_s25, %s1805_s25 }
  0x7f   :  { %p1812_p5 = por %p1811_p4, %p1810_p3 }
  0x81   :  { %p1813_p6 = pnand %p1812_p5, %p1806_p2 }
  0x83   :  { %1816 = shalt.err (!%p1813_p6)
}
  0x84   :  { %s1931_s28 = smov 256   ;;  %s1932_s0 = smov 16  }
  0x85   :  { %97 = dma.hbm_to_vmem [thread:$0]  %s2802_s4, 512, %s92_s1, [#allocation15], %s1931_s28, %s1931_s28, %s1932_s0  }
  0x86   :  { %s1817_s7 = scalar_lea.hbm %s2803_s5, 16 }
  0x87   :  { %p1818_p7 = scmp.ne.s32.totalorder %s2803_s5, %s1817_s7  ;;  %p1821_p8 = scmp.lt.u32.totalorder %s1817_s7, %s2803_s5 }
  0x89   :  { %p1823_p9 = pnand %p1821_p8, %p1818_p7 }
  0x8b   :  { %1826 = shalt.err (!%p1823_p9)
}
  0x8c   :  { %s1933_s21 = smov [#allocation17]   ;;  %s1827_s3 = scalar_lea.hbm %s2807_s9, 16 }
  0x8d   :  { %105 = dma.hbm_to_smem %s2803_s5, 16, %s1933_s21, [#allocation10]  }
  0x8e   :  { %p1828_p10 = scmp.ne.s32.totalorder %s2807_s9, %s1827_s3  ;;  %p1831_p11 = scmp.lt.u32.totalorder %s1827_s3, %s2807_s9 }
  0x90   :  { %p1833_p12 = pnand %p1831_p11, %p1828_p10 }
  0x92   :  { %1836 = shalt.err (!%p1833_p12)
}
  0x93   :  { %s1934_s28 = smov [#allocation20]   ;;  %s1837_s30 = scalar_lea.hbm %s2810_s12, 16 }
  0x94   :  { %125 = dma.hbm_to_smem %s2807_s9, 16, %s1934_s28, [#allocation19]  }
  0x95   :  { %p1838_p13 = scmp.ne.s32.totalorder %s2810_s12, %s1837_s30  ;;  %p1841_p0 = scmp.lt.u32.totalorder %s1837_s30, %s2810_s12 }
  0x97   :  { %p1843_p1 = pnand %p1841_p0, %p1838_p13 }
  0x99   :  { %1846 = shalt.err (!%p1843_p1)
}
  0x9a   :  { %s1935_s20 = smov [#allocation23]   ;;  %s1847_s4 = scalar_lea.hbm %s2813_s15, 16 }
  0x9b   :  { %143 = dma.hbm_to_smem %s2810_s12, 16, %s1935_s20, [#allocation22]  }
  0x9c   :  { %p1848_p2 = scmp.ne.s32.totalorder %s2813_s15, %s1847_s4  ;;  %p1851_p3 = scmp.lt.u32.totalorder %s1847_s4, %s2813_s15 }
  0x9e   :  { %p1853_p4 = pnand %p1851_p3, %p1848_p2 }
  0xa0   :  { %1856 = shalt.err (!%p1853_p4)
}
  0xa1   :  { %s1936_s11 = smov [#allocation26]  }
  0xa2   :  { %161 = dma.hbm_to_smem %s2813_s15, 16, %s1936_s11, [#allocation25]  }
  0xa3   :  { %1901 = dma.done.wait [#allocation8], 256  }
  0xa4   :  { %1902 = vsyncadd [#allocation8], 4294967040 }
  0xa5   :  { %1903 = dma.done.wait [#allocation12], 4384  }
  0xa6   :  { %1904 = vsyncadd [#allocation12], 4294962912 }
  0xa7   :  { %1905 = dma.done.wait [#allocation15], 4608  }
  0xa8   :  { %1906 = vsyncadd [#allocation15], 4294962688 }
  0xa9   :  { %1907 = dma.done.wait [#allocation10], 16  }
  0xaa   :  { %1908 = vsyncadd [#allocation10], 4294967280 }
  0xab   :  { %1909 = dma.done.wait [#allocation19], 32  }
  0xac   :  { %1910 = vsyncadd [#allocation19], 4294967264 }
  0xad   :  { %1911 = dma.done.wait [#allocation22], 32  }
  0xae   :  { %1912 = vsyncadd [#allocation22], 4294967264 }
  0xaf   :  { %1913 = dma.done.wait [#allocation25], 32  }
  0xb0   :  { %1914 = vsyncadd [#allocation25], 4294967264 }
  0xb1   :  { %200 = sfence }
  0xb2   :  { %s218_s12 = sld [smem:[#allocation17]]  ;;  %s1386_s26 = sld [smem:[#allocation17 + $0x1]]  ;;  %v219_v0 = vld [vmem:[#allocation7] ss:$4 sm:$0x3]  ;;  %v269_v17 = vlaneseq  ;;  %v256_v27 = vstv %s2804_s6  ;;  %vm1142_vm8 = vcmask 130048  }
  0xb3   :  { %s1387_s23 = sld [smem:[#allocation17 + $0x2]]  ;;  %v221_v1 = vld [vmem:[#allocation7 + $0x8] ss:$4 sm:$0x3]  ;;  %s1388_s15 = sld [smem:[#allocation17 + $0x3]]  ;;  %vm1344_vm9 = vcmask 123904  }
  0xb4   :  { %v227_v2 = vld [vmem:[#allocation7 + $0x1] ss:$4 sm:$0x3]  ;;  %v229_v3 = vld [vmem:[#allocation7 + $0x9] ss:$4 sm:$0x3] }
  0xb5   :  { %v237_v8 = vld [vmem:[#allocation7 + $0x2] ss:$4 sm:$0x3]  ;;  %v239_v9 = vld [vmem:[#allocation7 + $0xa] ss:$4 sm:$0x3] }
  0xb6   :  { %v247_v13 = vld [vmem:[#allocation7 + $0x3] ss:$4 sm:$0x3]  ;;  %v249_v14 = vld [vmem:[#allocation7 + $0xb] ss:$4 sm:$0x3] }
  0xb7   :  { %v1937_v15 = vmov 1966171168   ;;  %v270_v31 = vshrl.u32 %v269_v17, 7  ;;  %s1938_s6 = smov 17   ;;  %s1939_s30 = smov 15   ;;  %v2255_v44 = vand.u32 127, %v269_v17 }
  0xb8   :  { %v222_v4 = vstv %s218_s12  ;;  %v230_v7 = vstv %s1386_s26  ;;  %v267_v16 = vunpack.c.l.s4 %v1937_v15  ;;  %s1940_s7 = smov 1   ;;  %s1941_s18 = smov 127   ;;  %v203_v47 = vld [vmem:[#allocation11 + $0x2] sm:$0x3]  ;;  %v205_v48 = vld [vmem:[#allocation11 + $0x4] sm:$0x3] }
  0xb9   :  { %v223_v5 = vmul.f32 %v222_v4, %v219_v0  ;;  %v224_v6 = vmul.f32 %v222_v4, %v221_v1  ;;  %v231_v10 = vmul.f32 %v230_v7, %v227_v2  ;;  %v232_v11 = vmul.f32 %v230_v7, %v229_v3  ;;  %s1942_s24 = smov 113   ;;  %s1943_s19 = smov 112   ;;  %v207_v51 = vld [vmem:[#allocation11 + $0x6] sm:$0x3]  ;;  %v209_v52 = vld [vmem:[#allocation11 + $0x8] sm:$0x3] }
  0xba   :  { %v240_v12 = vstv %s1387_s23  ;;  %v250_v22 = vstv %s1388_s15  ;;  %v268_v30 = vunpack.c.0.s8 %v267_v16  ;;  %s1944_s20 = smov 111   ;;  %s2251_s21 = sld [smem:[#allocation18 + $0x1]]  ;;  %v2257_v45 = vsub.s32 0, %v270_v31  ;;  %v201_v56 = vld [vmem:[#allocation11] sm:$0x3] }
  0xbb   :  { %v233_v18 = vadd.f32 %v231_v10, %v223_v5  ;;  %v234_v19 = vadd.f32 %v232_v11, %v224_v6  ;;  %v241_v20 = vmul.f32 %v240_v12, %v237_v8  ;;  %v242_v21 = vmul.f32 %v240_v12, %v239_v9  ;;  %s2253_s13 = sld [smem:[#allocation18 + $0x2]]  ;;  %s2261_s9 = sld [smem:[#allocation18 + $0x3]]  ;;  %v211_v61 = vld [vmem:[#allocation11 + $0xa] sm:$0x3] }
  0xbc   :  { %v251_v25 = vmul.f32 %v250_v22, %v247_v13  ;;  %v252_v26 = vmul.f32 %v250_v22, %v249_v14  ;;  %v2206_v36 = vsub.s32 %v268_v30, %v270_v31  ;;  %v2259_v46 = vsub.s32 1, %v270_v31  ;;  %s2263_s22 = sld [smem:[#allocation18]]  ;;  %s2265_s4 = sld [smem:[#allocation18 + $0x5]] }
  0xbd   :  { %v243_v23 = vadd.f32 %v241_v20, %v233_v18  ;;  %v244_v24 = vadd.f32 %v242_v21, %v234_v19  ;;  %s2267_s1 = sld [smem:[#allocation18 + $0x4]]  ;;  %vm320_vm0 = vcmp.lt.s32.totalorder %v2255_v44, 16  ;;  %v2272_v54 = vrot.slane %v203_v47, %v2257_v45  ;;  %s2327_s3 = sld [smem:[#allocation18 + $0x6]]  ;;  %v213_v21 = vld [vmem:[#allocation11 + $0xc] sm:$0x3] }
  0xbe   :  { %v2275_v55 = vrot.slane %v203_v47, %v2259_v46  ;;  %vm346_vm1 = vcmp.lt.s32.totalorder %v2255_v44, 15  ;;  %v2280_v58 = vrot.slane %v205_v48, %v2257_v45  ;;  %v2283_v59 = vrot.slane %v205_v48, %v2259_v46  ;;  %s2353_s29 = sld [smem:[#allocation18 + $0x7]]  ;;  %s2373_s2 = sld [smem:[#allocation18 + $0x8]] }
  0xbf   :  { %v253_v28 = vadd.f32 %v251_v25, %v243_v23  ;;  %v254_v29 = vadd.f32 %v252_v26, %v244_v24  ;;  %vm372_vm2 = vcmp.lt.s32.totalorder %v2255_v44, 1  ;;  %v2287_v60 = vrot.slane %v207_v51, %v2257_v45  ;;  %s2490_s28 = sld [smem:[#allocation20 + $0x2]]  ;;  %s2492_s12 = sld [smem:[#allocation20 + $0x3]] }
  0xc0   :  { %v336_v53 = vstv %s2251_s21  ;;  %v2290_v62 = vrot.slane %v209_v52, %v2257_v45  ;;  %v2293_v63 = vrot.slane %v209_v52, %v2259_v46  ;;  %v2296_v2 = vrot.slane %v207_v51, %v2259_v46  ;;  %s2513_s26 = sld [smem:[#allocation20 + $0x4]]  ;;  %s2520_s23 = sld [smem:[#allocation20 + $0x5]] }
  0xc1   :  { %v2200_v32 = vadd.f32 %v256_v27, %v253_v28  ;;  %v2202_v33 = vadd.f32 %v256_v27, %v254_v29  ;;  %v362_v57 = vstv %s2253_s13  ;;  %vm296_vm3 = vcmp.lt.s32.totalorder %v2255_v44, 17  ;;  %s2524_s15 = sld [smem:[#allocation20 + $0x6]]  ;;  %s2530_s5 = sld [smem:[#allocation20 + $0x7]] }
  0xc2   :  { %v2300_v3 = vrot.slane %v201_v56, %v2257_v45  ;;  %v2303_v4 = vrot.slane %v201_v56, %v2259_v46  ;;  %v388_v7 = vstv %s2261_s9  ;;  %v312_v8 = vstv %s2263_s22  ;;  %s2544_s27 = sld [smem:[#allocation20 + $0x8]]  ;;  %s2609_s21 = sld [smem:[#allocation23 + $0x2]] }
  0xc3   :  { %v259_v34 = vmax.f32 %v2200_v32, 0.0  ;;  %v260_v35 = vmax.f32 %v2202_v33, 0.0  ;;  %vm417_vm4 = vcmp.lt.s32.totalorder %v2255_v44, 127  ;;  %v433_v9 = vstv %s2265_s4  ;;  %v1139_v32 = vld [vmem:[#allocation16 + $0x8] sm:$0xff]  ;;  %v1141_v33 = vld [vmem:[#allocation16 + $0x18] sm:$0xff]  ;;  %s2611_s13 = sld [smem:[#allocation23 + $0x3]] }
  0xc4   :  { %v2314_v10 = vrot.slane %v211_v61, %v2257_v45  ;;  %v2317_v11 = vrot.slane %v211_v61, %v2259_v46  ;;  %v407_v20 = vstv %s2267_s1  ;;  %vm443_vm5 = vcmp.lt.s32.totalorder %v2255_v44, 113  ;;  %s2613_s9 = sld [smem:[#allocation21 + $0x4]]  ;;  %s2615_s22 = sld [smem:[#allocation21 + $0x5]] }
  0xc5   :  { %v265_v37 = vcombine.low %v259_v34, %v260_v35  ;;  %vm469_vm6 = vcmp.lt.s32.totalorder %v2255_v44, 112  ;;  %vm495_vm7 = vcmp.lt.s32.totalorder %v2255_v44, 111  ;;  %s2617_s4 = sld [smem:[#allocation23 + $0x4]]  ;;  %s2619_s1 = sld [smem:[#allocation23 + $0x5]] }
  0xc6   :  { %s2627_s11 = sld [smem:[#allocation26]]  ;;  %s2629_s25 = sld [smem:[#allocation23 + $0x7]] }
  0xc7   :  { %v272_v38 = vrot.slane %v265_v37, %v2206_v36  ;;  %v2348_v37 = vrot.slane %v213_v21, %v2257_v45 }
  0xc9   :  { %v2214_v39 = vrot.slane %v272_v38, %v2206_v36  ;;  %v273_v40 = vcombine.high %v272_v38, %v272_v38  ;;  %v2351_v38 = vrot.slane %v213_v21, %v2259_v46 }
  0xcb   :  { %316 = vrot.lane.b32.xlu1 %v2214_v39, %s1932_s0  ;;  %290 = vrot.lane.b32.xlu0 %v2214_v39, %s1938_s6  ;;  %v2221_v41 = vrot.slane %v273_v40, %v2206_v36  ;;  %v405_v14 = vmul.f32 %v2290_v62, %v2214_v39 }
  0xcd   :  { %v406_v15 = vmul.f32 %v2293_v63, %v2221_v41  ;;  %v408_v48 = vmul.f32 %v407_v20, %v405_v14 }
  0xcf   :  { %342 = vrot.lane.b32.xlu0 %v2214_v39, %s1939_s30  ;;  %318 = vrot.lane.b32.xlu1 %v2221_v41, %s1932_s0 }
  0xd3   :  { %368 = vrot.lane.b32.xlu0 %v2214_v39, %s1940_s7  ;;  %344 = vrot.lane.b32.xlu1 %v2221_v41, %s1939_s30 }
  0xd7   :  { %370 = vrot.lane.b32.xlu1 %v2221_v41, %s1940_s7  ;;  %292 = vrot.lane.b32.xlu0 %v2221_v41, %s1938_s6 }
  0xdb   :  { %415 = vrot.lane.b32.xlu1 %v2221_v41, %s1941_s18  ;;  %413 = vrot.lane.b32.xlu0 %v2214_v39, %s1941_s18 }
  0xdf   :  { %441 = vrot.lane.b32.xlu1 %v2221_v41, %s1942_s24  ;;  %439 = vrot.lane.b32.xlu0 %v2214_v39, %s1942_s24 }
  0xe3   :  { %467 = vrot.lane.b32.xlu1 %v2221_v41, %s1943_s19  ;;  %465 = vrot.lane.b32.xlu0 %v2214_v39, %s1943_s19 }
  0xe7   :  { %493 = vrot.lane.b32.xlu1 %v2221_v41, %s1944_s20  ;;  %491 = vrot.lane.b32.xlu0 %v2214_v39, %s1944_s20 }
 0x13d   :  { %v317_v42 = vpop.permute.xlu1 %316  ;;  %v291_v43 = vpop.permute.xlu0 %290 }
 0x141   :  { %v343_v49 = vpop.permute.xlu0 %342  ;;  %v319_v50 = vpop.permute.xlu1 %318 }
 0x142   :  { %v321_v5 = vsel %vm320_vm0, %v317_v42, %v319_v50  ;;  %v322_v6 = vsel %vm320_vm0, %v319_v50, %v317_v42 }
 0x143   :  { %v334_v16 = vmul.f32 %v2272_v54, %v322_v6  ;;  %v335_v17 = vmul.f32 %v2275_v55, %v321_v5  ;;  %v459_v6 = vstv %s2327_s3  ;;  %s2621_s3 = sld [smem:[#allocation21 + $0x6]] }
 0x145   :  { %v369_v0 = vpop.permute.xlu0 %368  ;;  %v345_v1 = vpop.permute.xlu1 %344  ;;  %v337_v39 = vmul.f32 %v336_v53, %v334_v16  ;;  %v338_v40 = vmul.f32 %v336_v53, %v335_v17  ;;  %v217_v17 = vld [vmem:[#allocation11 + $0x10] sm:$0x3] }
 0x146   :  { %v347_v12 = vsel %vm346_vm1, %v343_v49, %v345_v1  ;;  %v348_v13 = vsel %vm346_vm1, %v345_v1, %v343_v49  ;;  %v409_v49 = vmul.f32 %v407_v20, %v406_v15  ;;  %v215_v1 = vld [vmem:[#allocation11 + $0xe] sm:$0x3] }
 0x147   :  { %v360_v26 = vmul.f32 %v2280_v58, %v348_v13  ;;  %v361_v27 = vmul.f32 %v2283_v59, %v347_v12 }
 0x149   :  { %v371_v18 = vpop.permute.xlu1 %370  ;;  %v293_v19 = vpop.permute.xlu0 %292  ;;  %v363_v52 = vmul.f32 %v362_v57, %v360_v26  ;;  %v364_v56 = vmul.f32 %v362_v57, %v361_v27  ;;  %v2383_v26 = vrot.slane %v217_v17, %v2259_v46 }
 0x14a   :  { %v373_v22 = vsel %vm372_vm2, %v369_v0, %v371_v18  ;;  %v374_v23 = vsel %vm372_vm2, %v371_v18, %v369_v0  ;;  %v297_v24 = vsel %vm296_vm3, %v291_v43, %v293_v19  ;;  %v298_v25 = vsel %vm296_vm3, %v293_v19, %v291_v43 }
 0x14b   :  { %v310_v28 = vmul.f32 %v2300_v3, %v298_v25  ;;  %v311_v29 = vmul.f32 %v2303_v4, %v297_v24  ;;  %v386_v30 = vmul.f32 %v2287_v60, %v374_v23  ;;  %v387_v31 = vmul.f32 %v2296_v2, %v373_v22 }
 0x14c   :  { %v2368_v18 = vrot.slane %v215_v1, %v2257_v45  ;;  %v2371_v19 = vrot.slane %v215_v1, %v2259_v46  ;;  %v485_v24 = vstv %s2353_s29  ;;  %v2380_v25 = vrot.slane %v217_v17, %v2257_v45  ;;  %s2623_s29 = sld [smem:[#allocation23 + $0x6]] }
 0x14d   :  { %v313_v41 = vmul.f32 %v312_v8, %v310_v28  ;;  %v314_v42 = vmul.f32 %v312_v8, %v311_v29  ;;  %v416_v43 = vpop.permute.xlu1 %415  ;;  %v414_v47 = vpop.permute.xlu0 %413  ;;  %v389_v5 = vmul.f32 %v388_v7, %v386_v30  ;;  %v390_v53 = vmul.f32 %v388_v7, %v387_v31 }
 0x14e   :  { %v418_v50 = vsel %vm417_vm4, %v414_v47, %v416_v43  ;;  %v419_v51 = vsel %vm417_vm4, %v416_v43, %v414_v47 }
 0x14f   :  { %v339_v61 = vadd.f32 %v337_v39, %v313_v41  ;;  %v340_v0 = vadd.f32 %v338_v40, %v314_v42  ;;  %v431_v13 = vmul.f32 %v2314_v10, %v418_v50  ;;  %v432_v14 = vmul.f32 %v2317_v11, %v419_v51 }
 0x151   :  { %v365_v8 = vadd.f32 %v363_v52, %v339_v61  ;;  %v366_v12 = vadd.f32 %v364_v56, %v340_v0  ;;  %v442_v15 = vpop.permute.xlu1 %441  ;;  %v440_v16 = vpop.permute.xlu0 %439  ;;  %v434_v29 = vmul.f32 %v433_v9, %v431_v13  ;;  %v435_v30 = vmul.f32 %v433_v9, %v432_v14 }
 0x152   :  { %v444_v57 = vsel %vm443_vm5, %v440_v16, %v442_v15  ;;  %v445_v7 = vsel %vm443_vm5, %v442_v15, %v440_v16  ;;  %v511_v61 = vstv %s2373_s2  ;;  %v516_v14 = vstv %s2806_s8  ;;  %s1397_s8 = sld [smem:[#allocation20 + $0x1]]  ;;  %s2625_s2 = sld [smem:[#allocation21 + $0x7]] }
 0x153   :  { %v391_v20 = vadd.f32 %v389_v5, %v365_v8  ;;  %v392_v21 = vadd.f32 %v390_v53, %v366_v12  ;;  %v457_v22 = vmul.f32 %v2348_v37, %v444_v57  ;;  %v458_v23 = vmul.f32 %v2351_v38, %v445_v7 }
 0x155   :  { %v410_v27 = vadd.f32 %v408_v48, %v391_v20  ;;  %v411_v28 = vadd.f32 %v409_v49, %v392_v21  ;;  %v468_v31 = vpop.permute.xlu1 %467  ;;  %v466_v39 = vpop.permute.xlu0 %465  ;;  %v460_v40 = vmul.f32 %v459_v6, %v457_v22  ;;  %v461_v41 = vmul.f32 %v459_v6, %v458_v23  ;;  %v702_v21 = vld [vmem:[#allocation13 + $0x80] sm:$0xff]  ;;  %v703_v22 = vld [vmem:[#allocation13 + $0x88] sm:$0xff] }
 0x156   :  { %v470_v42 = vsel %vm469_vm6, %v466_v39, %v468_v31  ;;  %v471_v45 = vsel %vm469_vm6, %v468_v31, %v466_v39  ;;  %v828_v23 = vld [vmem:[#allocation14 + $0x80] sm:$0xff] }
 0x157   :  { %v436_v43 = vadd.f32 %v434_v29, %v410_v27  ;;  %v437_v46 = vadd.f32 %v435_v30, %v411_v28  ;;  %v483_v47 = vmul.f32 %v2368_v18, %v470_v42  ;;  %v484_v48 = vmul.f32 %v2371_v19, %v471_v45  ;;  %v829_v27 = vld [vmem:[#allocation14 + $0x88] sm:$0xff]  ;;  %v686_v28 = vld [vmem:[#allocation13] sm:$0xff]  ;;  %v704_v42 = vld [vmem:[#allocation13 + $0x90] sm:$0xff] }
 0x158   :  { %v687_v29 = vld [vmem:[#allocation13 + $0x8] sm:$0xff]  ;;  %v1572_v30 = vpack.c.bf16 %v829_v27, %v828_v23  ;;  %v812_v39 = vld [vmem:[#allocation14] sm:$0xff]  ;;  %v705_v45 = vld [vmem:[#allocation13 + $0x98] sm:$0xff] }
 0x159   :  { %v462_v49 = vadd.f32 %v460_v40, %v436_v43  ;;  %v463_v50 = vadd.f32 %v461_v41, %v437_v46  ;;  %v486_v9 = vmul.f32 %v485_v24, %v483_v47  ;;  %v487_v51 = vmul.f32 %v485_v24, %v484_v48  ;;  %v494_v52 = vpop.permute.xlu1 %493  ;;  %v492_v56 = vpop.permute.xlu0 %491  ;;  %v813_v40 = vld [vmem:[#allocation14 + $0x8] sm:$0xff]  ;;  %v830_v43 = vld [vmem:[#allocation14 + $0x90] sm:$0xff]  ;;  %v831_v47 = vld [vmem:[#allocation14 + $0x98] sm:$0xff] }
 0x15a   :  { %v496_v0 = vsel %vm495_vm7, %v492_v56, %v494_v52  ;;  %v497_v1 = vsel %vm495_vm7, %v494_v52, %v492_v56  ;;  %v2421_v24 = vpack.c.bf16 %v703_v22, %v702_v21  ;;  %v2427_v31 = vpack.c.bf16 %v687_v29, %v686_v28  ;;  %1573 = vmatprep.subr.bf16.mxu1 %v1572_v30  ;;  %v688_v48 = vld [vmem:[#allocation13 + $0x10] sm:$0xff]  ;;  %v815_v52 = vld [vmem:[#allocation14 + $0x18] sm:$0xff] }
 0x15b   :  { %v509_v5 = vmul.f32 %v2380_v25, %v496_v0  ;;  %v510_v53 = vmul.f32 %v2383_v26, %v497_v1  ;;  %v488_v6 = vadd.f32 %v486_v9, %v462_v49  ;;  %v489_v8 = vadd.f32 %v487_v51, %v463_v50  ;;  %v689_v49 = vld [vmem:[#allocation13 + $0x18] sm:$0xff]  ;;  %v814_v51 = vld [vmem:[#allocation14 + $0x10] sm:$0xff]  ;;  %v707_v0 = vld [vmem:[#allocation13 + $0xa8] sm:$0xff] }
 0x15c   :  { %1541 = vmatprep.subr.bf16.mxu0 %v2421_v24  ;;  %v1574_v41 = vpack.c.bf16 %v813_v40, %v812_v39  ;;  %v2431_v46 = vpack.c.bf16 %v705_v45, %v704_v42  ;;  %v1576_v50 = vpack.c.bf16 %v831_v47, %v830_v43  ;;  %v2437_v9 = vpack.c.bf16 %v689_v49, %v688_v48  ;;  %v832_v1 = vld [vmem:[#allocation14 + $0xa0] sm:$0xff]  ;;  %v834_v21 = vld [vmem:[#allocation14 + $0xb0] sm:$0xff]  ;;  %v835_v23 = vld [vmem:[#allocation14 + $0xb8] sm:$0xff] }
 0x15d   :  { %v512_v12 = vmul.f32 %v511_v61, %v509_v5  ;;  %v513_v13 = vmul.f32 %v511_v61, %v510_v53  ;;  %1543 = vmatpush3.bf16.msra.mxu0 %v2427_v31  ;;  %v1578_v56 = vpack.c.bf16 %v815_v52, %v814_v51  ;;  %v706_v61 = vld [vmem:[#allocation13 + $0xa0] sm:$0xff]  ;;  %v833_v53 = vld [vmem:[#allocation14 + $0xa8] sm:$0xff]  ;;  %v692_v27 = vld [vmem:[#allocation13 + $0x30] sm:$0xff]  ;;  %v1584_v29 = vpack.c.bf16 %v835_v23, %v834_v21 }
 0x15e   :  { %1575 = vmatpush3.bf16.msra.mxu1 %v1574_v41  ;;  %1545 = vmatprep.subr.bf16.mxu0 %v2431_v46  ;;  %v2441_v5 = vpack.c.bf16 %v707_v0, %v706_v61  ;;  %v693_v28 = vld [vmem:[#allocation13 + $0x38] sm:$0xff]  ;;  %v818_v39 = vld [vmem:[#allocation14 + $0x30] sm:$0xff]  ;;  %v710_v42 = vld [vmem:[#allocation13 + $0xc0] sm:$0xff] }
 0x15f   :  { %v514_v15 = vadd.f32 %v512_v12, %v488_v6  ;;  %v515_v16 = vadd.f32 %v513_v13, %v489_v8  ;;  %1577 = vmatprep.subr.bf16.mxu1 %v1576_v50  ;;  %v690_v6 = vld [vmem:[#allocation13 + $0x20] sm:$0xff]  ;;  %v691_v8 = vld [vmem:[#allocation13 + $0x28] sm:$0xff]  ;;  %v1580_v12 = vpack.c.bf16 %v833_v53, %v832_v1  ;;  %v2457_v30 = vpack.c.bf16 %v693_v28, %v692_v27  ;;  %v819_v40 = vld [vmem:[#allocation14 + $0x38] sm:$0xff] }
 0x160   :  { %v2447_v13 = vpack.c.bf16 %v691_v8, %v690_v6  ;;  %v1586_v41 = vpack.c.bf16 %v819_v40, %v818_v39  ;;  %v711_v45 = vld [vmem:[#allocation13 + $0xc8] sm:$0xff]  ;;  %v836_v43 = vld [vmem:[#allocation14 + $0xc0] sm:$0xff]  ;;  %v712_v0 = vld [vmem:[#allocation13 + $0xd0] sm:$0xff] }
 0x161   :  { %v517_v17 = vadd.f32 %v516_v14, %v514_v15  ;;  %v518_v57 = vadd.f32 %v516_v14, %v515_v16  ;;  %1547 = vmatpush3.bf16.msra.mxu0 %v2437_v9  ;;  %v816_v14 = vld [vmem:[#allocation14 + $0x20] sm:$0xff]  ;;  %v817_v15 = vld [vmem:[#allocation14 + $0x28] sm:$0xff]  ;;  %v2461_v47 = vpack.c.bf16 %v711_v45, %v710_v42  ;;  %v713_v53 = vld [vmem:[#allocation13 + $0xd8] sm:$0xff] }
 0x162   :  { %1579 = vmatpush3.bf16.msra.mxu1 %v1578_v56  ;;  %1549 = vmatprep.subr.bf16.mxu0 %v2441_v5  ;;  %v1582_v16 = vpack.c.bf16 %v817_v15, %v816_v14  ;;  %v837_v48 = vld [vmem:[#allocation14 + $0xc8] sm:$0xff]  ;;  %v694_v49 = vld [vmem:[#allocation13 + $0x40] sm:$0xff]  ;;  %v838_v6 = vld [vmem:[#allocation14 + $0xd0] sm:$0xff] }
 0x163   :  { %v2405_v7 = vmax.f32 %v517_v17, 0.0  ;;  %v2407_v20 = vmax.f32 %v518_v57, 0.0  ;;  %1581 = vmatprep.subr.bf16.mxu1 %v1580_v12  ;;  %v708_v17 = vld [vmem:[#allocation13 + $0xb0] sm:$0xff]  ;;  %v709_v57 = vld [vmem:[#allocation13 + $0xb8] sm:$0xff]  ;;  %v695_v50 = vld [vmem:[#allocation13 + $0x48] sm:$0xff]  ;;  %v1588_v51 = vpack.c.bf16 %v837_v48, %v836_v43  ;;  %v2471_v12 = vpack.c.bf16 %v713_v53, %v712_v0 }
 0x164   :  { %v2451_v22 = vpack.c.bf16 %v709_v57, %v708_v17  ;;  %v2467_v52 = vpack.c.bf16 %v695_v50, %v694_v49  ;;  %v820_v56 = vld [vmem:[#allocation14 + $0x40] sm:$0xff]  ;;  %v821_v61 = vld [vmem:[#allocation14 + $0x48] sm:$0xff]  ;;  %v839_v8 = vld [vmem:[#allocation14 + $0xd8] sm:$0xff] }
 0x165   :  { %525 = vrot.lane.b32.xlu1 %v2407_v20, %s1938_s6  ;;  %523 = vrot.lane.b32.xlu0 %v2405_v7, %s1938_s6  ;;  %v1590_v1 = vpack.c.bf16 %v821_v61, %v820_v56  ;;  %v1592_v14 = vpack.c.bf16 %v839_v8, %v838_v6  ;;  %v696_v15 = vld [vmem:[#allocation13 + $0x50] sm:$0xff]  ;;  %v823_v21 = vld [vmem:[#allocation14 + $0x58] sm:$0xff]  ;;  %v714_v23 = vld [vmem:[#allocation13 + $0xe0] sm:$0xff]  ;;  %s2649_s6 = sld [smem:[#allocation24 + $0x2]] }
 0x166   :  { %1551 = vmatpush3.bf16.msra.mxu0 %v2447_v13  ;;  %1583 = vmatpush3.bf16.msra.mxu1 %v1582_v16  ;;  %v697_v16 = vld [vmem:[#allocation13 + $0x58] sm:$0xff]  ;;  %v822_v17 = vld [vmem:[#allocation14 + $0x50] sm:$0xff]  ;;  %v715_v27 = vld [vmem:[#allocation13 + $0xe8] sm:$0xff] }
 0x167   :  { %1553 = vmatprep.subr.bf16.mxu0 %v2451_v22  ;;  %1585 = vmatprep.subr.bf16.mxu1 %v1584_v29  ;;  %v2473_v57 = vpack.c.bf16 %v697_v16, %v696_v15  ;;  %v1594_v28 = vpack.c.bf16 %v823_v21, %v822_v17  ;;  %v2476_v29 = vpack.c.bf16 %v715_v27, %v714_v23  ;;  %v840_v39 = vld [vmem:[#allocation14 + $0xe0] sm:$0xff]  ;;  %v841_v40 = vld [vmem:[#allocation14 + $0xe8] sm:$0xff]  ;;  %v716_v50 = vld [vmem:[#allocation13 + $0xf0] sm:$0xff] }
 0x168   :  { %v1596_v42 = vpack.c.bf16 %v841_v40, %v840_v39  ;;  %v699_v45 = vld [vmem:[#allocation13 + $0x68] sm:$0xff]  ;;  %v824_v43 = vld [vmem:[#allocation14 + $0x60] sm:$0xff]  ;;  %v842_v56 = vld [vmem:[#allocation14 + $0xf0] sm:$0xff] }
 0x169   :  { %537 = vrot.lane.b32.xlu1 %v2407_v20, %s1932_s0  ;;  %535 = vrot.lane.b32.xlu0 %v2405_v7, %s1932_s0  ;;  %v825_v48 = vld [vmem:[#allocation14 + $0x68] sm:$0xff]  ;;  %v700_v53 = vld [vmem:[#allocation13 + $0x70] sm:$0xff]  ;;  %v701_v6 = vld [vmem:[#allocation13 + $0x78] sm:$0xff]  ;;  %s522_s0 = sld [smem:[#allocation20]] }
 0x16a   :  { %1555 = vmatpush3.bf16.msra.mxu0 %v2457_v30  ;;  %1587 = vmatpush3.bf16.msra.mxu1 %v1586_v41  ;;  %v698_v41 = vld [vmem:[#allocation13 + $0x60] sm:$0xff]  ;;  %v1598_v61 = vpack.c.bf16 %v825_v48, %v824_v43  ;;  %v827_v15 = vld [vmem:[#allocation14 + $0x78] sm:$0xff]  ;;  %v2485_v16 = vpack.c.bf16 %v701_v6, %v700_v53 }
 0x16b   :  { %1557 = vmatprep.subr.bf16.mxu0 %v2461_v47  ;;  %1589 = vmatprep.subr.bf16.mxu1 %v1588_v51  ;;  %v2479_v49 = vpack.c.bf16 %v699_v45, %v698_v41  ;;  %v717_v51 = vld [vmem:[#allocation13 + $0xf8] sm:$0xff] }
 0x16c   :  { %v2482_v0 = vpack.c.bf16 %v717_v51, %v716_v50 }
 0x16d   :  { %551 = vrot.lane.b32.xlu1 %v2407_v20, %s1939_s30  ;;  %549 = vrot.lane.b32.xlu0 %v2405_v7, %s1939_s30  ;;  %s2717_s30 = sld [smem:[#allocation24 + $0x3]] }
 0x16e   :  { %1559 = vmatpush3.bf16.msra.mxu0 %v2467_v52  ;;  %1591 = vmatpush3.bf16.msra.mxu1 %v1590_v1  ;;  %v843_v1 = vld [vmem:[#allocation14 + $0xf8] sm:$0xff] }
 0x16f   :  { %1561 = vmatprep.subr.bf16.mxu0 %v2471_v12  ;;  %1593 = vmatprep.subr.bf16.mxu1 %v1592_v14  ;;  %v1600_v8 = vpack.c.bf16 %v843_v1, %v842_v56  ;;  %v826_v14 = vld [vmem:[#allocation14 + $0x70] sm:$0xff]  ;;  %v531_v53 = vstv %s522_s0  ;;  %s2633_s0 = sld [smem:[#allocation26 + $0x2]] }
 0x170   :  { %v1602_v17 = vpack.c.bf16 %v827_v15, %v826_v14 }
 0x171   :  { %565 = vrot.lane.b32.xlu1 %v2407_v20, %s1940_s7  ;;  %563 = vrot.lane.b32.xlu0 %v2405_v7, %s1940_s7  ;;  %s2599_s7 = sld [smem:[#allocation21 + $0x1]] }
 0x172   :  { %1563 = vmatpush3.bf16.msra.mxu0 %v2473_v57  ;;  %1595 = vmatpush3.bf16.msra.mxu1 %v1594_v28 }
 0x173   :  { %1565 = vmatprep.subr.bf16.mxu0 %v2476_v29  ;;  %1597 = vmatprep.subr.bf16.mxu1 %v1596_v42  ;;  %v543_v42 = vstv %s1397_s8  ;;  %s2631_s8 = sld [smem:[#allocation26 + $0x1]] }
 0x175   :  { %587 = vrot.lane.b32.xlu1 %v2407_v20, %s1941_s18  ;;  %585 = vrot.lane.b32.xlu0 %v2405_v7, %s1941_s18  ;;  %s2601_s18 = sld [smem:[#allocation21 + $0x2]] }
 0x176   :  { %1567 = vmatpush3.bf16.msra.mxu0 %v2479_v49  ;;  %1599 = vmatpush3.bf16.msra.mxu1 %v1598_v61 }
 0x177   :  { %1569 = vmatprep.subr.bf16.mxu0 %v2482_v0  ;;  %1601 = vmatprep.subr.bf16.mxu1 %v1600_v8  ;;  %v557_v8 = vstv %s2490_s28  ;;  %s2635_s28 = sld [smem:[#allocation26 + $0x3]] }
 0x179   :  { %601 = vrot.lane.b32.xlu1 %v2407_v20, %s1942_s24  ;;  %599 = vrot.lane.b32.xlu0 %v2405_v7, %s1942_s24  ;;  %s2603_s24 = sld [smem:[#allocation23]] }
 0x17a   :  { %1571 = vmatpush3.bf16.msra.mxu0 %v2485_v16  ;;  %1603 = vmatpush3.bf16.msra.mxu1 %v1602_v17 }
 0x17b   :  { %1609 = vmatprep.subr.bf16.mxu1 %v2421_v24 }
 0x17d   :  { %615 = vrot.lane.b32.xlu1 %v2407_v20, %s1943_s19  ;;  %613 = vrot.lane.b32.xlu0 %v2405_v7, %s1943_s19  ;;  %s2605_s19 = sld [smem:[#allocation21 + $0x3]] }
 0x181   :  { %629 = vrot.lane.b32.xlu1 %v2407_v20, %s1944_s20  ;;  %627 = vrot.lane.b32.xlu0 %v2405_v7, %s1944_s20  ;;  %s2607_s20 = sld [smem:[#allocation23 + $0x1]] }
 0x1d7   :  { %v526_v21 = vpop.permute.xlu1 %525  ;;  %v524_v23 = vpop.permute.xlu0 %523 }
 0x1d8   :  { %v527_v24 = vsel %vm296_vm3, %v524_v23, %v526_v21  ;;  %v528_v41 = vsel %vm296_vm3, %v526_v21, %v524_v23 }
 0x1d9   :  { %v529_v51 = vmul.f32 %v528_v41, %v2300_v3  ;;  %v530_v56 = vmul.f32 %v527_v24, %v2303_v4  ;;  %v571_v3 = vstv %s2492_s12  ;;  %s2637_s12 = sld [smem:[#allocation26 + $0x4]] }
 0x1db   :  { %v538_v27 = vpop.permute.xlu1 %537  ;;  %v536_v28 = vpop.permute.xlu0 %535  ;;  %v532_v4 = vmul.f32 %v531_v53, %v529_v51  ;;  %v533_v21 = vmul.f32 %v531_v53, %v530_v56  ;;  %v577_v56 = vmul.f32 %v2405_v7, %v2290_v62 }
 0x1dc   :  { %v539_v39 = vsel %vm320_vm0, %v536_v28, %v538_v27  ;;  %v540_v40 = vsel %vm320_vm0, %v538_v27, %v536_v28 }
 0x1dd   :  { %v541_v45 = vmul.f32 %v540_v40, %v2272_v54  ;;  %v542_v43 = vmul.f32 %v539_v39, %v2275_v55 }
 0x1df   :  { %v552_v48 = vpop.permute.xlu1 %551  ;;  %v550_v50 = vpop.permute.xlu0 %549  ;;  %v544_v55 = vmul.f32 %v543_v42, %v541_v45  ;;  %v545_v14 = vmul.f32 %v543_v42, %v542_v43 }
 0x1e0   :  { %v553_v61 = vsel %vm346_vm1, %v550_v50, %v552_v48  ;;  %v554_v1 = vsel %vm346_vm1, %v552_v48, %v550_v50 }
 0x1e1   :  { %v555_v6 = vmul.f32 %v554_v1, %v2280_v58  ;;  %v556_v54 = vmul.f32 %v553_v61, %v2283_v59  ;;  %v546_v40 = vadd.f32 %v544_v55, %v532_v4  ;;  %v547_v24 = vadd.f32 %v545_v14, %v533_v21 }
 0x1e2   :  { %v579_v61 = vstv %s2513_s26  ;;  %v593_v14 = vstv %s2520_s23  ;;  %s2639_s26 = sld [smem:[#allocation26 + $0x5]]  ;;  %s2641_s23 = sld [smem:[#allocation26 + $0x6]] }
 0x1e3   :  { %v566_v15 = vpop.permute.xlu1 %565  ;;  %v564_v17 = vpop.permute.xlu0 %563  ;;  %v558_v58 = vmul.f32 %v557_v8, %v555_v6  ;;  %v559_v59 = vmul.f32 %v557_v8, %v556_v54  ;;  %v580_v7 = vmul.f32 %v579_v61, %v577_v56 }
 0x1e4   :  { %v567_v23 = vsel %vm372_vm2, %v564_v17, %v566_v15  ;;  %v568_v27 = vsel %vm372_vm2, %v566_v15, %v564_v17 }
 0x1e5   :  { %v569_v28 = vmul.f32 %v568_v27, %v2287_v60  ;;  %v570_v39 = vmul.f32 %v567_v23, %v2296_v2  ;;  %v560_v60 = vadd.f32 %v558_v58, %v546_v40  ;;  %v561_v51 = vadd.f32 %v559_v59, %v547_v24 }
 0x1e6   :  { %v578_v2 = vmul.f32 %v2407_v20, %v2293_v63  ;;  %v621_v58 = vstv %s2530_s5  ;;  %s2645_s5 = sld [smem:[#allocation24]] }
 0x1e7   :  { %v572_v41 = vmul.f32 %v571_v3, %v569_v28  ;;  %v573_v42 = vmul.f32 %v571_v3, %v570_v39  ;;  %v588_v45 = vpop.permute.xlu1 %587  ;;  %v586_v43 = vpop.permute.xlu0 %585  ;;  %v607_v3 = vstv %s2524_s15  ;;  %s2643_s15 = sld [smem:[#allocation26 + $0x7]] }
 0x1e8   :  { %v589_v48 = vsel %vm417_vm4, %v586_v43, %v588_v45  ;;  %v590_v50 = vsel %vm417_vm4, %v588_v45, %v586_v43  ;;  %v581_v62 = vmul.f32 %v579_v61, %v578_v2 }
 0x1e9   :  { %v574_v1 = vadd.f32 %v572_v41, %v560_v60  ;;  %v575_v53 = vadd.f32 %v573_v42, %v561_v51  ;;  %v591_v6 = vmul.f32 %v589_v48, %v2314_v10  ;;  %v592_v54 = vmul.f32 %v590_v50, %v2317_v11 }
 0x1ea   :  { %v635_v50 = vstv %s2544_s27  ;;  %s2647_s27 = sld [smem:[#allocation24 + $0x1]] }
 0x1eb   :  { %v602_v8 = vpop.permute.xlu1 %601  ;;  %v600_v55 = vpop.permute.xlu0 %599  ;;  %v583_v11 = vadd.f32 %v581_v62, %v575_v53  ;;  %v582_v17 = vadd.f32 %v580_v7, %v574_v1  ;;  %v594_v4 = vmul.f32 %v593_v14, %v591_v6  ;;  %v595_v21 = vmul.f32 %v593_v14, %v592_v54 }
 0x1ec   :  { %v603_v15 = vsel %vm443_vm5, %v600_v55, %v602_v8  ;;  %v604_v63 = vsel %vm443_vm5, %v602_v8, %v600_v55  ;;  %v640_v54 = vstv %s2808_s10  ;;  %s2597_s10 = sld [smem:[#allocation21]] }
 0x1ed   :  { %v605_v20 = vmul.f32 %v603_v15, %v2348_v37  ;;  %v606_v10 = vmul.f32 %v604_v63, %v2351_v38  ;;  %v596_v24 = vadd.f32 %v594_v4, %v582_v17  ;;  %v597_v41 = vadd.f32 %v595_v21, %v583_v11 }
 0x1ef   :  { %v616_v23 = vpop.permute.xlu1 %615  ;;  %v614_v27 = vpop.permute.xlu0 %613  ;;  %v608_v39 = vmul.f32 %v607_v3, %v605_v20  ;;  %v609_v40 = vmul.f32 %v607_v3, %v606_v10 }
 0x1f0   :  { %v617_v59 = vsel %vm469_vm6, %v614_v27, %v616_v23  ;;  %v618_v28 = vsel %vm469_vm6, %v616_v23, %v614_v27  ;;  %v1069_v27 = vstv %s2621_s3 }
 0x1f1   :  { %v619_v37 = vmul.f32 %v617_v59, %v2368_v18  ;;  %v620_v38 = vmul.f32 %v618_v28, %v2371_v19  ;;  %v610_v2 = vadd.f32 %v608_v39, %v596_v24  ;;  %v611_v56 = vadd.f32 %v609_v40, %v597_v41 }
 0x1f2   :  { %v936_v28 = vstv %s2627_s11  ;;  %v1072_v39 = vstv %s2623_s29  ;;  %v1095_v40 = vstv %s2625_s2  ;;  %v960_v41 = vstv %s2631_s8 }
 0x1f3   :  { %v622_v42 = vmul.f32 %v621_v58, %v619_v37  ;;  %v623_v45 = vmul.f32 %v621_v58, %v620_v38  ;;  %v630_v43 = vpop.permute.xlu1 %629  ;;  %v628_v48 = vpop.permute.xlu0 %627  ;;  %v1098_v37 = vstv %s2629_s25 }
 0x1f4   :  { %v631_v60 = vsel %vm495_vm7, %v628_v48, %v630_v43  ;;  %v632_v51 = vsel %vm495_vm7, %v630_v43, %v628_v48  ;;  %v1038_v43 = vstv %s2637_s12 }
 0x1f5   :  { %v633_v61 = vmul.f32 %v631_v60, %v2380_v25  ;;  %v634_v18 = vmul.f32 %v632_v51, %v2383_v26  ;;  %v624_v19 = vadd.f32 %v622_v42, %v610_v2  ;;  %v625_v1 = vadd.f32 %v623_v45, %v611_v56 }
 0x1f6   :  { %v986_v42 = vstv %s2633_s0  ;;  %v1012_v45 = vstv %s2635_s28  ;;  %v1064_v60 = vstv %s2639_s26  ;;  %v1090_v51 = vstv %s2641_s23 }
 0x1f7   :  { %v636_v53 = vmul.f32 %v635_v50, %v633_v61  ;;  %v637_v6 = vmul.f32 %v635_v50, %v634_v18  ;;  %v1116_v2 = vstv %s2643_s15  ;;  %v933_v56 = vstv %s2645_s5 }
 0x1f8   :  { %v957_v61 = vstv %s2647_s27  ;;  %v983_v18 = vstv %s2649_s6 }
 0x1f9   :  { %v638_v8 = vadd.f32 %v636_v53, %v624_v19  ;;  %v639_v55 = vadd.f32 %v637_v6, %v625_v1 }
 0x1fb   :  { %v641_v14 = vadd.f32 %v640_v54, %v638_v8  ;;  %v642_v15 = vadd.f32 %v640_v54, %v639_v55 }
 0x1fd   :  { %v643_v44 = vmax.f32 %v641_v14, 0.0  ;;  %v644_v63 = vmax.f32 %v642_v15, 0.0 }
 0x1ff   :  { %v647_v62 = vcombine.low %v643_v44, %v644_v63 }
 0x201   :  { %v654_v7 = vrot.slane %v647_v62, %v2206_v36 }
 0x203   :  { %v655_v25 = vcombine.high %v654_v7, %v654_v7  ;;  %v662_v26 = vrot.slane %v654_v7, %v2206_v36 }
 0x205   :  { %v669_v20 = vrot.slane %v655_v25, %v2206_v36  ;;  %v2571_v10 = vadd.f32 %v662_v26, %v259_v34  ;;  %v1138_v34 = vld [vmem:[#allocation16] sm:$0xff] }
 0x207   :  { %v2575_v3 = vadd.f32 %v669_v20, %v260_v35  ;;  %v1604_v35 = vpack.c.bf16 %v1141_v33, %v1139_v32 }
 0x209   :  { %v676_v11 = vcombine.low %v2571_v10, %v2575_v3  ;;  %1605 = vmatprep.subr.bf16.mxu0 %v1604_v35 }
 0x20b   :  { %v724_v17 = vrot.slane %v676_v11, %v2206_v36  ;;  %1405 = vst.sshfl [vmem:[#allocation27] sm:$0x33 pattern:$0x75316420] %v676_v11 }
 0x20d   :  { %v725_v4 = vcombine.high %v724_v17, %v724_v17  ;;  %v732_v23 = vrot.slane %v724_v17, %v2206_v36 }
 0x20f   :  { %v739_v21 = vrot.slane %v725_v4, %v2206_v36 }
 0x211   :  { %806 = vmatprep.mubr.f32.mxu0 %v739_v21  ;;  %908 = vmatprep.mubr.f32.mxu1 %v739_v21 }
 0x212   :  { %807 = vmatmul.mubr.f32.vlgmr.msra.gmra.mrb[0].mxu0 %v732_v23  ;;  %909 = vmatmul.mubr.f32.vlgmr.msra.gmra.mrb[0].mxu1 %v732_v23 }
 0x213   :  { %1611 = vmatpush3.bf16.msra.mxu1 %v2427_v31  ;;  %v1140_v31 = vld [vmem:[#allocation16 + $0x10] sm:$0xff] }
 0x214   :  { %1613 = vmatprep.subr.bf16.mxu1 %v2431_v46  ;;  %v1945_v46 = vmov 0.0  }
 0x215   :  { %1210 = vmatprep.mubr.f32.mxu0 %v1945_v46 }
 0x217   :  { %1615 = vmatpush3.bf16.msra.mxu1 %v2437_v9  ;;  %v1606_v9 = vpack.c.bf16 %v1140_v31, %v1138_v34 }
 0x218   :  { %1617 = vmatprep.subr.bf16.mxu1 %v2441_v5  ;;  %v915_v5 = vstv %s2597_s10  ;;  %s2730_s10 = sld [smem:[#allocation24 + $0x4]] }
 0x219   :  { %1607 = vmatpush1.bf16.msra.mxu0 %v1606_v9 }
 0x21b   :  { %1619 = vmatpush3.bf16.msra.mxu1 %v2447_v13  ;;  %v918_v13 = vstv %s2603_s24 }
 0x21c   :  { %1621 = vmatprep.subr.bf16.mxu1 %v2451_v22  ;;  %v939_v22 = vstv %s2599_s7  ;;  %s2737_s7 = sld [smem:[#allocation24 + $0x5]] }
 0x21f   :  { %1623 = vmatpush3.bf16.msra.mxu1 %v2457_v30  ;;  %v965_v30 = vstv %s2601_s18  ;;  %s2753_s18 = sld [smem:[#allocation24 + $0x6]] }
 0x220   :  { %1625 = vmatprep.subr.bf16.mxu1 %v2461_v47  ;;  %v991_v47 = vstv %s2605_s19 }
 0x223   :  { %1627 = vmatpush3.bf16.msra.mxu1 %v2467_v52  ;;  %v942_v52 = vstv %s2607_s20  ;;  %s1432_s20 = sld [smem:[#allocation24 + $0x7]] }
 0x224   :  { %1629 = vmatprep.subr.bf16.mxu1 %v2471_v12  ;;  %v968_v12 = vstv %s2609_s21 }
 0x227   :  { %1631 = vmatpush3.bf16.msra.mxu1 %v2473_v57  ;;  %v994_v57 = vstv %s2611_s13  ;;  %s1946_s13 = smov [#allocation27]  }
 0x228   :  { %1633 = vmatprep.subr.bf16.mxu1 %v2476_v29  ;;  %v1017_v29 = vstv %s2613_s9  ;;  %s1357_s9 = sshll.u32 %s1946_s13, 4  ;;  %s1358_s9 = int_to_ptr.vmem [resolvable:$true] %s1357_s9 }
 0x229   :  { %p1862_p6 = scmp.lt.s32.totalorder %s1358_s9, %s1358_s9 }
 0x22b   :  { %1635 = vmatpush3.bf16.msra.mxu1 %v2479_v49  ;;  %v1043_v49 = vstv %s2615_s22  ;;  %s1857_s22 = scalar_lea.vmem %s1358_s9, 64 }
 0x22c   :  { %1637 = vmatprep.subr.bf16.mxu1 %v2482_v0  ;;  %v1020_v0 = vstv %s2617_s4  ;;  %p1858_p5 = scmp.ne.s32.totalorder %s1358_s9, %s1857_s22  ;;  %p1863_p7 = scmp.lt.s32.totalorder %s1857_s22, %s1857_s22 }
 0x22e   :  { %p1864_p8 = por %p1863_p7, %p1862_p6 }
 0x22f   :  { %1639 = vmatpush3.bf16.msra.mxu1 %v2485_v16  ;;  %v1046_v16 = vstv %s2619_s1 }
 0x230   :  { %p1865_p9 = pnand %p1864_p8, %p1858_p5 }
 0x2e5   :  { %v1467_v58 = vpop.f32.mrb[0].mxu0  ;;  %v1502_v59 = vpop.f32.mrb[0].mxu1 }
 0x2e6   :  { %v1468_v38 = vpop.f32.mrb[1].mxu0  ;;  %v1503_v24 = vpop.f32.mrb[1].mxu1 }
 0x2e7   :  { %v2672_v48 = vadd.f32 %v1468_v38, %v1467_v58  ;;  %v1504_v50 = vadd.f32 %v1503_v24, %v1502_v59 }
 0x2e9   :  { %v916_v19 = vmul.f32 %v2672_v48, %v915_v5  ;;  %v940_v1 = vmul.f32 %v2672_v48, %v939_v22  ;;  %v966_v53 = vmul.f32 %v2672_v48, %v965_v30  ;;  %v992_v6 = vmul.f32 %v2672_v48, %v991_v47 }
 0x2ea   :  { %v2685_v54 = vmul.f32 %v2672_v48, %v1017_v29  ;;  %v2688_v8 = vmul.f32 %v2672_v48, %v1043_v49  ;;  %v925_v55 = vmul.f32 %v1504_v50, %v915_v5  ;;  %v949_v14 = vmul.f32 %v1504_v50, %v939_v22 }
 0x2eb   :  { %v919_v15 = vadd.f32 %v918_v13, %v916_v19  ;;  %v943_v44 = vadd.f32 %v942_v52, %v940_v1  ;;  %v2690_v63 = vadd.f32 %v968_v12, %v966_v53  ;;  %v2692_v62 = vadd.f32 %v994_v57, %v992_v6 }
 0x2ec   :  { %v926_v7 = vadd.f32 %v925_v55, %v918_v13  ;;  %v950_v25 = vadd.f32 %v949_v14, %v942_v52  ;;  %v975_v26 = vmul.f32 %v1504_v50, %v965_v30  ;;  %v1001_v20 = vmul.f32 %v1504_v50, %v991_v47 }
 0x2ed   :  { %v920_v11 = vadd.f32 3.0, %v919_v15  ;;  %v944_v17 = vadd.f32 3.0, %v943_v44  ;;  %v970_v4 = vadd.f32 3.0, %v2690_v63  ;;  %v1027_v21 = vmul.f32 %v1504_v50, %v1017_v29 }
 0x2ee   :  { %v927_v23 = vadd.f32 3.0, %v926_v7  ;;  %v951_v32 = vadd.f32 3.0, %v950_v25  ;;  %v976_v33 = vadd.f32 %v975_v26, %v968_v12  ;;  %v1002_v34 = vadd.f32 %v1001_v20, %v994_v57 }
 0x2ef   :  { %v921_v35 = vmax.f32 %v920_v11, 0.0  ;;  %v945_v31 = vmax.f32 %v944_v17, 0.0  ;;  %v971_v46 = vmax.f32 %v970_v4, 0.0  ;;  %v1028_v9 = vadd.f32 %v1027_v21, %v1020_v0 }
 0x2f0   :  { %v928_v5 = vmax.f32 %v927_v23, 0.0  ;;  %v952_v13 = vmax.f32 %v951_v32, 0.0  ;;  %v977_v22 = vadd.f32 3.0, %v976_v33  ;;  %v1003_v30 = vadd.f32 3.0, %v1002_v34 }
 0x2f1   :  { %v922_v47 = vmin.f32 %v921_v35, 6.0  ;;  %v946_v52 = vmin.f32 %v945_v31, 6.0  ;;  %v1029_v58 = vadd.f32 3.0, %v1028_v9  ;;  %v1053_v59 = vmul.f32 %v1504_v50, %v1043_v49 }
 0x2f2   :  { %v929_v29 = vmin.f32 %v928_v5, 6.0  ;;  %v953_v38 = vmin.f32 %v952_v13, 6.0  ;;  %v978_v12 = vmax.f32 %v977_v22, 0.0  ;;  %v1004_v57 = vmax.f32 %v1003_v30, 0.0 }
 0x2f3   :  { %v923_v24 = vmul.f32 %v922_v47, %v919_v15  ;;  %v947_v19 = vmul.f32 %v946_v52, %v943_v44  ;;  %v1030_v1 = vmax.f32 %v1029_v58, 0.0  ;;  %v1054_v53 = vadd.f32 %v1053_v59, %v1046_v16 }
 0x2f4   :  { %v930_v6 = vmul.f32 %v929_v29, %v926_v7  ;;  %v954_v55 = vmul.f32 %v953_v38, %v950_v25  ;;  %v979_v14 = vmin.f32 %v978_v12, 6.0  ;;  %v1005_v26 = vmin.f32 %v1004_v57, 6.0 }
 0x2f5   :  { %v1031_v20 = vmin.f32 %v1030_v1, 6.0  ;;  %v1055_v49 = vadd.f32 3.0, %v1054_v53  ;;  %v1079_v11 = vmul.f32 %v1504_v50, %v1069_v27  ;;  %v1105_v17 = vmul.f32 %v1504_v50, %v1095_v40 }
 0x2f6   :  { %v931_v4 = vmul.f32 0.16666667, %v930_v6  ;;  %v955_v15 = vmul.f32 0.16666667, %v954_v55  ;;  %v980_v44 = vmul.f32 %v979_v14, %v976_v33  ;;  %v1006_v21 = vmul.f32 %v1005_v26, %v1002_v34 }
 0x2f7   :  { %v1032_v23 = vmul.f32 %v1031_v20, %v1028_v9  ;;  %v1056_v7 = vmax.f32 %v1055_v49, 0.0  ;;  %v1080_v25 = vadd.f32 %v1079_v11, %v1072_v39  ;;  %v1106_v32 = vadd.f32 %v1105_v17, %v1098_v37 }
 0x2f8   :  { %v937_v35 = vmul.f32 %v936_v28, %v931_v4  ;;  %v961_v31 = vmul.f32 %v960_v41, %v955_v15  ;;  %v981_v5 = vmul.f32 0.16666667, %v980_v44  ;;  %v1007_v50 = vmul.f32 0.16666667, %v1006_v21 }
 0x2f9   :  { %v1033_v13 = vmul.f32 0.16666667, %v1032_v23  ;;  %v1057_v22 = vmin.f32 %v1056_v7, 6.0  ;;  %v1081_v30 = vadd.f32 3.0, %v1080_v25  ;;  %v1107_v33 = vadd.f32 3.0, %v1106_v32 }
 0x2fa   :  { %v963_v47 = vadd.f32 %v961_v31, %v937_v35  ;;  %v987_v34 = vmul.f32 %v986_v42, %v981_v5  ;;  %v1013_v9 = vmul.f32 %v1012_v45, %v1007_v50  ;;  %v924_v52 = vmul.f32 0.16666667, %v923_v24 }
 0x2fb   :  { %v1039_v58 = vmul.f32 %v1038_v43, %v1033_v13  ;;  %v1058_v28 = vmul.f32 %v1057_v22, %v1054_v53  ;;  %v1082_v41 = vmax.f32 %v1081_v30, 0.0  ;;  %v1108_v59 = vmax.f32 %v1107_v33, 0.0 }
 0x2fc   :  { %v989_v29 = vadd.f32 %v987_v34, %v963_v47  ;;  %v934_v38 = vmul.f32 %v933_v56, %v924_v52  ;;  %v948_v12 = vmul.f32 0.16666667, %v947_v19  ;;  %v972_v57 = vmin.f32 %v971_v46, 6.0 }
 0x2fd   :  { %v1059_v1 = vmul.f32 0.16666667, %v1058_v28  ;;  %v1083_v42 = vmin.f32 %v1082_v41, 6.0  ;;  %v1109_v6 = vmin.f32 %v1108_v59, 6.0  ;;  %v996_v45 = vadd.f32 3.0, %v2692_v62 }
 0x2fe   :  { %v1015_v24 = vadd.f32 %v1013_v9, %v989_v29  ;;  %v958_v43 = vmul.f32 %v957_v61, %v948_v12  ;;  %v973_v53 = vmul.f32 %v972_v57, %v2690_v63  ;;  %v1021_v55 = vadd.f32 %v1020_v0, %v2685_v54 }
 0x2ff   :  { %v1065_v14 = vmul.f32 %v1064_v60, %v1059_v1  ;;  %v1084_v56 = vmul.f32 %v1083_v42, %v1080_v25  ;;  %v1110_v46 = vmul.f32 %v1109_v6, %v1106_v32  ;;  %v997_v19 = vmax.f32 %v996_v45, 0.0 }
 0x300   :  { %v1041_v26 = vadd.f32 %v1039_v58, %v1015_v24  ;;  %v962_v20 = vadd.f32 %v958_v43, %v934_v38  ;;  %v974_v49 = vmul.f32 0.16666667, %v973_v53  ;;  %v1022_v61 = vadd.f32 3.0, %v1021_v55 }
 0x301   :  { %v1085_v63 = vmul.f32 0.16666667, %v1084_v56  ;;  %v1111_v11 = vmul.f32 0.16666667, %v1110_v46  ;;  %v998_v17 = vmin.f32 %v997_v19, 6.0  ;;  %v1047_v0 = vadd.f32 %v1046_v16, %v2688_v8 }
 0x302   :  { %v1067_v60 = vadd.f32 %v1065_v14, %v1041_v26  ;;  %v984_v54 = vmul.f32 %v983_v18, %v974_v49  ;;  %v1023_v4 = vmax.f32 %v1022_v61, 0.0  ;;  %v1070_v15 = vmul.f32 %v2672_v48, %v1069_v27 }
 0x303   :  { %v1091_v44 = vmul.f32 %v1090_v51, %v1085_v63  ;;  %v999_v21 = vmul.f32 %v998_v17, %v2692_v62  ;;  %v1009_v23 = vstv %s2717_s30  ;;  %v1048_v7 = vadd.f32 3.0, %v1047_v0 }
 0x304   :  { %v988_v25 = vadd.f32 %v984_v54, %v962_v20  ;;  %v1024_v32 = vmin.f32 %v1023_v4, 6.0  ;;  %v1073_v16 = vadd.f32 %v1072_v39, %v1070_v15  ;;  %v1096_v18 = vmul.f32 %v2672_v48, %v1095_v40 }
 0x305   :  { %v1093_v8 = vadd.f32 %v1091_v44, %v1067_v60  ;;  %v1117_v35 = vmul.f32 %v1116_v2, %v1111_v11  ;;  %v1000_v31 = vmul.f32 0.16666667, %v999_v21  ;;  %v1049_v27 = vmax.f32 %v1048_v7, 0.0 }
 0x306   :  { %v1130_v51 = vstv %s2814_s16  ;;  %v1025_v62 = vmul.f32 %v1024_v32, %v1021_v55  ;;  %v1074_v5 = vadd.f32 3.0, %v1073_v16  ;;  %v1099_v50 = vadd.f32 %v1098_v37, %v1096_v18 }
 0x307   :  { %v1119_v39 = vadd.f32 %v1117_v35, %v1093_v8  ;;  %v1010_v13 = vmul.f32 %v1009_v23, %v1000_v31  ;;  %v1035_v22 = vstv %s2730_s10  ;;  %v1050_v40 = vmin.f32 %v1049_v27, 6.0 }
 0x308   :  { %v1026_v48 = vmul.f32 0.16666667, %v1025_v62  ;;  %v1075_v2 = vmax.f32 %v1074_v5, 0.0  ;;  %v1100_v30 = vadd.f32 3.0, %v1099_v50  ;;  %v1061_v52 = vstv %s2737_s7 }
 0x309   :  { %v1131_v33 = vadd.f32 %v1130_v51, %v1119_v39  ;;  %v1014_v47 = vadd.f32 %v1010_v13, %v988_v25  ;;  %v1051_v34 = vmul.f32 %v1050_v40, %v1047_v0  ;;  %v1087_v1 = vstv %s2753_s18 }
 0x30a   :  { %v1036_v9 = vmul.f32 %v1035_v22, %v1026_v48  ;;  %v1076_v58 = vmin.f32 %v1075_v2, 6.0  ;;  %v1101_v28 = vmax.f32 %v1100_v30, 0.0  ;;  %v1113_v24 = vstv %s1432_s20 }
 0x30b   :  { %v1132_v41 = vsub.f32 0.0, %v1131_v33  ;;  %v1052_v59 = vmul.f32 0.16666667, %v1051_v34  ;;  %v1121_v7 = vstv %s2812_s14 }
 0x30c   :  { %v1040_v29 = vadd.f32 %v1036_v9, %v1014_v47  ;;  %v1077_v37 = vmul.f32 %v1076_v58, %v1073_v16  ;;  %v1102_v38 = vmin.f32 %v1101_v28, 6.0 }
 0x30d   :  { %v1133_v12 = vmul.f32 1.442695, %v1132_v41  ;;  %v1062_v57 = vmul.f32 %v1061_v52, %v1052_v59 }
 0x30e   :  { %v1078_v42 = vmul.f32 0.16666667, %v1077_v37  ;;  %v1103_v6 = vmul.f32 %v1102_v38, %v1099_v50 }
 0x30f   :  { %1669 = vpow2.f32 %v1133_v12  ;;  %v1066_v45 = vadd.f32 %v1062_v57, %v1040_v29 }
 0x310   :  { %v1088_v43 = vmul.f32 %v1087_v1, %v1078_v42  ;;  %v1104_v53 = vmul.f32 0.16666667, %v1103_v6 }
 0x312   :  { %v1092_v55 = vadd.f32 %v1088_v43, %v1066_v45  ;;  %v1114_v14 = vmul.f32 %v1113_v24, %v1104_v53 }
 0x314   :  { %v1118_v56 = vadd.f32 %v1114_v14, %v1092_v55 }
 0x316   :  { %v1122_v25 = vadd.f32 %v1121_v7, %v1118_v56 }
 0x318   :  { %v1123_v32 = vsub.f32 0.0, %v1122_v25 }
 0x319   :  { %v1670_v46 = vpop.eup %1669 }
 0x31a   :  { %v1135_v19 = vadd.f32 1.0, %v1670_v46  ;;  %v1124_v16 = vmul.f32 1.442695, %v1123_v32 }
 0x31c   :  { %1671 = vrcp.f32 %v1135_v19 }
 0x31d   :  { %1673 = vpow2.f32 %v1124_v16 }
 0x326   :  { %v1672_v26 = vpop.eup %1671 }
 0x327   :  { %1434 = vmatmul.mubr.msk.f32.vlgmr.msra.gmra.mrb[2].mxu0 %vm1142_vm8, %v1672_v26 }
 0x3fa   :  { %v1212_v20 = vpop.f32.mrb[2].mxu0 }
 0x3fb   :  { %v1214_v49 = vpop.f32.mrb[3].mxu0 }
 0x3fc   :  { %v1219_v61 = vcombine.low %v1212_v20, %v1214_v49 }
 0x3fe   :  { %v1226_v63 = vrot.slane %v1219_v61, %v2206_v36 }
 0x400   :  { %v1227_v11 = vcombine.high %v1226_v63, %v1226_v63  ;;  %v1234_v17 = vrot.slane %v1226_v63, %v2206_v36 }
 0x402   :  { %v1241_v0 = vrot.slane %v1227_v11, %v2206_v36  ;;  %v1244_v60 = vmul.f32 %v1234_v17, %v2571_v10  ;;  %v1674_v10 = vpop.eup %1673 }
 0x404   :  { %v1245_v54 = vmul.f32 %v1241_v0, %v2575_v3  ;;  %v1126_v3 = vadd.f32 1.0, %v1674_v10 }
 0x406   :  { %v1248_v4 = vcombine.low %v1244_v60, %v1245_v54  ;;  %1675 = vrcp.f32 %v1126_v3 }
 0x408   :  { %v1255_v15 = vrot.slane %v1248_v4, %v2206_v36 }
 0x40a   :  { %v1256_v44 = vcombine.high %v1255_v15, %v1255_v15  ;;  %v1263_v23 = vrot.slane %v1255_v15, %v2206_v36 }
 0x40c   :  { %v1270_v21 = vrot.slane %v1256_v44, %v2206_v36 }
 0x40e   :  { %1337 = vmatprep.mubr.f32.mxu1 %v1270_v21 }
 0x40f   :  { %1338 = vmatmul.mubr.f32.vlgmr.msra.gmra.mrb[2].mxu1 %v1263_v23 }
 0x410   :  { %v1676_v31 = vpop.eup %1675 }
 0x4e2   :  { %v1537_v18 = vpop.f32.mrb[2].mxu1 }
 0x4e3   :  { %v1538_v8 = vpop.f32.mrb[3].mxu1 }
 0x4e4   :  { %v1539_v35 = vadd.f32 %v1538_v8, %v1537_v18 }
 0x4e6   :  { %v1343_v27 = vmul.f32 %v1676_v31, %v1539_v35 }
 0x4e8   :  { %v1345_v36 = vsel %vm1344_vm9, %v1343_v27, 0.0 }
 0x4e9   :  { %1346 = vadd.xlane.f32.xlu0 %v1345_v36 }
 0x4ea   :  { %1868 = shalt.err (!%p1865_p9)
}
 0x4eb   :  { %s1869_s1 = scalar_lea.hbm %s2815_s17, 64 }
 0x4ec   :  { %p1870_p10 = scmp.ne.s32.totalorder %s2815_s17, %s1869_s1  ;;  %p1873_p11 = scmp.lt.u32.totalorder %s1869_s1, %s2815_s17 }
 0x4ee   :  { %p1875_p12 = pnand %p1873_p11, %p1870_p10 }
 0x4f0   :  { %1878 = shalt.err (!%p1875_p12)
}
 0x4f1   :  { %1360 = dma.vmem_to_hbm [thread:$0]  %s1358_s9, 64, %s2815_s17, [#allocation9]   ;;  %vm1349_vm10 = vcmask 1024  }
 0x4f2   :  { %s1947_s0 = smov [#allocation28]  }
 0x4f3   :  { %s1367_s28 = sshll.u32 %s1947_s0, 4  ;;  %s1368_s28 = int_to_ptr.vmem [resolvable:$true] %s1367_s28 }
 0x4f4   :  { %s1879_s12 = scalar_lea.vmem %s1368_s28, 32  ;;  %p1884_p0 = scmp.lt.s32.totalorder %s1368_s28, %s1368_s28 }
 0x4f5   :  { %p1880_p13 = scmp.ne.s32.totalorder %s1368_s28, %s1879_s12  ;;  %p1885_p1 = scmp.lt.s32.totalorder %s1879_s12, %s1879_s12 }
 0x4f7   :  { %p1886_p2 = por %p1885_p1, %p1884_p0 }
 0x4f9   :  { %p1887_p3 = pnand %p1886_p2, %p1880_p13 }
 0x576   :  { %v1347_v51 = vpop.xlane.xlu0 %1346 }
 0x577   :  { %v1348_v62 = vmul.f32 0.0625, %v1347_v51 }
 0x579   :  { %1350 = vst.msk [vmem:[#allocation28] sm:$0x3] %vm1349_vm10, %v1348_v62 }
 0x57a   :  { %1890 = shalt.err (!%p1887_p3)
}
 0x57b   :  { %s2828_s15 = sld [smem:[#allocation42_spill]] }
 0x581   :  { %s1891_s5 = scalar_lea.hbm %s2828_s15, 32 }
 0x582   :  { %p1892_p4 = scmp.ne.s32.totalorder %s2828_s15, %s1891_s5  ;;  %p1895_p5 = scmp.lt.u32.totalorder %s1891_s5, %s2828_s15 }
 0x584   :  { %p1897_p6 = pnand %p1895_p5, %p1892_p4 }
 0x586   :  { %1900 = shalt.err (!%p1897_p6)
}
 0x587   :  { %1370 = dma.vmem_to_hbm [thread:$0]  %s1368_s28, 32, %s2828_s15, [#allocation29]  }
 0x588   :  { %1915 = dma.done.wait [#allocation9], 64  }
 0x589   :  { %1916 = vsyncadd [#allocation9], 4294967232 }
 0x58a   :  { %1917 = dma.done.wait [#allocation29], 32  }
 0x58b   :  { %1918 = vsyncadd [#allocation29], 4294967264 }
 0x58c   :  { %1377 = vsyncpa [#allocation8], 1 }
 0x58d   :  { %1378 = vsyncpa [#allocation12], 1 }
 0x58e   :  { %1379 = vsyncpa [#allocation15], 1 }
 0x58f   :  { %1380 = vsyncpa [#allocation9], 1 }
 0x590   :  { %1381 = vsyncpa [#allocation29], 1 }
 0x591   :  { %1382 = vsyncpa [#allocation10], 1 }
 0x592   :  { %1383 = vsyncpa [#allocation19], 1 }
 0x593   :  { %1384 = vsyncpa [#allocation22], 1 }
 0x594   :  { %1385 = vsyncpa [#allocation25], 1 }

// kernel: window_trunction_forward.3
= control target key start
LH: loop header
LB: loop body
LE: loop exit
PB: predicated region body
PF: predicated region fallthrough
CT: control target
= control target key end

     0   :  { %s4374_s0 = inlined_call_operand.hbm [shape: f32[2,256], index: 0, kind: input, shape index: {}]   ;;  %s4375_s1 = inlined_call_operand.hbm [shape: f32[9,1,256], index: 1, kind: input, shape index: {}]   ;;  %s4376_s2 = inlined_call_operand.<no memory space> [shape: f32[1], index: 2, kind: input, shape index: {}]   ;;  %s4377_s3 = inlined_call_operand.hbm [shape: f32[36], index: 3, kind: input, shape index: {}]   ;;  %s4378_s4 = inlined_call_operand.hbm [shape: f32[4], index: 4, kind: input, shape index: {}]   ;;  %s4379_s5 = inlined_call_operand.hbm [shape: f32[144], index: 5, kind: input, shape index: {}]   ;;  %s4380_s6 = inlined_call_operand.hbm [shape: f32[4], index: 6, kind: input, shape index: {}]   ;;  %s4381_s7 = inlined_call_operand.hbm [shape: f32[2,4,256], index: 7, kind: output, shape index: {}]  }
   0x1   :  { %4546 = sst [smem:[#allocation143_spill]] %s4381_s7 }
   0x2   :  { %13 = vsyncpa [#allocation4], 0 }
   0x3   :  { %14 = vsyncpa [#allocation8], 0 }
   0x4   :  { %15 = vsyncpa [#allocation6], 0 }
   0x5   :  { %16 = vsyncpa [#allocation11], 0 }
   0x6   :  { %17 = vsyncpa [#allocation14], 0 }
   0x7   :  { %18 = vsyncpa [#allocation5], 0  ;;  %s2031_s26 = scalar_lea.hbm %s4378_s4, 16 }
   0x8   :  { %p2032_p0 = scmp.ne.s32.totalorder %s4378_s4, %s2031_s26  ;;  %p2035_p1 = scmp.lt.u32.totalorder %s2031_s26, %s4378_s4 }
   0xa   :  { %p2037_p2 = pnand %p2035_p1, %p2032_p0 }
   0xc   :  { %2040 = shalt.err (!%p2037_p2)
}
   0xd   :  { %s2149_s8 = smov [#allocation10]   ;;  %s2150_s11 = smov [#allocation3]  }
   0xe   :  { %58 = dma.hbm_to_smem %s4378_s4, 16, %s2149_s8, [#allocation11]  }
   0xf   :  { %s25_s12 = sshll.u32 %s2150_s11, 4  ;;  %s2151_s13 = smov [#allocation7]   ;;  %s26_s12 = int_to_ptr.vmem [resolvable:$true] %s25_s12 }
  0x10   :  { %s34_s14 = sshll.u32 %s2151_s13, 4  ;;  %s2041_s17 = scalar_lea.hbm %s4374_s0, 64  ;;  %s35_s14 = int_to_ptr.vmem [resolvable:$true] %s34_s14 }
  0x11   :  { %p2042_p3 = scmp.ne.s32.totalorder %s4374_s0, %s2041_s17  ;;  %p2045_p4 = scmp.lt.u32.totalorder %s2041_s17, %s4374_s0 }
  0x13   :  { %p2047_p5 = pnand %p2045_p4, %p2042_p3 }
  0x15   :  { %2050 = shalt.err (!%p2047_p5)
}
  0x16   :  { %s2051_s4 = scalar_lea.vmem %s26_s12, 64  ;;  %p2056_p7 = scmp.lt.s32.totalorder %s26_s12, %s26_s12 }
  0x17   :  { %p2052_p6 = scmp.ne.s32.totalorder %s26_s12, %s2051_s4  ;;  %p2057_p8 = scmp.lt.s32.totalorder %s2051_s4, %s2051_s4 }
  0x19   :  { %p2058_p9 = por %p2057_p8, %p2056_p7 }
  0x1b   :  { %p2059_p10 = pnand %p2058_p9, %p2052_p6 }
  0x1d   :  { %2062 = shalt.err (!%p2059_p10)
}
  0x1e   :  { %28 = dma.hbm_to_vmem [thread:$0]  %s4374_s0, 64, %s26_s12, [#allocation4]  }
  0x1f   :  { %s2063_s26 = scalar_lea.hbm %s4375_s1, 288 }
  0x20   :  { %p2064_p11 = scmp.ne.s32.totalorder %s4375_s1, %s2063_s26  ;;  %p2067_p12 = scmp.lt.u32.totalorder %s2063_s26, %s4375_s1 }
  0x22   :  { %p2069_p13 = pnand %p2067_p12, %p2064_p11 }
  0x24   :  { %2072 = shalt.err (!%p2069_p13)
}
  0x25   :  { %s2073_s8 = scalar_lea.vmem %s35_s14, 288  ;;  %p2078_p1 = scmp.lt.s32.totalorder %s35_s14, %s35_s14 }
  0x26   :  { %p2074_p0 = scmp.ne.s32.totalorder %s35_s14, %s2073_s8  ;;  %p2079_p2 = scmp.lt.s32.totalorder %s2073_s8, %s2073_s8 }
  0x28   :  { %p2080_p3 = por %p2079_p2, %p2078_p1 }
  0x2a   :  { %p2081_p4 = pnand %p2080_p3, %p2074_p0 }
  0x2c   :  { %2084 = shalt.err (!%p2081_p4)
}
  0x2d   :  { %s2152_s0 = smov 32   ;;  %s2153_s9 = smov 2  }
  0x2e   :  { %40 = dma.hbm_to_vmem [thread:$0]  %s4375_s1, 288, %s35_s14, [#allocation8], %s2152_s0, %s2152_s0, %s2153_s9  }
  0x2f   :  { %s2085_s15 = scalar_lea.hbm %s4377_s3, 16 }
  0x30   :  { %p2086_p5 = scmp.ne.s32.totalorder %s4377_s3, %s2085_s15  ;;  %p2089_p6 = scmp.lt.u32.totalorder %s2085_s15, %s4377_s3 }
  0x32   :  { %p2091_p7 = pnand %p2089_p6, %p2086_p5 }
  0x34   :  { %2094 = shalt.err (!%p2091_p7)
}
  0x35   :  { %s2154_s20 = smov [#allocation9]   ;;  %s2095_s22 = scalar_lea.hbm %s4379_s5, 32 }
  0x36   :  { %50 = dma.hbm_to_smem %s4377_s3, 16, %s2154_s20, [#allocation6]  }
  0x37   :  { %p2096_p8 = scmp.ne.s32.totalorder %s4379_s5, %s2095_s22  ;;  %p2099_p9 = scmp.lt.u32.totalorder %s2095_s22, %s4379_s5 }
  0x39   :  { %p2101_p10 = pnand %p2099_p9, %p2096_p8 }
  0x3b   :  { %2104 = shalt.err (!%p2101_p10)
}
  0x3c   :  { %s2155_s27 = smov [#allocation12]   ;;  %s2105_s8 = scalar_lea.hbm %s4380_s6, 16 }
  0x3d   :  { %66 = dma.hbm_to_smem %s4379_s5, 32, %s2155_s27, [#allocation11]  }
  0x3e   :  { %p2106_p11 = scmp.ne.s32.totalorder %s4380_s6, %s2105_s8  ;;  %p2109_p12 = scmp.lt.u32.totalorder %s2105_s8, %s4380_s6 }
  0x40   :  { %p2111_p13 = pnand %p2109_p12, %p2106_p11 }
  0x42   :  { %2114 = shalt.err (!%p2111_p13)
}
  0x43   :  { %s2156_s12 = smov [#allocation13]  }
  0x44   :  { %74 = dma.hbm_to_smem %s4380_s6, 16, %s2156_s12, [#allocation14]  }
  0x45   :  { %2137 = dma.done.wait [#allocation4], 64  }
  0x46   :  { %2138 = vsyncadd [#allocation4], 4294967232 }
  0x47   :  { %2139 = dma.done.wait [#allocation8], 288  }
  0x48   :  { %2140 = vsyncadd [#allocation8], 4294967008 }
  0x49   :  { %2141 = dma.done.wait [#allocation6], 16  }
  0x4a   :  { %2142 = vsyncadd [#allocation6], 4294967280 }
  0x4b   :  { %2143 = dma.done.wait [#allocation11], 48  }
  0x4c   :  { %2144 = vsyncadd [#allocation11], 4294967248 }
  0x4d   :  { %2145 = dma.done.wait [#allocation14], 16  }
  0x4e   :  { %2146 = vsyncadd [#allocation14], 4294967280 }
  0x4f   :  { %93 = sfence }
  0x50   :  { %v111_v0 = vld [vmem:[#allocation3] sm:$0xf]  ;;  %v114_v1 = vstv %s4376_s2  ;;  %v4382_v2 = vlaneseq  ;;  %v2157_v4 = vmov 1983009808   ;;  %s2158_s6 = smov 16   ;;  %s2159_s17 = smov 17  }
  0x51   :  { %v112_v3 = vmax.f32 %v111_v0, 1e-06  ;;  %v118_v5 = vunpack.c.l.s4 %v2157_v4  ;;  %s4396_s2 = smov 15   ;;  %s4397_s18 = smov 1   ;;  %v94_v19 = vld [vmem:[#allocation7] sm:$0x3] }
  0x52   :  { %v2286_v6 = vshrl.u32 %v4382_v2, 7  ;;  %s4391_s19 = smov 127   ;;  %s4389_s20 = smov 113   ;;  %v2328_v18 = vand.u32 127, %v4382_v2  ;;  %v96_v22 = vld [vmem:[#allocation7 + $0x2] sm:$0x3] }
  0x53   :  { %v115_v7 = vmin.f32 %v112_v3, %v114_v1  ;;  %v119_v8 = vunpack.c.0.s8 %v118_v5  ;;  %s4387_s21 = smov 112   ;;  %s4385_s4 = smov 111   ;;  %v98_v31 = vld [vmem:[#allocation7 + $0x4] sm:$0x3]  ;;  %v100_v38 = vld [vmem:[#allocation7 + $0x6] sm:$0x3] }
  0x54   :  { %s2330_s1 = sld [smem:[#allocation9]]  ;;  %v2333_v20 = vsub.s32 0, %v2286_v6  ;;  %v2336_v21 = vsub.s32 1, %v2286_v6  ;;  %vm133_vm0 = vcmp.lt.s32.totalorder %v2328_v18, 17  ;;  %s2339_s14 = sld [smem:[#allocation9 + $0x1]]  ;;  %vm153_vm1 = vcmp.lt.s32.totalorder %v2328_v18, 16 }
  0x55   :  { %v122_v9 = vsub.s32 %v119_v8, %v2286_v6  ;;  %s2362_s22 = sld [smem:[#allocation9 + $0x2]]  ;;  %vm173_vm2 = vcmp.lt.s32.totalorder %v2328_v18, 15  ;;  %s2375_s23 = sld [smem:[#allocation9 + $0x3]]  ;;  %vm193_vm3 = vcmp.lt.s32.totalorder %v2328_v18, 1  ;;  %v102_v42 = vld [vmem:[#allocation7 + $0x8] sm:$0x3] }
  0x56   :  { %v2343_v23 = vrot.slane %v94_v19, %v2333_v20  ;;  %v2346_v24 = vrot.slane %v94_v19, %v2336_v21  ;;  %v2353_v29 = vrot.slane %v96_v22, %v2333_v20  ;;  %v2356_v30 = vrot.slane %v96_v22, %v2336_v21  ;;  %s2392_s24 = sld [smem:[#allocation9 + $0x4]]  ;;  %s2430_s25 = sld [smem:[#allocation9 + $0x5]]  ;;  %v104_v8 = vld [vmem:[#allocation7 + $0xa] sm:$0x3]  ;;  %v106_v19 = vld [vmem:[#allocation7 + $0xc] sm:$0x3] }
  0x57   :  { %v2289_v10 = vrot.slane %v115_v7, %v122_v9  ;;  %v2372_v36 = vrot.slane %v98_v31, %v2333_v20  ;;  %v2384_v41 = vrot.slane %v98_v31, %v2336_v21  ;;  %v2397_v50 = vrot.slane %v100_v38, %v2333_v20  ;;  %s2444_s26 = sld [smem:[#allocation9 + $0x6]]  ;;  %s2458_s27 = sld [smem:[#allocation9 + $0x7]] }
  0x58   :  { %v2400_v51 = vrot.slane %v100_v38, %v2336_v21  ;;  %v2407_v54 = vrot.slane %v102_v42, %v2333_v20  ;;  %v2419_v60 = vrot.slane %v102_v42, %v2336_v21  ;;  %vm226_vm4 = vcmp.lt.s32.totalorder %v2328_v18, 127  ;;  %s2468_s28 = sld [smem:[#allocation9 + $0x9]]  ;;  %s2491_s29 = sld [smem:[#allocation9 + $0x8]] }
  0x59   :  { %149 = vrot.lane.b32.xlu1 %v2289_v10, %s2158_s6  ;;  %127 = vrot.lane.b32.xlu0 %v2289_v10, %s2159_s17  ;;  %v2297_v11 = vcombine.high %v2289_v10, %v2289_v10  ;;  %v2447_v22 = vrot.slane %v104_v8, %v2333_v20  ;;  %vm246_vm5 = vcmp.lt.s32.totalorder %v2328_v18, 113  ;;  %v2462_v31 = vrot.slane %v106_v19, %v2333_v20  ;;  %s2499_s3 = sld [smem:[#allocation9 + $0xa]]  ;;  %s2512_s30 = sld [smem:[#allocation10]] }
  0x5a   :  { %v303_v37 = vstv %s2330_s1  ;;  %v307_v43 = vstv %s2339_s14  ;;  %4547 = vst [vmem:[#allocation22_spill] sm:$0xff] %v2400_v51  ;;  %v2434_v9 = vmul.f32 %v2407_v54, %v2289_v10  ;;  %vm266_vm6 = vcmp.lt.s32.totalorder %v2328_v18, 112  ;;  %s2522_s8 = sld [smem:[#allocation9 + $0xb]]  ;;  %s2531_s0 = sld [smem:[#allocation9 + $0xc]] }
  0x5b   :  { %v313_v59 = vstv %s2362_s22  ;;  %v319_v1 = vstv %s2375_s23  ;;  %4548 = vst [vmem:[#allocation23_spill] sm:$0xff] %v2462_v31  ;;  %vm286_vm7 = vcmp.lt.s32.totalorder %v2328_v18, 111  ;;  %s2542_s9 = sld [smem:[#allocation9 + $0x12]]  ;;  %s2546_s10 = sld [smem:[#allocation9 + $0xd]] }
  0x5c   :  { %s2549_s11 = sld [smem:[#allocation9 + $0x13]]  ;;  %s2556_s12 = sld [smem:[#allocation9 + $0xe]] }
  0x5d   :  { %169 = vrot.lane.b32.xlu0 %v2289_v10, %s4396_s2  ;;  %151 = vrot.lane.b32.xlu1 %v2297_v11, %s2158_s6  ;;  %s2558_s13 = sld [smem:[#allocation9 + $0x14]]  ;;  %s2565_s15 = sld [smem:[#allocation9 + $0xf]] }
  0x5e   :  { %s2568_s5 = sld [smem:[#allocation9 + $0x15]]  ;;  %s2577_s16 = sld [smem:[#allocation9 + $0x10]] }
  0x5f   :  { %s2580_s1 = sld [smem:[#allocation9 + $0x11]]  ;;  %s2584_s14 = sld [smem:[#allocation9 + $0x16]] }
  0x60   :  { %s2597_s22 = sld [smem:[#allocation9 + $0x1b]]  ;;  %s2605_s23 = sld [smem:[#allocation9 + $0x1c]] }
  0x61   :  { %171 = vrot.lane.b32.xlu1 %v2297_v11, %s4396_s2  ;;  %129 = vrot.lane.b32.xlu0 %v2297_v11, %s2159_s17  ;;  %s2819_s7 = sld [smem:[#allocation12 + $0x3]] }
  0x65   :  { %191 = vrot.lane.b32.xlu1 %v2297_v11, %s4397_s18  ;;  %189 = vrot.lane.b32.xlu0 %v2289_v10, %s4397_s18 }
  0x67   :  { %4568 = sst [smem:[#allocation43_spill]] %s2819_s7 }
  0x68   :  { %s2839_s7 = sld [smem:[#allocation12 + $0x6]] }
  0x69   :  { %224 = vrot.lane.b32.xlu1 %v2297_v11, %s4391_s19  ;;  %222 = vrot.lane.b32.xlu0 %v2289_v10, %s4391_s19 }
  0x6d   :  { %244 = vrot.lane.b32.xlu1 %v2297_v11, %s4389_s20  ;;  %242 = vrot.lane.b32.xlu0 %v2289_v10, %s4389_s20 }
  0x6e   :  { %4578 = sst [smem:[#allocation51_spill]] %s2839_s7  ;;  %s2853_s7 = sld [smem:[#allocation12 + $0x2b]] }
  0x71   :  { %264 = vrot.lane.b32.xlu1 %v2297_v11, %s4387_s21  ;;  %262 = vrot.lane.b32.xlu0 %v2289_v10, %s4387_s21 }
  0x74   :  { %4584 = sst [smem:[#allocation56_spill]] %s2853_s7  ;;  %s2962_s7 = sld [smem:[#allocation12 + $0x54]] }
  0x75   :  { %284 = vrot.lane.b32.xlu1 %v2297_v11, %s4385_s4  ;;  %282 = vrot.lane.b32.xlu0 %v2289_v10, %s4385_s4  ;;  %v2450_v10 = vrot.slane %v104_v8, %v2336_v21 }
  0x7a   :  { %4620 = sst [smem:[#allocation82_spill]] %s2962_s7 }
  0x7b   :  { %s3030_s7 = sld [smem:[#allocation12 + $0x1c]] }
  0x81   :  { %4639 = sst [smem:[#allocation94_spill]] %s3030_s7 }
  0xcb   :  { %v150_v12 = vpop.permute.xlu1 %149  ;;  %v128_v13 = vpop.permute.xlu0 %127 }
  0xcf   :  { %v170_v14 = vpop.permute.xlu0 %169  ;;  %v152_v15 = vpop.permute.xlu1 %151 }
  0xd0   :  { %v154_v32 = vsel %vm153_vm1, %v150_v12, %v152_v15  ;;  %v155_v33 = vsel %vm153_vm1, %v152_v15, %v150_v12  ;;  %v325_v12 = vstv %s2392_s24  ;;  %s2609_s24 = sld [smem:[#allocation9 + $0x17]] }
  0xd1   :  { %v2378_v39 = vmul.f32 %v2353_v29, %v155_v33  ;;  %v2381_v40 = vmul.f32 %v2356_v30, %v154_v32  ;;  %v2465_v32 = vrot.slane %v106_v19, %v2336_v21 }
  0xd3   :  { %v172_v16 = vpop.permute.xlu1 %171  ;;  %v130_v17 = vpop.permute.xlu0 %129  ;;  %v308_v55 = vmul.f32 %v307_v43, %v2378_v39  ;;  %v309_v56 = vmul.f32 %v307_v43, %v2381_v40  ;;  %4549 = vst [vmem:[#allocation24_spill] sm:$0xff] %v2465_v32 }
  0xd4   :  { %v134_v25 = vsel %vm133_vm0, %v128_v13, %v130_v17  ;;  %v135_v26 = vsel %vm133_vm0, %v130_v17, %v128_v13  ;;  %v174_v44 = vsel %vm173_vm2, %v170_v14, %v172_v16  ;;  %v175_v45 = vsel %vm173_vm2, %v172_v16, %v170_v14 }
  0xd5   :  { %v2366_v34 = vmul.f32 %v2343_v23, %v135_v26  ;;  %v2369_v35 = vmul.f32 %v2346_v24, %v134_v25  ;;  %v2412_v57 = vmul.f32 %v2372_v36, %v175_v45  ;;  %v2415_v58 = vmul.f32 %v2384_v41, %v174_v44 }
  0xd6   :  { %v2440_v13 = vmul.f32 %v2419_v60, %v2297_v11  ;;  %v326_v26 = vmul.f32 %v325_v12, %v2434_v9 }
  0xd7   :  { %v192_v27 = vpop.permute.xlu1 %191  ;;  %v190_v28 = vpop.permute.xlu0 %189  ;;  %v304_v48 = vmul.f32 %v303_v37, %v2366_v34  ;;  %v305_v49 = vmul.f32 %v303_v37, %v2369_v35  ;;  %v314_v5 = vmul.f32 %v313_v59, %v2412_v57  ;;  %v315_v7 = vmul.f32 %v313_v59, %v2415_v58 }
  0xd8   :  { %v194_v52 = vsel %vm193_vm3, %v190_v28, %v192_v27  ;;  %v195_v53 = vsel %vm193_vm3, %v192_v27, %v190_v28  ;;  %v108_v27 = vld [vmem:[#allocation7 + $0xe] sm:$0x3]  ;;  %v327_v28 = vmul.f32 %v325_v12, %v2440_v13 }
  0xd9   :  { %v310_v61 = vadd.f32 %v308_v55, %v304_v48  ;;  %v311_v62 = vadd.f32 %v309_v56, %v305_v49  ;;  %v2422_v63 = vmul.f32 %v2397_v50, %v195_v53  ;;  %v2425_v0 = vmul.f32 %v2400_v51, %v194_v52 }
  0xda   :  { %v2484_v48 = vrot.slane %v108_v27, %v2336_v21  ;;  %v331_v49 = vstv %s2430_s25  ;;  %s2615_s25 = sld [smem:[#allocation9 + $0x18]] }
  0xdb   :  { %v225_v46 = vpop.permute.xlu1 %224  ;;  %v223_v47 = vpop.permute.xlu0 %222  ;;  %v316_v14 = vadd.f32 %v314_v5, %v310_v61  ;;  %v317_v15 = vadd.f32 %v315_v7, %v311_v62  ;;  %v320_v16 = vmul.f32 %v319_v1, %v2422_v63  ;;  %v321_v17 = vmul.f32 %v319_v1, %v2425_v0  ;;  %v110_v1 = vld [vmem:[#allocation7 + $0x10] sm:$0x3] }
  0xdc   :  { %v227_v11 = vsel %vm226_vm4, %v223_v47, %v225_v46  ;;  %v228_v25 = vsel %vm226_vm4, %v225_v46, %v223_v47  ;;  %v2481_v47 = vrot.slane %v108_v27, %v2333_v20  ;;  %4551 = vst [vmem:[#allocation26_spill] sm:$0xff] %v2484_v48  ;;  %v337_v62 = vstv %s2444_s26  ;;  %s2617_s26 = sld [smem:[#allocation10 + $0x1]] }
  0xdd   :  { %v322_v38 = vadd.f32 %v320_v16, %v316_v14  ;;  %v323_v42 = vadd.f32 %v321_v17, %v317_v15  ;;  %v2475_v45 = vmul.f32 %v2447_v22, %v227_v11  ;;  %v2478_v46 = vmul.f32 %v2450_v10, %v228_v25 }
  0xde   :  { %4550 = vst [vmem:[#allocation25_spill] sm:$0xff] %v2481_v47  ;;  %v343_v14 = vstv %s2458_s27  ;;  %v2517_v17 = vrot.slane %v110_v1, %v2333_v20  ;;  %v2520_v19 = vrot.slane %v110_v1, %v2336_v21  ;;  %v361_v11 = vstv %s2468_s28  ;;  %s2627_s27 = sld [smem:[#allocation9 + $0x19]]  ;;  %s2629_s28 = sld [smem:[#allocation9 + $0x1d]] }
  0xdf   :  { %v245_v3 = vpop.permute.xlu1 %244  ;;  %v243_v4 = vpop.permute.xlu0 %242  ;;  %v328_v59 = vadd.f32 %v326_v26, %v322_v38  ;;  %v329_v61 = vadd.f32 %v327_v28, %v323_v42  ;;  %v349_v21 = vstv %s2491_s29  ;;  %s2635_s29 = sld [smem:[#allocation9 + $0x1a]] }
  0xe0   :  { %v247_v43 = vsel %vm246_vm5, %v243_v4, %v245_v3  ;;  %v248_v44 = vsel %vm246_vm5, %v245_v3, %v243_v4  ;;  %v332_v3 = vmul.f32 %v331_v49, %v2475_v45  ;;  %v333_v4 = vmul.f32 %v331_v49, %v2478_v46  ;;  %4552 = vst [vmem:[#allocation27_spill] sm:$0xff] %v2517_v17 }
  0xe1   :  { %v2494_v55 = vmul.f32 %v2462_v31, %v247_v43  ;;  %v2497_v56 = vmul.f32 %v2465_v32, %v248_v44  ;;  %4553 = vst [vmem:[#allocation28_spill] sm:$0xff] %v2520_v19  ;;  %v365_v44 = vstv %s2499_s3  ;;  %v362_v49 = vmul.f32 %v361_v11, %v2366_v34  ;;  %s2638_s3 = sld [smem:[#allocation9 + $0x1e]] }
  0xe2   :  { %v334_v27 = vadd.f32 %v332_v3, %v328_v59  ;;  %v335_v28 = vadd.f32 %v333_v4, %v329_v61  ;;  %v366_v1 = vmul.f32 %v365_v44, %v2378_v39 }
  0xe3   :  { %v265_v33 = vpop.permute.xlu1 %264  ;;  %v263_v37 = vpop.permute.xlu0 %262  ;;  %v338_v15 = vmul.f32 %v337_v62, %v2494_v55  ;;  %v339_v16 = vmul.f32 %v337_v62, %v2497_v56  ;;  %v355_v62 = vstv %s2512_s30  ;;  %s2658_s30 = sld [smem:[#allocation9 + $0x1f]] }
  0xe4   :  { %v267_v52 = vsel %vm266_vm6, %v263_v37, %v265_v33  ;;  %v268_v53 = vsel %vm266_vm6, %v265_v33, %v263_v37 }
  0xe5   :  { %v2506_v5 = vmul.f32 %v2481_v47, %v267_v52  ;;  %v2509_v7 = vmul.f32 %v2484_v48, %v268_v53  ;;  %v340_v37 = vadd.f32 %v338_v15, %v334_v27  ;;  %v341_v38 = vadd.f32 %v339_v16, %v335_v28 }
  0xe7   :  { %v285_v8 = vpop.permute.xlu1 %284  ;;  %v283_v12 = vpop.permute.xlu0 %282  ;;  %v344_v33 = vmul.f32 %v343_v14, %v2506_v5  ;;  %v345_v20 = vmul.f32 %v343_v14, %v2509_v7  ;;  %v368_v14 = vadd.f32 %v366_v1, %v362_v49  ;;  %v423_v49 = vstv %s2549_s11  ;;  %s2699_s11 = sld [smem:[#allocation9 + $0x23]] }
  0xe8   :  { %v287_v25 = vsel %vm286_vm7, %v283_v12, %v285_v8  ;;  %v288_v26 = vsel %vm286_vm7, %v285_v8, %v283_v12  ;;  %v371_v8 = vstv %s2522_s8  ;;  %v363_v12 = vmul.f32 %v361_v11, %v2369_v35  ;;  %s2665_s8 = sld [smem:[#allocation10 + $0x2]] }
  0xe9   :  { %v2535_v42 = vmul.f32 %v2517_v17, %v287_v25  ;;  %v2538_v43 = vmul.f32 %v2520_v19, %v288_v26  ;;  %v346_v52 = vadd.f32 %v344_v33, %v340_v37  ;;  %v347_v53 = vadd.f32 %v345_v20, %v341_v38 }
  0xea   :  { %v367_v25 = vmul.f32 %v365_v44, %v2381_v40  ;;  %v377_v26 = vstv %s2531_s0  ;;  %v372_v27 = vmul.f32 %v371_v8, %v2412_v57  ;;  %v419_v11 = vstv %s2542_s9  ;;  %s2676_s0 = sld [smem:[#allocation9 + $0x20]]  ;;  %s2683_s9 = sld [smem:[#allocation9 + $0x21]] }
  0xeb   :  { %v350_v59 = vmul.f32 %v349_v21, %v2535_v42  ;;  %v351_v61 = vmul.f32 %v349_v21, %v2538_v43  ;;  %v378_v37 = vmul.f32 %v377_v26, %v2422_v63  ;;  %v373_v38 = vmul.f32 %v371_v8, %v2415_v58 }
  0xec   :  { %v369_v20 = vadd.f32 %v367_v25, %v363_v12  ;;  %v374_v21 = vadd.f32 %v372_v27, %v368_v14  ;;  %v383_v44 = vstv %s2546_s10  ;;  %v424_v1 = vmul.f32 %v423_v49, %v2378_v39  ;;  %s2692_s10 = sld [smem:[#allocation9 + $0x22]] }
  0xed   :  { %v352_v3 = vadd.f32 %v350_v59, %v346_v52  ;;  %v353_v4 = vadd.f32 %v351_v61, %v347_v53  ;;  %v420_v52 = vmul.f32 %v419_v11, %v2366_v34  ;;  %v379_v59 = vmul.f32 %v377_v26, %v2425_v0 }
  0xee   :  { %v375_v53 = vadd.f32 %v373_v38, %v369_v20  ;;  %v380_v61 = vadd.f32 %v378_v37, %v374_v21  ;;  %v385_v8 = vmul.f32 %v383_v44, %v2440_v13  ;;  %v421_v12 = vmul.f32 %v419_v11, %v2369_v35 }
  0xef   :  { %v356_v15 = vadd.f32 %v355_v62, %v352_v3  ;;  %v357_v16 = vadd.f32 %v355_v62, %v353_v4  ;;  %v384_v62 = vmul.f32 %v383_v44, %v2434_v9  ;;  %v389_v3 = vstv %s2556_s12  ;;  %s1863_s12 = sld [smem:[#allocation10 + $0x3]] }
  0xf0   :  { %v429_v4 = vstv %s2558_s13  ;;  %v426_v14 = vadd.f32 %v424_v1, %v420_v52  ;;  %v435_v25 = vstv %s2568_s5  ;;  %v390_v27 = vmul.f32 %v389_v3, %v2475_v45  ;;  %s2749_s13 = sld [smem:[#allocation12 + $0x4]] }
  0xf1   :  { %v2561_v28 = vmax.f32 %v356_v15, 0.0  ;;  %v2563_v33 = vmax.f32 %v357_v16, 0.0  ;;  %v381_v15 = vadd.f32 %v379_v59, %v375_v53  ;;  %v395_v16 = vstv %s2565_s15  ;;  %s2751_s15 = sld [smem:[#allocation12 + $0x28]]  ;;  %s2753_s5 = sld [smem:[#allocation12 + $0x4c]] }
  0xf2   :  { %v386_v26 = vadd.f32 %v384_v62, %v380_v61  ;;  %v425_v20 = vmul.f32 %v423_v49, %v2381_v40  ;;  %v430_v11 = vmul.f32 %v429_v4, %v2412_v57  ;;  %v401_v21 = vstv %s2577_s16  ;;  %s2757_s16 = sld [smem:[#allocation12 + $0x70]] }
  0xf3   :  { %536 = vrot.lane.b32.xlu1 %v2563_v33, %s2159_s17  ;;  %534 = vrot.lane.b32.xlu0 %v2561_v28, %s2159_s17  ;;  %v396_v37 = vmul.f32 %v395_v16, %v2494_v55  ;;  %v407_v38 = vstv %s2580_s1  ;;  %v436_v53 = vmul.f32 %v435_v25, %v2422_v63  ;;  %v387_v59 = vadd.f32 %v385_v8, %v381_v15  ;;  %s2759_s1 = sld [smem:[#allocation12 + $0xd]] }
  0xf4   :  { %v427_v44 = vadd.f32 %v425_v20, %v421_v12  ;;  %v432_v52 = vadd.f32 %v430_v11, %v426_v14  ;;  %v441_v61 = vstv %s2584_s14  ;;  %v391_v49 = vmul.f32 %v389_v3, %v2478_v46  ;;  %s2761_s14 = sld [smem:[#allocation12 + $0x31]] }
  0xf5   :  { %v392_v62 = vadd.f32 %v390_v27, %v386_v26  ;;  %v402_v1 = vmul.f32 %v401_v21, %v2506_v5  ;;  %v431_v12 = vmul.f32 %v429_v4, %v2415_v58  ;;  %v397_v8 = vmul.f32 %v395_v16, %v2497_v56 }
  0xf6   :  { %v408_v14 = vmul.f32 %v407_v38, %v2535_v42  ;;  %v437_v26 = vmul.f32 %v435_v25, %v2425_v0  ;;  %v438_v27 = vadd.f32 %v436_v53, %v432_v52  ;;  %v442_v20 = vmul.f32 %v441_v61, %v2434_v9 }
  0xf7   :  { %544 = vrot.lane.b32.xlu1 %v2563_v33, %s2158_s6  ;;  %542 = vrot.lane.b32.xlu0 %v2561_v28, %s2158_s6  ;;  %v398_v3 = vadd.f32 %v396_v37, %v392_v62  ;;  %v433_v15 = vadd.f32 %v431_v12, %v427_v44  ;;  %v477_v4 = vstv %s2597_s22  ;;  %v393_v11 = vadd.f32 %v391_v49, %v387_v59  ;;  %s2763_s22 = sld [smem:[#allocation12 + $0x55]] }
  0xf8   :  { %v403_v16 = vmul.f32 %v401_v21, %v2509_v7  ;;  %v481_v25 = vstv %s2605_s23  ;;  %v447_v37 = vstv %s2609_s24  ;;  %v443_v44 = vmul.f32 %v441_v61, %v2440_v13  ;;  %s2769_s23 = sld [smem:[#allocation12 + $0x79]]  ;;  %s2771_s24 = sld [smem:[#allocation12 + $0x16]] }
  0xf9   :  { %v404_v2 = vadd.f32 %v402_v1, %v398_v3  ;;  %v399_v52 = vadd.f32 %v397_v8, %v393_v11  ;;  %v409_v53 = vmul.f32 %v407_v38, %v2538_v43  ;;  %v478_v59 = vmul.f32 %v477_v4, %v2366_v34 }
  0xfa   :  { %v439_v21 = vadd.f32 %v437_v26, %v433_v15  ;;  %v453_v49 = vstv %s2615_s25  ;;  %v413_v1 = vstv %s2617_s26  ;;  %v444_v12 = vadd.f32 %v442_v20, %v438_v27  ;;  %s2773_s25 = sld [smem:[#allocation12 + $0x3a]]  ;;  %s2775_s26 = sld [smem:[#allocation12 + $0x5e]] }
  0xfb   :  { %552 = vrot.lane.b32.xlu1 %v2563_v33, %s4396_s2  ;;  %550 = vrot.lane.b32.xlu0 %v2561_v28, %s4396_s2  ;;  %v410_v62 = vadd.f32 %v408_v14, %v404_v2  ;;  %v448_v3 = vmul.f32 %v447_v37, %v2475_v45  ;;  %v405_v19 = vadd.f32 %v403_v16, %v399_v52  ;;  %v459_v2 = vstv %s2627_s27  ;;  %s2777_s27 = sld [smem:[#allocation12 + $0x82]] }
  0xfc   :  { %v482_v38 = vmul.f32 %v481_v25, %v2378_v39  ;;  %v487_v34 = vstv %s2629_s28  ;;  %v454_v61 = vmul.f32 %v453_v49, %v2494_v55  ;;  %v479_v15 = vmul.f32 %v477_v4, %v2369_v35  ;;  %s2779_s28 = sld [smem:[#allocation12 + $0x1f]] }
  0xfd   :  { %v411_v8 = vadd.f32 %v409_v53, %v405_v19  ;;  %v414_v14 = vadd.f32 %v413_v1, %v410_v62  ;;  %v445_v27 = vadd.f32 %v443_v44, %v439_v21  ;;  %v465_v20 = vstv %s2635_s29  ;;  %s2781_s29 = sld [smem:[#allocation12 + $0x43]] }
  0xfe   :  { %v484_v26 = vadd.f32 %v482_v38, %v478_v59  ;;  %v493_v11 = vstv %s2638_s3  ;;  %v449_v16 = vmul.f32 %v447_v37, %v2478_v46  ;;  %v450_v52 = vadd.f32 %v448_v3, %v444_v12  ;;  %s2783_s3 = sld [smem:[#allocation12 + $0x67]] }
  0xff   :  { %560 = vrot.lane.b32.xlu1 %v2563_v33, %s4397_s18  ;;  %558 = vrot.lane.b32.xlu0 %v2561_v28, %s4397_s18  ;;  %v460_v39 = vmul.f32 %v459_v2, %v2506_v5  ;;  %v483_v19 = vmul.f32 %v481_v25, %v2381_v40  ;;  %v488_v35 = vmul.f32 %v487_v34, %v2412_v57  ;;  %v2679_v53 = vmax.f32 %v414_v14, 0.0 }
 0x100   :  { %v455_v4 = vmul.f32 %v453_v49, %v2497_v56  ;;  %v456_v44 = vadd.f32 %v454_v61, %v450_v52  ;;  %v415_v37 = vadd.f32 %v413_v1, %v411_v8  ;;  %v466_v62 = vmul.f32 %v465_v20, %v2535_v42 }
 0x101   :  { %v485_v59 = vadd.f32 %v483_v19, %v479_v15  ;;  %v490_v21 = vadd.f32 %v488_v35, %v484_v26  ;;  %v494_v12 = vmul.f32 %v493_v11, %v2422_v63  ;;  %v451_v40 = vadd.f32 %v449_v16, %v445_v27 }
 0x102   :  { %v461_v57 = vmul.f32 %v459_v2, %v2509_v7  ;;  %v462_v25 = vadd.f32 %v460_v39, %v456_v44  ;;  %v489_v49 = vmul.f32 %v487_v34, %v2415_v58  ;;  %v499_v1 = vstv %s2658_s30  ;;  %4554 = sst [smem:[#allocation29_spill]] %s2779_s28  ;;  %s2791_s30 = sld [smem:[#allocation12 + $0x8b]] }
 0x103   :  { %570 = vrot.lane.b32.xlu1 %v2563_v33, %s4391_s19  ;;  %568 = vrot.lane.b32.xlu0 %v2561_v28, %s4391_s19  ;;  %v457_v63 = vadd.f32 %v455_v4, %v451_v40  ;;  %v2694_v3 = vmax.f32 %v415_v37, 0.0  ;;  %v467_v38 = vmul.f32 %v465_v20, %v2538_v43  ;;  %v495_v8 = vmul.f32 %v493_v11, %v2425_v0  ;;  %s2817_s19 = sld [smem:[#allocation12 + $0x6e]] }
 0x104   :  { %v468_v2 = vadd.f32 %v466_v62, %v462_v25  ;;  %v491_v61 = vadd.f32 %v489_v49, %v485_v59  ;;  %v471_v14 = vstv %s2665_s8  ;;  %v496_v15 = vadd.f32 %v494_v12, %v490_v21  ;;  %4555 = sst [smem:[#allocation30_spill]] %s2783_s3  ;;  %s2793_s8 = sld [smem:[#allocation12 + $0x24]] }
 0x105   :  { %v500_v58 = vmul.f32 %v499_v1, %v2434_v9  ;;  %v463_v34 = vadd.f32 %v461_v57, %v457_v63  ;;  %v505_v26 = vstv %s2676_s0  ;;  %v501_v0 = vmul.f32 %v499_v1, %v2440_v13  ;;  %s2795_s0 = sld [smem:[#allocation12 + $0x48]] }
 0x106   :  { %v472_v20 = vadd.f32 %v471_v14, %v468_v2  ;;  %v497_v16 = vadd.f32 %v495_v8, %v491_v61  ;;  %v511_v11 = vstv %s2683_s9  ;;  %v506_v39 = vmul.f32 %v505_v26, %v2475_v45  ;;  %s2797_s9 = sld [smem:[#allocation12 + $0x6c]] }
 0x107   :  { %578 = vrot.lane.b32.xlu1 %v2563_v33, %s4389_s20  ;;  %576 = vrot.lane.b32.xlu0 %v2561_v28, %s4389_s20  ;;  %v469_v27 = vadd.f32 %v467_v38, %v463_v34  ;;  %v502_v52 = vadd.f32 %v500_v58, %v496_v15  ;;  %v517_v9 = vstv %s2692_s10  ;;  %v512_v19 = vmul.f32 %v511_v11, %v2494_v55  ;;  %s2799_s10 = sld [smem:[#allocation12 + $0x1]]  ;;  %s2815_s20 = sld [smem:[#allocation12 + $0x4a]] }
 0x108   :  { %v2716_v4 = vmax.f32 %v472_v20, 0.0  ;;  %v503_v44 = vadd.f32 %v501_v0, %v497_v16  ;;  %v523_v37 = vstv %s2699_s11  ;;  %v507_v13 = vmul.f32 %v505_v26, %v2478_v46  ;;  %s2801_s11 = sld [smem:[#allocation12 + $0x25]] }
 0x109   :  { %v473_v35 = vadd.f32 %v471_v14, %v469_v27  ;;  %v508_v62 = vadd.f32 %v506_v39, %v502_v52  ;;  %v518_v45 = vmul.f32 %v517_v9, %v2506_v5  ;;  %v513_v59 = vmul.f32 %v511_v11, %v2497_v56  ;;  %4567 = sst [smem:[#allocation42_spill]] %s2817_s19  ;;  %s2837_s19 = sld [smem:[#allocation12 + $0x71]] }
 0x10a   :  { %v524_v12 = vmul.f32 %v523_v37, %v2535_v42  ;;  %v509_v40 = vadd.f32 %v507_v13, %v503_v44  ;;  %v519_v57 = vmul.f32 %v517_v9, %v2509_v7  ;;  %v525_v25 = vmul.f32 %v523_v37, %v2538_v43  ;;  %4557 = sst [smem:[#allocation32_spill]] %s2793_s8 }
 0x10b   :  { %586 = vrot.lane.b32.xlu1 %v2563_v33, %s4387_s21  ;;  %584 = vrot.lane.b32.xlu0 %v2561_v28, %s4387_s21  ;;  %v514_v55 = vadd.f32 %v512_v19, %v508_v62  ;;  %v2726_v21 = vmax.f32 %v473_v35, 0.0  ;;  %v529_v56 = vstv %s1863_s12  ;;  %4558 = sst [smem:[#allocation33_spill]] %s2795_s0  ;;  %s2803_s12 = sld [smem:[#allocation12 + $0x49]]  ;;  %v2166_v2 = vmov 1966171168  }
 0x10c   :  { %v515_v5 = vadd.f32 %v513_v59, %v509_v40  ;;  %4559 = sst [smem:[#allocation34_spill]] %s2797_s9  ;;  %s2813_s21 = sld [smem:[#allocation12 + $0x26]]  ;;  %v1664_v61 = vunpack.c.l.s4 %v2166_v2  ;;  %v623_v14 = vstv %s2749_s13  ;;  %v675_v15 = vstv %s2751_s15 }
 0x10d   :  { %v520_v46 = vadd.f32 %v518_v45, %v514_v55  ;;  %4560 = sst [smem:[#allocation35_spill]] %s2799_s10  ;;  %v727_v58 = vstv %s2753_s5  ;;  %v779_v34 = vstv %s2757_s16  ;;  %v897_v26 = vstv %s2759_s1  ;;  %s2890_s13 = sld [smem:[#allocation12 + $0x2f]] }
 0x10e   :  { %v521_v1 = vadd.f32 %v519_v57, %v515_v5  ;;  %4561 = sst [smem:[#allocation36_spill]] %s2801_s11  ;;  %v1665_v8 = vunpack.c.0.s8 %v1664_v61  ;;  %v951_v27 = vstv %s2761_s14  ;;  %v1005_v20 = vstv %s2763_s22  ;;  %s2892_s15 = sld [smem:[#allocation12 + $0x53]] }
 0x10f   :  { %808 = vrot.lane.b32.xlu1 %v2679_v53, %s2159_s17  ;;  %592 = vrot.lane.b32.xlu0 %v2561_v28, %s4385_s4  ;;  %v526_v49 = vadd.f32 %v524_v12, %v520_v46  ;;  %s2811_s4 = sld [smem:[#allocation12 + $0x2]]  ;;  %4566 = sst [smem:[#allocation41_spill]] %s2815_s20  ;;  %v1059_v16 = vstv %s2769_s23  ;;  %v1179_v0 = vstv %s2771_s24  ;;  %v567_v35 = vmul.f32 %v2563_v33, %v2419_v60 }
 0x110   :  { %v527_v7 = vadd.f32 %v525_v25, %v521_v1  ;;  %s2821_s11 = sld [smem:[#allocation12 + $0x27]]  ;;  %s2835_s20 = sld [smem:[#allocation12 + $0x4d]]  ;;  %v1233_v11 = vstv %s2773_s25  ;;  %v1287_v52 = vstv %s2775_s26  ;;  %v1341_v39 = vstv %s2777_s27 }
 0x111   :  { %v530_v42 = vadd.f32 %v529_v56, %v526_v49  ;;  %4562 = sst [smem:[#allocation37_spill]] %s2803_s12  ;;  %s2823_s12 = sld [smem:[#allocation12 + $0x4b]]  ;;  %v1461_v9 = vstv %s2779_s28  ;;  %v2899_v19 = vsub.s32 %v1665_v8, %v2286_v6  ;;  %v1515_v44 = vstv %s2781_s29 }
 0x112   :  { %v531_v63 = vadd.f32 %v529_v56, %v527_v7  ;;  %4565 = sst [smem:[#allocation40_spill]] %s2813_s21  ;;  %s2833_s21 = sld [smem:[#allocation12 + $0x29]]  ;;  %v1569_v6 = vstv %s2783_s3  ;;  %v1623_v45 = vstv %s2791_s30  ;;  %v566_v40 = vmul.f32 %v2561_v28, %v2407_v54 }
 0x113   :  { %816 = vrot.lane.b32.xlu1 %v2679_v53, %s2158_s6  ;;  %810 = vrot.lane.b32.xlu0 %v2694_v3, %s2159_s17  ;;  %v2743_v38 = vmax.f32 %v530_v42, 0.0  ;;  %4577 = sst [smem:[#allocation50_spill]] %s2837_s19  ;;  %s2851_s19 = sld [smem:[#allocation12 + $0x7]]  ;;  %4599 = vst [vmem:[#allocation70_spill] sm:$0xff] %v2899_v19  ;;  %v2944_v56 = vmul.f32 %v623_v14, %v567_v35  ;;  %v840_v1 = vmul.f32 %v2679_v53, %v2407_v54 }
 0x114   :  { %v2755_v43 = vmax.f32 %v531_v63, 0.0  ;;  %4597 = sst [smem:[#allocation68_spill]] %s2890_s13  ;;  %s2928_s3 = sld [smem:[#allocation12 + $0x13]]  ;;  %v2952_v7 = vmul.f32 %v675_v15, %v567_v35  ;;  %v2954_v42 = vmul.f32 %v727_v58, %v567_v35  ;;  %v2958_v63 = vmul.f32 %v779_v34, %v567_v35 }
 0x115   :  { %4564 = sst [smem:[#allocation39_spill]] %s2811_s4  ;;  %s2831_s4 = sld [smem:[#allocation12 + $0x5]]  ;;  %v841_v2 = vmul.f32 %v2694_v3, %v2419_v60  ;;  %v2966_v61 = vmul.f32 %v623_v14, %v566_v40  ;;  %v2968_v8 = vmul.f32 %v675_v15, %v566_v40  ;;  %v2970_v49 = vmul.f32 %v727_v58, %v566_v40 }
 0x116   :  { %4569 = sst [smem:[#allocation44_spill]] %s2821_s11  ;;  %s2841_s11 = sld [smem:[#allocation12 + $0x2a]]  ;;  %v1122_v35 = vmul.f32 %v2716_v4, %v2407_v54  ;;  %v2981_v25 = vmul.f32 %v779_v34, %v566_v40  ;;  %v1123_v14 = vmul.f32 %v2726_v21, %v2419_v60  ;;  %v2991_v15 = vmul.f32 %v2743_v38, %v2407_v54 }
 0x117   :  { %824 = vrot.lane.b32.xlu1 %v2679_v53, %s4396_s2  ;;  %818 = vrot.lane.b32.xlu0 %v2694_v3, %s2158_s6  ;;  %4570 = sst [smem:[#allocation45_spill]] %s2823_s12  ;;  %s2843_s12 = sld [smem:[#allocation12 + $0x4e]]  ;;  %v3005_v54 = vmul.f32 %v897_v26, %v840_v1  ;;  %v3009_v40 = vmul.f32 %v951_v27, %v840_v1  ;;  %v3018_v34 = vmul.f32 %v897_v26, %v841_v2 }
 0x118   :  { %4575 = sst [smem:[#allocation48_spill]] %s2833_s21  ;;  %s2859_s21 = sld [smem:[#allocation12 + $0x9]]  ;;  %v3022_v58 = vmul.f32 %v951_v27, %v841_v2  ;;  %v3026_v5 = vmul.f32 %v1005_v20, %v840_v1  ;;  %v3034_v28 = vmul.f32 %v1005_v20, %v841_v2  ;;  %v3038_v46 = vmul.f32 %v1059_v16, %v840_v1 }
 0x119   :  { %4576 = sst [smem:[#allocation49_spill]] %s2835_s20  ;;  %s2849_s20 = sld [smem:[#allocation12 + $0x72]]  ;;  %v3042_v26 = vmul.f32 %v1059_v16, %v841_v2  ;;  %v3046_v27 = vmul.f32 %v1179_v0, %v1122_v35  ;;  %v3056_v20 = vmul.f32 %v1179_v0, %v1123_v14  ;;  %v3060_v1 = vmul.f32 %v1233_v11, %v1122_v35 }
 0x11a   :  { %4583 = sst [smem:[#allocation55_spill]] %s2851_s19  ;;  %s2934_s0 = sld [smem:[#allocation12 + $0x37]]  ;;  %4634 = vst [vmem:[#allocation91_spill] sm:$0xff] %v3022_v58  ;;  %4636 = vst [vmem:[#allocation92_spill] sm:$0xff] %v3026_v5  ;;  %v3074_v0 = vmul.f32 %v1233_v11, %v1123_v14  ;;  %v3078_v12 = vmul.f32 %v1287_v52, %v1122_v35  ;;  %v3086_v2 = vmul.f32 %v1287_v52, %v1123_v14 }
 0x11b   :  { %1090 = vrot.lane.b32.xlu1 %v2716_v4, %s2159_s17  ;;  %826 = vrot.lane.b32.xlu0 %v2694_v3, %s4396_s2  ;;  %4574 = sst [smem:[#allocation47_spill]] %s2831_s4  ;;  %s2861_s4 = sld [smem:[#allocation12 + $0x2d]]  ;;  %4640 = vst [vmem:[#allocation95_spill] sm:$0xff] %v3034_v28  ;;  %4641 = vst [vmem:[#allocation96_spill] sm:$0xff] %v3038_v46  ;;  %v3090_v16 = vmul.f32 %v1341_v39, %v1122_v35  ;;  %v3094_v57 = vmul.f32 %v1341_v39, %v1123_v14 }
 0x11c   :  { %4579 = sst [smem:[#allocation52_spill]] %s2841_s11  ;;  %s2936_s8 = sld [smem:[#allocation12 + $0x5b]]  ;;  %4642 = vst [vmem:[#allocation97_spill] sm:$0xff] %v3042_v26  ;;  %4643 = vst [vmem:[#allocation98_spill] sm:$0xff] %v3046_v27  ;;  %v3098_v11 = vmul.f32 %v2755_v43, %v2419_v60  ;;  %v3129_v60 = vmul.f32 %v1461_v9, %v2991_v15  ;;  %v3173_v35 = vmul.f32 %v1569_v6, %v2991_v15 }
 0x11d   :  { %4580 = sst [smem:[#allocation53_spill]] %s2843_s12  ;;  %s2855_s11 = sld [smem:[#allocation12 + $0x4f]]  ;;  %4646 = vst [vmem:[#allocation101_spill] sm:$0xff] %v3056_v20  ;;  %4648 = vst [vmem:[#allocation102_spill] sm:$0xff] %v3060_v1 }
 0x11e   :  { %s2857_s12 = sld [smem:[#allocation12 + $0x73]]  ;;  %4587 = sst [smem:[#allocation59_spill]] %s2859_s21  ;;  %4655 = vst [vmem:[#allocation105_spill] sm:$0xff] %v3074_v0  ;;  %4657 = vst [vmem:[#allocation106_spill] sm:$0xff] %v3078_v12  ;;  %v3217_v39 = vmul.f32 %v1461_v9, %v3098_v11  ;;  %v3222_v14 = vmul.f32 %v1515_v44, %v3098_v11  ;;  %v3264_v62 = vmul.f32 %v1623_v45, %v3098_v11 }
 0x11f   :  { %1098 = vrot.lane.b32.xlu1 %v2716_v4, %s2158_s6  ;;  %1092 = vrot.lane.b32.xlu0 %v2726_v21, %s2159_s17  ;;  %4582 = sst [smem:[#allocation54_spill]] %s2849_s20  ;;  %s4590_s20 = smov 113   ;;  %4661 = vst [vmem:[#allocation109_spill] sm:$0xff] %v3086_v2  ;;  %4662 = vst [vmem:[#allocation110_spill] sm:$0xff] %v3090_v16 }
 0x120   :  { %s2872_s21 = sld [smem:[#allocation12 + $0xa]]  ;;  %4598 = sst [smem:[#allocation69_spill]] %s2892_s15  ;;  %4663 = vst [vmem:[#allocation111_spill] sm:$0xff] %v3094_v57  ;;  %4682 = vst [vmem:[#allocation116_spill] sm:$0xff] %v3129_v60 }
 0x121   :  { %4588 = sst [smem:[#allocation60_spill]] %s2861_s4  ;;  %s2879_s4 = sld [smem:[#allocation12 + $0x52]]  ;;  %4692 = vst [vmem:[#allocation119_spill] sm:$0xff] %v3173_v35  ;;  %4715 = vst [vmem:[#allocation125_spill] sm:$0xff] %v3217_v39 }
 0x122   :  { %s2907_s15 = sld [smem:[#allocation12 + $0x77]]  ;;  %4612 = sst [smem:[#allocation76_spill]] %s2928_s3  ;;  %4717 = vst [vmem:[#allocation126_spill] sm:$0xff] %v3222_v14  ;;  %4731 = vst [vmem:[#allocation131_spill] sm:$0xff] %v3264_v62 }
 0x123   :  { %832 = vrot.lane.b32.xlu1 %v2679_v53, %s4397_s18  ;;  %1100 = vrot.lane.b32.xlu0 %v2726_v21, %s2158_s6  ;;  %4585 = sst [smem:[#allocation57_spill]] %s2855_s11  ;;  %s2870_s11 = sld [smem:[#allocation12 + $0x75]] }
 0x124   :  { %4586 = sst [smem:[#allocation58_spill]] %s2857_s12  ;;  %s2882_s12 = sld [smem:[#allocation12 + $0x76]] }
 0x125   :  { %4613 = sst [smem:[#allocation77_spill]] %s2934_s0  ;;  %s2960_s28 = sld [smem:[#allocation12 + $0x30]] }
 0x126   :  { %4592 = sst [smem:[#allocation63_spill]] %s2872_s21  ;;  %s2916_s21 = sld [smem:[#allocation12 + $0x36]] }
 0x127   :  { %1106 = vrot.lane.b32.xlu1 %v2716_v4, %s4396_s2  ;;  %834 = vrot.lane.b32.xlu0 %v2694_v3, %s4397_s18  ;;  %4594 = sst [smem:[#allocation65_spill]] %s2879_s4  ;;  %s2946_s13 = sld [smem:[#allocation12 + $0x7f]] }
 0x128   :  { %4601 = sst [smem:[#allocation71_spill]] %s2907_s15  ;;  %s2948_s4 = sld [smem:[#allocation12 + $0xc]] }
 0x129   :  { %4591 = sst [smem:[#allocation62_spill]] %s2870_s11  ;;  %s2918_s11 = sld [smem:[#allocation12 + $0x5a]] }
 0x12a   :  { %4595 = sst [smem:[#allocation66_spill]] %s2882_s12  ;;  %s2972_s10 = sld [smem:[#allocation12 + $0x78]] }
 0x12b   :  { %1372 = vrot.lane.b32.xlu1 %v2743_v38, %s2159_s17  ;;  %1108 = vrot.lane.b32.xlu0 %v2726_v21, %s4396_s2  ;;  %4614 = sst [smem:[#allocation78_spill]] %s2936_s8  ;;  %s2974_s9 = sld [smem:[#allocation12 + $0x14]] }
 0x12c   :  { %4607 = sst [smem:[#allocation73_spill]] %s2916_s21  ;;  %s2999_s16 = sld [smem:[#allocation12 + $0x80]] }
 0x12d   :  { %4617 = sst [smem:[#allocation79_spill]] %s2946_s13  ;;  %s3050_s1 = sld [smem:[#allocation12 + $0x40]] }
 0x12e   :  { %4618 = sst [smem:[#allocation80_spill]] %s2948_s4  ;;  %s2985_s4 = sld [smem:[#allocation12 + $0x5c]] }
 0x12f   :  { %1380 = vrot.lane.b32.xlu1 %v2743_v38, %s2158_s6  ;;  %1374 = vrot.lane.b32.xlu0 %v2755_v43, %s2159_s17  ;;  %s2789_s17 = sld [smem:[#allocation12]]  ;;  %4608 = sst [smem:[#allocation74_spill]] %s2918_s11 }
 0x130   :  { %4619 = sst [smem:[#allocation81_spill]] %s2960_s28  ;;  %s2983_s28 = sld [smem:[#allocation12 + $0x38]] }
 0x131   :  { %4623 = sst [smem:[#allocation83_spill]] %s2972_s10  ;;  %s3052_s14 = sld [smem:[#allocation12 + $0x64]] }
 0x132   :  { %4624 = sst [smem:[#allocation84_spill]] %s2974_s9  ;;  %s3070_s24 = sld [smem:[#allocation12 + $0x15]] }
 0x133   :  { %1114 = vrot.lane.b32.xlu1 %v2716_v4, %s4397_s18  ;;  %1382 = vrot.lane.b32.xlu0 %v2755_v43, %s2158_s6  ;;  %s2809_s6 = sld [smem:[#allocation12 + $0x6d]]  ;;  %4628 = sst [smem:[#allocation87_spill]] %s2999_s16 }
 0x134   :  { %4627 = sst [smem:[#allocation86_spill]] %s2985_s4  ;;  %s3001_s4 = sld [smem:[#allocation12 + $0x1b]] }
 0x135   :  { %4556 = sst [smem:[#allocation31_spill]] %s2789_s17  ;;  %s4615_s17 = smov 112  }
 0x136   :  { %4626 = sst [smem:[#allocation85_spill]] %s2983_s28  ;;  %s3104_s26 = sld [smem:[#allocation12 + $0x81]] }
 0x137   :  { %1388 = vrot.lane.b32.xlu1 %v2743_v38, %s4396_s2  ;;  %1116 = vrot.lane.b32.xlu0 %v2726_v21, %s4397_s18  ;;  %s4571_s2 = smov 127   ;;  %s4572_s18 = smov 15  }
 0x138   :  { %s3028_s16 = sld [smem:[#allocation12 + $0x87]]  ;;  %4645 = sst [smem:[#allocation100_spill]] %s3052_s14 }
 0x139   :  { %4563 = sst [smem:[#allocation38_spill]] %s2809_s6  ;;  %s2829_s6 = sld [smem:[#allocation12 + $0x6f]] }
 0x13a   :  { %4630 = sst [smem:[#allocation88_spill]] %s3001_s4  ;;  %s3114_s23 = sld [smem:[#allocation12 + $0x65]] }
 0x13b   :  { %842 = vrot.lane.b32.xlu1 %v2679_v53, %s4571_s2  ;;  %1390 = vrot.lane.b32.xlu0 %v2755_v43, %s4572_s18  ;;  %s4581_s18 = smov 1   ;;  %4644 = sst [smem:[#allocation99_spill]] %s3050_s1 }
 0x13c   :  { %s3068_s1 = sld [smem:[#allocation12 + $0x88]]  ;;  %4653 = sst [smem:[#allocation104_spill]] %s3070_s24 }
 0x13d   :  { %4667 = sst [smem:[#allocation29_spill]] %s3104_s26  ;;  %s4675_s28 = smov 111  }
 0x13e   :  { %4638 = sst [smem:[#allocation93_spill]] %s3028_s16  ;;  %s3122_s14 = sld [smem:[#allocation12 + $0x89]] }
 0x13f   :  { %4573 = sst [smem:[#allocation46_spill]] %s2829_s6  ;;  %1396 = vrot.lane.b32.xlu1 %v2743_v38, %s4581_s18  ;;  %844 = vrot.lane.b32.xlu0 %v2694_v3, %s4571_s2  ;;  %s3124_s16 = sld [smem:[#allocation12 + $0xe]] }
 0x140   :  { %s2863_s6 = sld [smem:[#allocation12 + $0x51]]  ;;  %4674 = sst [smem:[#allocation113_spill]] %s3114_s23 }
 0x141   :  { %s3142_s4 = sld [smem:[#allocation12 + $0x56]]  ;;  %s3166_s15 = sld [smem:[#allocation12 + $0x8a]] }
 0x142   :  { %4652 = sst [smem:[#allocation103_spill]] %s3068_s1  ;;  %s3156_s1 = sld [smem:[#allocation12 + $0x42]] }
 0x143   :  { %850 = vrot.lane.b32.xlu1 %v2679_v53, %s4590_s20  ;;  %1398 = vrot.lane.b32.xlu0 %v2755_v43, %s4581_s18  ;;  %s2884_s18 = sld [smem:[#allocation12 + $0xb]]  ;;  %s3158_s5 = sld [smem:[#allocation12 + $0x66]] }
 0x144   :  { %4679 = sst [smem:[#allocation114_spill]] %s3122_s14  ;;  %s3150_s14 = sld [smem:[#allocation12 + $0x1e]] }
 0x145   :  { %4681 = sst [smem:[#allocation115_spill]] %s3124_s16  ;;  %s3148_s16 = sld [smem:[#allocation12 + $0x7a]] }
 0x146   :  { %4589 = sst [smem:[#allocation61_spill]] %s2863_s6  ;;  %s2877_s6 = sld [smem:[#allocation12 + $0x2e]] }
 0x147   :  { %1124 = vrot.lane.b32.xlu1 %v2716_v4, %s4571_s2  ;;  %852 = vrot.lane.b32.xlu0 %v2694_v3, %s4590_s20  ;;  %4689 = sst [smem:[#allocation30_spill]] %s3166_s15  ;;  %s3168_s21 = sld [smem:[#allocation12 + $0xf]] }
 0x148   :  { %s3186_s27 = sld [smem:[#allocation12 + $0x57]]  ;;  %s4703_s0 = sld [smem:[#allocation93_spill]] }
 0x149   :  { %4596 = sst [smem:[#allocation67_spill]] %s2884_s18  ;;  %s2909_s18 = sld [smem:[#allocation12 + $0x12]] }
 0x14a   :  { %s3194_s15 = sld [smem:[#allocation12 + $0x17]]  ;;  %s4704_s13 = sld [smem:[#allocation94_spill]] }
 0x14b   :  { %858 = vrot.lane.b32.xlu1 %v2679_v53, %s4615_s17  ;;  %1126 = vrot.lane.b32.xlu0 %v2726_v21, %s4571_s2  ;;  %s3200_s3 = sld [smem:[#allocation12 + $0x3b]]  ;;  %s4706_s22 = sld [smem:[#allocation100_spill]] }
 0x14c   :  { %4593 = sst [smem:[#allocation64_spill]] %s2877_s6  ;;  %s4708_s26 = smov 112  }
 0x14d   :  { %s3014_s6 = sld [smem:[#allocation12 + $0x63]]  ;;  %4690 = sst [smem:[#allocation118_spill]] %s3168_s21 }
 0x14e   :  { %4698 = sst [smem:[#allocation122_spill]] %s3186_s27  ;;  %s3212_s24 = sld [smem:[#allocation12 + $0x10]] }
 0x14f   :  { %4603 = sst [smem:[#allocation72_spill]] %s2909_s18  ;;  %s2926_s18 = sld [smem:[#allocation12 + $0x7e]]  ;;  %1132 = vrot.lane.b32.xlu1 %v2716_v4, %s4590_s20  ;;  %860 = vrot.lane.b32.xlu0 %v2694_v3, %s4615_s17 }
 0x150   :  { %s3012_s17 = sld [smem:[#allocation12 + $0x3f]]  ;;  %4702 = sst [smem:[#allocation124_spill]] %s3194_s15 }
 0x151   :  { %s3210_s19 = sld [smem:[#allocation12 + $0x83]]  ;;  %s3230_s11 = sld [smem:[#allocation12 + $0x58]] }
 0x152   :  { %s4721_s29 = sld [smem:[#allocation115_spill]]  ;;  %s3236_s12 = sld [smem:[#allocation12 + $0x7c]] }
 0x153   :  { %4633 = sst [smem:[#allocation90_spill]] %s3014_s6  ;;  %1406 = vrot.lane.b32.xlu1 %v2743_v38, %s4571_s2  ;;  %1134 = vrot.lane.b32.xlu0 %v2726_v21, %s4590_s20  ;;  %s3080_s6 = sld [smem:[#allocation12 + $0x39]] }
 0x154   :  { %s3082_s20 = sld [smem:[#allocation12 + $0x5d]]  ;;  %s3238_s21 = sld [smem:[#allocation12 + $0x18]] }
 0x155   :  { %4611 = sst [smem:[#allocation75_spill]] %s2926_s18  ;;  %s3184_s18 = sld [smem:[#allocation12 + $0x33]] }
 0x156   :  { %4632 = sst [smem:[#allocation89_spill]] %s3012_s17  ;;  %s3112_s17 = sld [smem:[#allocation12 + $0x41]] }
 0x157   :  { %594 = vrot.lane.b32.xlu1 %v2563_v33, %s4675_s28  ;;  %1408 = vrot.lane.b32.xlu0 %v2755_v43, %s4571_s2  ;;  %v3134_v33 = vmul.f32 %v1515_v44, %v2991_v15  ;;  %s3140_s2 = sld [smem:[#allocation12 + $0x32]]  ;;  %4712 = sst [smem:[#allocation94_spill]] %s3210_s19 }
 0x158   :  { %4722 = sst [smem:[#allocation115_spill]] %s3236_s12  ;;  %s3244_s8 = sld [smem:[#allocation12 + $0x3c]] }
 0x159   :  { %4659 = sst [smem:[#allocation107_spill]] %s3080_s6  ;;  %s3106_s6 = sld [smem:[#allocation12 + $0x1d]]  ;;  %4684 = vst [vmem:[#allocation117_spill] sm:$0xff] %v3134_v33 }
 0x15a   :  { %4660 = sst [smem:[#allocation108_spill]] %s3082_s20  ;;  %s3246_s10 = sld [smem:[#allocation12 + $0x60]] }
 0x15b   :  { %868 = vrot.lane.b32.xlu1 %v2694_v3, %s4675_s28  ;;  %866 = vrot.lane.b32.xlu0 %v2679_v53, %s4675_s28  ;;  %v3178_v3 = vmul.f32 %v1623_v45, %v2991_v15  ;;  %4696 = sst [smem:[#allocation121_spill]] %s3184_s18  ;;  %s3192_s28 = sld [smem:[#allocation12 + $0x7b]]  ;;  %v3259_v15 = vmul.f32 %v1569_v6, %v3098_v11 }
 0x15c   :  { %s3228_s20 = sld [smem:[#allocation12 + $0x34]]  ;;  %4723 = sst [smem:[#allocation127_spill]] %s3238_s21 }
 0x15d   :  { %4694 = vst [vmem:[#allocation120_spill] sm:$0xff] %v3178_v3  ;;  %s4727_s15 = sld [smem:[#allocation30_spill]]  ;;  %s3254_s9 = sld [smem:[#allocation12 + $0x84]]  ;;  %4730 = vst [vmem:[#allocation130_spill] sm:$0xff] %v3259_v15 }
 0x15e   :  { %4724 = sst [smem:[#allocation128_spill]] %s3244_s8  ;;  %s4728_s7 = sld [smem:[#allocation118_spill]] }
 0x15f   :  { %4669 = sst [smem:[#allocation112_spill]] %s3106_s6  ;;  %s3202_s6 = sld [smem:[#allocation12 + $0x5f]]  ;;  %1142 = vrot.lane.b32.xlu1 %v2726_v21, %s4708_s26  ;;  %1140 = vrot.lane.b32.xlu0 %v2716_v4, %s4708_s26 }
 0x160   :  { %4725 = sst [smem:[#allocation129_spill]] %s3246_s10  ;;  %s4733_s26 = sld [smem:[#allocation124_spill]] }
 0x161   :  { %4700 = sst [smem:[#allocation123_spill]] %s3192_s28  ;;  %s4726_s28 = smov 113  }
 0x162   :  { %4718 = sst [smem:[#allocation100_spill]] %s3228_s20  ;;  %s4735_s30 = sld [smem:[#allocation31_spill]] }
 0x163   :  { %1416 = vrot.lane.b32.xlu1 %v2755_v43, %s4726_s28  ;;  %1414 = vrot.lane.b32.xlu0 %v2743_v38, %s4726_s28  ;;  %4729 = sst [smem:[#allocation30_spill]] %s3254_s9  ;;  %s4732_s28 = sld [smem:[#allocation123_spill]] }
 0x164   :  { %s4736_s25 = smov 111   ;;  %s4737_s18 = sld [smem:[#allocation32_spill]] }
 0x165   :  { %4707 = sst [smem:[#allocation93_spill]] %s3202_s6  ;;  %v537_v53 = vpop.permute.xlu1 %536  ;;  %v535_v44 = vpop.permute.xlu0 %534  ;;  %s4739_s27 = sld [smem:[#allocation33_spill]] }
 0x166   :  { %s4716_s6 = sld [smem:[#allocation112_spill]]  ;;  %v538_v45 = vsel %vm133_vm0, %v535_v44, %v537_v53  ;;  %v539_v11 = vsel %vm133_vm0, %v537_v53, %v535_v44  ;;  %s4742_s20 = smov 112  }
 0x167   :  { %4719 = sst [smem:[#allocation112_spill]] %s3230_s11  ;;  %v540_v9 = vmul.f32 %v539_v11, %v2343_v23  ;;  %v541_v37 = vmul.f32 %v538_v45, %v2346_v24  ;;  %1150 = vrot.lane.b32.xlu1 %v2726_v21, %s4736_s25  ;;  %1148 = vrot.lane.b32.xlu0 %v2716_v4, %s4736_s25  ;;  %s4743_s8 = sld [smem:[#allocation35_spill]] }
 0x168   :  { %s4734_s23 = sld [smem:[#allocation93_spill]]  ;;  %v4738_v3 = vstv %s4735_s30  ;;  %s3312_s30 = sld [smem:[#allocation12 + $0x8]] }
 0x169   :  { %v545_v11 = vpop.permute.xlu1 %544  ;;  %v543_v55 = vpop.permute.xlu0 %542  ;;  %v602_v15 = vmul.f32 %v4738_v3, %v540_v9  ;;  %v4740_v44 = vmov %v4738_v3  ;;  %s4741_s19 = sld [smem:[#allocation34_spill]]  ;;  %s4744_s10 = sld [smem:[#allocation36_spill]] }
 0x16a   :  { %v603_v52 = vmul.f32 %v4740_v44, %v541_v37  ;;  %v546_v6 = vsel %vm153_vm1, %v543_v55, %v545_v11  ;;  %v547_v13 = vsel %vm153_vm1, %v545_v11, %v543_v55  ;;  %s3314_s21 = sld [smem:[#allocation12 + $0x2c]]  ;;  %v4745_v44 = vstv %s4737_s18  ;;  %s4747_s12 = sld [smem:[#allocation37_spill]] }
 0x16b   :  { %1424 = vrot.lane.b32.xlu1 %v2755_v43, %s4742_s20  ;;  %1422 = vrot.lane.b32.xlu0 %v2743_v38, %s4742_s20  ;;  %v654_v53 = vmul.f32 %v4745_v44, %v540_v9  ;;  %v4746_v35 = vmov %v4745_v44  ;;  %v548_v11 = vmul.f32 %v547_v13, %v2353_v29  ;;  %s4748_s11 = sld [smem:[#allocation38_spill]]  ;;  %v549_v4 = vmul.f32 %v546_v6, %v2356_v30  ;;  %s3322_s20 = sld [smem:[#allocation12 + $0x50]] }
 0x16c   :  { %v655_v55 = vmul.f32 %v4746_v35, %v541_v37  ;;  %s3324_s9 = sld [smem:[#allocation12 + $0x74]]  ;;  %v4751_v3 = vstv %s4739_s27  ;;  %s4771_s18 = sld [smem:[#allocation43_spill]] }
 0x16d   :  { %v706_v62 = vmul.f32 %v4751_v3, %v540_v9  ;;  %v4752_v21 = vmov %v4751_v3  ;;  %v553_v35 = vpop.permute.xlu1 %552  ;;  %v551_v33 = vpop.permute.xlu0 %550  ;;  %v4755_v39 = vstv %s4743_s8  ;;  %s4764_s8 = sld [smem:[#allocation40_spill]]  ;;  %s4772_s27 = sld [smem:[#allocation44_spill]] }
 0x16e   :  { %v707_v45 = vmul.f32 %v4752_v21, %v541_v37  ;;  %v606_v13 = vmul.f32 %v4755_v39, %v548_v11  ;;  %v4756_v60 = vmov %v4755_v39 }
 0x16f   :  { %v4753_v19 = vstv %s4741_s19  ;;  %v607_v17 = vmul.f32 %v4756_v60, %v549_v4  ;;  %v4757_v6 = vstv %s4744_s10  ;;  %1432 = vrot.lane.b32.xlu1 %v2755_v43, %s4736_s25  ;;  %1430 = vrot.lane.b32.xlu0 %v2743_v38, %s4736_s25  ;;  %s4763_s19 = sld [smem:[#allocation39_spill]]  ;;  %s4765_s10 = sld [smem:[#allocation41_spill]] }
 0x170   :  { %v758_v44 = vmul.f32 %v4753_v19, %v540_v9  ;;  %v4754_v59 = vmov %v4753_v19  ;;  %v658_v57 = vmul.f32 %v4757_v6, %v548_v11  ;;  %v4758_v16 = vmov %v4757_v6  ;;  %s4778_s25 = sld [smem:[#allocation46_spill]] }
 0x171   :  { %4749 = sst [smem:[#allocation118_spill]] %s3322_s20  ;;  %v759_v14 = vmul.f32 %v4754_v59, %v541_v37  ;;  %v659_v2 = vmul.f32 %v4758_v16, %v549_v4  ;;  %v4759_v12 = vstv %s4747_s12  ;;  %v4761_v20 = vstv %s4748_s11  ;;  %v559_v43 = vpop.permute.xlu0 %558  ;;  %s4766_s11 = sld [smem:[#allocation42_spill]] }
 0x172   :  { %4750 = sst [smem:[#allocation123_spill]] %s3324_s9  ;;  %v710_v0 = vmul.f32 %v4759_v12, %v548_v11  ;;  %v4760_v1 = vmov %v4759_v12  ;;  %v762_v21 = vmul.f32 %v4761_v20, %v548_v11  ;;  %v4762_v27 = vmov %v4761_v20  ;;  %s4777_s12 = sld [smem:[#allocation45_spill]] }
 0x173   :  { %v711_v3 = vmul.f32 %v4760_v1, %v549_v4  ;;  %v763_v19 = vmul.f32 %v4762_v27, %v549_v4  ;;  %v608_v37 = vadd.f32 %v606_v13, %v602_v15  ;;  %v609_v59 = vadd.f32 %v607_v17, %v603_v52  ;;  %v561_v27 = vpop.permute.xlu1 %560  ;;  %s3602_s9 = sld [smem:[#allocation12 + $0x35]]  ;;  %s4881_s20 = sld [smem:[#allocation77_spill]] }
 0x174   :  { %v660_v39 = vadd.f32 %v658_v57, %v654_v53  ;;  %v661_v60 = vadd.f32 %v659_v2, %v655_v55  ;;  %v712_v16 = vadd.f32 %v710_v0, %v706_v62  ;;  %v764_v1 = vadd.f32 %v762_v21, %v758_v44 }
 0x175   :  { %v713_v12 = vadd.f32 %v711_v3, %v707_v45  ;;  %v765_v20 = vadd.f32 %v763_v19, %v759_v14  ;;  %v554_v17 = vsel %vm173_vm2, %v551_v33, %v553_v35  ;;  %v555_v57 = vsel %vm173_vm2, %v553_v35, %v551_v33  ;;  %v569_v21 = vpop.permute.xlu0 %568 }
 0x176   :  { %v562_v38 = vsel %vm193_vm3, %v559_v43, %v561_v27  ;;  %v563_v62 = vsel %vm193_vm3, %v561_v27, %v559_v43  ;;  %v556_v2 = vmul.f32 %v555_v57, %v2372_v36  ;;  %v557_v0 = vmul.f32 %v554_v17, %v2384_v41 }
 0x177   :  { %v564_v15 = vmul.f32 %v563_v62, %v2397_v50  ;;  %v565_v33 = vmul.f32 %v562_v38, %v2400_v51  ;;  %v4767_v45 = vstv %s4763_s19  ;;  %v4769_v44 = vstv %s4764_s8  ;;  %v571_v3 = vpop.permute.xlu1 %570  ;;  %s4787_s19 = sld [smem:[#allocation47_spill]]  ;;  %s4788_s8 = sld [smem:[#allocation48_spill]] }
 0x178   :  { %v612_v4 = vmul.f32 %v4767_v45, %v556_v2  ;;  %v4768_v55 = vmov %v4767_v45  ;;  %v664_v35 = vmul.f32 %v4769_v44, %v556_v2  ;;  %v4770_v13 = vmov %v4769_v44 }
 0x179   :  { %v613_v11 = vmul.f32 %v4768_v55, %v557_v0  ;;  %v665_v6 = vmul.f32 %v4770_v13, %v557_v0  ;;  %v4773_v19 = vstv %s4765_s10  ;;  %v4775_v57 = vstv %s4766_s11  ;;  %s4789_s10 = sld [smem:[#allocation49_spill]]  ;;  %s3408_s11 = sld [smem:[#allocation12 + $0x20]] }
 0x17a   :  { %v716_v27 = vmul.f32 %v4773_v19, %v556_v2  ;;  %v4774_v43 = vmov %v4773_v19  ;;  %v768_v38 = vmul.f32 %v4775_v57, %v556_v2  ;;  %v4776_v62 = vmov %v4775_v57 }
 0x17b   :  { %v717_v17 = vmul.f32 %v4774_v43, %v557_v0  ;;  %v769_v45 = vmul.f32 %v4776_v62, %v557_v0  ;;  %v614_v55 = vadd.f32 %v612_v4, %v608_v37  ;;  %v615_v44 = vadd.f32 %v613_v11, %v609_v59  ;;  %v579_v0 = vpop.permute.xlu1 %578  ;;  %v577_v62 = vpop.permute.xlu0 %576 }
 0x17c   :  { %v666_v13 = vadd.f32 %v664_v35, %v660_v39  ;;  %v667_v53 = vadd.f32 %v665_v6, %v661_v60  ;;  %v718_v9 = vadd.f32 %v716_v27, %v712_v16  ;;  %v770_v52 = vadd.f32 %v768_v38, %v764_v1 }
 0x17d   :  { %v719_v14 = vadd.f32 %v717_v17, %v713_v12  ;;  %v771_v26 = vadd.f32 %v769_v45, %v765_v20  ;;  %v4779_v46 = vstv %s4771_s18  ;;  %v4781_v5 = vstv %s4772_s27  ;;  %s4791_s18 = sld [smem:[#allocation50_spill]]  ;;  %s3410_s27 = sld [smem:[#allocation12 + $0x44]] }
 0x17e   :  { %v618_v19 = vmul.f32 %v4779_v46, %v564_v15  ;;  %v4780_v28 = vmov %v4779_v46  ;;  %v670_v2 = vmul.f32 %v4781_v5, %v564_v15  ;;  %v4782_v57 = vmov %v4781_v5 }
 0x17f   :  { %v619_v43 = vmul.f32 %v4780_v28, %v565_v33  ;;  %v671_v58 = vmul.f32 %v4782_v57, %v565_v33  ;;  %v4783_v37 = vstv %s4777_s12  ;;  %v4785_v39 = vstv %s4778_s25  ;;  %4790 = sst [smem:[#allocation124_spill]] %s3408_s11  ;;  %s4802_s12 = sld [smem:[#allocation51_spill]] }
 0x180   :  { %v722_v4 = vmul.f32 %v4783_v37, %v564_v15  ;;  %v4784_v59 = vmov %v4783_v37  ;;  %v774_v60 = vmul.f32 %v4785_v39, %v564_v15  ;;  %v4786_v16 = vmov %v4785_v39  ;;  %s4803_s25 = sld [smem:[#allocation52_spill]]  ;;  %s4843_s11 = sld [smem:[#allocation66_spill]] }
 0x181   :  { %v723_v11 = vmul.f32 %v4784_v59, %v565_v33  ;;  %v775_v12 = vmul.f32 %v4786_v16, %v565_v33  ;;  %v620_v1 = vadd.f32 %v618_v19, %v614_v55  ;;  %v621_v20 = vadd.f32 %v619_v43, %v615_v44  ;;  %v587_v33 = vpop.permute.xlu1 %586 }
 0x182   :  { %v672_v35 = vadd.f32 %v670_v2, %v666_v13  ;;  %v673_v46 = vadd.f32 %v671_v58, %v667_v53  ;;  %v724_v6 = vadd.f32 %v722_v4, %v718_v9  ;;  %v776_v27 = vadd.f32 %v774_v60, %v770_v52  ;;  %v585_v58 = vpop.permute.xlu0 %584 }
 0x183   :  { %v725_v28 = vadd.f32 %v723_v11, %v719_v14  ;;  %v777_v5 = vadd.f32 %v775_v12, %v771_v26  ;;  %v627_v17 = vadd.f32 %v2944_v56, %v621_v20  ;;  %v572_v45 = vsel %vm226_vm4, %v569_v21, %v571_v3  ;;  %4792 = sst [smem:[#allocation93_spill]] %s3410_s27  ;;  %s4816_s27 = sld [smem:[#allocation57_spill]] }
 0x184   :  { %v679_v38 = vadd.f32 %v2952_v7, %v673_v46  ;;  %v573_v15 = vsel %vm226_vm4, %v571_v3, %v569_v21  ;;  %v574_v26 = vmul.f32 %v572_v45, %v2447_v22  ;;  %v626_v14 = vadd.f32 %v2966_v61, %v620_v1 }
 0x185   :  { %v731_v56 = vadd.f32 %v2954_v42, %v725_v28  ;;  %v783_v7 = vadd.f32 %v2958_v63, %v777_v5  ;;  %v575_v52 = vmul.f32 %v573_v15, %v2450_v10  ;;  %v678_v9 = vadd.f32 %v2968_v8, %v672_v35  ;;  %v809_v39 = vpop.permute.xlu1 %808 }
 0x186   :  { %v730_v53 = vadd.f32 %v2970_v49, %v724_v6  ;;  %v782_v3 = vadd.f32 %v2981_v25, %v776_v27  ;;  %v4793_v21 = vstv %s4787_s19  ;;  %v4795_v19 = vstv %s4788_s8  ;;  %v3436_v49 = vpop.permute.xlu0 %592  ;;  %s4804_s19 = sld [smem:[#allocation53_spill]]  ;;  %s4805_s8 = sld [smem:[#allocation54_spill]] }
 0x187   :  { %v630_v55 = vmul.f32 %v4793_v21, %v574_v26  ;;  %v4794_v44 = vmov %v4793_v21  ;;  %v682_v42 = vmul.f32 %v4795_v19, %v574_v26  ;;  %v4796_v43 = vmov %v4795_v19  ;;  %4801 = vst [vmem:[#allocation132_spill] sm:$0xff] %v3436_v49 }
 0x188   :  { %v631_v13 = vmul.f32 %v4794_v44, %v575_v52  ;;  %v683_v63 = vmul.f32 %v4796_v43, %v575_v52  ;;  %v4797_v2 = vstv %s4789_s10  ;;  %v4799_v59 = vstv %s4791_s18  ;;  %s4810_s10 = sld [smem:[#allocation55_spill]]  ;;  %s4813_s18 = sld [smem:[#allocation56_spill]] }
 0x189   :  { %v734_v57 = vmul.f32 %v4797_v2, %v574_v26  ;;  %v4798_v37 = vmov %v4797_v2  ;;  %v786_v61 = vmul.f32 %v4799_v59, %v574_v26  ;;  %v4800_v11 = vmov %v4799_v59  ;;  %v817_v45 = vpop.permute.xlu1 %816 }
 0x18a   :  { %v735_v4 = vmul.f32 %v4798_v37, %v575_v52  ;;  %v787_v8 = vmul.f32 %v4800_v11, %v575_v52  ;;  %v632_v25 = vadd.f32 %v630_v55, %v626_v14  ;;  %v633_v60 = vadd.f32 %v631_v13, %v627_v17  ;;  %v811_v15 = vpop.permute.xlu0 %810 }
 0x18b   :  { %v684_v16 = vadd.f32 %v682_v42, %v678_v9  ;;  %v685_v12 = vadd.f32 %v683_v63, %v679_v38  ;;  %v736_v1 = vadd.f32 %v734_v57, %v730_v53  ;;  %v788_v35 = vadd.f32 %v786_v61, %v782_v3 }
 0x18c   :  { %v737_v20 = vadd.f32 %v735_v4, %v731_v56  ;;  %v789_v46 = vadd.f32 %v787_v8, %v783_v7  ;;  %v580_v6 = vsel %vm246_vm5, %v577_v62, %v579_v0  ;;  %v581_v28 = vsel %vm246_vm5, %v579_v0, %v577_v62 }
 0x18d   :  { %v588_v27 = vsel %vm266_vm6, %v585_v58, %v587_v33  ;;  %v589_v5 = vsel %vm266_vm6, %v587_v33, %v585_v58  ;;  %v582_v17 = vmul.f32 %v580_v6, %v2462_v31  ;;  %v583_v38 = vmul.f32 %v581_v28, %v2465_v32  ;;  %v825_v11 = vpop.permute.xlu1 %824 }
 0x18e   :  { %v590_v0 = vmul.f32 %v588_v27, %v2481_v47  ;;  %v591_v62 = vmul.f32 %v589_v5, %v2484_v48  ;;  %v812_v26 = vsel %vm133_vm0, %v809_v39, %v811_v15  ;;  %v813_v33 = vsel %vm133_vm0, %v811_v15, %v809_v39  ;;  %v819_v8 = vpop.permute.xlu0 %818 }
 0x18f   :  { %v4806_v58 = vstv %s4802_s12  ;;  %v4808_v53 = vstv %s4803_s25  ;;  %v4811_v44 = vstv %s4804_s19  ;;  %v4814_v43 = vstv %s4805_s8  ;;  %s4817_s12 = sld [smem:[#allocation58_spill]]  ;;  %s4829_s25 = sld [smem:[#allocation59_spill]] }
 0x190   :  { %v636_v52 = vmul.f32 %v4806_v58, %v582_v17  ;;  %v4807_v14 = vmov %v4806_v58  ;;  %v688_v3 = vmul.f32 %v4808_v53, %v582_v17  ;;  %v4809_v21 = vmov %v4808_v53  ;;  %s4831_s19 = sld [smem:[#allocation60_spill]]  ;;  %s4837_s8 = sld [smem:[#allocation62_spill]] }
 0x191   :  { %v637_v9 = vmul.f32 %v4807_v14, %v583_v38  ;;  %v689_v55 = vmul.f32 %v4809_v21, %v583_v38  ;;  %v740_v13 = vmul.f32 %v4811_v44, %v582_v17  ;;  %v4812_v19 = vmov %v4811_v44  ;;  %v1091_v44 = vpop.permute.xlu1 %1090 }
 0x192   :  { %v741_v42 = vmul.f32 %v4812_v19, %v583_v38  ;;  %v792_v63 = vmul.f32 %v4814_v43, %v582_v17  ;;  %v4815_v2 = vmov %v4814_v43  ;;  %v638_v37 = vadd.f32 %v636_v52, %v632_v25 }
 0x193   :  { %v793_v57 = vmul.f32 %v4815_v2, %v583_v38  ;;  %v639_v4 = vadd.f32 %v637_v9, %v633_v60  ;;  %v690_v59 = vadd.f32 %v688_v3, %v684_v16  ;;  %v691_v61 = vadd.f32 %v689_v55, %v685_v12 }
 0x194   :  { %v742_v39 = vadd.f32 %v740_v13, %v736_v1  ;;  %v743_v6 = vadd.f32 %v741_v42, %v737_v20  ;;  %v794_v28 = vadd.f32 %v792_v63, %v788_v35  ;;  %v4818_v5 = vstv %s4810_s10  ;;  %v827_v13 = vpop.permute.xlu0 %826  ;;  %s4838_s10 = sld [smem:[#allocation63_spill]] }
 0x195   :  { %v795_v27 = vadd.f32 %v793_v57, %v789_v46  ;;  %v642_v15 = vmul.f32 %v4818_v5, %v590_v0  ;;  %v4819_v58 = vmov %v4818_v5  ;;  %v4820_v14 = vstv %s4813_s18  ;;  %s4839_s18 = sld [smem:[#allocation64_spill]]  ;;  %v1099_v5 = vpop.permute.xlu1 %1098 }
 0x196   :  { %v643_v17 = vmul.f32 %v4819_v58, %v591_v62  ;;  %v694_v53 = vmul.f32 %v4820_v14, %v590_v0  ;;  %v4821_v38 = vmov %v4820_v14  ;;  %v4822_v25 = vstv %s4816_s27  ;;  %s4835_s27 = sld [smem:[#allocation61_spill]] }
 0x197   :  { %v695_v21 = vmul.f32 %v4821_v38, %v591_v62  ;;  %v746_v52 = vmul.f32 %v4822_v25, %v590_v0  ;;  %v4823_v60 = vmov %v4822_v25  ;;  %v4824_v16 = vstv %s4817_s12  ;;  %s4840_s12 = sld [smem:[#allocation65_spill]] }
 0x198   :  { %v747_v9 = vmul.f32 %v4823_v60, %v591_v62  ;;  %v798_v12 = vmul.f32 %v4824_v16, %v590_v0  ;;  %v4825_v3 = vmov %v4824_v16  ;;  %v3488_v1 = vadd.f32 %v642_v15, %v638_v37  ;;  %v1093_v15 = vpop.permute.xlu0 %1092 }
 0x199   :  { %v799_v55 = vmul.f32 %v4825_v3, %v591_v62  ;;  %v3490_v20 = vadd.f32 %v643_v17, %v639_v4  ;;  %v3492_v35 = vadd.f32 %v694_v53, %v690_v59  ;;  %v3494_v46 = vadd.f32 %v695_v21, %v691_v61 }
 0x19a   :  { %4826 = vst [vmem:[#allocation133_spill] sm:$0xff] %v3488_v1  ;;  %v3496_v19 = vadd.f32 %v746_v52, %v742_v39  ;;  %v3498_v42 = vadd.f32 %v747_v9, %v743_v6  ;;  %v3500_v0 = vadd.f32 %v798_v12, %v794_v28  ;;  %v814_v43 = vmul.f32 %v813_v33, %v2343_v23 }
 0x19b   :  { %4827 = vst [vmem:[#allocation134_spill] sm:$0xff] %v3490_v20  ;;  %4828 = vst [vmem:[#allocation135_spill] sm:$0xff] %v3492_v35  ;;  %v3502_v62 = vadd.f32 %v799_v55, %v795_v27  ;;  %v815_v63 = vmul.f32 %v812_v26, %v2346_v24  ;;  %v820_v2 = vsel %vm153_vm1, %v817_v45, %v819_v8  ;;  %v4841_v59 = vstv %s4829_s25  ;;  %s4858_s25 = sld [smem:[#allocation67_spill]] }
 0x19c   :  { %4830 = vst [vmem:[#allocation136_spill] sm:$0xff] %v3494_v46  ;;  %4832 = vst [vmem:[#allocation137_spill] sm:$0xff] %v3496_v19  ;;  %v821_v57 = vsel %vm153_vm1, %v819_v8, %v817_v45  ;;  %v823_v4 = vmul.f32 %v820_v2, %v2356_v30  ;;  %v828_v33 = vsel %vm173_vm2, %v825_v11, %v827_v13  ;;  %v4842_v39 = vmov %v4841_v59 }
 0x19d   :  { %4833 = vst [vmem:[#allocation138_spill] sm:$0xff] %v3498_v42  ;;  %4834 = vst [vmem:[#allocation139_spill] sm:$0xff] %v3500_v0  ;;  %v822_v37 = vmul.f32 %v821_v57, %v2353_v29  ;;  %v829_v26 = vsel %vm173_vm2, %v827_v13, %v825_v11  ;;  %v876_v61 = vmul.f32 %v4841_v59, %v814_v43  ;;  %v4844_v8 = vstv %s4831_s19  ;;  %s3548_s19 = sld [smem:[#allocation12 + $0x68]] }
 0x19e   :  { %4836 = vst [vmem:[#allocation140_spill] sm:$0xff] %v3502_v62  ;;  %v877_v45 = vmul.f32 %v4842_v39, %v815_v63  ;;  %v930_v6 = vmul.f32 %v4844_v8, %v814_v43  ;;  %v4845_v28 = vmov %v4844_v8  ;;  %v4846_v58 = vstv %s4835_s27  ;;  %s4860_s27 = sld [smem:[#allocation68_spill]] }
 0x19f   :  { %v931_v27 = vmul.f32 %v4845_v28, %v815_v63  ;;  %v984_v17 = vmul.f32 %v4846_v58, %v814_v43  ;;  %v4847_v14 = vmov %v4846_v58  ;;  %v4848_v38 = vstv %s4837_s8  ;;  %s3550_s8 = sld [smem:[#allocation12 + $0x8c]] }
 0x1a0   :  { %v985_v53 = vmul.f32 %v4847_v14, %v815_v63  ;;  %v1038_v21 = vmul.f32 %v4848_v38, %v814_v43  ;;  %v4849_v11 = vmov %v4848_v38  ;;  %v4850_v52 = vstv %s4838_s10  ;;  %s4862_s10 = sld [smem:[#allocation69_spill]] }
 0x1a1   :  { %v1039_v25 = vmul.f32 %v4849_v11, %v815_v63  ;;  %v880_v60 = vmul.f32 %v4850_v52, %v822_v37  ;;  %v4851_v9 = vmov %v4850_v52  ;;  %v4852_v12 = vstv %s4839_s18  ;;  %v833_v11 = vpop.permute.xlu1 %832  ;;  %v1101_v52 = vpop.permute.xlu0 %1100  ;;  %s4868_s18 = sld [smem:[#allocation72_spill]] }
 0x1a2   :  { %v881_v16 = vmul.f32 %v4851_v9, %v823_v4  ;;  %v934_v3 = vmul.f32 %v4852_v12, %v822_v37  ;;  %v4853_v55 = vmov %v4852_v12  ;;  %v4854_v2 = vstv %s4840_s12  ;;  %s4873_s12 = sld [smem:[#allocation73_spill]] }
 0x1a3   :  { %v935_v13 = vmul.f32 %v4853_v55, %v823_v4  ;;  %v988_v57 = vmul.f32 %v4854_v2, %v822_v37  ;;  %v4855_v59 = vmov %v4854_v2  ;;  %v4856_v8 = vstv %s4843_s11  ;;  %4859 = sst [smem:[#allocation31_spill]] %s3548_s19  ;;  %s4863_s11 = sld [smem:[#allocation71_spill]] }
 0x1a4   :  { %v989_v39 = vmul.f32 %v4855_v59, %v823_v4  ;;  %v1042_v28 = vmul.f32 %v4856_v8, %v822_v37  ;;  %v4857_v58 = vmov %v4856_v8  ;;  %v882_v7 = vadd.f32 %v880_v60, %v876_v61  ;;  %s3620_s19 = sld [smem:[#allocation12 + $0x7d]] }
 0x1a5   :  { %v1043_v14 = vmul.f32 %v4857_v58, %v823_v4  ;;  %v883_v43 = vadd.f32 %v881_v16, %v877_v45  ;;  %v936_v38 = vadd.f32 %v934_v3, %v930_v6  ;;  %v937_v63 = vadd.f32 %v935_v13, %v931_v27  ;;  %4861 = sst [smem:[#allocation32_spill]] %s3550_s8  ;;  %s4885_s8 = sld [smem:[#allocation79_spill]] }
 0x1a6   :  { %v990_v9 = vadd.f32 %v988_v57, %v984_v17  ;;  %v991_v12 = vadd.f32 %v989_v39, %v985_v53  ;;  %v1044_v55 = vadd.f32 %v1042_v28, %v1038_v21  ;;  %v830_v4 = vmul.f32 %v829_v26, %v2372_v36 }
 0x1a7   :  { %v1045_v37 = vadd.f32 %v1043_v14, %v1039_v25  ;;  %v831_v61 = vmul.f32 %v828_v33, %v2384_v41  ;;  %v1094_v45 = vsel %vm133_vm0, %v1091_v44, %v1093_v15  ;;  %v1095_v6 = vsel %vm133_vm0, %v1093_v15, %v1091_v44  ;;  %v3572_v44 = vpop.permute.xlu1 %1106  ;;  %v835_v15 = vpop.permute.xlu0 %834 }
 0x1a8   :  { %v1096_v27 = vmul.f32 %v1095_v6, %v2343_v23  ;;  %v1097_v17 = vmul.f32 %v1094_v45, %v2346_v24  ;;  %v1102_v53 = vsel %vm153_vm1, %v1099_v5, %v1101_v52  ;;  %v1103_v26 = vsel %vm153_vm1, %v1101_v52, %v1099_v5 }
 0x1a9   :  { %v4864_v21 = vstv %s4858_s25  ;;  %v4866_v16 = vstv %s4860_s27  ;;  %v4869_v57 = vstv %s4862_s10  ;;  %v4871_v28 = vstv %s4863_s11  ;;  %s4874_s25 = sld [smem:[#allocation74_spill]]  ;;  %s4877_s27 = sld [smem:[#allocation75_spill]] }
 0x1aa   :  { %v886_v25 = vmul.f32 %v4864_v21, %v830_v4  ;;  %v4865_v33 = vmov %v4864_v21  ;;  %v940_v3 = vmul.f32 %v4866_v16, %v830_v4  ;;  %v4867_v13 = vmov %v4866_v16  ;;  %s3600_s10 = sld [smem:[#allocation12 + $0x11]]  ;;  %s4878_s11 = sld [smem:[#allocation76_spill]] }
 0x1ab   :  { %v887_v60 = vmul.f32 %v4865_v33, %v831_v61  ;;  %v941_v2 = vmul.f32 %v4867_v13, %v831_v61  ;;  %v994_v59 = vmul.f32 %v4869_v57, %v830_v4  ;;  %v4870_v39 = vmov %v4869_v57 }
 0x1ac   :  { %v995_v8 = vmul.f32 %v4870_v39, %v831_v61  ;;  %v1048_v5 = vmul.f32 %v4871_v28, %v830_v4  ;;  %v4872_v58 = vmov %v4871_v28  ;;  %v888_v52 = vadd.f32 %v886_v25, %v882_v7 }
 0x1ad   :  { %v1049_v14 = vmul.f32 %v4872_v58, %v831_v61  ;;  %v889_v45 = vadd.f32 %v887_v60, %v883_v43  ;;  %v3582_v6 = vadd.f32 %v940_v3, %v936_v38  ;;  %v3584_v21 = vadd.f32 %v941_v2, %v937_v63  ;;  %v1373_v43 = vpop.permute.xlu1 %1372  ;;  %v1109_v38 = vpop.permute.xlu0 %1108 }
 0x1ae   :  { %v3586_v33 = vadd.f32 %v994_v59, %v990_v9  ;;  %v3588_v16 = vadd.f32 %v995_v8, %v991_v12  ;;  %v3590_v13 = vadd.f32 %v1048_v5, %v1044_v55  ;;  %v4875_v4 = vstv %s4868_s18  ;;  %s4884_s18 = sld [smem:[#allocation78_spill]] }
 0x1af   :  { %v3592_v57 = vadd.f32 %v1049_v14, %v1045_v37  ;;  %v1158_v61 = vmul.f32 %v4875_v4, %v1096_v27  ;;  %v4876_v7 = vmov %v4875_v4  ;;  %v4879_v9 = vstv %s4873_s12  ;;  %s3618_s12 = sld [smem:[#allocation12 + $0x59]] }
 0x1b0   :  { %v1159_v25 = vmul.f32 %v4876_v7, %v1097_v17  ;;  %v1212_v12 = vmul.f32 %v4879_v9, %v1096_v27  ;;  %v4880_v55 = vmov %v4879_v9  ;;  %v4882_v3 = vstv %s4874_s25  ;;  %s4892_s25 = sld [smem:[#allocation80_spill]] }
 0x1b1   :  { %v1213_v37 = vmul.f32 %v4880_v55, %v1097_v17  ;;  %v1266_v2 = vmul.f32 %v4882_v3, %v1096_v27  ;;  %v4883_v59 = vmov %v4882_v3  ;;  %v1104_v8 = vmul.f32 %v1103_v26, %v2353_v29  ;;  %v1381_v62 = vpop.permute.xlu1 %1380  ;;  %v1375_v0 = vpop.permute.xlu0 %1374 }
 0x1b2   :  { %v1267_v39 = vmul.f32 %v4883_v59, %v1097_v17  ;;  %v1105_v28 = vmul.f32 %v1102_v53, %v2356_v30  ;;  %v836_v5 = vsel %vm193_vm3, %v833_v11, %v835_v15  ;;  %v837_v58 = vsel %vm193_vm3, %v835_v15, %v833_v11 }
 0x1b3   :  { %v4886_v14 = vstv %s4877_s27  ;;  %v838_v9 = vmul.f32 %v837_v58, %v2397_v50  ;;  %v839_v53 = vmul.f32 %v836_v5, %v2400_v51  ;;  %v4888_v55 = vstv %s4878_s11  ;;  %s4897_s27 = sld [smem:[#allocation81_spill]]  ;;  %s4901_s11 = sld [smem:[#allocation83_spill]] }
 0x1b4   :  { %v1320_v4 = vmul.f32 %v4886_v14, %v1096_v27  ;;  %v4887_v7 = vmov %v4886_v14  ;;  %v1162_v3 = vmul.f32 %v4888_v55, %v1104_v8  ;;  %v4889_v59 = vmov %v4888_v55 }
 0x1b5   :  { %v1321_v26 = vmul.f32 %v4887_v7, %v1097_v17  ;;  %v1163_v63 = vmul.f32 %v4889_v59, %v1105_v28  ;;  %v4890_v60 = vstv %s4881_s20  ;;  %v4893_v42 = vstv %s4884_s18  ;;  %s4898_s20 = sld [smem:[#allocation82_spill]]  ;;  %s4907_s18 = sld [smem:[#allocation85_spill]] }
 0x1b6   :  { %v1216_v56 = vmul.f32 %v4890_v60, %v1104_v8  ;;  %v4891_v11 = vmov %v4890_v60  ;;  %v1270_v27 = vmul.f32 %v4893_v42, %v1104_v8  ;;  %v4894_v14 = vmov %v4893_v42 }
 0x1b7   :  { %v1217_v15 = vmul.f32 %v4891_v11, %v1105_v28  ;;  %v1271_v17 = vmul.f32 %v4894_v14, %v1105_v28  ;;  %v4895_v58 = vstv %s4885_s8  ;;  %v1164_v59 = vadd.f32 %v1162_v3, %v1158_v61  ;;  %s4906_s8 = sld [smem:[#allocation84_spill]] }
 0x1b8   :  { %v1324_v5 = vmul.f32 %v4895_v58, %v1104_v8  ;;  %v4896_v7 = vmov %v4895_v58  ;;  %v1165_v60 = vadd.f32 %v1163_v63, %v1159_v25  ;;  %v1218_v19 = vadd.f32 %v1216_v56, %v1212_v12  ;;  %v1383_v58 = vpop.permute.xlu0 %1382 }
 0x1b9   :  { %v1325_v55 = vmul.f32 %v4896_v7, %v1105_v28  ;;  %v1219_v11 = vadd.f32 %v1217_v15, %v1213_v37  ;;  %v1272_v46 = vadd.f32 %v1270_v27, %v1266_v2  ;;  %v1273_v35 = vadd.f32 %v1271_v17, %v1267_v39  ;;  %v1115_v28 = vpop.permute.xlu1 %1114 }
 0x1ba   :  { %v1326_v42 = vadd.f32 %v1324_v5, %v1320_v4  ;;  %v4899_v14 = vstv %s4892_s25  ;;  %v4902_v56 = vstv %s4897_s27  ;;  %v1110_v2 = vsel %vm173_vm2, %v3572_v44, %v1109_v38  ;;  %s4910_s25 = sld [smem:[#allocation86_spill]]  ;;  %s4911_s27 = sld [smem:[#allocation87_spill]] }
 0x1bb   :  { %v1327_v20 = vadd.f32 %v1325_v55, %v1321_v26  ;;  %v892_v1 = vmul.f32 %v4899_v14, %v838_v9  ;;  %v4900_v49 = vmov %v4899_v14  ;;  %v946_v63 = vmul.f32 %v4902_v56, %v838_v9 }
 0x1bc   :  { %v893_v8 = vmul.f32 %v4900_v49, %v839_v53  ;;  %v4903_v12 = vmov %v4902_v56  ;;  %v1111_v39 = vsel %vm173_vm2, %v1109_v38, %v3572_v44  ;;  %v4904_v4 = vstv %s4898_s20  ;;  %s4920_s20 = sld [smem:[#allocation88_spill]] }
 0x1bd   :  { %v947_v37 = vmul.f32 %v4903_v12, %v839_v53  ;;  %v1000_v26 = vmul.f32 %v4904_v4, %v838_v9  ;;  %v4905_v49 = vmov %v4904_v4  ;;  %v3666_v17 = vadd.f32 %v892_v1, %v888_v52  ;;  %v1389_v12 = vpop.permute.xlu1 %1388 }
 0x1be   :  { %v1001_v3 = vmul.f32 %v4905_v49, %v839_v53  ;;  %v3668_v5 = vadd.f32 %v893_v8, %v889_v45  ;;  %v4908_v7 = vstv %s4901_s11  ;;  %v1112_v44 = vmul.f32 %v1111_v39, %v2372_v36  ;;  %v1117_v39 = vpop.permute.xlu0 %1116  ;;  %s4923_s11 = sld [smem:[#allocation89_spill]] }
 0x1bf   :  { %v1054_v55 = vmul.f32 %v4908_v7, %v838_v9  ;;  %v4909_v14 = vmov %v4908_v7  ;;  %v1113_v38 = vmul.f32 %v1110_v2, %v2384_v41  ;;  %v1376_v1 = vsel %vm133_vm0, %v1373_v43, %v1375_v0 }
 0x1c0   :  { %v1055_v56 = vmul.f32 %v4909_v14, %v839_v53  ;;  %v1377_v52 = vsel %vm133_vm0, %v1375_v0, %v1373_v43  ;;  %v3681_v45 = vadd.f32 %v946_v63, %v3582_v6  ;;  %v3684_v9 = vadd.f32 %v947_v37, %v3584_v21 }
 0x1c1   :  { %v1378_v53 = vmul.f32 %v1377_v52, %v2343_v23  ;;  %v1379_v8 = vmul.f32 %v1376_v1, %v2346_v24  ;;  %v4912_v2 = vstv %s4906_s8  ;;  %v4914_v14 = vstv %s4907_s18  ;;  %s4924_s8 = sld [smem:[#allocation90_spill]]  ;;  %s4927_s18 = sld [smem:[#allocation99_spill]] }
 0x1c2   :  { %v1168_v4 = vmul.f32 %v4912_v2, %v1112_v44  ;;  %v4913_v49 = vmov %v4912_v2  ;;  %v1222_v27 = vmul.f32 %v4914_v14, %v1112_v44  ;;  %v4915_v15 = vmov %v4914_v14 }
 0x1c3   :  { %v1169_v7 = vmul.f32 %v4913_v49, %v1113_v38  ;;  %v1223_v0 = vmul.f32 %v4915_v15, %v1113_v38  ;;  %v4916_v43 = vstv %s4910_s25  ;;  %v4918_v21 = vstv %s4911_s27  ;;  %s4932_s25 = sld [smem:[#allocation103_spill]]  ;;  %s4935_s27 = sld [smem:[#allocation104_spill]] }
 0x1c4   :  { %v1276_v6 = vmul.f32 %v4916_v43, %v1112_v44  ;;  %v4917_v63 = vmov %v4916_v43  ;;  %v1330_v37 = vmul.f32 %v4918_v21, %v1112_v44  ;;  %v4919_v61 = vmov %v4918_v21 }
 0x1c5   :  { %v1277_v25 = vmul.f32 %v4917_v63, %v1113_v38  ;;  %v1331_v23 = vmul.f32 %v4919_v61, %v1113_v38  ;;  %v3705_v24 = vadd.f32 %v1000_v26, %v3586_v33  ;;  %v3708_v1 = vadd.f32 %v1001_v3, %v3588_v16  ;;  %v3724_v38 = vpop.permute.xlu1 %842 }
 0x1c6   :  { %v3711_v52 = vadd.f32 %v1054_v55, %v3590_v13  ;;  %v3714_v15 = vadd.f32 %v1055_v56, %v3592_v57  ;;  %v1170_v2 = vadd.f32 %v1168_v4, %v1164_v59  ;;  %v1171_v49 = vadd.f32 %v1169_v7, %v1165_v60 }
 0x1c7   :  { %v1384_v44 = vsel %vm153_vm1, %v1381_v62, %v1383_v58  ;;  %v1385_v61 = vsel %vm153_vm1, %v1383_v58, %v1381_v62  ;;  %v1224_v33 = vadd.f32 %v1222_v27, %v1218_v19  ;;  %v1225_v16 = vadd.f32 %v1223_v0, %v1219_v11  ;;  %v1391_v62 = vpop.permute.xlu0 %1390 }
 0x1c8   :  { %4921 = vst [vmem:[#allocation141_spill] sm:$0xff] %v3711_v52  ;;  %4922 = vst [vmem:[#allocation142_spill] sm:$0xff] %v3714_v15  ;;  %v1278_v26 = vadd.f32 %v1276_v6, %v1272_v46  ;;  %v1279_v13 = vadd.f32 %v1277_v25, %v1273_v35  ;;  %v1332_v57 = vadd.f32 %v1330_v37, %v1326_v42  ;;  %v4925_v59 = vstv %s4920_s20  ;;  %s4938_s20 = sld [smem:[#allocation107_spill]] }
 0x1c9   :  { %v1333_v3 = vadd.f32 %v1331_v23, %v1327_v20  ;;  %v1440_v60 = vmul.f32 %v4925_v59, %v1378_v53  ;;  %v4926_v55 = vmov %v4925_v59  ;;  %v1386_v19 = vmul.f32 %v1385_v61, %v2353_v29 }
 0x1ca   :  { %v1441_v56 = vmul.f32 %v4926_v55, %v1379_v8  ;;  %v1387_v11 = vmul.f32 %v1384_v44, %v2356_v30  ;;  %v1118_v35 = vsel %vm193_vm3, %v1115_v28, %v1117_v39  ;;  %v1119_v20 = vsel %vm193_vm3, %v1117_v39, %v1115_v28 }
 0x1cb   :  { %v4928_v46 = vstv %s4923_s11  ;;  %v4930_v27 = vstv %s4924_s8  ;;  %v4933_v14 = vstv %s4704_s13  ;;  %v1120_v6 = vmul.f32 %v1119_v20, %v2397_v50  ;;  %s4939_s11 = sld [smem:[#allocation108_spill]]  ;;  %s4942_s13 = sld [smem:[#allocation29_spill]]  ;;  %v845_v48 = vpop.permute.xlu0 %844 }
 0x1cc   :  { %v1494_v42 = vmul.f32 %v4928_v46, %v1378_v53  ;;  %v4929_v58 = vmov %v4928_v46  ;;  %v1548_v4 = vmul.f32 %v4930_v27, %v1378_v53  ;;  %v4931_v7 = vmov %v4930_v27  ;;  %s4128_s8 = sld [smem:[#allocation12 + $0x61]] }
 0x1cd   :  { %v1495_v25 = vmul.f32 %v4929_v58, %v1379_v8  ;;  %v1549_v29 = vmul.f32 %v4931_v7, %v1379_v8  ;;  %v1444_v30 = vmul.f32 %v4933_v14, %v1386_v19  ;;  %v4934_v0 = vmov %v4933_v14 }
 0x1ce   :  { %v1445_v43 = vmul.f32 %v4934_v0, %v1387_v11  ;;  %v1121_v28 = vmul.f32 %v1118_v35, %v2400_v51  ;;  %v4936_v39 = vstv %s4703_s0  ;;  %v1392_v23 = vsel %vm173_vm2, %v1389_v12, %v1391_v62  ;;  %s4955_s0 = sld [smem:[#allocation113_spill]] }
 0x1cf   :  { %v1602_v63 = vmul.f32 %v4936_v39, %v1378_v53  ;;  %v4937_v21 = vmov %v4936_v39  ;;  %v1393_v44 = vsel %vm173_vm2, %v1391_v62, %v1389_v12  ;;  %v4940_v61 = vstv %s4927_s18  ;;  %s4130_s18 = sld [smem:[#allocation12 + $0x85]] }
 0x1d0   :  { %v1603_v37 = vmul.f32 %v4937_v21, %v1379_v8  ;;  %v1498_v59 = vmul.f32 %v4940_v61, %v1386_v19  ;;  %v4941_v55 = vmov %v4940_v61  ;;  %v4943_v20 = vstv %s4706_s22  ;;  %v1397_v21 = vpop.permute.xlu1 %1396  ;;  %s4956_s22 = sld [smem:[#allocation114_spill]] }
 0x1d1   :  { %v1499_v35 = vmul.f32 %v4941_v55, %v1387_v11  ;;  %v1552_v53 = vmul.f32 %v4943_v20, %v1386_v19  ;;  %v4944_v46 = vmov %v4943_v20  ;;  %v1446_v8 = vadd.f32 %v1444_v30, %v1440_v60 }
 0x1d2   :  { %v1553_v58 = vmul.f32 %v4944_v46, %v1387_v11  ;;  %v1447_v27 = vadd.f32 %v1445_v43, %v1441_v56  ;;  %v4945_v7 = vstv %s4932_s25  ;;  %v4947_v12 = vstv %s4935_s27  ;;  %s4196_s25 = sld [smem:[#allocation12 + $0x1a]]  ;;  %s4198_s27 = sld [smem:[#allocation12 + $0x3e]] }
 0x1d3   :  { %v1606_v14 = vmul.f32 %v4945_v7, %v1386_v19  ;;  %v4946_v0 = vmov %v4945_v7  ;;  %v1174_v62 = vmul.f32 %v4947_v12, %v1120_v6  ;;  %v4948_v47 = vmov %v4947_v12 }
 0x1d4   :  { %v1607_v39 = vmul.f32 %v4946_v0, %v1387_v11  ;;  %v1175_v61 = vmul.f32 %v4948_v47, %v1121_v28  ;;  %v4949_v32 = vstv %s4938_s20  ;;  %v4951_v52 = vstv %s4939_s11  ;;  %s4200_s20 = sld [smem:[#allocation12 + $0x62]]  ;;  %s4202_s11 = sld [smem:[#allocation12 + $0x86]] }
 0x1d5   :  { %v1228_v31 = vmul.f32 %v4949_v32, %v1120_v6  ;;  %v4950_v55 = vmov %v4949_v32  ;;  %v1282_v20 = vmul.f32 %v4951_v52, %v1120_v6  ;;  %v4952_v51 = vmov %v4951_v52 }
 0x1d6   :  { %v1229_v15 = vmul.f32 %v4950_v55, %v1121_v28  ;;  %v1283_v46 = vmul.f32 %v4952_v51, %v1121_v28  ;;  %v4953_v60 = vstv %s4942_s13  ;;  %v1500_v43 = vadd.f32 %v1498_v59, %v1494_v42  ;;  %s4216_s13 = sld [smem:[#allocation12 + $0x22]] }
 0x1d7   :  { %v1336_v56 = vmul.f32 %v4953_v60, %v1120_v6  ;;  %v4954_v30 = vmov %v4953_v60  ;;  %v1501_v11 = vadd.f32 %v1499_v35, %v1495_v25  ;;  %v1554_v7 = vadd.f32 %v1552_v53, %v1548_v4 }
 0x1d8   :  { %v1337_v19 = vmul.f32 %v4954_v30, %v1121_v28  ;;  %v1555_v0 = vadd.f32 %v1553_v58, %v1549_v29  ;;  %v1608_v12 = vadd.f32 %v1606_v14, %v1602_v63  ;;  %v1609_v47 = vadd.f32 %v1607_v39, %v1603_v37 }
 0x1d9   :  { %v3782_v32 = vadd.f32 %v1174_v62, %v1170_v2  ;;  %v3784_v55 = vadd.f32 %v1175_v61, %v1171_v49  ;;  %v3786_v52 = vadd.f32 %v1228_v31, %v1224_v33  ;;  %v3788_v51 = vadd.f32 %v1229_v15, %v1225_v16  ;;  %v851_v31 = vpop.permute.xlu1 %850  ;;  %v1399_v33 = vpop.permute.xlu0 %1398 }
 0x1da   :  { %v1394_v6 = vmul.f32 %v1393_v44, %v2372_v36  ;;  %v1395_v42 = vmul.f32 %v1392_v23, %v2384_v41  ;;  %v3792_v25 = vadd.f32 %v1282_v20, %v1278_v26  ;;  %v3794_v4 = vadd.f32 %v1283_v46, %v1279_v13 }
 0x1db   :  { %v3796_v2 = vadd.f32 %v1336_v56, %v1332_v57  ;;  %v3798_v49 = vadd.f32 %v1337_v19, %v1333_v3  ;;  %v4957_v15 = vstv %s4716_s6  ;;  %v4959_v28 = vstv %s3112_s17  ;;  %v4961_v3 = vld [vmem:[#allocation91_spill] sm:$0xff]  ;;  %s4992_s17 = sld [smem:[#allocation122_spill]]  ;;  %s5014_s6 = sld [smem:[#allocation100_spill]] }
 0x1dc   :  { %v1450_v16 = vmul.f32 %v4957_v15, %v1394_v6  ;;  %v4958_v29 = vmov %v4957_v15  ;;  %v1504_v63 = vmul.f32 %v4959_v28, %v1394_v6  ;;  %v4960_v41 = vmov %v4959_v28 }
 0x1dd   :  { %v1451_v36 = vmul.f32 %v4958_v29, %v1395_v42  ;;  %v1505_v37 = vmul.f32 %v4960_v41, %v1395_v42  ;;  %v900_v26 = vadd.f32 %v3005_v54, %v3666_v17  ;;  %v901_v13 = vadd.f32 %v3018_v34, %v3668_v5  ;;  %v4966_v54 = vld [vmem:[#allocation92_spill] sm:$0xff]  ;;  %v4967_v34 = vld [vmem:[#allocation95_spill] sm:$0xff]  ;;  %v3840_v60 = vpop.permute.xlu1 %1124  ;;  %v853_v56 = vpop.permute.xlu0 %852  ;;  %v4972_v29 = vld [vmem:[#allocation96_spill] sm:$0xff] }
 0x1de   :  { %v954_v57 = vadd.f32 %v3009_v40, %v3681_v45  ;;  %v955_v23 = vadd.f32 %v4961_v3, %v3684_v9  ;;  %v4962_v44 = vstv %s4955_s0  ;;  %v4964_v58 = vstv %s4956_s22  ;;  %s4218_s0 = sld [smem:[#allocation12 + $0x46]]  ;;  %s4248_s22 = sld [smem:[#allocation12 + $0x6a]] }
 0x1df   :  { %v1558_v59 = vmul.f32 %v4962_v44, %v1394_v6  ;;  %v4963_v35 = vmov %v4962_v44  ;;  %v1612_v14 = vmul.f32 %v4964_v58, %v1394_v6  ;;  %v4965_v39 = vmov %v4964_v58 }
 0x1e0   :  { %v1559_v53 = vmul.f32 %v4963_v35, %v1395_v42  ;;  %v1613_v62 = vmul.f32 %v4965_v39, %v1395_v42  ;;  %v1452_v61 = vadd.f32 %v1450_v16, %v1446_v8  ;;  %v1453_v20 = vadd.f32 %v1451_v36, %v1447_v27  ;;  %v4971_v16 = vld [vmem:[#allocation141_spill] sm:$0xff] }
 0x1e1   :  { %v1008_v17 = vadd.f32 %v4966_v54, %v3705_v24  ;;  %v1009_v40 = vadd.f32 %v4967_v34, %v3708_v1  ;;  %v1506_v5 = vadd.f32 %v1504_v63, %v1500_v43  ;;  %v1507_v45 = vadd.f32 %v1505_v37, %v1501_v11 }
 0x1e2   :  { %v846_v9 = vsel %vm226_vm4, %v3724_v38, %v845_v48  ;;  %v847_v46 = vsel %vm226_vm4, %v845_v48, %v3724_v38  ;;  %v1400_v24 = vsel %vm193_vm3, %v1397_v21, %v1399_v33  ;;  %v1401_v1 = vsel %vm193_vm3, %v1399_v33, %v1397_v21  ;;  %v4970_v33 = vld [vmem:[#allocation22_spill] sm:$0xff] }
 0x1e3   :  { %v848_v8 = vmul.f32 %v846_v9, %v2447_v22  ;;  %v849_v27 = vmul.f32 %v847_v46, %v2450_v10  ;;  %v1560_v30 = vadd.f32 %v1558_v59, %v1554_v7  ;;  %v1561_v19 = vadd.f32 %v1559_v53, %v1555_v0  ;;  %v4973_v0 = vld [vmem:[#allocation142_spill] sm:$0xff] }
 0x1e4   :  { %v1614_v48 = vadd.f32 %v1612_v14, %v1608_v12  ;;  %v1615_v38 = vadd.f32 %v1613_v62, %v1609_v47  ;;  %v4968_v43 = vstv %s4721_s29  ;;  %v1402_v21 = vmul.f32 %v1401_v1, %v2397_v50  ;;  %v4974_v12 = vld [vmem:[#allocation97_spill] sm:$0xff]  ;;  %s5068_s29 = sld [smem:[#allocation93_spill]] }
 0x1e5   :  { %v904_v11 = vmul.f32 %v4968_v43, %v848_v8  ;;  %v4969_v6 = vmov %v4968_v43  ;;  %v1403_v15 = vmul.f32 %v1400_v24, %v4970_v33  ;;  %v1062_v7 = vadd.f32 %v4972_v29, %v4971_v16 }
 0x1e6   :  { %v905_v42 = vmul.f32 %v4969_v6, %v849_v27  ;;  %v1063_v36 = vadd.f32 %v4974_v12, %v4973_v0  ;;  %v854_v47 = vsel %vm246_vm5, %v851_v31, %v853_v56  ;;  %v855_v28 = vsel %vm246_vm5, %v853_v56, %v851_v31  ;;  %v859_v6 = vpop.permute.xlu1 %858 }
 0x1e7   :  { %v4975_v63 = vstv %s3140_s2  ;;  %v4977_v3 = vstv %s3142_s4  ;;  %v906_v53 = vadd.f32 %v904_v11, %v900_v26  ;;  %v4979_v14 = vstv %s3148_s16  ;;  %s4989_s4 = sld [smem:[#allocation121_spill]]  ;;  %s5033_s16 = sld [smem:[#allocation128_spill]] }
 0x1e8   :  { %v958_v50 = vmul.f32 %v4975_v63, %v848_v8  ;;  %v4976_v41 = vmov %v4975_v63  ;;  %v1012_v44 = vmul.f32 %v4977_v3, %v848_v8  ;;  %v4978_v59 = vmov %v4977_v3  ;;  %s4054_s2 = sld [smem:[#allocation12 + $0x3d]] }
 0x1e9   :  { %v959_v37 = vmul.f32 %v4976_v41, %v849_v27  ;;  %v1013_v35 = vmul.f32 %v4978_v59, %v849_v27  ;;  %v907_v58 = vadd.f32 %v905_v42, %v901_v13  ;;  %v1066_v39 = vmul.f32 %v4979_v14, %v848_v8  ;;  %v1127_v8 = vpop.permute.xlu0 %1126 }
 0x1ea   :  { %v4980_v62 = vmov %v4979_v14  ;;  %v4981_v34 = vstv %s3150_s14  ;;  %v4983_v24 = vstv %s3156_s1  ;;  %v4985_v33 = vstv %s3158_s5  ;;  %s5029_s5 = sld [smem:[#allocation127_spill]]  ;;  %s5034_s1 = sld [smem:[#allocation129_spill]] }
 0x1eb   :  { %v1067_v54 = vmul.f32 %v4980_v62, %v849_v27  ;;  %v1456_v9 = vmul.f32 %v4981_v34, %v1402_v21  ;;  %v4982_v46 = vmov %v4981_v34  ;;  %v1510_v1 = vmul.f32 %v4983_v24, %v1402_v21  ;;  %s5036_s14 = sld [smem:[#allocation30_spill]] }
 0x1ec   :  { %v1457_v31 = vmul.f32 %v4982_v46, %v1403_v15  ;;  %v4984_v56 = vmov %v4983_v24  ;;  %v1564_v16 = vmul.f32 %v4985_v33, %v1402_v21  ;;  %v4986_v29 = vmov %v4985_v33  ;;  %v5003_v33 = vld [vmem:[#allocation106_spill] sm:$0xff] }
 0x1ed   :  { %v1511_v43 = vmul.f32 %v4984_v56, %v1403_v15  ;;  %v1565_v0 = vmul.f32 %v4986_v29, %v1403_v15  ;;  %v4987_v12 = vstv %s4727_s15  ;;  %v960_v42 = vadd.f32 %v958_v50, %v954_v57  ;;  %v4991_v57 = vld [vmem:[#allocation24_spill] sm:$0xff]  ;;  %s5017_s15 = sld [smem:[#allocation112_spill]] }
 0x1ee   :  { %v1618_v26 = vmul.f32 %v4987_v12, %v1402_v21  ;;  %v4988_v13 = vmov %v4987_v12  ;;  %v961_v27 = vadd.f32 %v959_v37, %v955_v23  ;;  %v1014_v63 = vadd.f32 %v1012_v44, %v1008_v17  ;;  %v5004_v29 = vld [vmem:[#allocation109_spill] sm:$0xff] }
 0x1ef   :  { %v1619_v11 = vmul.f32 %v4988_v13, %v1403_v15  ;;  %v1015_v41 = vadd.f32 %v1013_v35, %v1009_v40  ;;  %v1068_v3 = vadd.f32 %v1066_v39, %v1062_v7  ;;  %v1069_v59 = vadd.f32 %v1067_v54, %v1063_v36  ;;  %v4990_v15 = vld [vmem:[#allocation23_spill] sm:$0xff]  ;;  %v5000_v54 = vld [vmem:[#allocation105_spill] sm:$0xff] }
 0x1f0   :  { %v3884_v14 = vadd.f32 %v1456_v9, %v1452_v61  ;;  %v3886_v62 = vadd.f32 %v1457_v31, %v1453_v20  ;;  %v3888_v34 = vadd.f32 %v1510_v1, %v1506_v5  ;;  %v3890_v21 = vadd.f32 %v1511_v43, %v1507_v45  ;;  %v861_v31 = vpop.permute.xlu0 %860 }
 0x1f1   :  { %v856_v46 = vmul.f32 %v854_v47, %v4990_v15  ;;  %v857_v23 = vmul.f32 %v855_v28, %v4991_v57  ;;  %v3894_v17 = vadd.f32 %v1564_v16, %v1560_v30  ;;  %v3896_v40 = vadd.f32 %v1565_v0, %v1561_v19  ;;  %v1133_v28 = vpop.permute.xlu1 %1132  ;;  %v4997_v30 = vld [vmem:[#allocation98_spill] sm:$0xff]  ;;  %v4998_v19 = vld [vmem:[#allocation101_spill] sm:$0xff] }
 0x1f2   :  { %v3898_v7 = vadd.f32 %v1618_v26, %v1614_v48  ;;  %v3900_v61 = vadd.f32 %v1619_v11, %v1615_v38  ;;  %v4993_v20 = vstv %s4728_s7  ;;  %v4995_v50 = vstv %s4989_s4  ;;  %v4999_v38 = vld [vmem:[#allocation102_spill] sm:$0xff]  ;;  %s5007_s7 = sld [smem:[#allocation94_spill]] }
 0x1f3   :  { %v910_v36 = vmul.f32 %v4993_v20, %v856_v46  ;;  %v4994_v5 = vmov %v4993_v20  ;;  %v964_v47 = vmul.f32 %v4995_v50, %v856_v46  ;;  %v4996_v37 = vmov %v4995_v50  ;;  %s4250_s4 = sld [smem:[#allocation12 + $0x8e]] }
 0x1f4   :  { %v911_v45 = vmul.f32 %v4994_v5, %v857_v23  ;;  %v965_v44 = vmul.f32 %v4996_v37, %v857_v23  ;;  %v1182_v35 = vadd.f32 %v4997_v30, %v3782_v32  ;;  %v1183_v48 = vadd.f32 %v4998_v19, %v3784_v55  ;;  %v5009_v5 = vld [vmem:[#allocation26_spill] sm:$0xff] }
 0x1f5   :  { %v1236_v39 = vadd.f32 %v4999_v38, %v3786_v52  ;;  %v1237_v9 = vadd.f32 %v5000_v54, %v3788_v51  ;;  %v5001_v24 = vstv %s4992_s17  ;;  %v1290_v16 = vadd.f32 %v5003_v33, %v3792_v25  ;;  %v5015_v54 = vld [vmem:[#allocation110_spill] sm:$0xff]  ;;  %s4258_s17 = sld [smem:[#allocation12 + $0x23]] }
 0x1f6   :  { %v1018_v1 = vmul.f32 %v5001_v24, %v856_v46  ;;  %v5002_v56 = vmov %v5001_v24  ;;  %v1291_v32 = vadd.f32 %v5004_v29, %v3794_v4  ;;  %v912_v0 = vadd.f32 %v910_v36, %v906_v53  ;;  %v5016_v24 = vld [vmem:[#allocation111_spill] sm:$0xff] }
 0x1f7   :  { %v1019_v43 = vmul.f32 %v5002_v56, %v857_v23  ;;  %v913_v12 = vadd.f32 %v911_v45, %v907_v58  ;;  %v5005_v55 = vstv %s4732_s28  ;;  %v966_v51 = vadd.f32 %v964_v47, %v960_v42  ;;  %s5069_s28 = sld [smem:[#allocation31_spill]] }
 0x1f8   :  { %v1072_v26 = vmul.f32 %v5005_v55, %v856_v46  ;;  %v5006_v52 = vmov %v5005_v55  ;;  %v967_v11 = vadd.f32 %v965_v44, %v961_v27  ;;  %v1128_v20 = vsel %vm226_vm4, %v3840_v60, %v1127_v8 }
 0x1f9   :  { %v1073_v13 = vmul.f32 %v5006_v52, %v857_v23  ;;  %v1129_v25 = vsel %vm226_vm4, %v1127_v8, %v3840_v60  ;;  %v1130_v4 = vmul.f32 %v1128_v20, %v2447_v22  ;;  %v862_v58 = vsel %vm266_vm6, %v859_v6, %v861_v31  ;;  %v5008_v23 = vld [vmem:[#allocation25_spill] sm:$0xff]  ;;  %v3944_v8 = vpop.permute.xlu1 %1406 }
 0x1fa   :  { %v1131_v53 = vmul.f32 %v1129_v25, %v2450_v10  ;;  %v863_v42 = vsel %vm266_vm6, %v861_v31, %v859_v6  ;;  %v1020_v27 = vadd.f32 %v1018_v1, %v1014_v63  ;;  %v1021_v46 = vadd.f32 %v1019_v43, %v1015_v41  ;;  %v1135_v6 = vpop.permute.xlu0 %1134 }
 0x1fb   :  { %v864_v36 = vmul.f32 %v862_v58, %v5008_v23  ;;  %v865_v60 = vmul.f32 %v863_v42, %v5009_v5  ;;  %v5010_v45 = vstv %s4733_s26  ;;  %v5012_v44 = vstv %s3200_s3  ;;  %s5022_s3 = sld [smem:[#allocation115_spill]]  ;;  %s4052_s26 = sld [smem:[#allocation12 + $0x19]] }
 0x1fc   :  { %v1186_v50 = vmul.f32 %v5010_v45, %v1130_v4  ;;  %v5011_v47 = vmov %v5010_v45  ;;  %v1240_v30 = vmul.f32 %v5012_v44, %v1130_v4  ;;  %v5013_v19 = vmov %v5012_v44 }
 0x1fd   :  { %v1187_v37 = vmul.f32 %v5011_v47, %v1131_v53  ;;  %v1241_v38 = vmul.f32 %v5013_v19, %v1131_v53  ;;  %v1074_v63 = vadd.f32 %v1072_v26, %v1068_v3  ;;  %v1075_v41 = vadd.f32 %v1073_v13, %v1069_v59 }
 0x1fe   :  { %v1344_v31 = vadd.f32 %v5015_v54, %v3796_v2  ;;  %v1345_v1 = vadd.f32 %v5016_v24, %v3798_v49  ;;  %v5018_v56 = vstv %s4734_s23  ;;  %v5020_v55 = vstv %s5007_s7  ;;  %v595_v54 = vpop.permute.xlu1 %594  ;;  %s5041_s23 = sld [smem:[#allocation118_spill]]  ;;  %s4260_s7 = sld [smem:[#allocation12 + $0x47]] }
 0x1ff   :  { %v1294_v43 = vmul.f32 %v5018_v56, %v1130_v4  ;;  %v5019_v33 = vmov %v5018_v56  ;;  %v1348_v52 = vmul.f32 %v5020_v55, %v1130_v4  ;;  %v5021_v20 = vmov %v5020_v55 }
 0x200   :  { %v1295_v29 = vmul.f32 %v5019_v33, %v1131_v53  ;;  %v1349_v25 = vmul.f32 %v5021_v20, %v1131_v53  ;;  %v1188_v3 = vadd.f32 %v1186_v50, %v1182_v35  ;;  %v1189_v26 = vadd.f32 %v1187_v37, %v1183_v48 }
 0x201   :  { %v1136_v59 = vsel %vm246_vm5, %v1133_v28, %v1135_v6  ;;  %v1137_v2 = vsel %vm246_vm5, %v1135_v6, %v1133_v28  ;;  %v1242_v13 = vadd.f32 %v1240_v30, %v1236_v39  ;;  %v1243_v49 = vadd.f32 %v1241_v38, %v1237_v9 }
 0x202   :  { %v5023_v58 = vstv %s3212_s24  ;;  %v5025_v44 = vstv %s5014_s6  ;;  %v5027_v35 = vstv %s5017_s15  ;;  %v1296_v24 = vadd.f32 %v1294_v43, %v1290_v16  ;;  %s5043_s24 = sld [smem:[#allocation123_spill]]  ;;  %s4262_s6 = sld [smem:[#allocation12 + $0x6b]] }
 0x203   :  { %v916_v42 = vmul.f32 %v5023_v58, %v864_v36  ;;  %v5024_v45 = vmov %v5023_v58  ;;  %v970_v4 = vmul.f32 %v5025_v44, %v864_v36  ;;  %v5026_v19 = vmov %v5025_v44  ;;  %v1409_v44 = vpop.permute.xlu0 %1408  ;;  %s4264_s15 = sld [smem:[#allocation12 + $0x8f]] }
 0x204   :  { %v917_v47 = vmul.f32 %v5024_v45, %v865_v60  ;;  %v971_v53 = vmul.f32 %v5026_v19, %v865_v60  ;;  %v1024_v48 = vmul.f32 %v5027_v35, %v864_v36  ;;  %v5028_v50 = vmov %v5027_v35  ;;  %v5032_v45 = vld [vmem:[#allocation132_spill] sm:$0xff] }
 0x205   :  { %v1025_v37 = vmul.f32 %v5028_v50, %v865_v60  ;;  %v1297_v28 = vadd.f32 %v1295_v29, %v1291_v32  ;;  %v1350_v39 = vadd.f32 %v1348_v52, %v1344_v31  ;;  %v1351_v30 = vadd.f32 %v1349_v25, %v1345_v1  ;;  %v5038_v52 = vld [vmem:[#allocation27_spill] sm:$0xff] }
 0x206   :  { %v3982_v9 = vadd.f32 %v916_v42, %v912_v0  ;;  %v3984_v38 = vadd.f32 %v917_v47, %v913_v12  ;;  %v5030_v6 = vstv %s5022_s3  ;;  %v1138_v20 = vmul.f32 %v1136_v59, %v4990_v15  ;;  %v5039_v59 = vld [vmem:[#allocation28_spill] sm:$0xff]  ;;  %v5042_v42 = vld [vmem:[#allocation125_spill] sm:$0xff]  ;;  %s4266_s3 = sld [smem:[#allocation13]] }
 0x207   :  { %v1078_v56 = vmul.f32 %v5030_v6, %v864_v36  ;;  %v5031_v33 = vmov %v5030_v6  ;;  %v1139_v58 = vmul.f32 %v1137_v2, %v4991_v57  ;;  %v596_v16 = vsel %vm286_vm7, %v5032_v45, %v595_v54 }
 0x208   :  { %v1079_v55 = vmul.f32 %v5031_v33, %v865_v60  ;;  %v597_v32 = vsel %vm286_vm7, %v595_v54, %v5032_v45  ;;  %v3998_v0 = vadd.f32 %v970_v4, %v966_v51  ;;  %v4000_v12 = vadd.f32 %v971_v53, %v967_v11 }
 0x209   :  { %v4002_v36 = vadd.f32 %v1024_v48, %v1020_v27  ;;  %v4004_v60 = vadd.f32 %v1025_v37, %v1021_v46  ;;  %v5035_v31 = vstv %s5029_s5  ;;  %v598_v25 = vmul.f32 %v596_v16, %v5038_v52  ;;  %v5040_v27 = vld [vmem:[#allocation116_spill] sm:$0xff]  ;;  %s4290_s5 = sld [smem:[#allocation13 + $0x1]] }
 0x20a   :  { %v1192_v1 = vmul.f32 %v5035_v31, %v1138_v20  ;;  %v5037_v43 = vmov %v5035_v31  ;;  %v599_v51 = vmul.f32 %v597_v32, %v5039_v59  ;;  %v4012_v2 = vadd.f32 %v1078_v56, %v1074_v63 }
 0x20b   :  { %v1193_v29 = vmul.f32 %v5037_v43, %v1139_v58  ;;  %v4014_v11 = vadd.f32 %v1079_v55, %v1075_v41  ;;  %v1464_v46 = vadd.f32 %v5040_v27, %v3884_v14  ;;  %v1465_v47 = vadd.f32 %v5042_v42, %v3886_v62 }
 0x20c   :  { %v5044_v4 = vstv %s5033_s16  ;;  %v5046_v63 = vstv %s5034_s1  ;;  %v4028_v37 = vadd.f32 %v1192_v1, %v1188_v3  ;;  %v5048_v14 = vstv %s5036_s14  ;;  %s4296_s16 = sld [smem:[#allocation13 + $0x2]]  ;;  %s4298_s1 = sld [smem:[#allocation13 + $0x3]] }
 0x20d   :  { %v1246_v19 = vmul.f32 %v5044_v4, %v1138_v20  ;;  %v5045_v53 = vmov %v5044_v4  ;;  %v1300_v48 = vmul.f32 %v5046_v63, %v1138_v20  ;;  %v5047_v50 = vmov %v5046_v63  ;;  %s2167_s14 = smov [#allocation15]  }
 0x20e   :  { %v1247_v35 = vmul.f32 %v5045_v53, %v1139_v58  ;;  %v1301_v41 = vmul.f32 %v5047_v50, %v1139_v58  ;;  %v4030_v54 = vadd.f32 %v1193_v29, %v1189_v26  ;;  %v1354_v6 = vmul.f32 %v5048_v14, %v1138_v20 }
 0x20f   :  { %v5049_v56 = vmov %v5048_v14  ;;  %v5050_v62 = vstv %s3312_s30  ;;  %v5052_v32 = vstv %s3314_s21  ;;  %v5054_v42 = vstv %s5041_s23  ;;  %s5063_s21 = sld [smem:[#allocation124_spill]]  ;;  %s5074_s30 = sld [smem:[#allocation32_spill]] }
 0x210   :  { %v1355_v33 = vmul.f32 %v5049_v56, %v1139_v58  ;;  %v648_v55 = vmul.f32 %v5050_v62, %v598_v25  ;;  %v5051_v45 = vmov %v5050_v62  ;;  %v700_v31 = vmul.f32 %v5052_v32, %v598_v25  ;;  %s1810_s23 = sshll.u32 %s2167_s14, 4  ;;  %s1811_s23 = int_to_ptr.vmem [resolvable:$true] %s1810_s23 }
 0x211   :  { %v649_v16 = vmul.f32 %v5051_v45, %v599_v51  ;;  %v5053_v43 = vmov %v5052_v32  ;;  %v752_v4 = vmul.f32 %v5054_v42, %v598_v25  ;;  %v5055_v53 = vmov %v5054_v42  ;;  %v5059_v45 = vld [vmem:[#allocation133_spill] sm:$0xff]  ;;  %v5060_v32 = vld [vmem:[#allocation134_spill] sm:$0xff]  ;;  %v867_v42 = vpop.permute.xlu0 %866  ;;  %p2120_p1 = scmp.lt.s32.totalorder %s1811_s23, %s1811_s23 }
 0x212   :  { %v701_v27 = vmul.f32 %v5053_v43, %v599_v51  ;;  %v753_v63 = vmul.f32 %v5055_v53, %v599_v51  ;;  %v5056_v3 = vstv %s5043_s24  ;;  %v4056_v20 = vadd.f32 %v1246_v19, %v1242_v13  ;;  %v869_v43 = vpop.permute.xlu1 %868  ;;  %v5061_v53 = vld [vmem:[#allocation135_spill] sm:$0xff]  ;;  %v5062_v13 = vld [vmem:[#allocation136_spill] sm:$0xff]  ;;  %v5064_v19 = vld [vmem:[#allocation137_spill] sm:$0xff]  ;;  %s2115_s24 = scalar_lea.vmem %s1811_s23, 256 }
 0x213   :  { %v804_v1 = vmul.f32 %v5056_v3, %v598_v25  ;;  %v5057_v26 = vmov %v5056_v3  ;;  %v4058_v58 = vadd.f32 %v1247_v35, %v1243_v49  ;;  %v4060_v50 = vadd.f32 %v1300_v48, %v1296_v24  ;;  %p2116_p0 = scmp.ne.s32.totalorder %s1811_s23, %s2115_s24  ;;  %p2121_p2 = scmp.lt.s32.totalorder %s2115_s24, %s2115_s24 }
 0x214   :  { %v805_v29 = vmul.f32 %v5057_v26, %v599_v51  ;;  %v4062_v14 = vadd.f32 %v1301_v41, %v1297_v28  ;;  %v4064_v56 = vadd.f32 %v1354_v6, %v1350_v39  ;;  %v4066_v62 = vadd.f32 %v1355_v33, %v1351_v30  ;;  %v5065_v28 = vld [vmem:[#allocation138_spill] sm:$0xff]  ;;  %v5066_v39 = vld [vmem:[#allocation139_spill] sm:$0xff]  ;;  %v5067_v30 = vld [vmem:[#allocation140_spill] sm:$0xff] }
 0x215   :  { %v650_v25 = vadd.f32 %v648_v55, %v5059_v45  ;;  %v651_v51 = vadd.f32 %v649_v16, %v5060_v32  ;;  %v702_v3 = vadd.f32 %v700_v31, %v5061_v53  ;;  %v703_v49 = vadd.f32 %v701_v27, %v5062_v13  ;;  %p2122_p3 = por %p2121_p2, %p2120_p1 }
 0x216   :  { %5058 = vst [vmem:[#allocation91_spill] sm:$0xff] %v4066_v62  ;;  %v754_v24 = vadd.f32 %v752_v4, %v5064_v19  ;;  %v755_v35 = vadd.f32 %v753_v63, %v5065_v28  ;;  %v806_v48 = vadd.f32 %v804_v1, %v5066_v39  ;;  %v807_v41 = vadd.f32 %v805_v29, %v5067_v30  ;;  %v5070_v4 = vld [vmem:[#allocation117_spill] sm:$0xff] }
 0x217   :  { %v1410_v6 = vsel %vm226_vm4, %v3944_v8, %v1409_v44  ;;  %v1411_v33 = vsel %vm226_vm4, %v1409_v44, %v3944_v8  ;;  %v870_v31 = vsel %vm286_vm7, %v867_v42, %v869_v43  ;;  %v871_v27 = vsel %vm286_vm7, %v869_v43, %v867_v42  ;;  %v5071_v8 = vld [vmem:[#allocation126_spill] sm:$0xff]  ;;  %p2123_p4 = pnand %p2122_p3, %p2116_p0 }
 0x218   :  { %v1412_v55 = vmul.f32 %v1410_v6, %v2447_v22  ;;  %v1413_v16 = vmul.f32 %v1411_v33, %v2450_v10  ;;  %v1518_v63 = vadd.f32 %v5070_v4, %v3888_v34  ;;  %v1519_v44 = vadd.f32 %v5071_v8, %v3890_v21  ;;  %v5072_v22 = vld [vmem:[#allocation119_spill] sm:$0xff]  ;;  %v5077_v34 = vld [vmem:[#allocation120_spill] sm:$0xff] }
 0x219   :  { %v1572_v1 = vadd.f32 %v5072_v22, %v3894_v17  ;;  %v5073_v10 = vld [vmem:[#allocation130_spill] sm:$0xff]  ;;  %v5075_v29 = vstv %s5063_s21  ;;  %v872_v43 = vmul.f32 %v870_v31, %v5038_v52  ;;  %v873_v42 = vmul.f32 %v871_v27, %v5039_v59  ;;  %v5078_v21 = vld [vmem:[#allocation131_spill] sm:$0xff] }
 0x21a   :  { %v1573_v26 = vadd.f32 %v5073_v10, %v3896_v40  ;;  %v1468_v45 = vmul.f32 %v5075_v29, %v1412_v55  ;;  %v5076_v32 = vmov %v5075_v29  ;;  %v4104_v13 = vadd.f32 %v5077_v34, %v3898_v7  ;;  %v1141_v34 = vpop.permute.xlu0 %1140 }
 0x21b   :  { %v1469_v53 = vmul.f32 %v5076_v32, %v1413_v16  ;;  %v4108_v17 = vadd.f32 %v5078_v21, %v3900_v61  ;;  %v1197_v40 = vstv %s4052_s26  ;;  %v1251_v19 = vstv %s4054_s2  ;;  %v1143_v32 = vpop.permute.xlu1 %1142 }
 0x21c   :  { %v5079_v28 = vstv %s5068_s29  ;;  %v5081_v33 = vstv %s5069_s28  ;;  %v4120_v4 = vadd.f32 %v1468_v45, %v1464_v46  ;;  %v5085_v8 = vstv %s5074_s30 }
 0x21d   :  { %v1522_v39 = vmul.f32 %v5079_v28, %v1412_v55  ;;  %v5080_v30 = vmov %v5079_v28  ;;  %v1576_v31 = vmul.f32 %v5081_v33, %v1412_v55  ;;  %v5082_v7 = vmov %v5081_v33 }
 0x21e   :  { %v1523_v6 = vmul.f32 %v5080_v30, %v1413_v16  ;;  %v1577_v27 = vmul.f32 %v5082_v7, %v1413_v16  ;;  %5083 = vst [vmem:[#allocation92_spill] sm:$0xff] %v4120_v4  ;;  %v4122_v61 = vadd.f32 %v1469_v53, %v1465_v47  ;;  %v1630_v22 = vmul.f32 %v5085_v8, %v1412_v55 }
 0x21f   :  { %v5086_v10 = vmov %v5085_v8  ;;  %v5087_v21 = vstv %s3600_s10  ;;  %v5089_v7 = vstv %s3602_s9  ;;  %v5091_v47 = vstv %s3618_s12  ;;  %s4156_s9 = sld [smem:[#allocation12 + $0x21]]  ;;  %s4170_s12 = sld [smem:[#allocation12 + $0x8d]] }
 0x220   :  { %5084 = vst [vmem:[#allocation95_spill] sm:$0xff] %v4122_v61  ;;  %v1631_v29 = vmul.f32 %v5086_v10, %v1413_v16  ;;  %v922_v28 = vmul.f32 %v5087_v21, %v872_v43  ;;  %v5088_v30 = vmov %v5087_v21  ;;  %v976_v59 = vmul.f32 %v5089_v7, %v872_v43  ;;  %s4168_s10 = sld [smem:[#allocation12 + $0x69]] }
 0x221   :  { %v923_v33 = vmul.f32 %v5088_v30, %v873_v42  ;;  %v5090_v46 = vmov %v5089_v7  ;;  %v1030_v53 = vmul.f32 %v5091_v47, %v872_v43  ;;  %v5092_v52 = vmov %v5091_v47 }
 0x222   :  { %v977_v45 = vmul.f32 %v5090_v46, %v873_v42  ;;  %v1031_v55 = vmul.f32 %v5092_v52, %v873_v42  ;;  %v5093_v8 = vstv %s3620_s19  ;;  %v924_v4 = vadd.f32 %v922_v28, %v3982_v9  ;;  %s4158_s19 = sld [smem:[#allocation12 + $0x45]] }
 0x223   :  { %v1084_v16 = vmul.f32 %v5093_v8, %v872_v43  ;;  %v5094_v10 = vmov %v5093_v8  ;;  %v925_v62 = vadd.f32 %v923_v33, %v3984_v38  ;;  %v978_v21 = vadd.f32 %v976_v59, %v3998_v0 }
 0x224   :  { %v1085_v61 = vmul.f32 %v5094_v10, %v873_v42  ;;  %v979_v30 = vadd.f32 %v977_v45, %v4000_v12  ;;  %v1032_v7 = vadd.f32 %v1030_v53, %v4002_v36  ;;  %v1033_v46 = vadd.f32 %v1031_v55, %v4004_v60  ;;  %v5095_v10 = vld [vmem:[#allocation91_spill] sm:$0xff] }
 0x225   :  { %v1086_v47 = vadd.f32 %v1084_v16, %v4012_v2  ;;  %v4160_v43 = vadd.f32 %v924_v4, %v650_v25  ;;  %v4162_v9 = vadd.f32 %v925_v62, %v651_v51  ;;  %v4164_v38 = vadd.f32 %v978_v21, %v702_v3  ;;  %v1417_v2 = vpop.permute.xlu1 %1416 }
 0x226   :  { %v1087_v52 = vadd.f32 %v1085_v61, %v4014_v11  ;;  %v4166_v0 = vadd.f32 %v979_v30, %v703_v49  ;;  %v4172_v12 = vadd.f32 %v1032_v7, %v754_v24  ;;  %v4174_v36 = vadd.f32 %v1033_v46, %v755_v35  ;;  %v1415_v11 = vpop.permute.xlu0 %1414 }
 0x227   :  { %v4176_v60 = vadd.f32 %v1086_v47, %v806_v48  ;;  %v1524_v62 = vadd.f32 %v1522_v39, %v1518_v63  ;;  %v1525_v25 = vadd.f32 %v1523_v6, %v1519_v44  ;;  %v1144_v51 = vsel %vm266_vm6, %v1141_v34, %v1143_v32 }
 0x228   :  { %v4178_v59 = vadd.f32 %v1087_v52, %v807_v41  ;;  %v1145_v3 = vsel %vm266_vm6, %v1143_v32, %v1141_v34  ;;  %v1305_v49 = vstv %s4128_s8  ;;  %v1359_v42 = vstv %s4130_s18 }
 0x229   :  { %v1146_v24 = vmul.f32 %v1144_v51, %v5008_v23  ;;  %v1147_v35 = vmul.f32 %v1145_v3, %v5009_v5  ;;  %v4188_v48 = vadd.f32 %v1576_v31, %v1572_v1  ;;  %v4190_v41 = vadd.f32 %v1577_v27, %v1573_v26  ;;  %v1151_v33 = vpop.permute.xlu1 %1150  ;;  %v5096_v51 = vld [vmem:[#allocation92_spill] sm:$0xff] }
 0x22a   :  { %v1418_v63 = vsel %vm246_vm5, %v1415_v11, %v1417_v2  ;;  %v1419_v44 = vsel %vm246_vm5, %v1417_v2, %v1415_v11  ;;  %v4205_v32 = vadd.f32 %v1630_v22, %v4104_v13  ;;  %v4208_v34 = vadd.f32 %v1631_v29, %v4108_v17  ;;  %v1149_v45 = vpop.permute.xlu0 %1148 }
 0x22b   :  { %v1198_v39 = vmul.f32 %v1197_v40, %v1146_v24  ;;  %v1199_v6 = vmul.f32 %v1197_v40, %v1147_v35  ;;  %v1252_v4 = vmul.f32 %v1251_v19, %v1146_v24  ;;  %v1253_v1 = vmul.f32 %v1251_v19, %v1147_v35 }
 0x22c   :  { %v1306_v26 = vmul.f32 %v1305_v49, %v1146_v24  ;;  %v1307_v31 = vmul.f32 %v1305_v49, %v1147_v35  ;;  %v1360_v27 = vmul.f32 %v1359_v42, %v1146_v24  ;;  %v1361_v61 = vmul.f32 %v1359_v42, %v1147_v35  ;;  %v5097_v49 = vld [vmem:[#allocation95_spill] sm:$0xff] }
 0x22d   :  { %v1473_v28 = vstv %s4156_s9  ;;  %v1527_v40 = vstv %s4158_s19  ;;  %v1200_v19 = vadd.f32 %v1198_v39, %v4028_v37  ;;  %v1201_v53 = vadd.f32 %v1199_v6, %v4030_v54  ;;  %v1425_v2 = vpop.permute.xlu1 %1424  ;;  %v5098_v39 = vld [vmem:[#allocation27_spill] sm:$0xff] }
 0x22e   :  { %v1581_v55 = vstv %s4168_s10  ;;  %v1635_v8 = vstv %s4170_s12  ;;  %v1254_v13 = vadd.f32 %v1252_v4, %v4056_v20  ;;  %v1255_v17 = vadd.f32 %v1253_v1, %v4058_v58  ;;  %v1423_v11 = vpop.permute.xlu0 %1422  ;;  %v5099_v4 = vld [vmem:[#allocation28_spill] sm:$0xff] }
 0x22f   :  { %v1420_v22 = vmul.f32 %v1418_v63, %v4990_v15  ;;  %v1421_v29 = vmul.f32 %v1419_v44, %v4991_v57  ;;  %v1308_v37 = vadd.f32 %v1306_v26, %v4060_v50  ;;  %v1309_v54 = vadd.f32 %v1307_v31, %v4062_v14 }
 0x230   :  { %v1362_v16 = vadd.f32 %v1360_v27, %v4064_v56  ;;  %v1363_v21 = vadd.f32 %v1361_v61, %v5095_v10  ;;  %v1203_v47 = vstv %s4196_s25  ;;  %v1257_v58 = vstv %s4198_s27 }
 0x231   :  { %v1474_v30 = vmul.f32 %v1473_v28, %v1420_v22  ;;  %v1475_v7 = vmul.f32 %v1473_v28, %v1421_v29  ;;  %v1528_v46 = vmul.f32 %v1527_v40, %v1420_v22  ;;  %v1529_v20 = vmul.f32 %v1527_v40, %v1421_v29 }
 0x232   :  { %v1152_v15 = vsel %vm286_vm7, %v1149_v45, %v1151_v33  ;;  %v1153_v57 = vsel %vm286_vm7, %v1151_v33, %v1149_v45  ;;  %v1582_v52 = vmul.f32 %v1581_v55, %v1420_v22  ;;  %v1583_v50 = vmul.f32 %v1581_v55, %v1421_v29 }
 0x233   :  { %v1311_v14 = vstv %s4200_s20  ;;  %v1365_v56 = vstv %s4202_s11  ;;  %v4237_v3 = vadd.f32 %v1474_v30, %v5096_v51  ;;  %v4240_v42 = vadd.f32 %v1475_v7, %v5097_v49  ;;  %v1431_v51 = vpop.permute.xlu0 %1430 }
 0x234   :  { %v1636_v24 = vmul.f32 %v1635_v8, %v1420_v22  ;;  %v1637_v35 = vmul.f32 %v1635_v8, %v1421_v29  ;;  %v4242_v63 = vadd.f32 %v1528_v46, %v1524_v62  ;;  %v4244_v44 = vadd.f32 %v1529_v20, %v1525_v25 }
 0x235   :  { %v1154_v6 = vmul.f32 %v1152_v15, %v5098_v39  ;;  %v1155_v1 = vmul.f32 %v1153_v57, %v5099_v4  ;;  %v1479_v26 = vstv %s4216_s13  ;;  %v1533_v31 = vstv %s4218_s0 }
 0x236   :  { %v1426_v27 = vsel %vm266_vm6, %v1423_v11, %v1425_v2  ;;  %v1427_v61 = vsel %vm266_vm6, %v1425_v2, %v1423_v11  ;;  %v1433_v11 = vpop.permute.xlu1 %1432 }
 0x237   :  { %v1204_v62 = vmul.f32 %v1203_v47, %v1154_v6  ;;  %v1205_v28 = vmul.f32 %v1203_v47, %v1155_v1  ;;  %v1258_v25 = vmul.f32 %v1257_v58, %v1154_v6  ;;  %v1259_v40 = vmul.f32 %v1257_v58, %v1155_v1 }
 0x238   :  { %v1312_v33 = vmul.f32 %v1311_v14, %v1154_v6  ;;  %v1313_v45 = vmul.f32 %v1311_v14, %v1155_v1  ;;  %v1366_v55 = vmul.f32 %v1365_v56, %v1154_v6  ;;  %v1367_v8 = vmul.f32 %v1365_v56, %v1155_v1 }
 0x239   :  { %v1206_v22 = vadd.f32 %v1204_v62, %v1200_v19  ;;  %v1207_v29 = vadd.f32 %v1205_v28, %v1201_v53  ;;  %v1260_v10 = vadd.f32 %v1258_v25, %v1254_v13  ;;  %v1261_v30 = vadd.f32 %v1259_v40, %v1255_v17 }
 0x23a   :  { %v1314_v7 = vadd.f32 %v1312_v33, %v1308_v37  ;;  %v1315_v46 = vadd.f32 %v1313_v45, %v1309_v54  ;;  %v1368_v20 = vadd.f32 %v1366_v55, %v1362_v16  ;;  %v1369_v47 = vadd.f32 %v1367_v8, %v1363_v21 }
 0x23b   :  { %v4269_v58 = vadd.f32 %v1206_v22, %v4160_v43  ;;  %v4272_v19 = vadd.f32 %v1207_v29, %v4162_v9  ;;  %v4275_v53 = vadd.f32 %v1260_v10, %v4164_v38  ;;  %v4278_v13 = vadd.f32 %v1261_v30, %v4166_v0 }
 0x23c   :  { %v4281_v17 = vadd.f32 %v1314_v7, %v4172_v12  ;;  %v4284_v37 = vadd.f32 %v1315_v46, %v4174_v36  ;;  %v1370_v54 = vadd.f32 %v1368_v20, %v4176_v60  ;;  %v4288_v43 = vadd.f32 %v1369_v47, %v4178_v59 }
 0x23d   :  { %v1587_v9 = vstv %s4248_s22  ;;  %v1641_v16 = vstv %s4250_s4  ;;  %v1428_v38 = vmul.f32 %v1426_v27, %v5008_v23  ;;  %v1429_v0 = vmul.f32 %v1427_v61, %v5009_v5 }
 0x23e   :  { %v1584_v12 = vadd.f32 %v1582_v52, %v4188_v48  ;;  %v1585_v36 = vadd.f32 %v1583_v50, %v4190_v41  ;;  %v1638_v60 = vadd.f32 %v1636_v24, %v4205_v32  ;;  %v1639_v59 = vadd.f32 %v1637_v35, %v4208_v34 }
 0x23f   :  { %v1480_v21 = vmul.f32 %v1479_v26, %v1428_v38  ;;  %v1481_v23 = vmul.f32 %v1479_v26, %v1429_v0  ;;  %v1534_v5 = vmul.f32 %v1533_v31, %v1428_v38  ;;  %v1535_v15 = vmul.f32 %v1533_v31, %v1429_v0 }
 0x240   :  { %v1588_v57 = vmul.f32 %v1587_v9, %v1428_v38  ;;  %v1589_v14 = vmul.f32 %v1587_v9, %v1429_v0  ;;  %v1642_v56 = vmul.f32 %v1641_v16, %v1428_v38  ;;  %v1643_v2 = vmul.f32 %v1641_v16, %v1429_v0 }
 0x241   :  { %v1485_v48 = vstv %s4258_s17  ;;  %v1539_v52 = vstv %s4260_s7  ;;  %v1593_v41 = vstv %s4262_s6  ;;  %v1647_v32 = vstv %s4264_s15 }
 0x242   :  { %v1482_v34 = vadd.f32 %v1480_v21, %v4237_v3  ;;  %v1483_v50 = vadd.f32 %v1481_v23, %v4240_v42  ;;  %v1536_v49 = vadd.f32 %v1534_v5, %v4242_v63  ;;  %v1655_v24 = vstv %s4266_s3 }
 0x243   :  { %v1537_v35 = vadd.f32 %v1535_v15, %v4244_v44  ;;  %v1590_v6 = vadd.f32 %v1588_v57, %v1584_v12  ;;  %v1591_v1 = vadd.f32 %v1589_v14, %v1585_v36  ;;  %v1434_v26 = vsel %vm286_vm7, %v1431_v51, %v1433_v11 }
 0x244   :  { %v1644_v31 = vadd.f32 %v1642_v56, %v1638_v60  ;;  %v1645_v27 = vadd.f32 %v1643_v2, %v1639_v59  ;;  %v1435_v61 = vsel %vm286_vm7, %v1433_v11, %v1431_v51  ;;  %v1436_v62 = vmul.f32 %v1434_v26, %v5098_v39 }
 0x245   :  { %v1695_v3 = vstv %s4290_s5  ;;  %v1732_v28 = vstv %s4296_s16  ;;  %v1769_v42 = vstv %s4298_s1  ;;  %v1437_v63 = vmul.f32 %v1435_v61, %v5099_v4 }
 0x246   :  { %v1486_v25 = vmul.f32 %v1485_v48, %v1436_v62  ;;  %v1540_v40 = vmul.f32 %v1539_v52, %v1436_v62  ;;  %v1594_v44 = vmul.f32 %v1593_v41, %v1436_v62  ;;  %v1648_v33 = vmul.f32 %v1647_v32, %v1436_v62 }
 0x247   :  { %v1487_v45 = vmul.f32 %v1485_v48, %v1437_v63  ;;  %v1541_v55 = vmul.f32 %v1539_v52, %v1437_v63  ;;  %v1595_v8 = vmul.f32 %v1593_v41, %v1437_v63  ;;  %v1649_v22 = vmul.f32 %v1647_v32, %v1437_v63  ;;  %v5100_v48 = vld [vmem:[#allocation70_spill] sm:$0xff] }
 0x248   :  { %v1488_v29 = vadd.f32 %v1486_v25, %v1482_v34  ;;  %v1542_v10 = vadd.f32 %v1540_v40, %v1536_v49  ;;  %v1596_v30 = vadd.f32 %v1594_v44, %v1590_v6  ;;  %v1650_v18 = vadd.f32 %v1648_v33, %v1644_v31 }
 0x249   :  { %v1489_v7 = vadd.f32 %v1487_v45, %v1483_v50  ;;  %v1543_v46 = vadd.f32 %v1541_v55, %v1537_v35  ;;  %v1597_v39 = vadd.f32 %v1595_v8, %v1591_v1  ;;  %v1651_v20 = vadd.f32 %v1649_v22, %v1645_v27 }
 0x24a   :  { %v1490_v47 = vadd.f32 %v1488_v29, %v4269_v58  ;;  %v1544_v4 = vadd.f32 %v1542_v10, %v4275_v53  ;;  %v1598_v9 = vadd.f32 %v1596_v30, %v4281_v17  ;;  %v1652_v16 = vadd.f32 %v1650_v18, %v1370_v54 }
 0x24b   :  { %v1491_v38 = vadd.f32 %v1489_v7, %v4272_v19  ;;  %v1545_v0 = vadd.f32 %v1543_v46, %v4278_v13  ;;  %v1599_v12 = vadd.f32 %v1597_v39, %v4284_v37  ;;  %v1653_v36 = vadd.f32 %v1651_v20, %v4288_v43 }
 0x24c   :  { %v1656_v60 = vadd.f32 %v1655_v24, %v1490_v47  ;;  %v1696_v59 = vadd.f32 %v1695_v3, %v1544_v4  ;;  %v1733_v21 = vadd.f32 %v1732_v28, %v1598_v9  ;;  %v1770_v23 = vadd.f32 %v1769_v42, %v1652_v16 }
 0x24d   :  { %v1657_v5 = vadd.f32 %v1655_v24, %v1491_v38  ;;  %v1697_v15 = vadd.f32 %v1695_v3, %v1545_v0  ;;  %v1734_v58 = vadd.f32 %v1732_v28, %v1599_v12  ;;  %v1771_v57 = vadd.f32 %v1769_v42, %v1653_v36 }
 0x24e   :  { %v1658_v53 = vmax.f32 %v1656_v60, 0.0  ;;  %v1698_v14 = vmax.f32 %v1696_v59, 0.0  ;;  %v1735_v17 = vmax.f32 %v1733_v21, 0.0  ;;  %v1772_v54 = vmax.f32 %v1770_v23, 0.0 }
 0x24f   :  { %v1659_v56 = vmax.f32 %v1657_v5, 0.0  ;;  %v1699_v19 = vmax.f32 %v1697_v15, 0.0  ;;  %v1736_v2 = vmax.f32 %v1734_v58, 0.0  ;;  %v1773_v13 = vmax.f32 %v1771_v57, 0.0 }
 0x250   :  { %v5101_v50 = vlaneseq }
 0x251   :  { %v1662_v11 = vcombine.low %v1658_v53, %v1659_v56  ;;  %v1702_v37 = vcombine.low %v1698_v14, %v1699_v19  ;;  %v1739_v51 = vcombine.low %v1735_v17, %v1736_v2  ;;  %v1776_v43 = vcombine.low %v1772_v54, %v1773_v13 }
 0x252   :  { %vm4334_vm8 = vcmp.lt.s32.totalorder %v5101_v50, 256 }
 0x253   :  { %v1669_v52 = vrot.slane %v1662_v11, %v5100_v48  ;;  %v1709_v41 = vrot.slane %v1702_v37, %v5100_v48  ;;  %v1746_v32 = vrot.slane %v1739_v51, %v5100_v48  ;;  %v1783_v34 = vrot.slane %v1776_v43, %v5100_v48 }
 0x255   :  { %v1670_v24 = vcombine.high %v1669_v52, %v1669_v52  ;;  %v1677_v35 = vrot.slane %v1669_v52, %v5100_v48  ;;  %v1710_v6 = vcombine.high %v1709_v41, %v1709_v41  ;;  %v1717_v1 = vrot.slane %v1709_v41, %v5100_v48 }
 0x256   :  { %v1747_v26 = vcombine.high %v1746_v32, %v1746_v32  ;;  %v1754_v31 = vrot.slane %v1746_v32, %v5100_v48  ;;  %v1784_v27 = vcombine.high %v1783_v34, %v1783_v34  ;;  %v1791_v61 = vrot.slane %v1783_v34, %v5100_v48 }
 0x257   :  { %v1684_v62 = vrot.slane %v1670_v24, %v5100_v48  ;;  %1691 = vst.msk [vmem:[#allocation15] ss:$4 sm:$0x3] %vm4334_vm8, %v1677_v35  ;;  %v1724_v3 = vrot.slane %v1710_v6, %v5100_v48  ;;  %1728 = vst.msk [vmem:[#allocation15 + $0x1] ss:$4 sm:$0x3] %vm4334_vm8, %v1717_v1 }
 0x258   :  { %v1761_v28 = vrot.slane %v1747_v26, %v5100_v48  ;;  %1765 = vst.msk [vmem:[#allocation15 + $0x2] ss:$4 sm:$0x3] %vm4334_vm8, %v1754_v31  ;;  %v1798_v42 = vrot.slane %v1784_v27, %v5100_v48  ;;  %1802 = vst.msk [vmem:[#allocation15 + $0x3] ss:$4 sm:$0x3] %vm4334_vm8, %v1791_v61 }
 0x259   :  { %1693 = vst.msk [vmem:[#allocation15 + $0x8] ss:$4 sm:$0x3] %vm4334_vm8, %v1684_v62  ;;  %1730 = vst.msk [vmem:[#allocation15 + $0x9] ss:$4 sm:$0x3] %vm4334_vm8, %v1724_v3 }
 0x25a   :  { %1767 = vst.msk [vmem:[#allocation15 + $0xa] ss:$4 sm:$0x3] %vm4334_vm8, %v1761_v28  ;;  %1804 = vst.msk [vmem:[#allocation15 + $0xb] ss:$4 sm:$0x3] %vm4334_vm8, %v1798_v42 }
 0x25b   :  { %2126 = shalt.err (!%p2123_p4)
}
 0x25c   :  { %s5104_s21 = sld [smem:[#allocation143_spill]] }
 0x262   :  { %s2127_s29 = scalar_lea.hbm %s5104_s21, 256 }
 0x263   :  { %p2128_p5 = scmp.ne.s32.totalorder %s5104_s21, %s2127_s29  ;;  %p2131_p6 = scmp.lt.u32.totalorder %s2127_s29, %s5104_s21 }
 0x265   :  { %p2133_p7 = pnand %p2131_p6, %p2128_p5 }
 0x267   :  { %2136 = shalt.err (!%p2133_p7)
}
 0x268   :  { %s2168_s9 = smov 128   ;;  %s2169_s19 = smov 8  }
 0x269   :  { %1816 = dma.vmem_to_hbm [thread:$0]  %s1811_s23, 256, %s5104_s21, [#allocation5], %s2168_s9, %s2168_s9, %s2169_s19  }
 0x26a   :  { %2147 = dma.done.wait [#allocation5], 256  }
 0x26b   :  { %2148 = vsyncadd [#allocation5], 4294967040 }
 0x26c   :  { %1820 = vsyncpa [#allocation4], 1 }
 0x26d   :  { %1821 = vsyncpa [#allocation8], 1 }
 0x26e   :  { %1822 = vsyncpa [#allocation5], 1 }
 0x26f   :  { %1823 = vsyncpa [#allocation6], 1 }
 0x270   :  { %1824 = vsyncpa [#allocation11], 1 }
 0x271   :  { %1825 = vsyncpa [#allocation14], 1 }

</bundles_post_ra>
